<compile_context>
chip_gen: v7x
topology: tpu7x:2x2x1
jax: 0.10.0
libtpu: 0.0.40
codegen_flags: <defaults>
</compile_context>

<pallas_src>
import functools
import math

import jax
import jax.numpy as jnp
from jax.experimental import pallas as pl
from jax.experimental.pallas import tpu as pltpu


def _layer_norm(x, a, b, n_features, eps=1e-6):
    # x: (M, D); a, b: (1, D).  Matches torch: unbiased std, eps added to std.
    mean = jnp.mean(x, axis=-1, keepdims=True)
    var = jnp.sum((x - mean) ** 2, axis=-1, keepdims=True) / (n_features - 1)
    std = jnp.sqrt(var)
    return a * (x - mean) / (std + eps) + b


def encoder_layer_kernel(
    x_ref, mask_ref,
    a1_ref, b1_ref,
    wq_ref, bq_ref, wk_ref, bk_ref, wv_ref, bv_ref, wo_ref, bo_ref,
    a2_ref, b2_ref,
    w1_ref, bf1_ref, w2_ref, bf2_ref,
    out_ref,
    *, n_heads, matmul_dtype, approx_recip,
):
    x3 = x_ref[...]                       # (Bb, S, D)
    Bb, S, D = x3.shape
    dk = D // n_heads
    scale = 1.0 / math.sqrt(dk)

    def mm(a, b):                         # 2-D matmul, f32 accumulation on MXU
        return jnp.dot(a.astype(matmul_dtype), b.astype(matmul_dtype),
                       preferred_element_type=jnp.float32)

    def bmm(eq, a, b):                    # batched matmul (leading batch dim)
        return jnp.einsum(eq, a.astype(matmul_dtype), b.astype(matmul_dtype),
                          preferred_element_type=jnp.float32)

    # Fold the batch block into the MXU row dimension for all projections.
    x2 = x3.reshape(Bb * S, D)

    # ---- Sublayer 0: self-attention on LN1(x), residual add ----
    xn = _layer_norm(x2, a1_ref[...], b1_ref[...], D)

    q2 = (mm(xn, wq_ref[...]) + bq_ref[...]) * scale   # scale folded in once
    k2 = mm(xn, wk_ref[...]) + bk_ref[...]
    v2 = mm(xn, wv_ref[...]) + bv_ref[...]

    q3 = q2.reshape(Bb, S, D)
    k3 = k2.reshape(Bb, S, D)
    v3 = v2.reshape(Bb, S, D)

    # Hoisted mask: compare + broadcast done once per block (not per head).
    keep = jnp.broadcast_to(mask_ref[...] != 0.0, (Bb, S, S))

    attn2 = jnp.zeros((Bb * S, D), jnp.float32)
    for h in range(n_heads):
        qh = q3[:, :, h * dk:(h + 1) * dk]                        # (Bb, S, dk)
        kh = k3[:, :, h * dk:(h + 1) * dk]
        vh = v3[:, :, h * dk:(h + 1) * dk]
        s = bmm('bqd,bkd->bqk', qh, kh)                           # (Bb, S, S)
        s = jnp.where(keep, s, -1e9)
        m = jnp.max(s, axis=-1, keepdims=True)
        p = jnp.exp(s - m)
        denom = jnp.sum(p, axis=-1, keepdims=True)
        if approx_recip:
            p = p * pl.reciprocal(denom, approx=True)             # EUP slot
        else:
            p = p / denom
        ctx = bmm('bqk,bkd->bqd', p, vh)                          # (Bb, S, dk)
        # Output projection folded per head: no concat of head outputs.
        attn2 = attn2 + mm(ctx.reshape(Bb * S, dk), wo_ref[h])    # (Bb*S, D)
    attn2 = attn2 + bo_ref[...]

    x1 = x2 + attn2

    # ---- Sublayer 1: positionwise feed-forward on LN2(x1), residual add ----
    xn2 = _layer_norm(x1, a2_ref[...], b2_ref[...], D)
    hdn = jnp.maximum(mm(xn2, w1_ref[...]) + bf1_ref[...], 0.0)
    ff = mm(hdn, w2_ref[...]) + bf2_ref[...]

    out_ref[...] = (x1 + ff).reshape(Bb, S, D)


def _pick_block_b(B, S, target_rows=128):
    """Largest divisor of B such that block_b*S is around the MXU row size."""
    bb = max(1, min(B, target_rows // max(S, 1)))
    while B % bb != 0:
        bb -= 1
    return bb


def encoder_layer_forward(x, mask, params, n_heads, *, block_b=None,
                          matmul_dtype=jnp.float32, approx_recip=True):
    B, S, D = x.shape
    Dff = params["w1"].shape[1]
    assert D % n_heads == 0
    dk = D // n_heads

    if block_b is None:
        block_b = _pick_block_b(B, S)
    assert B % block_b == 0
    n_blocks = B // block_b

    # Wo pre-split per head so the kernel indexes heads on the leading axis.
    wo3 = params["wo"].reshape(n_heads, dk, D)

    full = lambda shape: pl.BlockSpec(shape, lambda b: (0,) * len(shape))

    kernel = functools.partial(
        encoder_layer_kernel, n_heads=n_heads,
        matmul_dtype=matmul_dtype, approx_recip=approx_recip)

    # Advisory cost estimate so XLA schedules surrounding ops sensibly.
    flops = 2 * B * S * (4 * D * D + 2 * D * Dff + 2 * S * D)
    transcendentals = B * n_heads * S * S            # softmax exp
    param_bytes = sum(int(v.size) * v.dtype.itemsize for v in params.values())
    io_bytes = int(x.size) * x.dtype.itemsize + int(mask.size) * mask.dtype.itemsize \
        + B * S * D * 4
    cost = pl.CostEstimate(flops=int(flops), transcendentals=int(transcendentals),
                           bytes_accessed=int(io_bytes + param_bytes))

    return pl.pallas_call(
        kernel,
        out_shape=jax.ShapeDtypeStruct((B, S, D), jnp.float32),
        grid_spec=pltpu.PrefetchScalarGridSpec(
            num_scalar_prefetch=0,
            grid=(n_blocks,),
            in_specs=[
                pl.BlockSpec((block_b, S, D), lambda b: (b, 0, 0)),   # x
                pl.BlockSpec((block_b, 1, S), lambda b: (b, 0, 0)),   # mask
                full((1, D)), full((1, D)),                           # LN1 a, b
                full((D, D)), full((1, D)),                           # Wq, bq
                full((D, D)), full((1, D)),                           # Wk, bk
                full((D, D)), full((1, D)),                           # Wv, bv
                full((n_heads, dk, D)), full((1, D)),                 # Wo (per-head), bo
                full((1, D)), full((1, D)),                           # LN2 a, b
                full((D, Dff)), full((1, Dff)),                       # W1, b1
                full((Dff, D)), full((1, D)),                         # W2, b2
            ],
            out_specs=pl.BlockSpec((block_b, S, D), lambda b: (b, 0, 0)),
        ),
        compiler_params=pltpu.CompilerParams(
            dimension_semantics=("parallel",),
            vmem_limit_bytes=64 * 1024 * 1024,   # explicit scoped-VMEM budget
        ),
        cost_estimate=cost,
    )(
        x, mask,
        params["a1"], params["b1"],
        params["wq"], params["bq"], params["wk"], params["bk"],
        params["wv"], params["bv"], wo3, params["bo"],
        params["a2"], params["b2"],
        params["w1"], params["bf1"], params["w2"], params["bf2"],
    )


def _reference(x, mask, params, n_heads):
    """Pure-jnp reference of the same forward, for validation."""
    B, S, D = x.shape
    dk = D // n_heads

    def ln(z, a, b, eps=1e-6):
        mean = jnp.mean(z, axis=-1, keepdims=True)
        var = jnp.sum((z - mean) ** 2, axis=-1, keepdims=True) / (D - 1)
        return a * (z - mean) / (jnp.sqrt(var) + eps) + b

    xn = ln(x, params["a1"], params["b1"])
    q = xn @ params["wq"] + params["bq"]
    k = xn @ params["wk"] + params["bk"]
    v = xn @ params["wv"] + params["bv"]
    q = q.reshape(B, S, n_heads, dk).transpose(0, 2, 1, 3)
    k = k.reshape(B, S, n_heads, dk).transpose(0, 2, 1, 3)
    v = v.reshape(B, S, n_heads, dk).transpose(0, 2, 1, 3)
    scores = jnp.einsum("bhqd,bhkd->bhqk", q, k) / math.sqrt(dk)
    scores = jnp.where(mask[:, None, :, :] == 0.0, -1e9, scores)
    p = jax.nn.softmax(scores, axis=-1)
    attn = jnp.einsum("bhqk,bhkd->bhqd", p, v).transpose(0, 2, 1, 3).reshape(B, S, D)
    attn = attn @ params["wo"] + params["bo"]
    x1 = x + attn
    xn2 = ln(x1, params["a2"], params["b2"])
    ff = jnp.maximum(xn2 @ params["w1"] + params["bf1"], 0.0) @ params["w2"] + params["bf2"]
    return x1 + ff


if __name__ == "__main__":
    # Small, but B*S = 256 rows -> MXU-shaped tiles and a 2-step parallel grid.
    B, S, D, H, Dff = 32, 8, 32, 4, 64

    key = jax.random.PRNGKey(0)
    keys = jax.random.split(key, 8)

    def init(k, shape, fan_in):
        return jax.random.normal(k, shape, jnp.float32) / math.sqrt(fan_in)

    params = {
        "a1": jnp.ones((1, D), jnp.float32),
        "b1": jnp.zeros((1, D), jnp.float32),
        "wq": init(keys[0], (D, D), D),  "bq": jnp.zeros((1, D), jnp.float32),
        "wk": init(keys[1], (D, D), D),  "bk": jnp.zeros((1, D), jnp.float32),
        "wv": init(keys[2], (D, D), D),  "bv": jnp.zeros((1, D), jnp.float32),
        "wo": init(keys[3], (D, D), D),  "bo": jnp.zeros((1, D), jnp.float32),
        "a2": jnp.ones((1, D), jnp.float32),
        "b2": jnp.zeros((1, D), jnp.float32),
        "w1": init(keys[4], (D, Dff), D),   "bf1": jnp.zeros((1, Dff), jnp.float32),
        "w2": init(keys[5], (Dff, D), Dff), "bf2": jnp.zeros((1, D), jnp.float32),
    }

    x = jax.random.normal(keys[6], (B, S, D), jnp.float32)
    # mask: per-sequence right-padding of 0..3 positions (never fully masked)
    lengths = S - (jnp.arange(B) % 4)
    mask = (jnp.arange(S)[None, :] < lengths[:, None]).astype(jnp.float32)[:, None, :]

    # Optimized path (approximate EUP reciprocal in the softmax normalization).
    out = encoder_layer_forward(x, mask, params, H)
    out = jax.block_until_ready(out)

    # Exact-divide path, to verify bit-faithful semantics at tight tolerance.
    out_exact = encoder_layer_forward(x, mask, params, H, approx_recip=False)
    out_exact = jax.block_until_ready(out_exact)

    ref = _reference(x, mask, params, H)
    assert out.shape == (B, S, D)
    assert jnp.allclose(out_exact, ref, atol=1e-4, rtol=1e-4), "mismatch vs reference"
    # Looser tolerance for the approx-reciprocal softmax normalization
    # (perf-review item); the exact path above already matches at 1e-4.
    assert jnp.allclose(out, ref, atol=1e-2, rtol=1e-2), "approx path mismatch"

    print("KERNEL_OK")
</pallas_src>

<mosaic_0001>
module attributes {stable_mosaic.version = 11 : i64} {
  func.func @encoder_layer_kernel(%arg0: i32, %arg1: memref<16x8x32xf32, #tpu.memory_space<vmem>>, %arg2: memref<16x1x8xf32, #tpu.memory_space<vmem>>, %arg3: memref<1x32xf32, #tpu.memory_space<vmem>>, %arg4: memref<1x32xf32, #tpu.memory_space<vmem>>, %arg5: memref<32x32xf32, #tpu.memory_space<vmem>>, %arg6: memref<1x32xf32, #tpu.memory_space<vmem>>, %arg7: memref<32x32xf32, #tpu.memory_space<vmem>>, %arg8: memref<1x32xf32, #tpu.memory_space<vmem>>, %arg9: memref<32x32xf32, #tpu.memory_space<vmem>>, %arg10: memref<1x32xf32, #tpu.memory_space<vmem>>, %arg11: memref<4x8x32xf32, #tpu.memory_space<vmem>>, %arg12: memref<1x32xf32, #tpu.memory_space<vmem>>, %arg13: memref<1x32xf32, #tpu.memory_space<vmem>>, %arg14: memref<1x32xf32, #tpu.memory_space<vmem>>, %arg15: memref<32x64xf32, #tpu.memory_space<vmem>>, %arg16: memref<1x64xf32, #tpu.memory_space<vmem>>, %arg17: memref<64x32xf32, #tpu.memory_space<vmem>>, %arg18: memref<1x32xf32, #tpu.memory_space<vmem>>, %arg19: memref<16x8x32xf32, #tpu.memory_space<vmem>>) attributes {dimension_semantics = [#tpu.dimension_semantics<parallel>], iteration_bounds = array<i64: 2>, scalar_prefetch = 0 : i64, scratch_operands = 0 : i64, tpu.core_type = #tpu.core_type<tc>, window_params = [{transform_indices = @transform_0, window_bounds = array<i64: 16, 8, 32>}, {transform_indices = @transform_1, window_bounds = array<i64: 16, 1, 8>}, {pipeline_mode = #tpu.pipeline_mode<synchronous>, transform_indices = @transform_2, window_bounds = array<i64: 1, 32>}, {pipeline_mode = #tpu.pipeline_mode<synchronous>, transform_indices = @transform_3, window_bounds = array<i64: 1, 32>}, {pipeline_mode = #tpu.pipeline_mode<synchronous>, transform_indices = @transform_4, window_bounds = array<i64: 32, 32>}, {pipeline_mode = #tpu.pipeline_mode<synchronous>, transform_indices = @transform_5, window_bounds = array<i64: 1, 32>}, {pipeline_mode = #tpu.pipeline_mode<synchronous>, transform_indices = @transform_6, window_bounds = array<i64: 32, 32>}, {pipeline_mode = #tpu.pipeline_mode<synchronous>, transform_indices = @transform_7, window_bounds = array<i64: 1, 32>}, {pipeline_mode = #tpu.pipeline_mode<synchronous>, transform_indices = @transform_8, window_bounds = array<i64: 32, 32>}, {pipeline_mode = #tpu.pipeline_mode<synchronous>, transform_indices = @transform_9, window_bounds = array<i64: 1, 32>}, {pipeline_mode = #tpu.pipeline_mode<synchronous>, transform_indices = @transform_10, window_bounds = array<i64: 4, 8, 32>}, {pipeline_mode = #tpu.pipeline_mode<synchronous>, transform_indices = @transform_11, window_bounds = array<i64: 1, 32>}, {pipeline_mode = #tpu.pipeline_mode<synchronous>, transform_indices = @transform_12, window_bounds = array<i64: 1, 32>}, {pipeline_mode = #tpu.pipeline_mode<synchronous>, transform_indices = @transform_13, window_bounds = array<i64: 1, 32>}, {pipeline_mode = #tpu.pipeline_mode<synchronous>, transform_indices = @transform_14, window_bounds = array<i64: 32, 64>}, {pipeline_mode = #tpu.pipeline_mode<synchronous>, transform_indices = @transform_15, window_bounds = array<i64: 1, 64>}, {pipeline_mode = #tpu.pipeline_mode<synchronous>, transform_indices = @transform_16, window_bounds = array<i64: 64, 32>}, {pipeline_mode = #tpu.pipeline_mode<synchronous>, transform_indices = @transform_17, window_bounds = array<i64: 1, 32>}, {transform_indices = @transform_18, window_bounds = array<i64: 16, 8, 32>}]} {
    %c0 = arith.constant 0 : index
    %c0_0 = arith.constant 0 : index
    %c0_1 = arith.constant 0 : index
    %0 = vector.load %arg1[%c0, %c0_0, %c0_1] : memref<16x8x32xf32, #tpu.memory_space<vmem>>, vector<16x8x32xf32>
    %1 = vector.shape_cast %0 : vector<16x8x32xf32> to vector<128x32xf32>
    %c0_2 = arith.constant 0 : index
    %c0_3 = arith.constant 0 : index
    %2 = vector.load %arg3[%c0_2, %c0_3] : memref<1x32xf32, #tpu.memory_space<vmem>>, vector<1x32xf32>
    %c0_4 = arith.constant 0 : index
    %c0_5 = arith.constant 0 : index
    %3 = vector.load %arg4[%c0_4, %c0_5] : memref<1x32xf32, #tpu.memory_space<vmem>>, vector<1x32xf32>
    %cst = arith.constant dense<0.000000e+00> : vector<128xf32>
    %4 = vector.multi_reduction <add>, %1, %cst [1] : vector<128x32xf32> to vector<128xf32>
    %5 = vector.shape_cast %4 : vector<128xf32> to vector<128x1xf32>
    %cst_6 = arith.constant 3.200000e+01 : f32
    %6 = vector.broadcast %cst_6 : f32 to vector<128x1xf32>
    %7 = arith.divf %5, %6 : vector<128x1xf32>
    %8 = vector.broadcast %7 : vector<128x1xf32> to vector<128x32xf32>
    %9 = arith.subf %1, %8 : vector<128x32xf32>
    %10 = arith.mulf %9, %9 : vector<128x32xf32>
    %cst_7 = arith.constant dense<0.000000e+00> : vector<128xf32>
    %11 = vector.multi_reduction <add>, %10, %cst_7 [1] : vector<128x32xf32> to vector<128xf32>
    %12 = vector.shape_cast %11 : vector<128xf32> to vector<128x1xf32>
    %cst_8 = arith.constant 3.100000e+01 : f32
    %13 = vector.broadcast %cst_8 : f32 to vector<128x1xf32>
    %14 = arith.divf %12, %13 : vector<128x1xf32>
    %15 = math.sqrt %14 : vector<128x1xf32>
    %16 = vector.broadcast %7 : vector<128x1xf32> to vector<128x32xf32>
    %17 = arith.subf %1, %16 : vector<128x32xf32>
    %18 = vector.broadcast %2 : vector<1x32xf32> to vector<128x32xf32>
    %19 = arith.mulf %18, %17 : vector<128x32xf32>
    %cst_9 = arith.constant 9.99999997E-7 : f32
    %20 = vector.broadcast %cst_9 : f32 to vector<128x1xf32>
    %21 = arith.addf %15, %20 : vector<128x1xf32>
    %22 = vector.broadcast %21 : vector<128x1xf32> to vector<128x32xf32>
    %23 = arith.divf %19, %22 : vector<128x32xf32>
    %24 = vector.broadcast %3 : vector<1x32xf32> to vector<128x32xf32>
    %25 = arith.addf %23, %24 : vector<128x32xf32>
    %c0_10 = arith.constant 0 : index
    %c0_11 = arith.constant 0 : index
    %26 = vector.load %arg5[%c0_10, %c0_11] : memref<32x32xf32, #tpu.memory_space<vmem>>, vector<32x32xf32>
    %cst_12 = arith.constant dense<0.000000e+00> : vector<128x32xf32>
    %27 = tpu.matmul %25, %26, %cst_12 {dimension_numbers = #tpu.dot_dimension_numbers<[1], [0], [0], [1], [0, 0, 1, 1], [], []>} : vector<128x32xf32>, vector<32x32xf32>, vector<128x32xf32> -> vector<128x32xf32>
    %c0_13 = arith.constant 0 : index
    %c0_14 = arith.constant 0 : index
    %28 = vector.load %arg6[%c0_13, %c0_14] : memref<1x32xf32, #tpu.memory_space<vmem>>, vector<1x32xf32>
    %29 = vector.broadcast %28 : vector<1x32xf32> to vector<128x32xf32>
    %30 = arith.addf %27, %29 : vector<128x32xf32>
    %cst_15 = arith.constant 0.353553385 : f32
    %31 = vector.broadcast %cst_15 : f32 to vector<128x32xf32>
    %32 = arith.mulf %30, %31 : vector<128x32xf32>
    %c0_16 = arith.constant 0 : index
    %c0_17 = arith.constant 0 : index
    %33 = vector.load %arg7[%c0_16, %c0_17] : memref<32x32xf32, #tpu.memory_space<vmem>>, vector<32x32xf32>
    %cst_18 = arith.constant dense<0.000000e+00> : vector<128x32xf32>
    %34 = tpu.matmul %25, %33, %cst_18 {dimension_numbers = #tpu.dot_dimension_numbers<[1], [0], [0], [1], [0, 0, 1, 1], [], []>} : vector<128x32xf32>, vector<32x32xf32>, vector<128x32xf32> -> vector<128x32xf32>
    %c0_19 = arith.constant 0 : index
    %c0_20 = arith.constant 0 : index
    %35 = vector.load %arg8[%c0_19, %c0_20] : memref<1x32xf32, #tpu.memory_space<vmem>>, vector<1x32xf32>
    %36 = vector.broadcast %35 : vector<1x32xf32> to vector<128x32xf32>
    %37 = arith.addf %34, %36 : vector<128x32xf32>
    %c0_21 = arith.constant 0 : index
    %c0_22 = arith.constant 0 : index
    %38 = vector.load %arg9[%c0_21, %c0_22] : memref<32x32xf32, #tpu.memory_space<vmem>>, vector<32x32xf32>
    %cst_23 = arith.constant dense<0.000000e+00> : vector<128x32xf32>
    %39 = tpu.matmul %25, %38, %cst_23 {dimension_numbers = #tpu.dot_dimension_numbers<[1], [0], [0], [1], [0, 0, 1, 1], [], []>} : vector<128x32xf32>, vector<32x32xf32>, vector<128x32xf32> -> vector<128x32xf32>
    %c0_24 = arith.constant 0 : index
    %c0_25 = arith.constant 0 : index
    %40 = vector.load %arg10[%c0_24, %c0_25] : memref<1x32xf32, #tpu.memory_space<vmem>>, vector<1x32xf32>
    %41 = vector.broadcast %40 : vector<1x32xf32> to vector<128x32xf32>
    %42 = arith.addf %39, %41 : vector<128x32xf32>
    %43 = vector.shape_cast %32 : vector<128x32xf32> to vector<16x8x32xf32>
    %44 = vector.shape_cast %37 : vector<128x32xf32> to vector<16x8x32xf32>
    %45 = vector.shape_cast %42 : vector<128x32xf32> to vector<16x8x32xf32>
    %c0_26 = arith.constant 0 : index
    %c0_27 = arith.constant 0 : index
    %c0_28 = arith.constant 0 : index
    %46 = vector.load %arg2[%c0_26, %c0_27, %c0_28] : memref<16x1x8xf32, #tpu.memory_space<vmem>>, vector<16x1x8xf32>
    %cst_29 = arith.constant 0.000000e+00 : f32
    %47 = vector.broadcast %cst_29 : f32 to vector<16x1x8xf32>
    %48 = arith.cmpf one, %46, %47 : vector<16x1x8xf32>
    %49 = vector.shape_cast %48 : vector<16x1x8xi1> to vector<16x1x8xi1>
    %50 = vector.broadcast %49 : vector<16x1x8xi1> to vector<16x8x8xi1>
    %cst_30 = arith.constant 0.000000e+00 : f32
    %51 = vector.broadcast %cst_30 : f32 to vector<128x32xf32>
    %52 = vector.extract_strided_slice %43 {offsets = [0, 0, 0], sizes = [16, 8, 8], strides = [1, 1, 1]} : vector<16x8x32xf32> to vector<16x8x8xf32>
    %53 = vector.extract_strided_slice %44 {offsets = [0, 0, 0], sizes = [16, 8, 8], strides = [1, 1, 1]} : vector<16x8x32xf32> to vector<16x8x8xf32>
    %54 = vector.extract_strided_slice %45 {offsets = [0, 0, 0], sizes = [16, 8, 8], strides = [1, 1, 1]} : vector<16x8x32xf32> to vector<16x8x8xf32>
    "tpu.trace_start"() <{level = 10 : i32, message = "bqd,bkd->bqk"}> : () -> ()
    %cst_31 = arith.constant dense<0.000000e+00> : vector<16x8x8xf32>
    %55 = tpu.matmul %52, %53, %cst_31 {dimension_numbers = #tpu.dot_dimension_numbers<[2], [2], [1], [1], [0, 0, 0, 1, 1, 1], [0], [0]>} : vector<16x8x8xf32>, vector<16x8x8xf32>, vector<16x8x8xf32> -> vector<16x8x8xf32>
    %cst_32 = arith.constant -1.000000e+09 : f32
    "tpu.trace_stop"() : () -> ()
    %56 = vector.broadcast %cst_32 : f32 to vector<16x8x8xf32>
    %57 = arith.select %50, %55, %56 : vector<16x8x8xi1>, vector<16x8x8xf32>
    %cst_33 = arith.constant dense<0xFF800000> : vector<16x8xf32>
    %58 = vector.multi_reduction <maximumf>, %57, %cst_33 [2] : vector<16x8x8xf32> to vector<16x8xf32>
    %59 = vector.shape_cast %58 : vector<16x8xf32> to vector<16x8x1xf32>
    %60 = vector.broadcast %59 : vector<16x8x1xf32> to vector<16x8x8xf32>
    %61 = arith.subf %57, %60 : vector<16x8x8xf32>
    %62 = math.exp %61 : vector<16x8x8xf32>
    %cst_34 = arith.constant dense<0.000000e+00> : vector<16x8xf32>
    %63 = vector.multi_reduction <add>, %62, %cst_34 [2] : vector<16x8x8xf32> to vector<16x8xf32>
    %64 = vector.shape_cast %63 : vector<16x8xf32> to vector<16x8x1xf32>
    %65 = tpu.reciprocal %64 {approx = true} : vector<16x8x1xf32> -> vector<16x8x1xf32>
    %66 = vector.broadcast %65 : vector<16x8x1xf32> to vector<16x8x8xf32>
    %67 = arith.mulf %62, %66 : vector<16x8x8xf32>
    "tpu.trace_start"() <{level = 10 : i32, message = "bqk,bkd->bqd"}> : () -> ()
    %cst_35 = arith.constant dense<0.000000e+00> : vector<16x8x8xf32>
    %68 = tpu.matmul %67, %54, %cst_35 {dimension_numbers = #tpu.dot_dimension_numbers<[2], [1], [1], [2], [0, 0, 0, 1, 1, 2], [0], [0]>} : vector<16x8x8xf32>, vector<16x8x8xf32>, vector<16x8x8xf32> -> vector<16x8x8xf32>
    "tpu.trace_stop"() : () -> ()
    %69 = vector.shape_cast %68 : vector<16x8x8xf32> to vector<128x8xf32>
    %c0_36 = arith.constant 0 : index
    %c0_37 = arith.constant 0 : index
    %c0_38 = arith.constant 0 : index
    %70 = vector.load %arg11[%c0_36, %c0_37, %c0_38] : memref<4x8x32xf32, #tpu.memory_space<vmem>>, vector<1x8x32xf32>
    %71 = vector.shape_cast %70 : vector<1x8x32xf32> to vector<8x32xf32>
    %cst_39 = arith.constant dense<0.000000e+00> : vector<128x32xf32>
    %72 = tpu.matmul %69, %71, %cst_39 {dimension_numbers = #tpu.dot_dimension_numbers<[1], [0], [0], [1], [0, 0, 1, 1], [], []>} : vector<128x8xf32>, vector<8x32xf32>, vector<128x32xf32> -> vector<128x32xf32>
    %73 = arith.addf %51, %72 : vector<128x32xf32>
    %74 = vector.extract_strided_slice %43 {offsets = [0, 0, 8], sizes = [16, 8, 8], strides = [1, 1, 1]} : vector<16x8x32xf32> to vector<16x8x8xf32>
    %75 = vector.extract_strided_slice %44 {offsets = [0, 0, 8], sizes = [16, 8, 8], strides = [1, 1, 1]} : vector<16x8x32xf32> to vector<16x8x8xf32>
    %76 = vector.extract_strided_slice %45 {offsets = [0, 0, 8], sizes = [16, 8, 8], strides = [1, 1, 1]} : vector<16x8x32xf32> to vector<16x8x8xf32>
    "tpu.trace_start"() <{level = 10 : i32, message = "bqd,bkd->bqk"}> : () -> ()
    %cst_40 = arith.constant dense<0.000000e+00> : vector<16x8x8xf32>
    %77 = tpu.matmul %74, %75, %cst_40 {dimension_numbers = #tpu.dot_dimension_numbers<[2], [2], [1], [1], [0, 0, 0, 1, 1, 1], [0], [0]>} : vector<16x8x8xf32>, vector<16x8x8xf32>, vector<16x8x8xf32> -> vector<16x8x8xf32>
    %cst_41 = arith.constant -1.000000e+09 : f32
    "tpu.trace_stop"() : () -> ()
    %78 = vector.broadcast %cst_41 : f32 to vector<16x8x8xf32>
    %79 = arith.select %50, %77, %78 : vector<16x8x8xi1>, vector<16x8x8xf32>
    %cst_42 = arith.constant dense<0xFF800000> : vector<16x8xf32>
    %80 = vector.multi_reduction <maximumf>, %79, %cst_42 [2] : vector<16x8x8xf32> to vector<16x8xf32>
    %81 = vector.shape_cast %80 : vector<16x8xf32> to vector<16x8x1xf32>
    %82 = vector.broadcast %81 : vector<16x8x1xf32> to vector<16x8x8xf32>
    %83 = arith.subf %79, %82 : vector<16x8x8xf32>
    %84 = math.exp %83 : vector<16x8x8xf32>
    %cst_43 = arith.constant dense<0.000000e+00> : vector<16x8xf32>
    %85 = vector.multi_reduction <add>, %84, %cst_43 [2] : vector<16x8x8xf32> to vector<16x8xf32>
    %86 = vector.shape_cast %85 : vector<16x8xf32> to vector<16x8x1xf32>
    %87 = tpu.reciprocal %86 {approx = true} : vector<16x8x1xf32> -> vector<16x8x1xf32>
    %88 = vector.broadcast %87 : vector<16x8x1xf32> to vector<16x8x8xf32>
    %89 = arith.mulf %84, %88 : vector<16x8x8xf32>
    "tpu.trace_start"() <{level = 10 : i32, message = "bqk,bkd->bqd"}> : () -> ()
    %cst_44 = arith.constant dense<0.000000e+00> : vector<16x8x8xf32>
    %90 = tpu.matmul %89, %76, %cst_44 {dimension_numbers = #tpu.dot_dimension_numbers<[2], [1], [1], [2], [0, 0, 0, 1, 1, 2], [0], [0]>} : vector<16x8x8xf32>, vector<16x8x8xf32>, vector<16x8x8xf32> -> vector<16x8x8xf32>
    "tpu.trace_stop"() : () -> ()
    %91 = vector.shape_cast %90 : vector<16x8x8xf32> to vector<128x8xf32>
    %c1 = arith.constant 1 : index
    %c0_45 = arith.constant 0 : index
    %c0_46 = arith.constant 0 : index
    %92 = vector.load %arg11[%c1, %c0_45, %c0_46] : memref<4x8x32xf32, #tpu.memory_space<vmem>>, vector<1x8x32xf32>
    %93 = vector.shape_cast %92 : vector<1x8x32xf32> to vector<8x32xf32>
    %cst_47 = arith.constant dense<0.000000e+00> : vector<128x32xf32>
    %94 = tpu.matmul %91, %93, %cst_47 {dimension_numbers = #tpu.dot_dimension_numbers<[1], [0], [0], [1], [0, 0, 1, 1], [], []>} : vector<128x8xf32>, vector<8x32xf32>, vector<128x32xf32> -> vector<128x32xf32>
    %95 = arith.addf %73, %94 : vector<128x32xf32>
    %96 = vector.extract_strided_slice %43 {offsets = [0, 0, 16], sizes = [16, 8, 8], strides = [1, 1, 1]} : vector<16x8x32xf32> to vector<16x8x8xf32>
    %97 = vector.extract_strided_slice %44 {offsets = [0, 0, 16], sizes = [16, 8, 8], strides = [1, 1, 1]} : vector<16x8x32xf32> to vector<16x8x8xf32>
    %98 = vector.extract_strided_slice %45 {offsets = [0, 0, 16], sizes = [16, 8, 8], strides = [1, 1, 1]} : vector<16x8x32xf32> to vector<16x8x8xf32>
    "tpu.trace_start"() <{level = 10 : i32, message = "bqd,bkd->bqk"}> : () -> ()
    %cst_48 = arith.constant dense<0.000000e+00> : vector<16x8x8xf32>
    %99 = tpu.matmul %96, %97, %cst_48 {dimension_numbers = #tpu.dot_dimension_numbers<[2], [2], [1], [1], [0, 0, 0, 1, 1, 1], [0], [0]>} : vector<16x8x8xf32>, vector<16x8x8xf32>, vector<16x8x8xf32> -> vector<16x8x8xf32>
    %cst_49 = arith.constant -1.000000e+09 : f32
    "tpu.trace_stop"() : () -> ()
    %100 = vector.broadcast %cst_49 : f32 to vector<16x8x8xf32>
    %101 = arith.select %50, %99, %100 : vector<16x8x8xi1>, vector<16x8x8xf32>
    %cst_50 = arith.constant dense<0xFF800000> : vector<16x8xf32>
    %102 = vector.multi_reduction <maximumf>, %101, %cst_50 [2] : vector<16x8x8xf32> to vector<16x8xf32>
    %103 = vector.shape_cast %102 : vector<16x8xf32> to vector<16x8x1xf32>
    %104 = vector.broadcast %103 : vector<16x8x1xf32> to vector<16x8x8xf32>
    %105 = arith.subf %101, %104 : vector<16x8x8xf32>
    %106 = math.exp %105 : vector<16x8x8xf32>
    %cst_51 = arith.constant dense<0.000000e+00> : vector<16x8xf32>
    %107 = vector.multi_reduction <add>, %106, %cst_51 [2] : vector<16x8x8xf32> to vector<16x8xf32>
    %108 = vector.shape_cast %107 : vector<16x8xf32> to vector<16x8x1xf32>
    %109 = tpu.reciprocal %108 {approx = true} : vector<16x8x1xf32> -> vector<16x8x1xf32>
    %110 = vector.broadcast %109 : vector<16x8x1xf32> to vector<16x8x8xf32>
    %111 = arith.mulf %106, %110 : vector<16x8x8xf32>
    "tpu.trace_start"() <{level = 10 : i32, message = "bqk,bkd->bqd"}> : () -> ()
    %cst_52 = arith.constant dense<0.000000e+00> : vector<16x8x8xf32>
    %112 = tpu.matmul %111, %98, %cst_52 {dimension_numbers = #tpu.dot_dimension_numbers<[2], [1], [1], [2], [0, 0, 0, 1, 1, 2], [0], [0]>} : vector<16x8x8xf32>, vector<16x8x8xf32>, vector<16x8x8xf32> -> vector<16x8x8xf32>
    "tpu.trace_stop"() : () -> ()
    %113 = vector.shape_cast %112 : vector<16x8x8xf32> to vector<128x8xf32>
    %c2 = arith.constant 2 : index
    %c0_53 = arith.constant 0 : index
    %c0_54 = arith.constant 0 : index
    %114 = vector.load %arg11[%c2, %c0_53, %c0_54] : memref<4x8x32xf32, #tpu.memory_space<vmem>>, vector<1x8x32xf32>
    %115 = vector.shape_cast %114 : vector<1x8x32xf32> to vector<8x32xf32>
    %cst_55 = arith.constant dense<0.000000e+00> : vector<128x32xf32>
    %116 = tpu.matmul %113, %115, %cst_55 {dimension_numbers = #tpu.dot_dimension_numbers<[1], [0], [0], [1], [0, 0, 1, 1], [], []>} : vector<128x8xf32>, vector<8x32xf32>, vector<128x32xf32> -> vector<128x32xf32>
    %117 = arith.addf %95, %116 : vector<128x32xf32>
    %118 = vector.extract_strided_slice %43 {offsets = [0, 0, 24], sizes = [16, 8, 8], strides = [1, 1, 1]} : vector<16x8x32xf32> to vector<16x8x8xf32>
    %119 = vector.extract_strided_slice %44 {offsets = [0, 0, 24], sizes = [16, 8, 8], strides = [1, 1, 1]} : vector<16x8x32xf32> to vector<16x8x8xf32>
    %120 = vector.extract_strided_slice %45 {offsets = [0, 0, 24], sizes = [16, 8, 8], strides = [1, 1, 1]} : vector<16x8x32xf32> to vector<16x8x8xf32>
    "tpu.trace_start"() <{level = 10 : i32, message = "bqd,bkd->bqk"}> : () -> ()
    %cst_56 = arith.constant dense<0.000000e+00> : vector<16x8x8xf32>
    %121 = tpu.matmul %118, %119, %cst_56 {dimension_numbers = #tpu.dot_dimension_numbers<[2], [2], [1], [1], [0, 0, 0, 1, 1, 1], [0], [0]>} : vector<16x8x8xf32>, vector<16x8x8xf32>, vector<16x8x8xf32> -> vector<16x8x8xf32>
    %cst_57 = arith.constant -1.000000e+09 : f32
    "tpu.trace_stop"() : () -> ()
    %122 = vector.broadcast %cst_57 : f32 to vector<16x8x8xf32>
    %123 = arith.select %50, %121, %122 : vector<16x8x8xi1>, vector<16x8x8xf32>
    %cst_58 = arith.constant dense<0xFF800000> : vector<16x8xf32>
    %124 = vector.multi_reduction <maximumf>, %123, %cst_58 [2] : vector<16x8x8xf32> to vector<16x8xf32>
    %125 = vector.shape_cast %124 : vector<16x8xf32> to vector<16x8x1xf32>
    %126 = vector.broadcast %125 : vector<16x8x1xf32> to vector<16x8x8xf32>
    %127 = arith.subf %123, %126 : vector<16x8x8xf32>
    %128 = math.exp %127 : vector<16x8x8xf32>
    %cst_59 = arith.constant dense<0.000000e+00> : vector<16x8xf32>
    %129 = vector.multi_reduction <add>, %128, %cst_59 [2] : vector<16x8x8xf32> to vector<16x8xf32>
    %130 = vector.shape_cast %129 : vector<16x8xf32> to vector<16x8x1xf32>
    %131 = tpu.reciprocal %130 {approx = true} : vector<16x8x1xf32> -> vector<16x8x1xf32>
    %132 = vector.broadcast %131 : vector<16x8x1xf32> to vector<16x8x8xf32>
    %133 = arith.mulf %128, %132 : vector<16x8x8xf32>
    "tpu.trace_start"() <{level = 10 : i32, message = "bqk,bkd->bqd"}> : () -> ()
    %cst_60 = arith.constant dense<0.000000e+00> : vector<16x8x8xf32>
    %134 = tpu.matmul %133, %120, %cst_60 {dimension_numbers = #tpu.dot_dimension_numbers<[2], [1], [1], [2], [0, 0, 0, 1, 1, 2], [0], [0]>} : vector<16x8x8xf32>, vector<16x8x8xf32>, vector<16x8x8xf32> -> vector<16x8x8xf32>
    "tpu.trace_stop"() : () -> ()
    %135 = vector.shape_cast %134 : vector<16x8x8xf32> to vector<128x8xf32>
    %c3 = arith.constant 3 : index
    %c0_61 = arith.constant 0 : index
    %c0_62 = arith.constant 0 : index
    %136 = vector.load %arg11[%c3, %c0_61, %c0_62] : memref<4x8x32xf32, #tpu.memory_space<vmem>>, vector<1x8x32xf32>
    %137 = vector.shape_cast %136 : vector<1x8x32xf32> to vector<8x32xf32>
    %cst_63 = arith.constant dense<0.000000e+00> : vector<128x32xf32>
    %138 = tpu.matmul %135, %137, %cst_63 {dimension_numbers = #tpu.dot_dimension_numbers<[1], [0], [0], [1], [0, 0, 1, 1], [], []>} : vector<128x8xf32>, vector<8x32xf32>, vector<128x32xf32> -> vector<128x32xf32>
    %139 = arith.addf %117, %138 : vector<128x32xf32>
    %c0_64 = arith.constant 0 : index
    %c0_65 = arith.constant 0 : index
    %140 = vector.load %arg12[%c0_64, %c0_65] : memref<1x32xf32, #tpu.memory_space<vmem>>, vector<1x32xf32>
    %141 = vector.broadcast %140 : vector<1x32xf32> to vector<128x32xf32>
    %142 = arith.addf %139, %141 : vector<128x32xf32>
    %143 = arith.addf %1, %142 : vector<128x32xf32>
    %c0_66 = arith.constant 0 : index
    %c0_67 = arith.constant 0 : index
    %144 = vector.load %arg13[%c0_66, %c0_67] : memref<1x32xf32, #tpu.memory_space<vmem>>, vector<1x32xf32>
    %c0_68 = arith.constant 0 : index
    %c0_69 = arith.constant 0 : index
    %145 = vector.load %arg14[%c0_68, %c0_69] : memref<1x32xf32, #tpu.memory_space<vmem>>, vector<1x32xf32>
    %cst_70 = arith.constant dense<0.000000e+00> : vector<128xf32>
    %146 = vector.multi_reduction <add>, %143, %cst_70 [1] : vector<128x32xf32> to vector<128xf32>
    %147 = vector.shape_cast %146 : vector<128xf32> to vector<128x1xf32>
    %cst_71 = arith.constant 3.200000e+01 : f32
    %148 = vector.broadcast %cst_71 : f32 to vector<128x1xf32>
    %149 = arith.divf %147, %148 : vector<128x1xf32>
    %150 = vector.broadcast %149 : vector<128x1xf32> to vector<128x32xf32>
    %151 = arith.subf %143, %150 : vector<128x32xf32>
    %152 = arith.mulf %151, %151 : vector<128x32xf32>
    %cst_72 = arith.constant dense<0.000000e+00> : vector<128xf32>
    %153 = vector.multi_reduction <add>, %152, %cst_72 [1] : vector<128x32xf32> to vector<128xf32>
    %154 = vector.shape_cast %153 : vector<128xf32> to vector<128x1xf32>
    %cst_73 = arith.constant 3.100000e+01 : f32
    %155 = vector.broadcast %cst_73 : f32 to vector<128x1xf32>
    %156 = arith.divf %154, %155 : vector<128x1xf32>
    %157 = math.sqrt %156 : vector<128x1xf32>
    %158 = vector.broadcast %149 : vector<128x1xf32> to vector<128x32xf32>
    %159 = arith.subf %143, %158 : vector<128x32xf32>
    %160 = vector.broadcast %144 : vector<1x32xf32> to vector<128x32xf32>
    %161 = arith.mulf %160, %159 : vector<128x32xf32>
    %cst_74 = arith.constant 9.99999997E-7 : f32
    %162 = vector.broadcast %cst_74 : f32 to vector<128x1xf32>
    %163 = arith.addf %157, %162 : vector<128x1xf32>
    %164 = vector.broadcast %163 : vector<128x1xf32> to vector<128x32xf32>
    %165 = arith.divf %161, %164 : vector<128x32xf32>
    %166 = vector.broadcast %145 : vector<1x32xf32> to vector<128x32xf32>
    %167 = arith.addf %165, %166 : vector<128x32xf32>
    %c0_75 = arith.constant 0 : index
    %c0_76 = arith.constant 0 : index
    %168 = vector.load %arg15[%c0_75, %c0_76] : memref<32x64xf32, #tpu.memory_space<vmem>>, vector<32x64xf32>
    %cst_77 = arith.constant dense<0.000000e+00> : vector<128x64xf32>
    %169 = tpu.matmul %167, %168, %cst_77 {dimension_numbers = #tpu.dot_dimension_numbers<[1], [0], [0], [1], [0, 0, 1, 1], [], []>} : vector<128x32xf32>, vector<32x64xf32>, vector<128x64xf32> -> vector<128x64xf32>
    %c0_78 = arith.constant 0 : index
    %c0_79 = arith.constant 0 : index
    %170 = vector.load %arg16[%c0_78, %c0_79] : memref<1x64xf32, #tpu.memory_space<vmem>>, vector<1x64xf32>
    %171 = vector.broadcast %170 : vector<1x64xf32> to vector<128x64xf32>
    %172 = arith.addf %169, %171 : vector<128x64xf32>
    %cst_80 = arith.constant 0.000000e+00 : f32
    %173 = vector.broadcast %cst_80 : f32 to vector<128x64xf32>
    %174 = arith.maximumf %172, %173 : vector<128x64xf32>
    %c0_81 = arith.constant 0 : index
    %c0_82 = arith.constant 0 : index
    %175 = vector.load %arg17[%c0_81, %c0_82] : memref<64x32xf32, #tpu.memory_space<vmem>>, vector<64x32xf32>
    %cst_83 = arith.constant dense<0.000000e+00> : vector<128x32xf32>
    %176 = tpu.matmul %174, %175, %cst_83 {dimension_numbers = #tpu.dot_dimension_numbers<[1], [0], [0], [1], [0, 0, 1, 1], [], []>} : vector<128x64xf32>, vector<64x32xf32>, vector<128x32xf32> -> vector<128x32xf32>
    %c0_84 = arith.constant 0 : index
    %c0_85 = arith.constant 0 : index
    %177 = vector.load %arg18[%c0_84, %c0_85] : memref<1x32xf32, #tpu.memory_space<vmem>>, vector<1x32xf32>
    %178 = vector.broadcast %177 : vector<1x32xf32> to vector<128x32xf32>
    %179 = arith.addf %176, %178 : vector<128x32xf32>
    %180 = arith.addf %143, %179 : vector<128x32xf32>
    %181 = vector.shape_cast %180 : vector<128x32xf32> to vector<16x8x32xf32>
    %c0_86 = arith.constant 0 : index
    %c0_87 = arith.constant 0 : index
    %c0_88 = arith.constant 0 : index
    %182 = vector.load %arg19[%c0_86, %c0_87, %c0_88] : memref<16x8x32xf32, #tpu.memory_space<vmem>>, vector<16x8x32xf32>
    tpu.vector_store %arg19[%c0_86, %c0_87, %c0_88], %181 {strides = array<i32>} : memref<16x8x32xf32, #tpu.memory_space<vmem>>, vector<16x8x32xf32>,
    return
  }
  func.func @transform_0(%arg0: i32) -> (i32, i32, i32) {
    %c0_i32 = arith.constant 0 : i32
    %c0_i32_0 = arith.constant 0 : i32
    %c0_i32_1 = arith.constant 0 : i32
    return %arg0, %c0_i32, %c0_i32_0 : i32, i32, i32
  }
  func.func @transform_1(%arg0: i32) -> (i32, i32, i32) {
    %c0_i32 = arith.constant 0 : i32
    %c0_i32_0 = arith.constant 0 : i32
    %c0_i32_1 = arith.constant 0 : i32
    return %arg0, %c0_i32, %c0_i32_0 : i32, i32, i32
  }
  func.func @transform_2(%arg0: i32) -> (i32, i32) {
    %c0_i32 = arith.constant 0 : i32
    %c0_i32_0 = arith.constant 0 : i32
    %c0_i32_1 = arith.constant 0 : i32
    return %c0_i32, %c0_i32_0 : i32, i32
  }
  func.func @transform_3(%arg0: i32) -> (i32, i32) {
    %c0_i32 = arith.constant 0 : i32
    %c0_i32_0 = arith.constant 0 : i32
    %c0_i32_1 = arith.constant 0 : i32
    return %c0_i32, %c0_i32_0 : i32, i32
  }
  func.func @transform_4(%arg0: i32) -> (i32, i32) {
    %c0_i32 = arith.constant 0 : i32
    %c0_i32_0 = arith.constant 0 : i32
    %c0_i32_1 = arith.constant 0 : i32
    return %c0_i32, %c0_i32_0 : i32, i32
  }
  func.func @transform_5(%arg0: i32) -> (i32, i32) {
    %c0_i32 = arith.constant 0 : i32
    %c0_i32_0 = arith.constant 0 : i32
    %c0_i32_1 = arith.constant 0 : i32
    return %c0_i32, %c0_i32_0 : i32, i32
  }
  func.func @transform_6(%arg0: i32) -> (i32, i32) {
    %c0_i32 = arith.constant 0 : i32
    %c0_i32_0 = arith.constant 0 : i32
    %c0_i32_1 = arith.constant 0 : i32
    return %c0_i32, %c0_i32_0 : i32, i32
  }
  func.func @transform_7(%arg0: i32) -> (i32, i32) {
    %c0_i32 = arith.constant 0 : i32
    %c0_i32_0 = arith.constant 0 : i32
    %c0_i32_1 = arith.constant 0 : i32
    return %c0_i32, %c0_i32_0 : i32, i32
  }
  func.func @transform_8(%arg0: i32) -> (i32, i32) {
    %c0_i32 = arith.constant 0 : i32
    %c0_i32_0 = arith.constant 0 : i32
    %c0_i32_1 = arith.constant 0 : i32
    return %c0_i32, %c0_i32_0 : i32, i32
  }
  func.func @transform_9(%arg0: i32) -> (i32, i32) {
    %c0_i32 = arith.constant 0 : i32
    %c0_i32_0 = arith.constant 0 : i32
    %c0_i32_1 = arith.constant 0 : i32
    return %c0_i32, %c0_i32_0 : i32, i32
  }
  func.func @transform_10(%arg0: i32) -> (i32, i32, i32) {
    %c0_i32 = arith.constant 0 : i32
    %c0_i32_0 = arith.constant 0 : i32
    %c0_i32_1 = arith.constant 0 : i32
    %c0_i32_2 = arith.constant 0 : i32
    return %c0_i32, %c0_i32_0, %c0_i32_1 : i32, i32, i32
  }
  func.func @transform_11(%arg0: i32) -> (i32, i32) {
    %c0_i32 = arith.constant 0 : i32
    %c0_i32_0 = arith.constant 0 : i32
    %c0_i32_1 = arith.constant 0 : i32
    return %c0_i32, %c0_i32_0 : i32, i32
  }
  func.func @transform_12(%arg0: i32) -> (i32, i32) {
    %c0_i32 = arith.constant 0 : i32
    %c0_i32_0 = arith.constant 0 : i32
    %c0_i32_1 = arith.constant 0 : i32
    return %c0_i32, %c0_i32_0 : i32, i32
  }
  func.func @transform_13(%arg0: i32) -> (i32, i32) {
    %c0_i32 = arith.constant 0 : i32
    %c0_i32_0 = arith.constant 0 : i32
    %c0_i32_1 = arith.constant 0 : i32
    return %c0_i32, %c0_i32_0 : i32, i32
  }
  func.func @transform_14(%arg0: i32) -> (i32, i32) {
    %c0_i32 = arith.constant 0 : i32
    %c0_i32_0 = arith.constant 0 : i32
    %c0_i32_1 = arith.constant 0 : i32
    return %c0_i32, %c0_i32_0 : i32, i32
  }
  func.func @transform_15(%arg0: i32) -> (i32, i32) {
    %c0_i32 = arith.constant 0 : i32
    %c0_i32_0 = arith.constant 0 : i32
    %c0_i32_1 = arith.constant 0 : i32
    return %c0_i32, %c0_i32_0 : i32, i32
  }
  func.func @transform_16(%arg0: i32) -> (i32, i32) {
    %c0_i32 = arith.constant 0 : i32
    %c0_i32_0 = arith.constant 0 : i32
    %c0_i32_1 = arith.constant 0 : i32
    return %c0_i32, %c0_i32_0 : i32, i32
  }
  func.func @transform_17(%arg0: i32) -> (i32, i32) {
    %c0_i32 = arith.constant 0 : i32
    %c0_i32_0 = arith.constant 0 : i32
    %c0_i32_1 = arith.constant 0 : i32
    return %c0_i32, %c0_i32_0 : i32, i32
  }
  func.func @transform_18(%arg0: i32) -> (i32, i32, i32) {
    %c0_i32 = arith.constant 0 : i32
    %c0_i32_0 = arith.constant 0 : i32
    %c0_i32_1 = arith.constant 0 : i32
    return %arg0, %c0_i32, %c0_i32_0 : i32, i32, i32
  }
}

</mosaic_0001>

<bundles_post_ra>
// kernel: tpu_custom_call.1
= control target key start
LH: loop header
LB: loop body
LE: loop exit
PB: predicated region body
PF: predicated region fallthrough
CT: control target
= control target key end

     0   :  { %s21449_s0 = inlined_call_operand.hbm [shape: f32[32,8,32], index: 0, kind: input, shape index: {}]   ;;  %s21450_s1 = inlined_call_operand.hbm [shape: f32[32,1,8], index: 1, kind: input, shape index: {}]   ;;  %s21451_s2 = inlined_call_operand.hbm [shape: f32[1,32], index: 2, kind: input, shape index: {}]   ;;  %s21452_s3 = inlined_call_operand.hbm [shape: f32[1,32], index: 3, kind: input, shape index: {}]   ;;  %s21453_s4 = inlined_call_operand.hbm [shape: f32[32,32], index: 4, kind: input, shape index: {}]   ;;  %s21454_s5 = inlined_call_operand.hbm [shape: f32[1,32], index: 5, kind: input, shape index: {}]   ;;  %s21455_s6 = inlined_call_operand.hbm [shape: f32[32,32], index: 6, kind: input, shape index: {}]   ;;  %s21456_s7 = inlined_call_operand.hbm [shape: f32[1,32], index: 7, kind: input, shape index: {}]   ;;  %s21457_s8 = inlined_call_operand.hbm [shape: f32[32,32], index: 8, kind: input, shape index: {}]   ;;  %s21458_s9 = inlined_call_operand.hbm [shape: f32[1,32], index: 9, kind: input, shape index: {}]   ;;  %s21459_s10 = inlined_call_operand.hbm [shape: f32[4,8,32], index: 10, kind: input, shape index: {}]   ;;  %s21460_s11 = inlined_call_operand.hbm [shape: f32[1,32], index: 11, kind: input, shape index: {}]   ;;  %s21461_s12 = inlined_call_operand.hbm [shape: f32[1,32], index: 12, kind: input, shape index: {}]   ;;  %s21462_s13 = inlined_call_operand.hbm [shape: f32[1,32], index: 13, kind: input, shape index: {}]   ;;  %s21463_s14 = inlined_call_operand.hbm [shape: f32[32,64], index: 14, kind: input, shape index: {}]   ;;  %s21464_s15 = inlined_call_operand.hbm [shape: f32[1,64], index: 15, kind: input, shape index: {}]   ;;  %s21465_s16 = inlined_call_operand.hbm [shape: f32[64,32], index: 16, kind: input, shape index: {}]   ;;  %s21466_s17 = inlined_call_operand.hbm [shape: f32[1,32], index: 17, kind: input, shape index: {}]   ;;  %s21467_s18 = inlined_call_operand.hbm [shape: f32[32,8,32], index: 18, kind: output, shape index: {}]  }
   0x1   :  { %21612 = sst [smem:[#allocation128_spill]] %s21449_s0 }
   0x2   :  { %21613 = sst [smem:[#allocation129_spill]] %s21450_s1 }
   0x3   :  { %21614 = sst [smem:[#allocation130_spill]] %s21451_s2 }
   0x4   :  { %21615 = sst [smem:[#allocation131_spill]] %s21452_s3 }
   0x5   :  { %21616 = sst [smem:[#allocation132_spill]] %s21453_s4 }
   0x6   :  { %21617 = sst [smem:[#allocation133_spill]] %s21454_s5 }
   0x7   :  { %21618 = sst [smem:[#allocation134_spill]] %s21455_s6 }
   0x8   :  { %21619 = sst [smem:[#allocation135_spill]] %s21456_s7 }
   0x9   :  { %21620 = sst [smem:[#allocation136_spill]] %s21457_s8 }
   0xa   :  { %21621 = sst [smem:[#allocation137_spill]] %s21458_s9 }
   0xb   :  { %21622 = sst [smem:[#allocation138_spill]] %s21459_s10 }
   0xc   :  { %21623 = sst [smem:[#allocation139_spill]] %s21460_s11 }
   0xd   :  { %21624 = sst [smem:[#allocation140_spill]] %s21461_s12 }
   0xe   :  { %21625 = sst [smem:[#allocation141_spill]] %s21467_s18 }
   0xf   :  { %23 = vsyncpa [#allocation3], 0 }
  0x10   :  { %25 = vsyncpa [#allocation3 + $0x1], 0 }
  0x11   :  { %26 = vsyncpa [#allocation6], 0 }
  0x12   :  { %28 = vsyncpa [#allocation6 + $0x1], 0 }
  0x13   :  { %29 = vsyncpa [#allocation9], 0 }
  0x14   :  { %30 = vsyncpa [#allocation12], 0 }
  0x15   :  { %31 = vsyncpa [#allocation15], 0 }
  0x16   :  { %32 = vsyncpa [#allocation18], 0 }
  0x17   :  { %33 = vsyncpa [#allocation21], 0 }
  0x18   :  { %34 = vsyncpa [#allocation24], 0 }
  0x19   :  { %35 = vsyncpa [#allocation27], 0 }
  0x1a   :  { %36 = vsyncpa [#allocation30], 0 }
  0x1b   :  { %37 = vsyncpa [#allocation4], 0 }
  0x1c   :  { %39 = vsyncpa [#allocation4 + $0x1], 0  ;;  %s17597_s27 = smov 0   ;;  %s17599_s28 = smov 0  }
  0x1d   :  { %s17601_s29 = smov 0   ;;  %s17603_s30 = smov 0  }
  0x1e LB: > { %21626 = sst [smem:[#allocation44_spill]] %s17457_s27  ;;  %s17471_s0 = smov [#allocation7]   ;;  %s17469_s30 = sphi %s17603_s30, %s22003_s30   ;;  %s17465_s29 = sphi %s17601_s29, %s17988_s29   ;;  %s17461_s28 = sphi %s17599_s28, %s22002_s28   ;;  %s17457_s27 = sphi %s17597_s27, %s22001_s27  }
  0x1f   : > { %21627 = sst [smem:[#allocation45_spill]] %s17461_s28  ;;  %s477_s19 = sshll.u32 %s17471_s0, 4  ;;  %s17623_s19 = int_to_ptr.vmem [resolvable:$true] %s477_s19 }
  0x20   : > { %21628 = sst [smem:[#allocation46_spill]] %s17465_s29  ;;  %s17618_s1 = sadd.s32 4294967295, %s17469_s30  }
  0x21   : > { %21629 = sst [smem:[#allocation47_spill]] %s17469_s30  ;;  %p14395_p0 = scmp.ge.s32.totalorder %s17469_s30, 1 }
  0x22   : > { %21630 = sst [smem:[#allocation48_spill]] %s17618_s1  ;;  %p21480_p1 = scmp.eq.s32.totalorder %s17618_s1, 0 }
  0x23   : > { %p464_p2 = scmp.lt.s32.totalorder %s17469_s30, 3  ;;  %s17472_s21 = smov [#allocation8]  }
  0x24   : > { %s488_s22 = sshll.u32 %s17472_s21, 4  ;;  %s17473_s2 = smov [#allocation11]   ;;  %s17632_s22 = int_to_ptr.vmem [resolvable:$true] %s488_s22 }
  0x25   : > { %p17625_p3 = pnand %p14395_p0, %p464_p2  ;;  %s512_s23 = sshll.u32 %s17473_s2, 4  ;;  %s17640_s23 = int_to_ptr.vmem [resolvable:$true] %s512_s23 }
  0x26   : > { %s17474_s25 = smov [#allocation14]  }
  0x27   : > { %s21631_s20 = scalar_select %p17625_p3, 1, 0 }
  0x28   : > { %p16301_p5 = pneg %p17625_p3  ;;  %s17642_s26 = sshll.u32 %s17474_s25, 4  ;;  %s537_s26 = int_to_ptr.vmem [resolvable:$true] %s17642_s26 }
  0x29   : > { %21632 = sst [smem:[#allocation49_spill]] %s21631_s20  ;;  %s21634_s20 = sld [smem:[#allocation130_spill]] }
  0x2a   : > { %p17636_p6 = pnand %p16301_p5, %p21480_p1 }
  0x2c   : > { %p17652_p8 = pneg %p17636_p6 }
  0x2f   : > { %s16855_s27 = scalar_lea.hbm %s21634_s20, 16 }
  0x30   : > { %p16856_p7 = scmp.ne.s32.totalorder %s21634_s20, %s16855_s27  ;;  %p16862_p11 = scmp.lt.u32.totalorder %s16855_s27, %s21634_s20 }
  0x32   : > { %p16858_p9 = pnand %p17652_p8, %p16856_p7 }
  0x34   : > { %p16859_p10 = pneg %p16858_p9 }
  0x36   : > { %p16864_p12 = pnand %p16862_p11, %p16859_p10 }
  0x38   : > { %16867 = shalt.err (!%p16864_p12)
}
  0x39   : > { %s16868_s18 = scalar_lea.vmem %s17623_s19, 16  ;;  %s16875_s28 = scalar_lea.vmem %s17623_s19, 32 }
  0x3a   : > { %p16869_p13 = scmp.ne.s32.totalorder %s17623_s19, %s16868_s18  ;;  %p16876_p5 = scmp.lt.s32.totalorder %s17623_s19, %s17623_s19 }
  0x3b   : > { %p16877_p7 = scmp.lt.s32.totalorder %s16875_s28, %s16868_s18 }
  0x3c   : > { %p16871_p0 = pnand %p16869_p13, %p17652_p8 }
  0x3d   : > { %p16878_p9 = por %p16877_p7, %p16876_p5 }
  0x3e   : > { %p16872_p2 = pneg %p16871_p0 }
  0x40   : > { %p16879_p4 = pnand %p16878_p9, %p16872_p2 }
  0x42   : > { %16882 = shalt.err (!%p16879_p4)
}
  0x43   : > { %16304 = dma.hbm_to_vmem [thread:$0]  (!%p17636_p6), %s21634_s20, 16, %s17623_s19, [#allocation6]  }
  0x44   : > { %s21636_s3 = sld [smem:[#allocation131_spill]] }
  0x4a   : > { %s16883_s25 = scalar_lea.hbm %s21636_s3, 16 }
  0x4b   : > { %p16884_p10 = scmp.ne.s32.totalorder %s21636_s3, %s16883_s25  ;;  %p16890_p4 = scmp.lt.u32.totalorder %s16883_s25, %s21636_s3 }
  0x4d   : > { %p16886_p11 = pnand %p16884_p10, %p17652_p8 }
  0x4f   : > { %p16887_p12 = pneg %p16886_p11 }
  0x51   : > { %p16892_p13 = pnand %p16890_p4, %p16887_p12 }
  0x53   : > { %16895 = shalt.err (!%p16892_p13)
}
  0x54   : > { %s16896_s19 = scalar_lea.vmem %s17632_s22, 16  ;;  %s16903_s29 = scalar_lea.vmem %s17632_s22, 32 }
  0x55   : > { %p16897_p0 = scmp.ne.s32.totalorder %s17632_s22, %s16896_s19  ;;  %p16904_p7 = scmp.lt.s32.totalorder %s17632_s22, %s17632_s22 }
  0x56   : > { %p16905_p9 = scmp.lt.s32.totalorder %s16903_s29, %s16896_s19 }
  0x57   : > { %p16899_p2 = pnand %p16897_p0, %p17652_p8 }
  0x58   : > { %p16906_p10 = por %p16905_p9, %p16904_p7 }
  0x59   : > { %p16900_p5 = pneg %p16899_p2 }
  0x5b   : > { %p16907_p11 = pnand %p16906_p10, %p16900_p5 }
  0x5d   : > { %16910 = shalt.err (!%p16907_p11)
}
  0x5e   : > { %16307 = dma.hbm_to_vmem [thread:$0]  (!%p17636_p6), %s21636_s3, 16, %s17632_s22, [#allocation9]  }
  0x5f   : > { %s21637_s5 = sld [smem:[#allocation133_spill]] }
  0x65   : > { %s16911_s21 = scalar_lea.hbm %s21637_s5, 16 }
  0x66   : > { %p16912_p12 = scmp.ne.s32.totalorder %s21637_s5, %s16911_s21  ;;  %p16918_p0 = scmp.lt.u32.totalorder %s16911_s21, %s21637_s5 }
  0x68   : > { %p16914_p4 = pnand %p16912_p12, %p17652_p8 }
  0x6a   : > { %p16915_p13 = pneg %p16914_p4 }
  0x6c   : > { %p16920_p2 = pnand %p16918_p0, %p16915_p13 }
  0x6e   : > { %16923 = shalt.err (!%p16920_p2)
}
  0x6f   : > { %s16924_s22 = scalar_lea.vmem %s17640_s23, 16  ;;  %s16931_s29 = scalar_lea.vmem %s17640_s23, 32 }
  0x70   : > { %p16925_p5 = scmp.ne.s32.totalorder %s17640_s23, %s16924_s22  ;;  %p16932_p10 = scmp.lt.s32.totalorder %s17640_s23, %s17640_s23 }
  0x71   : > { %p16933_p11 = scmp.lt.s32.totalorder %s16931_s29, %s16924_s22 }
  0x72   : > { %p16927_p7 = pnand %p16925_p5, %p17652_p8 }
  0x73   : > { %p16934_p12 = por %p16933_p11, %p16932_p10 }
  0x74   : > { %p16928_p9 = pneg %p16927_p7 }
  0x76   : > { %p16935_p4 = pnand %p16934_p12, %p16928_p9 }
  0x78   : > { %16938 = shalt.err (!%p16935_p4)
}
  0x79   : > { %16313 = dma.hbm_to_vmem [thread:$0]  (!%p17636_p6), %s21637_s5, 16, %s17640_s23, [#allocation12]  }
  0x7a   : > { %s17475_s1 = smov [#allocation17]   ;;  %s21638_s7 = sld [smem:[#allocation135_spill]] }
  0x7b   : > { %s560_s0 = sshll.u32 %s17475_s1, 4  ;;  %s561_s0 = int_to_ptr.vmem [resolvable:$true] %s560_s0 }
  0x80   : > { %s16939_s18 = scalar_lea.hbm %s21638_s7, 16 }
  0x81   : > { %p16940_p13 = scmp.ne.s32.totalorder %s21638_s7, %s16939_s18  ;;  %p16946_p5 = scmp.lt.u32.totalorder %s16939_s18, %s21638_s7 }
  0x83   : > { %p16942_p0 = pnand %p16940_p13, %p17652_p8 }
  0x85   : > { %p16943_p2 = pneg %p16942_p0 }
  0x87   : > { %p16948_p7 = pnand %p16946_p5, %p16943_p2 }
  0x89   : > { %16951 = shalt.err (!%p16948_p7)
}
  0x8a   : > { %s16952_s23 = scalar_lea.vmem %s537_s26, 16  ;;  %s16959_s30 = scalar_lea.vmem %s537_s26, 32 }
  0x8b   : > { %p16953_p9 = scmp.ne.s32.totalorder %s537_s26, %s16952_s23  ;;  %p16960_p12 = scmp.lt.s32.totalorder %s537_s26, %s537_s26 }
  0x8c   : > { %p16961_p4 = scmp.lt.s32.totalorder %s16959_s30, %s16952_s23 }
  0x8d   : > { %p16955_p10 = pnand %p16953_p9, %p17652_p8 }
  0x8e   : > { %p16962_p1 = por %p16961_p4, %p16960_p12 }
  0x8f   : > { %p16956_p11 = pneg %p16955_p10 }
  0x91   : > { %p16963_p3 = pnand %p16962_p1, %p16956_p11 }
  0x93   : > { %16966 = shalt.err (!%p16963_p3)
}
  0x94   : > { %16319 = dma.hbm_to_vmem [thread:$0]  (!%p17636_p6), %s21638_s7, 16, %s537_s26, [#allocation15]  }
  0x95   : > { %s21639_s9 = sld [smem:[#allocation137_spill]] }
  0x9b   : > { %s16967_s18 = scalar_lea.hbm %s21639_s9, 16 }
  0x9c   : > { %p16968_p13 = scmp.ne.s32.totalorder %s21639_s9, %s16967_s18  ;;  %p16974_p3 = scmp.lt.u32.totalorder %s16967_s18, %s21639_s9 }
  0x9e   : > { %p16970_p0 = pnand %p16968_p13, %p17652_p8 }
  0xa0   : > { %p16971_p1 = pneg %p16970_p0 }
  0xa2   : > { %p16976_p2 = pnand %p16974_p3, %p16971_p1 }
  0xa4   : > { %16979 = shalt.err (!%p16976_p2)
}
  0xa5   : > { %s16980_s23 = scalar_lea.vmem %s561_s0, 16  ;;  %s16987_s26 = scalar_lea.vmem %s561_s0, 32 }
  0xa6   : > { %p16981_p5 = scmp.ne.s32.totalorder %s561_s0, %s16980_s23  ;;  %p16988_p10 = scmp.lt.s32.totalorder %s561_s0, %s561_s0 }
  0xa7   : > { %p16989_p11 = scmp.lt.s32.totalorder %s16987_s26, %s16980_s23 }
  0xa8   : > { %p16983_p7 = pnand %p16981_p5, %p17652_p8 }
  0xa9   : > { %p16990_p12 = por %p16989_p11, %p16988_p10 }
  0xaa   : > { %p16984_p9 = pneg %p16983_p7 }
  0xac   : > { %p16991_p4 = pnand %p16990_p12, %p16984_p9 }
  0xae   : > { %16994 = shalt.err (!%p16991_p4)
}
  0xaf   : > { %16325 = dma.hbm_to_vmem [thread:$0]  (!%p17636_p6), %s21639_s9, 16, %s561_s0, [#allocation18]  }
  0xb0   : > { %s17476_s1 = smov [#allocation20]   ;;  %s17477_s25 = smov [#allocation23]  }
  0xb1   : > { %s584_s21 = sshll.u32 %s17476_s1, 4  ;;  %s606_s18 = sshll.u32 %s17477_s25, 4  ;;  %s585_s21 = int_to_ptr.vmem [resolvable:$true] %s584_s21  ;;  %s607_s18 = int_to_ptr.vmem [resolvable:$true] %s606_s18 }
  0xb2   : > { %s21640_s11 = sld [smem:[#allocation139_spill]] }
  0xb8   : > { %s16995_s22 = scalar_lea.hbm %s21640_s11, 16 }
  0xb9   : > { %p16996_p13 = scmp.ne.s32.totalorder %s21640_s11, %s16995_s22  ;;  %p17002_p3 = scmp.lt.u32.totalorder %s16995_s22, %s21640_s11 }
  0xbb   : > { %p16998_p0 = pnand %p16996_p13, %p17652_p8 }
  0xbd   : > { %p16999_p1 = pneg %p16998_p0 }
  0xbf   : > { %p17004_p2 = pnand %p17002_p3, %p16999_p1 }
  0xc1   : > { %17007 = shalt.err (!%p17004_p2)
}
  0xc2   : > { %s17008_s0 = scalar_lea.vmem %s585_s21, 16  ;;  %s17015_s27 = scalar_lea.vmem %s585_s21, 32 }
  0xc3   : > { %p17009_p5 = scmp.ne.s32.totalorder %s585_s21, %s17008_s0  ;;  %p17016_p10 = scmp.lt.s32.totalorder %s585_s21, %s585_s21 }
  0xc4   : > { %p17017_p11 = scmp.lt.s32.totalorder %s17015_s27, %s17008_s0 }
  0xc5   : > { %p17011_p7 = pnand %p17009_p5, %p17652_p8 }
  0xc6   : > { %p17018_p12 = por %p17017_p11, %p17016_p10 }
  0xc7   : > { %p17012_p9 = pneg %p17011_p7 }
  0xc9   : > { %p17019_p4 = pnand %p17018_p12, %p17012_p9 }
  0xcb   : > { %17022 = shalt.err (!%p17019_p4)
}
  0xcc   : > { %16331 = dma.hbm_to_vmem [thread:$0]  (!%p17636_p6), %s21640_s11, 16, %s585_s21, [#allocation21]  }
  0xcd   : > { %s17023_s22 = scalar_lea.hbm %s21462_s13, 16 }
  0xce   : > { %p17024_p13 = scmp.ne.s32.totalorder %s21462_s13, %s17023_s22  ;;  %p17030_p3 = scmp.lt.u32.totalorder %s17023_s22, %s21462_s13 }
  0xd0   : > { %p17026_p0 = pnand %p17024_p13, %p17652_p8 }
  0xd2   : > { %p17027_p1 = pneg %p17026_p0 }
  0xd4   : > { %p17032_p2 = pnand %p17030_p3, %p17027_p1 }
  0xd6   : > { %17035 = shalt.err (!%p17032_p2)
}
  0xd7   : > { %s17036_s0 = scalar_lea.vmem %s607_s18, 16  ;;  %s17043_s21 = scalar_lea.vmem %s607_s18, 32 }
  0xd8   : > { %p17037_p5 = scmp.ne.s32.totalorder %s607_s18, %s17036_s0  ;;  %p17044_p10 = scmp.lt.s32.totalorder %s607_s18, %s607_s18 }
  0xd9   : > { %p17045_p11 = scmp.lt.s32.totalorder %s17043_s21, %s17036_s0 }
  0xda   : > { %p17039_p7 = pnand %p17037_p5, %p17652_p8 }
  0xdb   : > { %p17046_p12 = por %p17045_p11, %p17044_p10 }
  0xdc   : > { %p17040_p9 = pneg %p17039_p7 }
  0xde   : > { %p17047_p4 = pnand %p17046_p12, %p17040_p9 }
  0xe0   : > { %17050 = shalt.err (!%p17047_p4)
}
  0xe1   : > { %16337 = dma.hbm_to_vmem [thread:$0]  (!%p17636_p6), %s21462_s13, 16, %s607_s18, [#allocation24]  }
  0xe2   : > { %s17478_s25 = smov [#allocation26]   ;;  %s17479_s19 = smov [#allocation10]  }
  0xe3   : > { %s630_s28 = sshll.u32 %s17478_s25, 4  ;;  %s498_s22 = sshll.u32 %s17479_s19, 4  ;;  %s631_s28 = int_to_ptr.vmem [resolvable:$true] %s630_s28  ;;  %s499_s22 = int_to_ptr.vmem [resolvable:$true] %s498_s22 }
  0xe4   : > { %s17051_s26 = scalar_lea.hbm %s21464_s15, 16 }
  0xe5   : > { %p17052_p13 = scmp.ne.s32.totalorder %s21464_s15, %s17051_s26  ;;  %p17058_p3 = scmp.lt.u32.totalorder %s17051_s26, %s21464_s15 }
  0xe7   : > { %p17054_p0 = pnand %p17052_p13, %p17652_p8 }
  0xe9   : > { %p17055_p1 = pneg %p17054_p0 }
  0xeb   : > { %p17060_p2 = pnand %p17058_p3, %p17055_p1 }
  0xed   : > { %17063 = shalt.err (!%p17060_p2)
}
  0xee   : > { %s17064_s18 = scalar_lea.vmem %s631_s28, 16  ;;  %s17071_s1 = scalar_lea.vmem %s631_s28, 32 }
  0xef   : > { %p17065_p5 = scmp.ne.s32.totalorder %s631_s28, %s17064_s18  ;;  %p17072_p10 = scmp.lt.s32.totalorder %s631_s28, %s631_s28 }
  0xf0   : > { %p17073_p11 = scmp.lt.s32.totalorder %s17071_s1, %s17064_s18 }
  0xf1   : > { %p17067_p7 = pnand %p17065_p5, %p17652_p8 }
  0xf2   : > { %p17074_p12 = por %p17073_p11, %p17072_p10 }
  0xf3   : > { %p17068_p9 = pneg %p17067_p7 }
  0xf5   : > { %p17075_p4 = pnand %p17074_p12, %p17068_p9 }
  0xf7   : > { %17078 = shalt.err (!%p17075_p4)
}
  0xf8   : > { %16343 = dma.hbm_to_vmem [thread:$0]  (!%p17636_p6), %s21464_s15, 16, %s631_s28, [#allocation27]  }
  0xf9   : > { %s21641_s4 = sld [smem:[#allocation132_spill]] }
  0xff   : > { %s17079_s26 = scalar_lea.hbm %s21641_s4, 512 }
 0x100   : > { %p17080_p13 = scmp.ne.s32.totalorder %s21641_s4, %s17079_s26  ;;  %p17086_p3 = scmp.lt.u32.totalorder %s17079_s26, %s21641_s4 }
 0x102   : > { %p17082_p0 = pnand %p17080_p13, %p17652_p8 }
 0x104   : > { %p17083_p1 = pneg %p17082_p0 }
 0x106   : > { %p17088_p2 = pnand %p17086_p3, %p17083_p1 }
 0x108   : > { %17091 = shalt.err (!%p17088_p2)
}
 0x109   : > { %s17092_s18 = scalar_lea.vmem %s499_s22, 512  ;;  %p17100_p10 = scmp.lt.s32.totalorder %s499_s22, %s499_s22 }
 0x10a   : > { %p17093_p5 = scmp.ne.s32.totalorder %s499_s22, %s17092_s18  ;;  %p17101_p11 = scmp.lt.s32.totalorder %s17092_s18, %s17092_s18 }
 0x10c   : > { %p17095_p7 = pnand %p17093_p5, %p17652_p8  ;;  %p17102_p12 = por %p17101_p11, %p17100_p10 }
 0x10e   : > { %p17096_p9 = pneg %p17095_p7 }
 0x110   : > { %p17103_p4 = pnand %p17102_p12, %p17096_p9 }
 0x112   : > { %17106 = shalt.err (!%p17103_p4)
}
 0x113   : > { %s21482_s28 = smov 128   ;;  %s21483_s1 = smov 8  }
 0x114   : > { %16310 = dma.hbm_to_vmem [thread:$0]  (!%p17636_p6), %s21641_s4, 512, %s499_s22, [#allocation9], %s21482_s28, %s21482_s28, %s21483_s1  }
 0x115   : > { %s17482_s29 = smov [#allocation13]   ;;  %s17483_s26 = smov [#allocation16]  }
 0x116   : > { %s522_s23 = sshll.u32 %s17482_s29, 4  ;;  %s546_s30 = sshll.u32 %s17483_s26, 4  ;;  %s523_s23 = int_to_ptr.vmem [resolvable:$true] %s522_s23  ;;  %s547_s30 = int_to_ptr.vmem [resolvable:$true] %s546_s30 }
 0x117   : > { %s21642_s6 = sld [smem:[#allocation134_spill]] }
 0x11d   : > { %s17107_s27 = scalar_lea.hbm %s21642_s6, 512 }
 0x11e   : > { %p17108_p13 = scmp.ne.s32.totalorder %s21642_s6, %s17107_s27  ;;  %p17114_p3 = scmp.lt.u32.totalorder %s17107_s27, %s21642_s6 }
 0x120   : > { %p17110_p0 = pnand %p17108_p13, %p17652_p8 }
 0x122   : > { %p17111_p1 = pneg %p17110_p0 }
 0x124   : > { %p17116_p2 = pnand %p17114_p3, %p17111_p1 }
 0x126   : > { %17119 = shalt.err (!%p17116_p2)
}
 0x127   : > { %s17120_s22 = scalar_lea.vmem %s523_s23, 512  ;;  %p17128_p10 = scmp.lt.s32.totalorder %s523_s23, %s523_s23 }
 0x128   : > { %p17121_p5 = scmp.ne.s32.totalorder %s523_s23, %s17120_s22  ;;  %p17129_p11 = scmp.lt.s32.totalorder %s17120_s22, %s17120_s22 }
 0x12a   : > { %p17123_p7 = pnand %p17121_p5, %p17652_p8  ;;  %p17130_p12 = por %p17129_p11, %p17128_p10 }
 0x12c   : > { %p17124_p9 = pneg %p17123_p7 }
 0x12e   : > { %p17131_p4 = pnand %p17130_p12, %p17124_p9 }
 0x130   : > { %17134 = shalt.err (!%p17131_p4)
}
 0x131   : > { %16316 = dma.hbm_to_vmem [thread:$0]  (!%p17636_p6), %s21642_s6, 512, %s523_s23, [#allocation12], %s21482_s28, %s21482_s28, %s21483_s1  }
 0x132   : > { %s21643_s8 = sld [smem:[#allocation136_spill]] }
 0x138   : > { %s17135_s19 = scalar_lea.hbm %s21643_s8, 512 }
 0x139   : > { %p17136_p13 = scmp.ne.s32.totalorder %s21643_s8, %s17135_s19  ;;  %p17142_p3 = scmp.lt.u32.totalorder %s17135_s19, %s21643_s8 }
 0x13b   : > { %p17138_p0 = pnand %p17136_p13, %p17652_p8 }
 0x13d   : > { %p17139_p1 = pneg %p17138_p0 }
 0x13f   : > { %p17144_p2 = pnand %p17142_p3, %p17139_p1 }
 0x141   : > { %17147 = shalt.err (!%p17144_p2)
}
 0x142   : > { %s17148_s27 = scalar_lea.vmem %s547_s30, 512  ;;  %p17156_p10 = scmp.lt.s32.totalorder %s547_s30, %s547_s30 }
 0x143   : > { %p17149_p5 = scmp.ne.s32.totalorder %s547_s30, %s17148_s27  ;;  %p17157_p11 = scmp.lt.s32.totalorder %s17148_s27, %s17148_s27 }
 0x145   : > { %p17151_p7 = pnand %p17149_p5, %p17652_p8  ;;  %p17158_p12 = por %p17157_p11, %p17156_p10 }
 0x147   : > { %p17152_p9 = pneg %p17151_p7 }
 0x149   : > { %p17159_p4 = pnand %p17158_p12, %p17152_p9 }
 0x14b   : > { %17162 = shalt.err (!%p17159_p4)
}
 0x14c   : > { %16322 = dma.hbm_to_vmem [thread:$0]  (!%p17636_p6), %s21643_s8, 512, %s547_s30, [#allocation15], %s21482_s28, %s21482_s28, %s21483_s1  }
 0x14d   : > { %s17484_s22 = smov [#allocation19]   ;;  %s17485_s5 = smov [#allocation22]  }
 0x14e   : > { %s570_s3 = sshll.u32 %s17484_s22, 4  ;;  %s595_s7 = sshll.u32 %s17485_s5, 4  ;;  %s571_s3 = int_to_ptr.vmem [resolvable:$true] %s570_s3  ;;  %s596_s7 = int_to_ptr.vmem [resolvable:$true] %s595_s7 }
 0x14f   : > { %s21644_s10 = sld [smem:[#allocation138_spill]] }
 0x155   : > { %s17163_s29 = scalar_lea.hbm %s21644_s10, 512 }
 0x156   : > { %p17164_p13 = scmp.ne.s32.totalorder %s21644_s10, %s17163_s29  ;;  %p17170_p3 = scmp.lt.u32.totalorder %s17163_s29, %s21644_s10 }
 0x158   : > { %p17166_p0 = pnand %p17164_p13, %p17652_p8 }
 0x15a   : > { %p17167_p1 = pneg %p17166_p0 }
 0x15c   : > { %p17172_p2 = pnand %p17170_p3, %p17167_p1 }
 0x15e   : > { %17175 = shalt.err (!%p17172_p2)
}
 0x15f   : > { %s17176_s30 = scalar_lea.vmem %s571_s3, 512  ;;  %p17184_p10 = scmp.lt.s32.totalorder %s571_s3, %s571_s3 }
 0x160   : > { %p17177_p5 = scmp.ne.s32.totalorder %s571_s3, %s17176_s30  ;;  %p17185_p11 = scmp.lt.s32.totalorder %s17176_s30, %s17176_s30 }
 0x162   : > { %p17179_p7 = pnand %p17177_p5, %p17652_p8  ;;  %p17186_p12 = por %p17185_p11, %p17184_p10 }
 0x164   : > { %p17180_p9 = pneg %p17179_p7 }
 0x166   : > { %p17187_p4 = pnand %p17186_p12, %p17180_p9 }
 0x168   : > { %17190 = shalt.err (!%p17187_p4)
}
 0x169   : > { %16328 = dma.hbm_to_vmem [thread:$0]  (!%p17636_p6), %s21644_s10, 512, %s571_s3, [#allocation18], %s21482_s28, %s21482_s28, %s21483_s1  }
 0x16a   : > { %s21645_s12 = sld [smem:[#allocation140_spill]] }
 0x170   : > { %s17191_s25 = scalar_lea.hbm %s21645_s12, 16 }
 0x171   : > { %p17192_p13 = scmp.ne.s32.totalorder %s21645_s12, %s17191_s25  ;;  %p17198_p3 = scmp.lt.u32.totalorder %s17191_s25, %s21645_s12 }
 0x173   : > { %p17194_p0 = pnand %p17192_p13, %p17652_p8 }
 0x175   : > { %p17195_p1 = pneg %p17194_p0 }
 0x177   : > { %p17200_p2 = pnand %p17198_p3, %p17195_p1 }
 0x179   : > { %17203 = shalt.err (!%p17200_p2)
}
 0x17a   : > { %s17204_s21 = scalar_lea.vmem %s596_s7, 16  ;;  %s17211_s3 = scalar_lea.vmem %s596_s7, 32 }
 0x17b   : > { %p17205_p5 = scmp.ne.s32.totalorder %s596_s7, %s17204_s21  ;;  %p17212_p10 = scmp.lt.s32.totalorder %s596_s7, %s596_s7 }
 0x17c   : > { %p17213_p11 = scmp.lt.s32.totalorder %s17211_s3, %s17204_s21 }
 0x17d   : > { %p17207_p7 = pnand %p17205_p5, %p17652_p8 }
 0x17e   : > { %p17214_p12 = por %p17213_p11, %p17212_p10 }
 0x17f   : > { %p17208_p9 = pneg %p17207_p7 }
 0x181   : > { %p17215_p4 = pnand %p17214_p12, %p17208_p9 }
 0x183   : > { %17218 = shalt.err (!%p17215_p4)
}
 0x184   : > { %16334 = dma.hbm_to_vmem [thread:$0]  (!%p17636_p6), %s21645_s12, 16, %s596_s7, [#allocation21]  }
 0x185   : > { %s17486_s23 = smov [#allocation25]   ;;  %s17487_s22 = smov [#allocation28]  }
 0x186   : > { %s616_s18 = sshll.u32 %s17486_s23, 4  ;;  %s640_s5 = sshll.u32 %s17487_s22, 4  ;;  %s617_s18 = int_to_ptr.vmem [resolvable:$true] %s616_s18  ;;  %s641_s5 = int_to_ptr.vmem [resolvable:$true] %s640_s5 }
 0x187   : > { %s17219_s29 = scalar_lea.hbm %s21463_s14, 512 }
 0x188   : > { %p17220_p13 = scmp.ne.s32.totalorder %s21463_s14, %s17219_s29  ;;  %p17226_p3 = scmp.lt.u32.totalorder %s17219_s29, %s21463_s14 }
 0x18a   : > { %p17222_p0 = pnand %p17220_p13, %p17652_p8 }
 0x18c   : > { %p17223_p1 = pneg %p17222_p0 }
 0x18e   : > { %p17228_p2 = pnand %p17226_p3, %p17223_p1 }
 0x190   : > { %17231 = shalt.err (!%p17228_p2)
}
 0x191   : > { %s17232_s7 = scalar_lea.vmem %s617_s18, 512  ;;  %p17240_p10 = scmp.lt.s32.totalorder %s617_s18, %s617_s18 }
 0x192   : > { %p17233_p5 = scmp.ne.s32.totalorder %s617_s18, %s17232_s7  ;;  %p17241_p11 = scmp.lt.s32.totalorder %s17232_s7, %s17232_s7 }
 0x194   : > { %p17235_p7 = pnand %p17233_p5, %p17652_p8  ;;  %p17242_p12 = por %p17241_p11, %p17240_p10 }
 0x196   : > { %p17236_p9 = pneg %p17235_p7 }
 0x198   : > { %p17243_p4 = pnand %p17242_p12, %p17236_p9 }
 0x19a   : > { %17246 = shalt.err (!%p17243_p4)
}
 0x19b   : > { %16340 = dma.hbm_to_vmem [thread:$0]  (!%p17636_p6), %s21463_s14, 512, %s617_s18, [#allocation24], %s21482_s28, %s21482_s28, %s21483_s1  }
 0x19c   : > { %s17247_s25 = scalar_lea.hbm %s21465_s16, 1024 }
 0x19d   : > { %p17248_p13 = scmp.ne.s32.totalorder %s21465_s16, %s17247_s25  ;;  %p17254_p3 = scmp.lt.u32.totalorder %s17247_s25, %s21465_s16 }
 0x19f   : > { %p17250_p0 = pnand %p17248_p13, %p17652_p8 }
 0x1a1   : > { %p17251_p1 = pneg %p17250_p0 }
 0x1a3   : > { %p17256_p2 = pnand %p17254_p3, %p17251_p1 }
 0x1a5   : > { %17259 = shalt.err (!%p17256_p2)
}
 0x1a6   : > { %s17260_s21 = scalar_lea.vmem %s641_s5, 1024  ;;  %p17268_p10 = scmp.lt.s32.totalorder %s641_s5, %s641_s5 }
 0x1a7   : > { %p17261_p5 = scmp.ne.s32.totalorder %s641_s5, %s17260_s21  ;;  %p17269_p11 = scmp.lt.s32.totalorder %s17260_s21, %s17260_s21 }
 0x1a9   : > { %p17263_p7 = pnand %p17261_p5, %p17652_p8  ;;  %p17270_p12 = por %p17269_p11, %p17268_p10 }
 0x1ab   : > { %p17264_p9 = pneg %p17263_p7 }
 0x1ad   : > { %p17271_p4 = pnand %p17270_p12, %p17264_p9 }
 0x1af   : > { %17274 = shalt.err (!%p17271_p4)
}
 0x1b0   : > { %16346 = dma.hbm_to_vmem [thread:$0]  (!%p17636_p6), %s21465_s16, 1024, %s641_s5, [#allocation27], %s21482_s28, %s21482_s28, %s21483_s1  }
 0x1b1   : > { %s17488_s7 = smov [#allocation29]   ;;  %s17275_s22 = scalar_lea.hbm %s21466_s17, 16 }
 0x1b2   : > { %s654_s27 = sshll.u32 %s17488_s7, 4  ;;  %p17276_p13 = scmp.ne.s32.totalorder %s21466_s17, %s17275_s22  ;;  %s655_s27 = int_to_ptr.vmem [resolvable:$true] %s654_s27 }
 0x1b3   : > { %p17282_p3 = scmp.lt.u32.totalorder %s17275_s22, %s21466_s17 }
 0x1b4   : > { %p17278_p0 = pnand %p17276_p13, %p17652_p8 }
 0x1b6   : > { %p17279_p1 = pneg %p17278_p0 }
 0x1b8   : > { %p17284_p2 = pnand %p17282_p3, %p17279_p1 }
 0x1ba   : > { %17287 = shalt.err (!%p17284_p2)
}
 0x1bb   : > { %s17288_s5 = scalar_lea.vmem %s655_s27, 16  ;;  %s17295_s0 = scalar_lea.vmem %s655_s27, 32 }
 0x1bc   : > { %p17289_p5 = scmp.ne.s32.totalorder %s655_s27, %s17288_s5  ;;  %p17296_p10 = scmp.lt.s32.totalorder %s655_s27, %s655_s27 }
 0x1bd   : > { %p17297_p11 = scmp.lt.s32.totalorder %s17295_s0, %s17288_s5 }
 0x1be   : > { %p17291_p7 = pnand %p17289_p5, %p17652_p8 }
 0x1bf   : > { %p17298_p12 = por %p17297_p11, %p17296_p10 }
 0x1c0   : > { %p17292_p9 = pneg %p17291_p7 }
 0x1c2   : > { %p17299_p4 = pnand %p17298_p12, %p17292_p9 }
 0x1c4   : > { %17302 = shalt.err (!%p17299_p4)
}
 0x1c5   : > { %s21646_s3 = sld [smem:[#allocation47_spill]]  ;;  %s21647_s7 = sld [smem:[#allocation46_spill]] }
 0x1c6   : > { %s21648_s30 = sld [smem:[#allocation45_spill]]  ;;  %s21649_s2 = sld [smem:[#allocation44_spill]] }
 0x1c7   : > { %s21650_s23 = sld [smem:[#allocation48_spill]] }
 0x1c8   : > { %16349 = dma.hbm_to_vmem [thread:$0]  (!%p17636_p6), %s21466_s17, 16, %s655_s27, [#allocation30]  }
 0x1cb   : > { %s14394_s22 = sadd.s32 4294967294, %s21646_s3   ;;  %s17977_s24 = sadd.s32 1, %s21646_s3  }
 0x1cc   : > { %s49_s25 = ssub.s32 %s21646_s3, %s17977_s24  ;;  %s52_s19 = sadd.s32 1, %s21647_s7 }
 0x1cd   : > { %p50_p8 = scmp.eq.s32.totalorder %s49_s25, 0  ;;  %p59_p13 = scmp.ne.s32.totalorder %s21647_s7, %s21648_s30 }
 0x1ce   : > { %p60_p0 = scmp.eq.s32.totalorder %s21646_s3, 0  ;;  %p65_p1 = scmp.ne.s32.totalorder %s21648_s30, %s21649_s2 }
 0x1cf   : > { %s17988_s29 = scalar_select %p50_p8, %s21647_s7, %s52_s19  }
 0x1d0   : > { %p17990_p3 = por %p60_p0, %p59_p13  ;;  %p21652_p2 = scmp.eq.s32.totalorder %s21650_s23, 0 }
 0x1d1   : > { %p451_p5 = scmp.eq.s32.totalorder %s21650_s23, 1  ;;  %p457_p7 = scmp.eq.s32.totalorder %s14394_s22, 1 }
 0x1d2   : > { %p17996_p6 = por %p21652_p2, %p65_p1  ;;  %p16377_p9 = scmp.lt.s32.totalorder %s21646_s3, 2 }
 0x1d3   : > { %s18003_s5 = sand.u32 1, %s21647_s7   ;;  %p18005_p10 = por %p451_p5, %p59_p13 }
 0x1d4   : > { %p18009_p11 = por %p457_p7, %p65_p1  ;;  %s14413_s18 = sshll.u32 %s18003_s5, 7 }
 0x1d5   : > { %s21654_s0 = scalar_select %p18005_p10, 1, 0 }
 0x1d6   : > { %s21655_s21 = scalar_select %p18009_p11, 1, 0 }
 0x1d7   : > { %s14790_s30 = sshll.u32 %s21646_s3, 11  ;;  %s21656_s23 = sld [smem:[#allocation128_spill]] }
 0x1d8   : > { %s669_s7 = scalar_lea.vmem [#allocation2], %s14413_s18  ;;  %p18024_p12 = pnand %p16377_p9, %p17990_p3 }
 0x1d9   : > { %s676_s19 = sshll.u32 %s669_s7, 4  ;;  %s14416_s4 = sshll.u32 %s18003_s5, 4  ;;  %s18020_s19 = int_to_ptr.vmem [resolvable:$true] %s676_s19 }
 0x1da   : > { %s666_s2 = scalar_lea.sflag [#allocation3], %s18003_s5  ;;  %p17305_p8 = pneg %p18024_p12 }
 0x1dd   : > { %s18018_s22 = scalar_lea.hbm %s21656_s23, %s14790_s30  ;;  %s17308_s26 = scalar_lea.hbm %s21656_s23, 4096 }
 0x1de   : > { %s17303_s30 = scalar_lea.hbm %s18018_s22, 2048  ;;  %p17309_p1 = scmp.lt.u32.totalorder %s18018_s22, %s21656_s23 }
 0x1df   : > { %p17304_p4 = scmp.ne.s32.totalorder %s18018_s22, %s17303_s30  ;;  %p17310_p3 = scmp.lt.u32.totalorder %s17308_s26, %s17303_s30 }
 0x1e0   : > { %p17312_p5 = scmp.lt.u32.totalorder %s17303_s30, %s18018_s22 }
 0x1e1   : > { %p17306_p13 = pnand %p17305_p8, %p17304_p4  ;;  %p17311_p2 = por %p17310_p3, %p17309_p1 }
 0x1e3   : > { %p17307_p0 = pneg %p17306_p13  ;;  %p17313_p7 = por %p17312_p5, %p17311_p2 }
 0x1e5   : > { %p17314_p9 = pnand %p17313_p7, %p17307_p0 }
 0x1e7   : > { %17317 = shalt.err (!%p17314_p9)
}
 0x1e8   : > { %s17318_s1 = scalar_lea.vmem %s18020_s19, 2048  ;;  %s17489_s18 = smov [#allocation2]  }
 0x1e9   : > { %p17319_p4 = scmp.ne.s32.totalorder %s18020_s19, %s17318_s1  ;;  %s17323_s25 = sshll.u32 %s17489_s18, 4  ;;  %s17324_s25 = int_to_ptr.vmem [resolvable:$false] %s17323_s25 }
 0x1ea   : > { %s17325_s6 = scalar_lea.vmem %s17324_s25, 4096  ;;  %p17326_p10 = scmp.lt.s32.totalorder %s18020_s19, %s17324_s25 }
 0x1eb   : > { %p17321_p13 = pnand %p17319_p4, %p17305_p8  ;;  %p17327_p1 = scmp.lt.s32.totalorder %s17325_s6, %s17318_s1 }
 0x1ed   : > { %p17322_p11 = pneg %p17321_p13  ;;  %p17328_p3 = por %p17327_p1, %p17326_p10 }
 0x1ef   : > { %p17329_p2 = pnand %p17328_p3, %p17322_p11 }
 0x1f1   : > { %17332 = shalt.err (!%p17329_p2)
}
 0x1f2   : > { %s21658_s30 = smov 8   ;;  %s21659_s26 = smov 128  }
 0x1f3   : > { %16353 = dma.hbm_to_vmem [thread:$0]  (!%p18024_p12), %s18018_s22, 2048, %s18020_s19, %s666_s2, %s21659_s26, %s21659_s26, %s21658_s30  }
 0x1f4   : > { %s14791_s7 = sshll.u32 %s21646_s3, 8  ;;  %s21660_s25 = sld [smem:[#allocation129_spill]] }
 0x1f5   : > { %s690_s8 = scalar_lea.vmem [#allocation5], %s14416_s4  ;;  %s21661_s10 = sand.u32 1, %s21646_s3  }
 0x1f6   : > { %s697_s9 = sshll.u32 %s690_s8, 4  ;;  %s18073_s11 = scalar_lea.sflag [#allocation6], %s21661_s10  ;;  %s18069_s9 = int_to_ptr.vmem [resolvable:$true] %s697_s9 }
 0x1fa   : > { %s18065_s6 = scalar_lea.hbm %s21660_s25, %s14791_s7  ;;  %s17338_s5 = scalar_lea.hbm %s21660_s25, 512 }
 0x1fb   : > { %s17333_s12 = scalar_lea.hbm %s18065_s6, 256  ;;  %p17339_p5 = scmp.lt.u32.totalorder %s18065_s6, %s21660_s25 }
 0x1fc   : > { %p17334_p10 = scmp.ne.s32.totalorder %s18065_s6, %s17333_s12  ;;  %p17340_p7 = scmp.lt.u32.totalorder %s17338_s5, %s17333_s12 }
 0x1fd   : > { %p17342_p4 = scmp.lt.u32.totalorder %s17333_s12, %s18065_s6 }
 0x1fe   : > { %p17336_p11 = pnand %p17334_p10, %p17305_p8  ;;  %p17341_p9 = por %p17340_p7, %p17339_p5 }
 0x200   : > { %p17337_p0 = pneg %p17336_p11  ;;  %p17343_p13 = por %p17342_p4, %p17341_p9 }
 0x202   : > { %p17344_p1 = pnand %p17343_p13, %p17337_p0 }
 0x204   : > { %17347 = shalt.err (!%p17344_p1)
}
 0x205   : > { %s17348_s4 = scalar_lea.vmem %s18069_s9, 256  ;;  %s17490_s8 = smov [#allocation5]  }
 0x206   : > { %p17349_p3 = scmp.ne.s32.totalorder %s18069_s9, %s17348_s4  ;;  %s17353_s10 = sshll.u32 %s17490_s8, 4  ;;  %s17354_s10 = int_to_ptr.vmem [resolvable:$false] %s17353_s10 }
 0x207   : > { %s17355_s3 = scalar_lea.vmem %s17354_s10, 512  ;;  %p17356_p11 = scmp.lt.s32.totalorder %s18069_s9, %s17354_s10 }
 0x208   : > { %p17351_p2 = pnand %p17349_p3, %p17305_p8  ;;  %p17357_p5 = scmp.lt.s32.totalorder %s17355_s3, %s17348_s4 }
 0x20a   : > { %p17352_p10 = pneg %p17351_p2  ;;  %p17358_p7 = por %p17357_p5, %p17356_p11 }
 0x20c   : > { %p17359_p9 = pnand %p17358_p7, %p17352_p10 }
 0x20e   : > { %17362 = shalt.err (!%p17359_p9)
}
 0x20f   : > { %s17491_s12 = smov 16   ;;  %s17492_s26 = smov 1  }
 0x210   : > { %16356 = dma.hbm_to_vmem [thread:$0]  (!%p18024_p12), %s18065_s6, 256, %s18069_s9, %s18073_s11, %s17491_s12, %s17491_s12, %s17492_s26  }
 0x211   : > { %s21662_s7 = sld [smem:[#allocation49_spill]] }
 0x217   : > { %p21663_p8 = scmp.ne.s32.totalorder %s21662_s7, 0 }
 0x219   : > { %709 = sbr.rel (%p21663_p8) target bundleno = 5193 (0x1449), region = 92 }
 0x220   : > { %s21664_s18 = sld [smem:[#allocation45_spill]] }
 0x226   : > { %s18102_s1 = sand.u32 1, %s21664_s18  }
 0x227   : > { %s14420_s22 = sshll.u32 %s18102_s1, 7  ;;  %s712_s19 = scalar_lea.sflag [#allocation3], %s18102_s1 }
 0x228   : > { %s18108_s5 = scalar_lea.vmem [#allocation2], %s14420_s22 }
 0x229   : > { %17408 = dma.done.wait (%p17996_p6), %s712_s19, 2048  }
 0x22a   : > { %17410 = vsyncadd (%p17996_p6), %s712_s19, 4294965248  ;;  %s21665_s9 = sld [smem:[#allocation48_spill]]  ;;  %s14421_s28 = sshll.u32 %s18102_s1, 4 }
 0x22b   : > { %s18116_s2 = scalar_lea.vmem [#allocation5], %s14421_s28 }
 0x230   : > { %s720_s11 = sand.u32 1, %s21665_s9  }
 0x231   : > { %s721_s6 = scalar_lea.sflag [#allocation6], %s720_s11 }
 0x232   : > { %17412 = dma.done.wait (%p17996_p6), %s721_s6, 256  }
 0x233   : > { %17414 = vsyncadd (%p17996_p6), %s721_s6, 4294967040  ;;  %p21666_p12 = scmp.eq.s32.totalorder %s21665_s9, 0 }
 0x235   : > { %17416 = dma.done.wait (%p21666_p12), [#allocation6], 16   ;;  %p21667_p0 = pmov %p21666_p12 }
 0x237   : > { %17418 = vsyncadd (%p21667_p0), [#allocation6], 4294967280  ;;  %p21668_p4 = pmov %p21667_p0 }
 0x238   : > { %p21669_p13 = pmov %p21667_p0 }
 0x239   : > { %17420 = dma.done.wait (%p21668_p4), [#allocation9], 528  }
 0x23a   : > { %17422 = vsyncadd (%p21669_p13), [#allocation9], 4294966768  ;;  %p21670_p1 = pmov %p21667_p0 }
 0x23b   : > { %p21671_p3 = pmov %p21667_p0 }
 0x23c   : > { %17424 = dma.done.wait (%p21670_p1), [#allocation12], 528  }
 0x23d   : > { %17426 = vsyncadd (%p21671_p3), [#allocation12], 4294966768  ;;  %p21672_p6 = pmov %p21667_p0 }
 0x23e   : > { %p21673_p2 = pmov %p21667_p0 }
 0x23f   : > { %17428 = dma.done.wait (%p21672_p6), [#allocation15], 528  }
 0x240   : > { %17430 = vsyncadd (%p21673_p2), [#allocation15], 4294966768  ;;  %p21674_p10 = pmov %p21667_p0 }
 0x241   : > { %p21675_p11 = pmov %p21667_p0 }
 0x242   : > { %17432 = dma.done.wait (%p21674_p10), [#allocation18], 528  }
 0x243   : > { %17434 = vsyncadd (%p21675_p11), [#allocation18], 4294966768  ;;  %p21676_p5 = pmov %p21667_p0 }
 0x244   : > { %p21677_p7 = pmov %p21667_p0 }
 0x245   : > { %17436 = dma.done.wait (%p21676_p5), [#allocation21], 32  }
 0x246   : > { %17438 = vsyncadd (%p21677_p7), [#allocation21], 4294967264  ;;  %p21678_p9 = pmov %p21667_p0 }
 0x247   : > { %p21679_p8 = pmov %p21667_p0 }
 0x248   : > { %17440 = dma.done.wait (%p21678_p9), [#allocation24], 528  }
 0x249   : > { %17442 = vsyncadd (%p21679_p8), [#allocation24], 4294966768  ;;  %p21680_p12 = pmov %p21667_p0 }
 0x24b   : > { %17444 = dma.done.wait (%p21680_p12), [#allocation27], 1040  }
 0x24c   : > { %17446 = vsyncadd (%p21667_p0), [#allocation27], 4294966256  ;;  %p21681_p4 = pmov %p21667_p0 }
 0x24d   : > { %p21682_p13 = pmov %p21667_p0 }
 0x24e   : > { %17448 = dma.done.wait (%p21681_p4), [#allocation30], 16  }
 0x24f   : > { %17450 = vsyncadd (%p21682_p13), [#allocation30], 4294967280  ;;  %vm21542_vm0 = vcmask 261120   ;;  %v849_v0 = vld [vmem:[%s18108_s5] sm:$0xff]  ;;  %v851_v1 = vld [vmem:[%s18108_s5 + $0x10] sm:$0xff]  ;;  %s17495_s27 = smov 120  }
 0x250   : > { %v850_v2 = vld [vmem:[%s18108_s5 + $0x8] sm:$0xff]  ;;  %v868_v3 = vsel %vm21542_vm0, %v849_v0, 0.0  ;;  %v874_v4 = vsel %vm21542_vm0, %v851_v1, 0.0  ;;  %v852_v5 = vld [vmem:[%s18108_s5 + $0x18] sm:$0xff]  ;;  %v853_v8 = vld [vmem:[%s18108_s5 + $0x20] sm:$0xff]  ;;  %s17497_s30 = smov 112  }
 0x251   : > { %869 = vadd.xlane.f32.xlu0 %v868_v3  ;;  %875 = vadd.xlane.f32.xlu1 %v874_v4  ;;  %v871_v6 = vsel %vm21542_vm0, %v850_v2, 0.0  ;;  %v877_v7 = vsel %vm21542_vm0, %v852_v5, 0.0  ;;  %v854_v9 = vld [vmem:[%s18108_s5 + $0x28] sm:$0xff]  ;;  %v880_v10 = vsel %vm21542_vm0, %v853_v8, 0.0  ;;  %v18171_v12 = vld [vmem:[%s18108_s5 + $0x30] sm:$0xff]  ;;  %v18174_v13 = vld [vmem:[%s18108_s5 + $0x38] sm:$0xff] }
 0x252   : > { %v883_v11 = vsel %vm21542_vm0, %v854_v9, 0.0  ;;  %v886_v14 = vsel %vm21542_vm0, %v18171_v12, 0.0  ;;  %v889_v15 = vsel %vm21542_vm0, %v18174_v13, 0.0  ;;  %v18181_v16 = vld [vmem:[%s18108_s5 + $0x40] sm:$0xff]  ;;  %v18184_v17 = vld [vmem:[%s18108_s5 + $0x48] sm:$0xff]  ;;  %v18191_v20 = vld [vmem:[%s18108_s5 + $0x50] sm:$0xff] }
 0x253   : > { %v892_v18 = vsel %vm21542_vm0, %v18181_v16, 0.0  ;;  %v895_v19 = vsel %vm21542_vm0, %v18184_v17, 0.0  ;;  %v18194_v21 = vld [vmem:[%s18108_s5 + $0x58] sm:$0xff]  ;;  %v898_v22 = vsel %vm21542_vm0, %v18191_v20, 0.0  ;;  %v18201_v24 = vld [vmem:[%s18108_s5 + $0x60] sm:$0xff]  ;;  %v18204_v25 = vld [vmem:[%s18108_s5 + $0x68] sm:$0xff] }
 0x254   : > { %v901_v23 = vsel %vm21542_vm0, %v18194_v21, 0.0  ;;  %v904_v26 = vsel %vm21542_vm0, %v18201_v24, 0.0  ;;  %v907_v27 = vsel %vm21542_vm0, %v18204_v25, 0.0  ;;  %v18211_v28 = vld [vmem:[%s18108_s5 + $0x70] sm:$0xff]  ;;  %v18214_v29 = vld [vmem:[%s18108_s5 + $0x78] sm:$0xff]  ;;  %s17498_s4 = smov 104  }
 0x255   : > { %872 = vadd.xlane.f32.xlu0 %v871_v6  ;;  %878 = vadd.xlane.f32.xlu1 %v877_v7  ;;  %v910_v30 = vsel %vm21542_vm0, %v18211_v28, 0.0  ;;  %v913_v31 = vsel %vm21542_vm0, %v18214_v29, 0.0  ;;  %s21336_s8 = scalar_lea.vmem [#allocation31], %s14420_s22  ;;  %s14792_s10 = sshll.u32 %s21665_s9, 11 }
 0x256   : > { %s14146_s3 = sshll.u32 %s21336_s8, 4  ;;  %s21993_s7 = sld [smem:[#allocation141_spill]]  ;;  %s21400_s3 = int_to_ptr.vmem [resolvable:$true] %s14146_s3 }
 0x257   : > { %s14133_s22 = scalar_lea.sflag [#allocation4], %s18102_s1  ;;  %s17363_s19 = scalar_lea.vmem %s21400_s3, 2048 }
 0x258   : > { %p17364_p1 = scmp.ne.s32.totalorder %s21400_s3, %s17363_s19  ;;  %p21996_p3 = scmp.ne.s32.totalorder %s21654_s0, 0 }
 0x259   : > { %881 = vadd.xlane.f32.xlu0 %v880_v10  ;;  %884 = vadd.xlane.f32.xlu1 %v883_v11 }
 0x25a   : > { %p17365_p6 = pnand %p17364_p1, %p21996_p3 }
 0x25c   : > { %s21398_s18 = scalar_lea.hbm %s21993_s7, %s14792_s10  ;;  %p17366_p2 = pneg %p17365_p6 }
 0x25d   : > { %887 = vadd.xlane.f32.xlu0 %v886_v14  ;;  %890 = vadd.xlane.f32.xlu1 %v889_v15 }
 0x261   : > { %893 = vadd.xlane.f32.xlu0 %v892_v18  ;;  %896 = vadd.xlane.f32.xlu1 %v895_v19 }
 0x265   : > { %899 = vadd.xlane.f32.xlu0 %v898_v22  ;;  %902 = vadd.xlane.f32.xlu1 %v901_v23 }
 0x269   : > { %905 = vadd.xlane.f32.xlu0 %v904_v26  ;;  %908 = vadd.xlane.f32.xlu1 %v907_v27 }
 0x26d   : > { %911 = vadd.xlane.f32.xlu0 %v910_v30  ;;  %914 = vadd.xlane.f32.xlu1 %v913_v31 }
 0x2de   : > { %v870_v32 = vpop.xlane.xlu0 %869  ;;  %v876_v33 = vpop.xlane.xlu1 %875 }
 0x2df   : > { %v917_v34 = vmul.f32 0.03125, %v870_v32  ;;  %v919_v35 = vmul.f32 0.03125, %v876_v33 }
 0x2e1   : > { %v18220_v36 = vsub.f32 %v849_v0, %v917_v34  ;;  %v18222_v37 = vsub.f32 %v851_v1, %v919_v35 }
 0x2e2   : > { %v873_v38 = vpop.xlane.xlu0 %872  ;;  %v879_v39 = vpop.xlane.xlu1 %878 }
 0x2e3   : > { %v918_v40 = vmul.f32 0.03125, %v873_v38  ;;  %v920_v41 = vmul.f32 0.03125, %v879_v39  ;;  %v949_v42 = vmul.f32 %v18220_v36, %v18220_v36  ;;  %v951_v43 = vmul.f32 %v18222_v37, %v18222_v37 }
 0x2e5   : > { %v18228_v44 = vsub.f32 %v850_v2, %v918_v40  ;;  %v18230_v45 = vsub.f32 %v852_v5, %v920_v41  ;;  %v965_v46 = vsel %vm21542_vm0, %v949_v42, 0.0  ;;  %v971_v51 = vsel %vm21542_vm0, %v951_v43, 0.0 }
 0x2e6   : > { %v882_v47 = vpop.xlane.xlu0 %881  ;;  %v885_v48 = vpop.xlane.xlu1 %884  ;;  %966 = vadd.xlane.f32.xlu0 %v965_v46 }
 0x2e7   : > { %v921_v49 = vmul.f32 0.03125, %v882_v47  ;;  %v922_v50 = vmul.f32 0.03125, %v885_v48  ;;  %v950_v52 = vmul.f32 %v18228_v44, %v18228_v44  ;;  %v952_v53 = vmul.f32 %v18230_v45, %v18230_v45 }
 0x2e9   : > { %v18238_v54 = vsub.f32 %v853_v8, %v921_v49  ;;  %v18240_v55 = vsub.f32 %v854_v9, %v922_v50  ;;  %v968_v56 = vsel %vm21542_vm0, %v950_v52, 0.0  ;;  %v974_v61 = vsel %vm21542_vm0, %v952_v53, 0.0  ;;  %v1235_v53 = vld [vmem:[#allocation10 + $0x8] sm:$0xff] }
 0x2ea   : > { %v888_v57 = vpop.xlane.xlu0 %887  ;;  %v891_v58 = vpop.xlane.xlu1 %890  ;;  %972 = vadd.xlane.f32.xlu0 %v971_v51  ;;  %969 = vadd.xlane.f32.xlu1 %v968_v56  ;;  %v1454_v56 = vld [vmem:[#allocation13] sm:$0xff] }
 0x2eb   : > { %v923_v59 = vmul.f32 0.03125, %v888_v57  ;;  %v924_v60 = vmul.f32 0.03125, %v891_v58  ;;  %v953_v62 = vmul.f32 %v18238_v54, %v18238_v54  ;;  %v954_v63 = vmul.f32 %v18240_v55, %v18240_v55  ;;  %v1455_v58 = vld [vmem:[#allocation13 + $0x8] sm:$0xff] }
 0x2ed   : > { %v18249_v0 = vsub.f32 %v18171_v12, %v923_v59  ;;  %v18252_v1 = vsub.f32 %v18174_v13, %v924_v60  ;;  %v977_v2 = vsel %vm21542_vm0, %v953_v62, 0.0  ;;  %v980_v7 = vsel %vm21542_vm0, %v954_v63, 0.0  ;;  %v1236_v60 = vld [vmem:[#allocation10 + $0x10] sm:$0xff] }
 0x2ee   : > { %v894_v3 = vpop.xlane.xlu0 %893  ;;  %v897_v4 = vpop.xlane.xlu1 %896  ;;  %975 = vadd.xlane.f32.xlu1 %v974_v61  ;;  %978 = vadd.xlane.f32.xlu0 %v977_v2  ;;  %v16141_v59 = vpack.c.bf16 %v1455_v58, %v1454_v56  ;;  %v1237_v61 = vld [vmem:[#allocation10 + $0x18] sm:$0xff] }
 0x2ef   : > { %v925_v5 = vmul.f32 0.03125, %v894_v3  ;;  %v926_v6 = vmul.f32 0.03125, %v897_v4  ;;  %v955_v8 = vmul.f32 %v18249_v0, %v18249_v0  ;;  %v956_v9 = vmul.f32 %v18252_v1, %v18252_v1  ;;  %v1456_v63 = vld [vmem:[#allocation13 + $0x10] sm:$0xff]  ;;  %v1457_v2 = vld [vmem:[#allocation13 + $0x18] sm:$0xff]  ;;  %v1610_v4 = vld [vmem:[#allocation16] sm:$0xff] }
 0x2f0   : > { %16142 = vmatprep.subr.bf16.mxu1 %v16141_v59  ;;  %v16137_v62 = vpack.c.bf16 %v1237_v61, %v1236_v60  ;;  %v16145_v3 = vpack.c.bf16 %v1457_v2, %v1456_v63 }
 0x2f1   : > { %v18261_v10 = vsub.f32 %v18181_v16, %v925_v5  ;;  %v18264_v11 = vsub.f32 %v18184_v17, %v926_v6  ;;  %v983_v12 = vsel %vm21542_vm0, %v955_v8, 0.0  ;;  %v986_v19 = vsel %vm21542_vm0, %v956_v9, 0.0  ;;  %16144 = vmatpush3.bf16.msra.mxu1 %v16141_v59  ;;  %v1611_v5 = vld [vmem:[#allocation16 + $0x8] sm:$0xff] }
 0x2f2   : > { %v900_v13 = vpop.xlane.xlu0 %899  ;;  %v903_v14 = vpop.xlane.xlu1 %902  ;;  %981 = vadd.xlane.f32.xlu1 %v980_v7  ;;  %984 = vadd.xlane.f32.xlu0 %v983_v12  ;;  %v18310_v6 = vpack.c.bf16 %v1611_v5, %v1610_v4 }
 0x2f3   : > { %v927_v15 = vmul.f32 0.03125, %v900_v13  ;;  %v928_v18 = vmul.f32 0.03125, %v903_v14  ;;  %v957_v22 = vmul.f32 %v18261_v10, %v18261_v10  ;;  %v958_v16 = vmul.f32 %v18264_v11, %v18264_v11  ;;  %16146 = vmatprep.subr.bf16.mxu1 %v16145_v3 }
 0x2f5   : > { %v18273_v23 = vsub.f32 %v18191_v20, %v927_v15  ;;  %v18276_v17 = vsub.f32 %v18194_v21, %v928_v18  ;;  %v989_v26 = vsel %vm21542_vm0, %v957_v22, 0.0  ;;  %v992_v33 = vsel %vm21542_vm0, %v958_v16, 0.0  ;;  %16148 = vmatpush3.bf16.msra.mxu1 %v16145_v3  ;;  %v18323_v16 = vld [vmem:[#allocation7] ss:$0 sm:$0xff] }
 0x2f6   : > { %v906_v27 = vpop.xlane.xlu0 %905  ;;  %v909_v30 = vpop.xlane.xlu1 %908  ;;  %987 = vadd.xlane.f32.xlu1 %v986_v19  ;;  %990 = vadd.xlane.f32.xlu0 %v989_v26 }
 0x2f7   : > { %v929_v31 = vmul.f32 0.03125, %v906_v27  ;;  %v930_v32 = vmul.f32 0.03125, %v909_v30  ;;  %v959_v34 = vmul.f32 %v18273_v23, %v18273_v23  ;;  %v960_v20 = vmul.f32 %v18276_v17, %v18276_v17 }
 0x2f9   : > { %v18285_v35 = vsub.f32 %v18201_v24, %v929_v31  ;;  %v18288_v21 = vsub.f32 %v18204_v25, %v930_v32  ;;  %v995_v38 = vsel %vm21542_vm0, %v959_v34, 0.0  ;;  %v998_v43 = vsel %vm21542_vm0, %v960_v20, 0.0  ;;  %v1613_v34 = vld [vmem:[#allocation16 + $0x18] sm:$0xff] }
 0x2fa   : > { %v912_v39 = vpop.xlane.xlu0 %911  ;;  %v915_v40 = vpop.xlane.xlu1 %914  ;;  %993 = vadd.xlane.f32.xlu1 %v992_v33  ;;  %996 = vadd.xlane.f32.xlu0 %v995_v38  ;;  %v1612_v33 = vld [vmem:[#allocation16 + $0x10] sm:$0xff]  ;;  %v18333_v20 = vmul.f32 %v18323_v16, %v18220_v36  ;;  %v18337_v38 = vmul.f32 %v18323_v16, %v18222_v37 }
 0x2fb   : > { %v931_v41 = vmul.f32 0.03125, %v912_v39  ;;  %v932_v42 = vmul.f32 0.03125, %v915_v40  ;;  %v961_v46 = vmul.f32 %v18285_v35, %v18285_v35  ;;  %v962_v24 = vmul.f32 %v18288_v21, %v18288_v21 }
 0x2fc   : > { %v18341_v40 = vmul.f32 %v18323_v16, %v18228_v44 }
 0x2fd   : > { %v18297_v47 = vsub.f32 %v18211_v28, %v931_v41  ;;  %v18300_v25 = vsub.f32 %v18214_v29, %v932_v42  ;;  %v1001_v48 = vsel %vm21542_vm0, %v961_v46, 0.0  ;;  %v1004_v50 = vsel %vm21542_vm0, %v962_v24, 0.0  ;;  %v1234_v29 = vld [vmem:[#allocation10] sm:$0xff] }
 0x2fe   : > { %999 = vadd.xlane.f32.xlu1 %v998_v43  ;;  %1002 = vadd.xlane.f32.xlu0 %v1001_v48  ;;  %v16133_v57 = vpack.c.bf16 %v1235_v53, %v1234_v29  ;;  %v18345_v46 = vpack.c.bf16 %v1613_v34, %v1612_v33 }
 0x2ff   : > { %v963_v49 = vmul.f32 %v18297_v47, %v18297_v47  ;;  %v964_v51 = vmul.f32 %v18300_v25, %v18300_v25 }
 0x300   : > { %16134 = vmatprep.subr.bf16.mxu0 %v16133_v57 }
 0x301   : > { %v1007_v52 = vsel %vm21542_vm0, %v963_v49, 0.0  ;;  %v1010_v28 = vsel %vm21542_vm0, %v964_v51, 0.0  ;;  %16136 = vmatpush3.bf16.msra.mxu0 %v16133_v57 }
 0x302   : > { %1005 = vadd.xlane.f32.xlu1 %v1004_v50  ;;  %1008 = vadd.xlane.f32.xlu0 %v1007_v52 }
 0x303   : > { %16138 = vmatprep.subr.bf16.mxu0 %v16137_v62 }
 0x305   : > { %16140 = vmatpush3.bf16.msra.mxu0 %v16137_v62 }
 0x306   : > { %1011 = vadd.xlane.f32.xlu1 %v1010_v28  ;;  %16150 = vmatprep.subr.bf16.mxu0 %v18310_v6 }
 0x373   : > { %v967_v7 = vpop.xlane.xlu0 %966 }
 0x374   : > { %v1014_v8 = vmul.f32 0.032258064, %v967_v7 }
 0x376   : > { %16455 = vrsqrt.f32 %v1014_v8  ;;  %vm1032_vm1 = vcmp.eq.f32.partialorder %v1014_v8, inf  ;;  %v1035_v41 = vand.u32 2147483648, %v1014_v8  ;;  %vm1034_vm2 = vcmp.eq.f32.partialorder %v1014_v8, 0.0 }
 0x377   : > { %v970_v9 = vpop.xlane.xlu1 %969  ;;  %v973_v12 = vpop.xlane.xlu0 %972 }
 0x378   : > { %v18313_v13 = vmul.f32 0.032258064, %v970_v9  ;;  %v18315_v14 = vmul.f32 0.032258064, %v973_v12 }
 0x37a   : > { %16457 = vrsqrt.f32 %v18313_v13  ;;  %vm1039_vm3 = vcmp.eq.f32.partialorder %v18313_v13, inf  ;;  %vm1041_vm4 = vcmp.eq.f32.partialorder %v18313_v13, 0.0  ;;  %v1042_v51 = vand.u32 2147483648, %v18313_v13 }
 0x37b   : > { %16459 = vrsqrt.f32 %v18315_v14  ;;  %v976_v15 = vpop.xlane.xlu1 %975  ;;  %v979_v18 = vpop.xlane.xlu0 %978  ;;  %vm1046_vm5 = vcmp.eq.f32.partialorder %v18315_v14, inf  ;;  %vm1048_vm6 = vcmp.eq.f32.partialorder %v18315_v14, 0.0  ;;  %v1049_v28 = vand.u32 2147483648, %v18315_v14 }
 0x37c   : > { %v18319_v19 = vmul.f32 0.032258064, %v976_v15  ;;  %v18321_v22 = vmul.f32 0.032258064, %v979_v18 }
 0x37e   : > { %16461 = vrsqrt.f32 %v18319_v19  ;;  %vm1053_vm7 = vcmp.eq.f32.partialorder %v18319_v19, inf  ;;  %v1056_v59 = vand.u32 2147483648, %v18319_v19  ;;  %vm1060_vm8 = vcmp.eq.f32.partialorder %v18321_v22, inf }
 0x37f   : > { %16463 = vrsqrt.f32 %v18321_v22  ;;  %v982_v26 = vpop.xlane.xlu1 %981  ;;  %v985_v27 = vpop.xlane.xlu0 %984  ;;  %v1063_v60 = vand.u32 2147483648, %v18321_v22  ;;  %vm1055_vm12 = vcmp.eq.f32.partialorder %v18319_v19, 0.0 }
 0x380   : > { %v16456_v30 = vpop.eup %16455  ;;  %v18327_v31 = vmul.f32 0.032258064, %v982_v26  ;;  %v18329_v32 = vmul.f32 0.032258064, %v985_v27 }
 0x381   : > { %v1031_v39 = vmul.f32 %v16456_v30, %v1014_v8 }
 0x382   : > { %16465 = vrsqrt.f32 %v18327_v31  ;;  %vm1067_vm9 = vcmp.eq.f32.partialorder %v18327_v31, inf  ;;  %v1070_v63 = vand.u32 2147483648, %v18327_v31  ;;  %vm1074_vm10 = vcmp.eq.f32.partialorder %v18329_v32, inf }
 0x383   : > { %v1033_v42 = vsel %vm1032_vm1, %v1014_v8, %v1031_v39  ;;  %16467 = vrsqrt.f32 %v18329_v32  ;;  %v988_v43 = vpop.xlane.xlu1 %987  ;;  %v991_v36 = vpop.xlane.xlu0 %990  ;;  %v1077_v7 = vand.u32 2147483648, %v18329_v32  ;;  %vm1076_vm14 = vcmp.eq.f32.partialorder %v18329_v32, 0.0 }
 0x384   : > { %v16458_v24 = vpop.eup %16457  ;;  %v18348_v37 = vmul.f32 0.032258064, %v988_v43  ;;  %v18350_v48 = vmul.f32 0.032258064, %v991_v36  ;;  %v1036_v44 = vsel %vm1034_vm2, %v1035_v41, %v1033_v42  ;;  %vm1062_vm1 = vcmp.eq.f32.partialorder %v18321_v22, 0.0 }
 0x385   : > { %v16460_v49 = vpop.eup %16459  ;;  %v1038_v50 = vmul.f32 %v16458_v24, %v18313_v13  ;;  %v1164_v52 = vadd.f32 1e-06, %v1036_v44  ;;  %vm1069_vm2 = vcmp.eq.f32.partialorder %v18327_v31, 0.0 }
 0x386   : > { %16469 = vrsqrt.f32 %v18348_v37  ;;  %v1045_v53 = vmul.f32 %v16460_v49, %v18315_v14  ;;  %vm1081_vm11 = vcmp.eq.f32.partialorder %v18348_v37, inf  ;;  %vm1088_vm13 = vcmp.eq.f32.partialorder %v18350_v48, inf }
 0x387   : > { %v1040_v29 = vsel %vm1039_vm3, %v18313_v13, %v1038_v50  ;;  %16471 = vrsqrt.f32 %v18350_v48  ;;  %v994_v56 = vpop.xlane.xlu1 %993  ;;  %v997_v57 = vpop.xlane.xlu0 %996  ;;  %v1084_v13 = vand.u32 2147483648, %v18348_v37  ;;  %v1091_v27 = vand.u32 2147483648, %v18350_v48 }
 0x388   : > { %v16462_v58 = vpop.eup %16461  ;;  %v18366_v61 = vmul.f32 0.032258064, %v994_v56  ;;  %v18370_v2 = vmul.f32 0.032258064, %v997_v57  ;;  %16473 = vrcp.f32 %v1164_v52  ;;  %v1043_v4 = vsel %vm1041_vm4, %v1042_v51, %v1040_v29 }
 0x389   : > { %v16464_v62 = vpop.eup %16463  ;;  %v1052_v3 = vmul.f32 %v16462_v58, %v18319_v19  ;;  %v1047_v5 = vsel %vm1046_vm5, %v18315_v14, %v1045_v53  ;;  %v1165_v33 = vadd.f32 1e-06, %v1043_v4  ;;  %vm1083_vm3 = vcmp.eq.f32.partialorder %v18348_v37, 0.0 }
 0x38a   : > { %16475 = vrsqrt.f32 %v18366_v61  ;;  %v1059_v15 = vmul.f32 %v16464_v62, %v18321_v22  ;;  %vm1095_vm15 = vcmp.eq.f32.partialorder %v18366_v61, inf  ;;  %v1050_v41 = vsel %vm1048_vm6, %v1049_v28, %v1047_v5 }
 0x38b   : > { %16477 = vrsqrt.f32 %v18370_v2  ;;  %v1000_v8 = vpop.xlane.xlu1 %999  ;;  %v1003_v9 = vpop.xlane.xlu0 %1002  ;;  %v1054_v34 = vsel %vm1053_vm7, %v18319_v19, %v1052_v3  ;;  %vm1090_vm4 = vcmp.eq.f32.partialorder %v18350_v48, 0.0  ;;  %v1098_v43 = vand.u32 2147483648, %v18366_v61 }
 0x38c   : > { %v16466_v12 = vpop.eup %16465  ;;  %v18387_v18 = vmul.f32 0.032258064, %v1000_v8  ;;  %v18392_v30 = vmul.f32 0.032258064, %v1003_v9  ;;  %vm1102_vm5 = vcmp.eq.f32.partialorder %v18370_v2, inf  ;;  %v1061_v44 = vsel %vm1060_vm8, %v18321_v22, %v1059_v15 }
 0x38d   : > { %v16468_v26 = vpop.eup %16467  ;;  %v1066_v39 = vmul.f32 %v16466_v12, %v18327_v31  ;;  %v1105_v49 = vand.u32 2147483648, %v18370_v2  ;;  %v1166_v29 = vadd.f32 1e-06, %v1050_v41  ;;  %v18442_v15 = vld [vmem:[#allocation8] ss:$0 sm:$0xff]  ;;  %v1057_v41 = vsel %vm1055_vm12, %v1056_v59, %v1054_v34 }
 0x38e   : > { %16479 = vrsqrt.f32 %v18387_v18  ;;  %v1073_v42 = vmul.f32 %v16468_v26, %v18329_v32  ;;  %v1112_v57 = vand.u32 2147483648, %v18387_v18  ;;  %vm1116_vm7 = vcmp.eq.f32.partialorder %v18392_v30, inf }
 0x38f   : > { %16481 = vrsqrt.f32 %v18392_v30  ;;  %v1006_v36 = vpop.xlane.xlu1 %1005  ;;  %v1009_v24 = vpop.xlane.xlu0 %1008  ;;  %v1068_v53 = vsel %vm1067_vm9, %v18327_v31, %v1066_v39  ;;  %v1119_v3 = vand.u32 2147483648, %v18392_v30  ;;  %vm1111_vm9 = vcmp.eq.f32.partialorder %v18387_v18, 0.0 }
 0x390   : > { %v16470_v14 = vpop.eup %16469  ;;  %v18414_v50 = vmul.f32 0.032258064, %v1006_v36  ;;  %v18418_v28 = vmul.f32 0.032258064, %v1009_v24  ;;  %16483 = vrcp.f32 %v1165_v33  ;;  %v1075_v62 = vsel %vm1074_vm10, %v18329_v32, %v1073_v42 }
 0x391   : > { %v16472_v51 = vpop.eup %16471  ;;  %v1080_v52 = vmul.f32 %v16470_v14, %v18348_v37  ;;  %vm1118_vm8 = vcmp.eq.f32.partialorder %v18392_v30, 0.0  ;;  %v1167_v34 = vadd.f32 1e-06, %v1057_v41 }
 0x392   : > { %v1087_v56 = vmul.f32 %v16472_v51, %v18350_v48  ;;  %16485 = vrsqrt.f32 %v18414_v50  ;;  %v16474_v58 = vpop.eup %16473  ;;  %vm1123_vm6 = vcmp.eq.f32.partialorder %v18414_v50, inf  ;;  %v1126_v9 = vand.u32 2147483648, %v18414_v50 }
 0x393   : > { %16487 = vrsqrt.f32 %v18418_v28  ;;  %v1012_v4 = vpop.xlane.xlu1 %1011  ;;  %v1082_v8 = vsel %vm1081_vm11, %v18348_v37, %v1080_v52  ;;  %v1181_v39 = vmul.f32 %v16474_v58, %v18333_v20  ;;  %vm1125_vm11 = vcmp.eq.f32.partialorder %v18414_v50, 0.0 }
 0x394   : > { %v16476_v5 = vpop.eup %16475  ;;  %v18440_v12 = vmul.f32 0.032258064, %v1012_v4  ;;  %16489 = vrcp.f32 %v1166_v29  ;;  %v1089_v42 = vsel %vm1088_vm13, %v18350_v48, %v1087_v56  ;;  %v1133_v24 = vand.u32 2147483648, %v18418_v28 }
 0x395   : > { %v16478_v26 = vpop.eup %16477  ;;  %v1094_v33 = vmul.f32 %v16476_v5, %v18366_v61  ;;  %vm1132_vm10 = vcmp.eq.f32.partialorder %v18418_v28, 0.0  ;;  %v18464_v59 = vadd.f32 %v18442_v15, %v1181_v39  ;;  %v1064_v52 = vsel %vm1062_vm1, %v1063_v60, %v1061_v44 }
 0x396   : > { %v1101_v36 = vmul.f32 %v16478_v26, %v18370_v2  ;;  %16491 = vrsqrt.f32 %v18440_v12  ;;  %v1140_v19 = vand.u32 2147483648, %v18440_v12  ;;  %vm1137_vm12 = vcmp.eq.f32.partialorder %v18440_v12, inf }
 0x397   : > { %v1096_v20 = vsel %vm1095_vm15, %v18366_v61, %v1094_v33  ;;  %v1071_v29 = vsel %vm1069_vm2, %v1070_v63, %v1068_v53  ;;  %v1078_v56 = vsel %vm1076_vm14, %v1077_v7, %v1075_v62  ;;  %vm1139_vm13 = vcmp.eq.f32.partialorder %v18440_v12, 0.0  ;;  %15229 = vmatprep.mubr.msk.f32.mxu0 %vm21542_vm0, %v18464_v59  ;;  %15261 = vmatprep.mubr.msk.f32.mxu1 %vm21542_vm0, %v18464_v59 }
 0x398   : > { %v16480_v14 = vpop.eup %16479  ;;  %v1103_v51 = vsel %vm1102_vm5, %v18370_v2, %v1101_v36  ;;  %16493 = vrcp.f32 %v1167_v34  ;;  %v1168_v22 = vadd.f32 1e-06, %v1064_v52  ;;  %v1169_v31 = vadd.f32 1e-06, %v1071_v29 }
 0x399   : > { %v16482_v58 = vpop.eup %16481  ;;  %v1108_v4 = vmul.f32 %v16480_v14, %v18387_v18  ;;  %v1170_v63 = vadd.f32 1e-06, %v1078_v56  ;;  %v1085_v32 = vsel %vm1083_vm3, %v1084_v13, %v1082_v8  ;;  %v1092_v7 = vsel %vm1090_vm4, %v1091_v27, %v1089_v42 }
 0x39a   : > { %v1115_v60 = vmul.f32 %v16482_v58, %v18392_v30  ;;  %v16484_v44 = vpop.eup %16483  ;;  %vm21683_vm14 = vcmp.eq.f32.partialorder %v18387_v18, inf  ;;  %16495 = vrcp.f32 %v1168_v22  ;;  %v1171_v62 = vadd.f32 1e-06, %v1085_v32 }
 0x39b   : > { %v1110_v53 = vsel %vm21683_vm14, %v18387_v18, %v1108_v4  ;;  %v1172_v5 = vadd.f32 1e-06, %v1092_v7  ;;  %v1183_v37 = vmul.f32 %v16484_v44, %v18341_v40  ;;  %16497 = vrcp.f32 %v1169_v31 }
 0x39c   : > { %v16486_v26 = vpop.eup %16485  ;;  %v1117_v33 = vsel %vm1116_vm7, %v18392_v30, %v1115_v60  ;;  %vm21684_vm15 = vcmp.eq.f32.partialorder %v18366_v61, 0.0  ;;  %16499 = vrcp.f32 %v1170_v63  ;;  %vm21685_vm1 = vcmp.eq.f32.partialorder %v18370_v2, 0.0 }
 0x39d   : > { %v1099_v48 = vsel %vm21684_vm15, %v1098_v43, %v1096_v20  ;;  %v16488_v13 = vpop.eup %16487  ;;  %v1122_v27 = vmul.f32 %v16486_v26, %v18414_v50  ;;  %v1106_v39 = vsel %vm21685_vm1, %v1105_v49, %v1103_v51  ;;  %v18515_v40 = vadd.f32 %v18442_v15, %v1183_v37 }
 0x39e   : > { %v1173_v8 = vadd.f32 1e-06, %v1099_v48  ;;  %v1129_v41 = vmul.f32 %v16488_v13, %v18418_v28  ;;  %16501 = vrcp.f32 %v1171_v62  ;;  %v1174_v42 = vadd.f32 1e-06, %v1106_v39  ;;  %v16490_v36 = vpop.eup %16489 }
 0x39f   : > { %v1124_v61 = vsel %vm1123_vm6, %v18414_v50, %v1122_v27  ;;  %16503 = vrcp.f32 %v1172_v5  ;;  %v1113_v43 = vsel %vm1111_vm9, %v1112_v57, %v1110_v53  ;;  %v1120_v2 = vsel %vm1118_vm8, %v1119_v3, %v1117_v33  ;;  %15230 = vmatmul.mubr.msk.f32.vlgmr.msra.gmra.mrb[0].mxu0 %vm21542_vm0, %v18515_v40  ;;  %15262 = vmatmul.mubr.msk.f32.vlgmr.msra.gmra.mrb[0].mxu1 %vm21542_vm0, %v18515_v40 }
 0x3a0   : > { %v16492_v49 = vpop.eup %16491  ;;  %vm21686_vm2 = vcmp.eq.f32.partialorder %v18418_v28, inf  ;;  %v1185_v34 = vmul.f32 %v16490_v36, %v18337_v38  ;;  %16505 = vrcp.f32 %v1173_v8  ;;  %v1175_v18 = vadd.f32 1e-06, %v1113_v43  ;;  %16152 = vmatpush3.bf16.msra.mxu0 %v18310_v6 }
 0x3a1   : > { %v1131_v20 = vsel %vm21686_vm2, %v18418_v28, %v1129_v41  ;;  %v1136_v57 = vmul.f32 %v16492_v49, %v18440_v12  ;;  %16507 = vrcp.f32 %v1174_v42  ;;  %v1176_v30 = vadd.f32 1e-06, %v1120_v2  ;;  %16154 = vmatprep.subr.bf16.mxu0 %v18345_v46 }
 0x3a2   : > { %v1127_v3 = vsel %vm1125_vm11, %v1126_v9, %v1124_v61  ;;  %v1151_v14 = vmul.f32 %v18323_v16, %v18230_v45  ;;  %v18545_v51 = vadd.f32 %v18442_v15, %v1185_v34  ;;  %v1134_v38 = vsel %vm1132_vm10, %v1133_v24, %v1131_v20  ;;  %v16494_v52 = vpop.eup %16493 }
 0x3a3   : > { %v1152_v50 = vmul.f32 %v18323_v16, %v18238_v54  ;;  %v1138_v6 = vsel %vm1137_vm12, %v18440_v12, %v1136_v57  ;;  %16509 = vrcp.f32 %v1175_v18  ;;  %v1177_v45 = vadd.f32 1e-06, %v1127_v3 }
 0x3a4   : > { %15232 = vmatprep.mubr.msk.f32.mxu0 %vm21542_vm0, %v18545_v51  ;;  %15264 = vmatprep.mubr.msk.f32.mxu1 %vm21542_vm0, %v18545_v51  ;;  %v1187_v28 = vmul.f32 %v16494_v52, %v1151_v14  ;;  %16511 = vrcp.f32 %v1176_v30  ;;  %v1178_v9 = vadd.f32 1e-06, %v1134_v38  ;;  %v1141_v54 = vsel %vm1139_vm13, %v1140_v19, %v1138_v6  ;;  %v16496_v24 = vpop.eup %16495 }
 0x3a5   : > { %v1153_v29 = vmul.f32 %v18323_v16, %v18240_v55  ;;  %16156 = vmatpush3.bf16.msra.mxu0 %v18345_v46  ;;  %v16498_v56 = vpop.eup %16497  ;;  %v1154_v58 = vmul.f32 %v18323_v16, %v18249_v0  ;;  %v1189_v22 = vmul.f32 %v16496_v24, %v1152_v50  ;;  %v1155_v60 = vmul.f32 %v18323_v16, %v18252_v1 }
 0x3a6   : > { %v18571_v4 = vadd.f32 %v18442_v15, %v1187_v28  ;;  %v16500_v31 = vpop.eup %16499  ;;  %16513 = vrcp.f32 %v1177_v45  ;;  %v1179_v19 = vadd.f32 1e-06, %v1141_v54  ;;  %v1156_v55 = vmul.f32 %v18323_v16, %v18261_v10 }
 0x3a7   : > { %v1191_v12 = vmul.f32 %v16498_v56, %v1153_v29  ;;  %v18582_v0 = vadd.f32 %v18442_v15, %v1189_v22  ;;  %v1193_v46 = vmul.f32 %v16500_v31, %v1154_v58  ;;  %16515 = vrcp.f32 %v1178_v9 }
 0x3a8   : > { %v16502_v63 = vpop.eup %16501  ;;  %15233 = vmatmul.mubr.msk.f32.gmra.mrb[2].mxu0 %vm21542_vm0, %v18571_v4  ;;  %15265 = vmatmul.mubr.msk.f32.gmra.mrb[2].mxu1 %vm21542_vm0, %v18571_v4  ;;  %v1157_v10 = vmul.f32 %v18323_v16, %v18264_v11  ;;  %v1158_v26 = vmul.f32 %v18323_v16, %v18273_v23  ;;  %16517 = vrcp.f32 %v1179_v19  ;;  %v1159_v23 = vmul.f32 %v18323_v16, %v18276_v17 }
 0x3a9   : > { %v16504_v32 = vpop.eup %16503  ;;  %v18585_v1 = vadd.f32 %v18442_v15, %v1191_v12  ;;  %v1195_v7 = vmul.f32 %v16502_v63, %v1155_v60  ;;  %15235 = vmatprep.mubr.msk.f32.mxu0 %vm21542_vm0, %v18582_v0  ;;  %15267 = vmatprep.mubr.msk.f32.mxu1 %vm21542_vm0, %v18582_v0  ;;  %v1224_v53 = vadd.f32 %v18442_v15, %v1193_v46  ;;  %vm21549_vm3 = vmmov 0  }
 0x3aa   : > { %v16506_v44 = vpop.eup %16505  ;;  %v1197_v62 = vmul.f32 %v16504_v32, %v1156_v55  ;;  %v1160_v8 = vmul.f32 %v18323_v16, %v18285_v35  ;;  %v1161_v17 = vmul.f32 %v18323_v16, %v18288_v21  ;;  %v1162_v35 = vmul.f32 %v18323_v16, %v18297_v47 }
 0x3ab   : > { %v16508_v5 = vpop.eup %16507  ;;  %v1225_v11 = vadd.f32 %v18442_v15, %v1195_v7  ;;  %v1199_v33 = vmul.f32 %v16506_v44, %v1157_v10  ;;  %v1163_v21 = vmul.f32 %v18323_v16, %v18300_v25  ;;  %v21485_v25 = vmov 0.0   ;;  %v18667_v16 = vld [vmem:[#allocation11] ss:$0 sm:$0xff] }
 0x3ac   : > { %15236 = vmatmul.mubr.msk.f32.gmra.mrb[4].mxu0 %vm21542_vm0, %v18585_v1  ;;  %15268 = vmatmul.mubr.msk.f32.gmra.mrb[4].mxu1 %vm21542_vm0, %v18585_v1  ;;  %v1226_v48 = vadd.f32 %v18442_v15, %v1197_v62  ;;  %v1201_v13 = vmul.f32 %v16508_v5, %v1158_v26  ;;  %vm1894_vm4 = vcmask 64512  }
 0x3ad   : > { %v16510_v37 = vpop.eup %16509  ;;  %15238 = vmatprep.mubr.msk.f32.mxu0 %vm21542_vm0, %v1224_v53  ;;  %15270 = vmatprep.mubr.msk.f32.mxu1 %vm21542_vm0, %v1224_v53  ;;  %v1227_v39 = vadd.f32 %v18442_v15, %v1199_v33 }
 0x3ae   : > { %v16512_v27 = vpop.eup %16511  ;;  %v1203_v41 = vmul.f32 %v16510_v37, %v1159_v23  ;;  %v1228_v36 = vadd.f32 %v18442_v15, %v1201_v13  ;;  %15317 = vmatprep.subr.mxu1 %v21485_v25  ;;  %15357 = vmatprep.subr.mxu0 %v21485_v25 }
 0x3af   : > { %v1205_v61 = vmul.f32 %v16512_v27, %v1160_v8 }
 0x3b0   : > { %15239 = vmatmul.mubr.msk.f32.gmra.mrb[6].mxu0 %vm21542_vm0, %v1225_v11  ;;  %15271 = vmatmul.mubr.msk.f32.gmra.mrb[6].mxu1 %vm21542_vm0, %v1225_v11  ;;  %v16514_v42 = vpop.eup %16513  ;;  %v1229_v2 = vadd.f32 %v18442_v15, %v1203_v41 }
 0x3b1   : > { %15241 = vmatprep.mubr.msk.f32.mxu0 %vm21542_vm0, %v1226_v48  ;;  %15273 = vmatprep.mubr.msk.f32.mxu1 %vm21542_vm0, %v1226_v48  ;;  %v16516_v43 = vpop.eup %16515  ;;  %v1207_v49 = vmul.f32 %v16514_v42, %v1161_v17  ;;  %v1230_v34 = vadd.f32 %v18442_v15, %v1205_v61 }
 0x3b2   : > { %v16518_v20 = vpop.eup %16517  ;;  %v1209_v18 = vmul.f32 %v16516_v43, %v1162_v35 }
 0x3b3   : > { %v1231_v47 = vadd.f32 %v18442_v15, %v1207_v49  ;;  %v1211_v57 = vmul.f32 %v16518_v20, %v1163_v21 }
 0x3b4   : > { %15242 = vmatmul.mubr.msk.f32.gmra.mrb[8].mxu0 %vm21542_vm0, %v1227_v39  ;;  %15274 = vmatmul.mubr.msk.f32.gmra.mrb[8].mxu1 %vm21542_vm0, %v1227_v39  ;;  %v1232_v30 = vadd.f32 %v18442_v15, %v1209_v18 }
 0x3b5   : > { %15244 = vmatprep.mubr.msk.f32.mxu0 %vm21542_vm0, %v1228_v36  ;;  %15276 = vmatprep.mubr.msk.f32.mxu1 %vm21542_vm0, %v1228_v36  ;;  %v1233_v3 = vadd.f32 %v18442_v15, %v1211_v57  ;;  %v18669_v15 = vld [vmem:[#allocation14] ss:$0 sm:$0xff] }
 0x3b8   : > { %15245 = vmatmul.mubr.msk.f32.gmra.mrb[10].mxu0 %vm21542_vm0, %v1229_v2  ;;  %15277 = vmatmul.mubr.msk.f32.gmra.mrb[10].mxu1 %vm21542_vm0, %v1229_v2 }
 0x3b9   : > { %15247 = vmatprep.mubr.msk.f32.mxu0 %vm21542_vm0, %v1230_v34  ;;  %15279 = vmatprep.mubr.msk.f32.mxu1 %vm21542_vm0, %v1230_v34 }
 0x3bc   : > { %15248 = vmatmul.mubr.msk.f32.gmra.mrb[12].mxu0 %vm21542_vm0, %v1231_v47  ;;  %15280 = vmatmul.mubr.msk.f32.gmra.mrb[12].mxu1 %vm21542_vm0, %v1231_v47 }
 0x3bd   : > { %15250 = vmatprep.mubr.msk.f32.mxu0 %vm21542_vm0, %v1232_v30  ;;  %15282 = vmatprep.mubr.msk.f32.mxu1 %vm21542_vm0, %v1232_v30 }
 0x3c0   : > { %15251 = vmatmul.mubr.msk.f32.gmra.mrb[14].mxu0 %vm21542_vm0, %v1233_v3  ;;  %15283 = vmatmul.mubr.msk.f32.gmra.mrb[14].mxu1 %vm21542_vm0, %v1233_v3 }
 0x3c1   : > { %15293 = vmatprep.mubr.msk.f32.mxu0 %vm21542_vm0, %v18464_v59  ;;  %15319 = vmatprep.mubr.msk.f32.mxu1 %vm21549_vm3, %v21485_v25 }
 0x3c4   : > { %15294 = vmatmul.mubr.msk.f32.vlgmr.msra.gmra.mrb[16].mxu0 %vm21542_vm0, %v18515_v40 }
 0x3c5   : > { %15296 = vmatprep.mubr.msk.f32.mxu0 %vm21542_vm0, %v18545_v51 }
 0x3c8   : > { %15297 = vmatmul.mubr.msk.f32.gmra.mrb[18].mxu0 %vm21542_vm0, %v18571_v4 }
 0x3c9   : > { %15299 = vmatprep.mubr.msk.f32.mxu0 %vm21542_vm0, %v18582_v0 }
 0x3cc   : > { %15300 = vmatmul.mubr.msk.f32.gmra.mrb[20].mxu0 %vm21542_vm0, %v18585_v1 }
 0x3cd   : > { %15302 = vmatprep.mubr.msk.f32.mxu0 %vm21542_vm0, %v1224_v53 }
 0x3d0   : > { %15303 = vmatmul.mubr.msk.f32.gmra.mrb[22].mxu0 %vm21542_vm0, %v1225_v11 }
 0x3d1   : > { %15305 = vmatprep.mubr.msk.f32.mxu0 %vm21542_vm0, %v1226_v48 }
 0x3d4   : > { %15306 = vmatmul.mubr.msk.f32.gmra.mrb[24].mxu0 %vm21542_vm0, %v1227_v39 }
 0x3d5   : > { %15308 = vmatprep.mubr.msk.f32.mxu0 %vm21542_vm0, %v1228_v36 }
 0x3d8   : > { %15309 = vmatmul.mubr.msk.f32.gmra.mrb[26].mxu0 %vm21542_vm0, %v1229_v2 }
 0x3d9   : > { %15311 = vmatprep.mubr.msk.f32.mxu0 %vm21542_vm0, %v1230_v34 }
 0x3dc   : > { %15312 = vmatmul.mubr.msk.f32.gmra.mrb[28].mxu0 %vm21542_vm0, %v1231_v47 }
 0x3dd   : > { %15314 = vmatprep.mubr.msk.f32.mxu0 %vm21542_vm0, %v1232_v30 }
 0x3e0   : > { %15315 = vmatmul.mubr.msk.f32.gmra.mrb[30].mxu0 %vm21542_vm0, %v1233_v3 }
 0x3e1   : > { %15359 = vmatprep.mubr.msk.f32.mxu0 %vm21549_vm3, %v21485_v25 }
 0x472   : > { %v15231_v59 = vpop.f32.mrb[0].mxu0  ;;  %v15263_v40 = vpop.f32.mrb[0].mxu1 }
 0x473   : > { %v1365_v14 = vadd.f32 %v15231_v59, %v18667_v16  ;;  %v18673_v51 = vadd.f32 %v15263_v40, %v18669_v15  ;;  %v1359_v38 = vpop.f32.mrb[1].mxu0  ;;  %v1531_v52 = vpop.f32.mrb[1].mxu1 }
 0x474   : > { %v1360_v50 = vadd.f32 %v18667_v16, %v1359_v38  ;;  %v18677_v6 = vadd.f32 %v18669_v15, %v1531_v52 }
 0x475   : > { %21687 = vst [vmem:[#allocation50_spill] sm:$0xff] %v18673_v51  ;;  %v18679_v45 = vmul.f32 0.35355338, %v1365_v14  ;;  %4552 = vrot.lane.b32.xlu0 %v18673_v51, %s17495_s27 }
 0x476   : > { %21688 = vst [vmem:[#allocation51_spill] sm:$0xff] %v18677_v6  ;;  %v18683_v28 = vmul.f32 0.35355338, %v1360_v50  ;;  %15318 = vmatpush3.xpose.msk.msra.mxu1 %vm1894_vm4, %v18677_v6 }
 0x477   : > { %21689 = vst [vmem:[#allocation52_spill] sm:$0xff] %v18679_v45  ;;  %4550 = vrot.lane.b32.xlu1 %v18679_v45, %s17495_s27  ;;  %15322 = vmatprep.subr.mxu1 %v21485_v25 }
 0x478   : > { %21690 = vst [vmem:[#allocation53_spill] sm:$0xff] %v18683_v28 }
 0x479   : > { %15320 = vmatmul.mubr.msk.f32.vlgmr.msra.gmra.mrb[16].mxu1 %vm1894_vm4, %v18683_v28 }
 0x47a   : > { %15323 = vmatpush3.xpose.msk.msra.mxu1 %vm1894_vm4, %v18673_v51  ;;  %15324 = vmatprep.mubr.msk.f32.mxu1 %vm21549_vm3, %v21485_v25 }
 0x47b   : > { %v15234_v9 = vpop.f32.mrb[2].mxu0  ;;  %v15266_v54 = vpop.f32.mrb[2].mxu1  ;;  %15327 = vmatprep.subr.mxu1 %v21485_v25 }
 0x47c   : > { %v1375_v24 = vadd.f32 %v15234_v9, %v18667_v16  ;;  %v18698_v29 = vadd.f32 %v15266_v54, %v18669_v15  ;;  %v1369_v56 = vpop.f32.mrb[3].mxu0  ;;  %v1541_v58 = vpop.f32.mrb[3].mxu1  ;;  %v18828_v54 = vld [vmem:[#allocation17] ss:$0 sm:$0xff] }
 0x47d   : > { %v1370_v4 = vadd.f32 %v18667_v16, %v1369_v56  ;;  %v18703_v22 = vadd.f32 %v18669_v15, %v1541_v58  ;;  %15325 = vmatmul.mubr.msk.f32.vlgmr.msra.gmra.mrb[18].mxu1 %vm1894_vm4, %v18679_v45 }
 0x47e   : > { %21691 = vst [vmem:[#allocation54_spill] sm:$0xff] %v18698_v29  ;;  %4708 = vrot.lane.b32.xlu1 %v18698_v29, %s17495_s27  ;;  %15329 = vmatprep.mubr.msk.f32.mxu1 %vm21549_vm3, %v21485_v25  ;;  %v18713_v12 = vmul.f32 0.35355338, %v1375_v24 }
 0x47f   : > { %21692 = vst [vmem:[#allocation55_spill] sm:$0xff] %v18703_v22  ;;  %v15237_v31 = vpop.f32.mrb[4].mxu0  ;;  %v15269_v60 = vpop.f32.mrb[4].mxu1  ;;  %15328 = vmatpush3.xpose.msk.msra.mxu1 %vm1894_vm4, %v18703_v22  ;;  %v18720_v46 = vmul.f32 0.35355338, %v1370_v4 }
 0x480   : > { %21693 = vst [vmem:[#allocation56_spill] sm:$0xff] %v18713_v12  ;;  %v1385_v19 = vadd.f32 %v15237_v31, %v18667_v16  ;;  %v18717_v63 = vadd.f32 %v15269_v60, %v18669_v15  ;;  %v1379_v55 = vpop.f32.mrb[5].mxu0  ;;  %v1551_v0 = vpop.f32.mrb[5].mxu1  ;;  %15332 = vmatprep.subr.mxu1 %v21485_v25 }
 0x481   : > { %21695 = vst [vmem:[#allocation58_spill] sm:$0xff] %v18720_v46  ;;  %v1380_v62 = vadd.f32 %v18667_v16, %v1379_v55  ;;  %v18740_v5 = vadd.f32 %v18669_v15, %v1551_v0 }
 0x482   : > { %21694 = vst [vmem:[#allocation57_spill] sm:$0xff] %v18717_v63  ;;  %4864 = vrot.lane.b32.xlu0 %v18717_v63, %s17495_s27  ;;  %4706 = vrot.lane.b32.xlu1 %v18713_v12, %s17495_s27  ;;  %v18728_v7 = vmul.f32 0.35355338, %v1385_v19 }
 0x483   : > { %v15240_v32 = vpop.f32.mrb[6].mxu0  ;;  %v15272_v1 = vpop.f32.mrb[6].mxu1  ;;  %15330 = vmatmul.mubr.msk.f32.vlgmr.msra.gmra.mrb[20].mxu1 %vm1894_vm4, %v18720_v46  ;;  %21698 = vst [vmem:[#allocation61_spill] sm:$0xff] %v18740_v5  ;;  %v18752_v48 = vmul.f32 0.35355338, %v1380_v62 }
 0x484   : > { %21696 = vst [vmem:[#allocation59_spill] sm:$0xff] %v18728_v7  ;;  %v18731_v44 = vadd.f32 %v15272_v1, %v18669_v15  ;;  %v1389_v10 = vpop.f32.mrb[7].mxu0  ;;  %v1561_v53 = vpop.f32.mrb[7].mxu1  ;;  %15333 = vmatpush3.xpose.msk.msra.mxu1 %vm1894_vm4, %v18698_v29  ;;  %15334 = vmatprep.mubr.msk.f32.mxu1 %vm21549_vm3, %v21485_v25  ;;  %v1395_v47 = vadd.f32 %v15240_v32, %v18667_v16  ;;  %v21750_v29 = vmov 0 }
 0x485   : > { %15337 = vmatprep.subr.mxu1 %v21485_v25  ;;  %21699 = vst [vmem:[#allocation62_spill] sm:$0xff] %v18752_v48  ;;  %v1390_v43 = vadd.f32 %v18667_v16, %v1389_v10  ;;  %v18781_v17 = vadd.f32 %v18669_v15, %v1561_v53 }
 0x486   : > { %21697 = vst [vmem:[#allocation60_spill] sm:$0xff] %v18731_v44  ;;  %5020 = vrot.lane.b32.xlu0 %v18731_v44, %s17495_s27  ;;  %4862 = vrot.lane.b32.xlu1 %v18728_v7, %s17495_s27  ;;  %v18823_v50 = vmul.f32 0.35355338, %v1395_v47 }
 0x487   : > { %v15243_v26 = vpop.f32.mrb[8].mxu0  ;;  %v15275_v11 = vpop.f32.mrb[8].mxu1  ;;  %15335 = vmatmul.mubr.msk.f32.vlgmr.msra.gmra.mrb[22].mxu1 %vm1894_vm4, %v18713_v12  ;;  %21703 = vst [vmem:[#allocation66_spill] sm:$0xff] %v18781_v17  ;;  %v18801_v57 = vmul.f32 0.35355338, %v1390_v43 }
 0x488   : > { %v1399_v33 = vpop.f32.mrb[9].mxu0  ;;  %v1571_v37 = vpop.f32.mrb[9].mxu1  ;;  %15338 = vmatpush3.xpose.msk.msra.mxu1 %vm1894_vm4, %v18740_v5  ;;  %15339 = vmatprep.mubr.msk.f32.mxu1 %vm21549_vm3, %v21485_v25  ;;  %21708 = vst [vmem:[#allocation71_spill] sm:$0xff] %v18823_v50  ;;  %v1405_v9 = vadd.f32 %v15243_v26, %v18667_v16  ;;  %v18832_v24 = vadd.f32 %v15275_v11, %v18669_v15 }
 0x489   : > { %v1400_v13 = vadd.f32 %v18667_v16, %v1399_v33  ;;  %v18756_v27 = vadd.f32 %v18669_v15, %v1571_v37  ;;  %15342 = vmatprep.subr.mxu1 %v21485_v25  ;;  %21706 = vst [vmem:[#allocation69_spill] sm:$0xff] %v18801_v57 }
 0x48a   : > { %21709 = vst [vmem:[#allocation72_spill] sm:$0xff] %v18832_v24  ;;  %v18850_v60 = vmul.f32 0.35355338, %v1405_v9 }
 0x48b   : > { %21700 = vst [vmem:[#allocation63_spill] sm:$0xff] %v18756_v27  ;;  %v18759_v23 = vmul.f32 0.35355338, %v1400_v13  ;;  %v15246_v8 = vpop.f32.mrb[10].mxu0  ;;  %v18761_v39 = vpop.f32.mrb[10].mxu1  ;;  %15358 = vmatpush3.xpose.msk.msra.mxu0 %vm1894_vm4, %v18756_v27  ;;  %15340 = vmatmul.mubr.msk.f32.vlgmr.msra.gmra.mrb[24].mxu1 %vm1894_vm4, %v18752_v48 }
 0x48c   : > { %v1409_v41 = vpop.f32.mrb[11].mxu0  ;;  %v1581_v42 = vpop.f32.mrb[11].mxu1  ;;  %15367 = vmatprep.subr.mxu0 %v21485_v25  ;;  %15343 = vmatpush3.xpose.msk.msra.mxu1 %vm1894_vm4, %v18717_v63  ;;  %21712 = vst [vmem:[#allocation75_spill] sm:$0xff] %v18850_v60  ;;  %v1415_v19 = vadd.f32 %v15246_v8, %v18667_v16  ;;  %v18858_v55 = vadd.f32 %v18761_v39, %v18669_v15 }
 0x48d   : > { %21701 = vst [vmem:[#allocation64_spill] sm:$0xff] %v18759_v23  ;;  %v1410_v36 = vadd.f32 %v18667_v16, %v1409_v41  ;;  %v18772_v61 = vadd.f32 %v18669_v15, %v1581_v42  ;;  %15344 = vmatprep.mubr.msk.f32.mxu1 %vm21549_vm3, %v21485_v25  ;;  %15347 = vmatprep.subr.mxu1 %v21485_v25 }
 0x48e   : > { %15360 = vmatmul.mubr.msk.f32.vlgmr.msra.gmra.mrb[32].mxu0 %vm1894_vm4, %v18759_v23  ;;  %21713 = vst [vmem:[#allocation76_spill] sm:$0xff] %v18858_v55  ;;  %v18876_v53 = vmul.f32 0.35355338, %v1415_v19 }
 0x48f   : > { %21702 = vst [vmem:[#allocation65_spill] sm:$0xff] %v18772_v61  ;;  %v18783_v35 = vmul.f32 0.35355338, %v1410_v36  ;;  %v15249_v2 = vpop.f32.mrb[12].mxu0  ;;  %v15281_v49 = vpop.f32.mrb[12].mxu1  ;;  %15368 = vmatpush3.xpose.msk.msra.mxu0 %vm1894_vm4, %v18772_v61  ;;  %15369 = vmatprep.mubr.msk.f32.mxu0 %vm21549_vm3, %v21485_v25 }
 0x490   : > { %v1419_v20 = vpop.f32.mrb[13].mxu0  ;;  %v1591_v34 = vpop.f32.mrb[13].mxu1  ;;  %15345 = vmatmul.mubr.msk.f32.vlgmr.msra.gmra.mrb[26].mxu1 %vm1894_vm4, %v18728_v7  ;;  %15377 = vmatprep.subr.mxu0 %v21485_v25  ;;  %21716 = vst [vmem:[#allocation79_spill] sm:$0xff] %v18876_v53  ;;  %v1425_v62 = vadd.f32 %v15249_v2, %v18667_v16  ;;  %v18881_v26 = vadd.f32 %v15281_v49, %v18669_v15 }
 0x491   : > { %21704 = vst [vmem:[#allocation67_spill] sm:$0xff] %v18783_v35  ;;  %v1420_v18 = vadd.f32 %v18667_v16, %v1419_v20  ;;  %v18794_v21 = vadd.f32 %v18669_v15, %v1591_v34  ;;  %15348 = vmatpush3.xpose.msk.msra.mxu1 %vm1894_vm4, %v18781_v17  ;;  %15349 = vmatprep.mubr.msk.f32.mxu1 %vm21549_vm3, %v21485_v25 }
 0x492   : > { %15370 = vmatmul.mubr.msk.f32.vlgmr.msra.gmra.mrb[34].mxu0 %vm1894_vm4, %v18783_v35  ;;  %15352 = vmatprep.subr.mxu1 %v21485_v25  ;;  %21717 = vst [vmem:[#allocation80_spill] sm:$0xff] %v18881_v26  ;;  %v18895_v8 = vmul.f32 0.35355338, %v1425_v62  ;;  %v1814_v62 = vlaneseq }
 0x493   : > { %21705 = vst [vmem:[#allocation68_spill] sm:$0xff] %v18794_v21  ;;  %v18806_v30 = vmul.f32 0.35355338, %v1420_v18  ;;  %v15252_v3 = vpop.f32.mrb[14].mxu0  ;;  %v15284_v59 = vpop.f32.mrb[14].mxu1  ;;  %15378 = vmatpush3.xpose.msk.msra.mxu0 %vm1894_vm4, %v18794_v21  ;;  %15379 = vmatprep.mubr.msk.f32.mxu0 %vm21549_vm3, %v21485_v25 }
 0x494   : > { %v1429_v40 = vpop.f32.mrb[15].mxu0  ;;  %v1601_v14 = vpop.f32.mrb[15].mxu1  ;;  %15350 = vmatmul.mubr.msk.f32.vlgmr.msra.gmra.mrb[28].mxu1 %vm1894_vm4, %v18801_v57  ;;  %15387 = vmatprep.subr.mxu0 %v21485_v25  ;;  %21720 = vst [vmem:[#allocation83_spill] sm:$0xff] %v18895_v8  ;;  %v1435_v39 = vadd.f32 %v15252_v3, %v18667_v16  ;;  %v18900_v41 = vadd.f32 %v15284_v59, %v18669_v15 }
 0x495   : > { %v1430_v38 = vadd.f32 %v18667_v16, %v1429_v40  ;;  %v18817_v52 = vadd.f32 %v18669_v15, %v1601_v14  ;;  %15353 = vmatpush3.xpose.msk.msra.mxu1 %vm1894_vm4, %v18731_v44  ;;  %15354 = vmatprep.mubr.msk.f32.mxu1 %vm21549_vm3, %v21485_v25  ;;  %v21747_v44 = vmov 0 }
 0x496   : > { %15380 = vmatmul.mubr.msk.f32.vlgmr.msra.gmra.mrb[36].mxu0 %vm1894_vm4, %v18806_v30  ;;  %15362 = vmatprep.subr.mxu1 %v21485_v25  ;;  %21721 = vst [vmem:[#allocation84_spill] sm:$0xff] %v18900_v41  ;;  %v18914_v16 = vmul.f32 0.35355338, %v1435_v39  ;;  %v21490_v39 = vmov 0  }
 0x497   : > { %21707 = vst [vmem:[#allocation70_spill] sm:$0xff] %v18817_v52  ;;  %v18834_v56 = vmul.f32 0.35355338, %v1430_v38  ;;  %v15295_v58 = vpop.f32.mrb[16].mxu0  ;;  %15388 = vmatpush3.xpose.msk.msra.mxu0 %vm1894_vm4, %v18817_v52  ;;  %15389 = vmatprep.mubr.msk.f32.mxu0 %vm21549_vm3, %v21485_v25 }
 0x498   : > { %v1687_v4 = vpop.f32.mrb[17].mxu0  ;;  %15355 = vmatmul.mubr.msk.f32.vlgmr.msra.gmra.mrb[30].mxu1 %vm1894_vm4, %v18823_v50  ;;  %15397 = vmatprep.subr.mxu0 %v21485_v25  ;;  %21724 = vst [vmem:[#allocation87_spill] sm:$0xff] %v18914_v16  ;;  %v18918_v15 = vadd.f32 %v15295_v58, %v18828_v54 }
 0x499   : > { %21710 = vst [vmem:[#allocation73_spill] sm:$0xff] %v18834_v56  ;;  %v18844_v31 = vadd.f32 %v18828_v54, %v1687_v4  ;;  %15363 = vmatpush3.xpose.msk.msra.mxu1 %vm1894_vm4, %v18832_v24  ;;  %15364 = vmatprep.mubr.msk.f32.mxu1 %vm21549_vm3, %v21485_v25 }
 0x49a   : > { %15390 = vmatmul.mubr.msk.f32.vlgmr.msra.gmra.mrb[38].mxu0 %vm1894_vm4, %v18834_v56  ;;  %15372 = vmatprep.subr.mxu1 %v21485_v25  ;;  %21725 = vst [vmem:[#allocation88_spill] sm:$0xff] %v18918_v15 }
 0x49b   : > { %21711 = vst [vmem:[#allocation74_spill] sm:$0xff] %v18844_v31  ;;  %v15298_v0 = vpop.f32.mrb[18].mxu0  ;;  %15398 = vmatpush3.msra.mxu0 %v18844_v31  ;;  %15399 = vmatprep.mubr.msk.f32.mxu0 %vm21549_vm3, %v21485_v25  ;;  %v1775_v31 = vld [vmem:[%s18116_s2 + $0x9] sm:$0x1] }
 0x49c   : > { %v18864_v32 = vadd.f32 %v15298_v0, %v18828_v54  ;;  %v1697_v1 = vpop.f32.mrb[19].mxu0  ;;  %15365 = vmatmul.mubr.msk.f32.vlgmr.msra.gmra.mrb[32].mxu1 %vm1894_vm4, %v18850_v60  ;;  %15407 = vmatprep.subr.mxu0 %v21485_v25  ;;  %vm1791_vm12 = vcmp.ne.f32.partialorder %v1775_v31, 0.0 }
 0x49d   : > { %v18870_v10 = vadd.f32 %v18828_v54, %v1697_v1  ;;  %15373 = vmatpush3.xpose.msk.msra.mxu1 %vm1894_vm4, %v18858_v55  ;;  %15374 = vmatprep.mubr.msk.f32.mxu1 %vm21549_vm3, %v21485_v25 }
 0x49e   : > { %21714 = vst [vmem:[#allocation77_spill] sm:$0xff] %v18864_v32  ;;  %15382 = vmatprep.subr.mxu1 %v21485_v25 }
 0x49f   : > { %21715 = vst [vmem:[#allocation78_spill] sm:$0xff] %v18870_v10  ;;  %v15301_v11 = vpop.f32.mrb[20].mxu0 }
 0x4a0   : > { %v18884_v33 = vadd.f32 %v15301_v11, %v18828_v54  ;;  %v1707_v37 = vpop.f32.mrb[21].mxu0  ;;  %15375 = vmatmul.mubr.msk.f32.vlgmr.msra.gmra.mrb[34].mxu1 %vm1894_vm4, %v18876_v53  ;;  %v1767_v11 = vld [vmem:[%s18116_s2 + $0x1] sm:$0x1] }
 0x4a1   : > { %v18889_v13 = vadd.f32 %v18828_v54, %v1707_v37  ;;  %15383 = vmatpush3.xpose.msk.msra.mxu1 %vm1894_vm4, %v18881_v26  ;;  %15384 = vmatprep.mubr.msk.f32.mxu1 %vm21549_vm3, %v21485_v25  ;;  %v1815_v37 = vshrl.u32 %v1814_v62, 7  ;;  %vm1783_vm5 = vcmp.ne.f32.partialorder %v1767_v11, 0.0 }
 0x4a2   : > { %21718 = vst [vmem:[#allocation81_spill] sm:$0xff] %v18884_v33  ;;  %15392 = vmatprep.subr.mxu1 %v21485_v25 }
 0x4a3   : > { %21719 = vst [vmem:[#allocation82_spill] sm:$0xff] %v18889_v13  ;;  %v15304_v42 = vpop.f32.mrb[22].mxu0 }
 0x4a4   : > { %v18903_v36 = vadd.f32 %v15304_v42, %v18828_v54  ;;  %v1717_v43 = vpop.f32.mrb[23].mxu0  ;;  %15385 = vmatmul.mubr.msk.f32.vlgmr.msra.gmra.mrb[36].mxu1 %vm1894_vm4, %v18895_v8  ;;  %v1799_v42 = vsel %vm1783_vm5, 1, %v21490_v39 }
 0x4a5   : > { %v18908_v2 = vadd.f32 %v18828_v54, %v1717_v43  ;;  %15393 = vmatpush3.xpose.msk.msra.mxu1 %vm1894_vm4, %v18900_v41  ;;  %15394 = vmatprep.mubr.msk.f32.mxu1 %vm21549_vm3, %v21485_v25  ;;  %v18952_v43 = vsub.s32 0, %v1815_v37  ;;  %v1771_v37 = vld [vmem:[%s18116_s2 + $0x5] sm:$0x1] }
 0x4a6   : > { %21722 = vst [vmem:[#allocation85_spill] sm:$0xff] %v18903_v36  ;;  %15402 = vmatprep.subr.mxu1 %v21485_v25  ;;  %vm1787_vm8 = vcmp.ne.f32.partialorder %v1771_v37, 0.0 }
 0x4a7   : > { %21723 = vst [vmem:[#allocation86_spill] sm:$0xff] %v18908_v2  ;;  %v15307_v49 = vpop.f32.mrb[24].mxu0 }
 0x4a8   : > { %v18921_v20 = vadd.f32 %v15307_v49, %v18828_v54  ;;  %v1727_v34 = vpop.f32.mrb[25].mxu0  ;;  %15395 = vmatmul.mubr.msk.f32.vlgmr.msra.gmra.mrb[38].mxu1 %vm1894_vm4, %v18914_v16  ;;  %v1821_v49 = vrot.slane %v1799_v42, %v18952_v43 }
 0x4a9   : > { %v18926_v18 = vadd.f32 %v18828_v54, %v1727_v34  ;;  %15403 = vmatpush3.msra.mxu1 %v18918_v15  ;;  %15404 = vmatprep.mubr.msk.f32.mxu1 %vm21549_vm3, %v21485_v25  ;;  %v1769_v34 = vld [vmem:[%s18116_s2 + $0x3] sm:$0x1] }
 0x4aa   : > { %21726 = vst [vmem:[#allocation89_spill] sm:$0xff] %v18921_v20  ;;  %15412 = vmatprep.subr.mxu1 %v21485_v25  ;;  %vm1785_vm6 = vcmp.ne.f32.partialorder %v1769_v34, 0.0  ;;  %vm18958_vm7 = vcmp.eq.s32.totalorder %v1821_v49, 1  ;;  %v21737_v34 = vmov 0  ;;  %v1773_v25 = vld [vmem:[%s18116_s2 + $0x7] sm:$0x1] }
 0x4ab   : > { %21727 = vst [vmem:[#allocation90_spill] sm:$0xff] %v18926_v18  ;;  %v15310_v47 = vpop.f32.mrb[26].mxu0  ;;  %vm1789_vm10 = vcmp.ne.f32.partialorder %v1773_v25, 0.0 }
 0x4ac   : > { %v18933_v3 = vadd.f32 %v15310_v47, %v18828_v54  ;;  %v1737_v59 = vpop.f32.mrb[27].mxu0 }
 0x4ad   : > { %v18936_v40 = vadd.f32 %v18828_v54, %v1737_v59 }
 0x4ae   : > { %21728 = vst [vmem:[#allocation91_spill] sm:$0xff] %v18933_v3 }
 0x4af   : > { %21729 = vst [vmem:[#allocation92_spill] sm:$0xff] %v18936_v40  ;;  %v15313_v14 = vpop.f32.mrb[28].mxu0 }
 0x4b0   : > { %v18939_v38 = vadd.f32 %v15313_v14, %v18828_v54  ;;  %v1747_v9 = vpop.f32.mrb[29].mxu0 }
 0x4b1   : > { %v18942_v58 = vadd.f32 %v18828_v54, %v1747_v9  ;;  %v1801_v9 = vsel %vm1785_vm6, 1, %v21490_v39 }
 0x4b2   : > { %21730 = vst [vmem:[#allocation93_spill] sm:$0xff] %v18939_v38  ;;  %v1829_v11 = vrot.slane %v1801_v9, %v18952_v43 }
 0x4b3   : > { %21731 = vst [vmem:[#allocation94_spill] sm:$0xff] %v18942_v58  ;;  %v15316_v4 = vpop.f32.mrb[30].mxu0 }
 0x4b4   : > { %v18945_v19 = vadd.f32 %v15316_v4, %v18828_v54  ;;  %v1757_v0 = vpop.f32.mrb[31].mxu0  ;;  %vm18973_vm9 = vcmp.eq.s32.totalorder %v1829_v11, 1 }
 0x4b5   : > { %v18948_v1 = vadd.f32 %v18828_v54, %v1757_v0  ;;  %v21734_v54 = vmov 0  ;;  %v21738_v34 = vsel %vm18973_vm9, 4294967295, %v21737_v34 }
 0x4b6   : > { %21732 = vst [vmem:[#allocation95_spill] sm:$0xff] %v18945_v19  ;;  %v21735_v54 = vsel %vm18958_vm7, 4294967295, %v21734_v54  ;;  %21739 = vst [vmem:[#allocation98_spill] sm:$0xff] %v21738_v34 }
 0x4b7   : > { %21733 = vst [vmem:[#allocation96_spill] sm:$0xff] %v18948_v1  ;;  %21736 = vst [vmem:[#allocation97_spill] sm:$0xff] %v21735_v54 }
 0x54c   : > { %v18956_v47 = vpop.f32.mrb[16].mxu1 }
 0x54d   : > { %v15321_v59 = vpop.f32.mrb[17].mxu1 }
 0x550   : > { %v2043_v14 = vpop.f32.mrb[18].mxu1 }
 0x551   : > { %v18965_v4 = vsel %vm18958_vm7, %v2043_v14, -1e+09  ;;  %v15326_v0 = vpop.f32.mrb[19].mxu1  ;;  %v1803_v14 = vsel %vm1787_vm8, 1, %v21490_v39  ;;  %v21740_v39 = vmov 0 }
 0x552   : > { %v3130_v62 = vsel %vm1894_vm4, %v18965_v4, -inf  ;;  %v1837_v37 = vrot.slane %v1803_v14, %v18952_v43 }
 0x553   : > { %3131 = vmax.xlane.f32.xlu0 %v3130_v62 }
 0x554   : > { %vm18991_vm11 = vcmp.eq.s32.totalorder %v1837_v37, 1 }
 0x555   : > { %v21741_v39 = vsel %vm18991_vm11, 4294967295, %v21740_v39 }
 0x556   : > { %v18971_v42 = vpop.f32.mrb[20].mxu1  ;;  %21742 = vst [vmem:[#allocation99_spill] sm:$0xff] %v21741_v39 }
 0x557   : > { %v15331_v49 = vpop.f32.mrb[21].mxu1 }
 0x55a   : > { %v2195_v59 = vpop.f32.mrb[22].mxu1 }
 0x55b   : > { %v18980_v0 = vsel %vm18973_vm9, %v2195_v59, -1e+09  ;;  %v15336_v62 = vpop.f32.mrb[23].mxu1 }
 0x55c   : > { %v3136_v9 = vsel %vm1894_vm4, %v18980_v0, -inf  ;;  %v21743_v62 = vmov 0  }
 0x55d   : > { %3137 = vmax.xlane.f32.xlu1 %v3136_v9  ;;  %v1805_v34 = vsel %vm1789_vm10, 1, %v21743_v62 }
 0x55e   : > { %v18986_v11 = vpop.f32.mrb[24].mxu1  ;;  %v1845_v54 = vrot.slane %v1805_v34, %v18952_v43 }
 0x55f   : > { %v15341_v49 = vpop.f32.mrb[25].mxu1 }
 0x560   : > { %v1777_v49 = vld [vmem:[%s18116_s2 + $0xb] sm:$0x1]  ;;  %vm19012_vm14 = vcmp.eq.s32.totalorder %v1845_v54, 1 }
 0x561   : > { %v18989_v1 = vpop.f32.mrb[32].mxu0  ;;  %vm1793_vm13 = vcmp.ne.f32.partialorder %v1777_v49, 0.0 }
 0x562   : > { %v15361_v59 = vpop.f32.mrb[33].mxu0 }
 0x563   : > { %v2347_v58 = vpop.f32.mrb[26].mxu1  ;;  %v1807_v59 = vsel %vm1791_vm12, 1, %v21743_v62 }
 0x564   : > { %v18998_v14 = vsel %vm18991_vm11, %v2347_v58, -1e+09  ;;  %v15346_v9 = vpop.f32.mrb[27].mxu1  ;;  %v1779_v58 = vld [vmem:[%s18116_s2 + $0xd] sm:$0x1]  ;;  %v1853_v2 = vrot.slane %v1807_v59, %v18952_v43 }
 0x565   : > { %v19001_v25 = vpop.f32.mrb[34].mxu0  ;;  %v3142_v37 = vsel %vm1894_vm4, %v18998_v14, -inf  ;;  %v21744_v9 = vmov 0  ;;  %vm1795_vm15 = vcmp.ne.f32.partialorder %v1779_v58, 0.0 }
 0x566   : > { %v15371_v40 = vpop.f32.mrb[35].mxu0  ;;  %3143 = vmax.xlane.f32.xlu0 %v3142_v37  ;;  %v21745_v9 = vsel %vm19012_vm14, 4294967295, %v21744_v9  ;;  %vm19027_vm1 = vcmp.eq.s32.totalorder %v1853_v2, 1  ;;  %v1811_v58 = vsel %vm1795_vm15, 1, %v21743_v62 }
 0x567   : > { %v19007_v18 = vpop.f32.mrb[28].mxu1  ;;  %21746 = vst [vmem:[#allocation100_spill] sm:$0xff] %v21745_v9  ;;  %v1809_v40 = vsel %vm1793_vm13, 1, %v21743_v62  ;;  %v21748_v44 = vsel %vm19027_vm1, 4294967295, %v21747_v44  ;;  %v1869_v2 = vrot.slane %v1811_v58, %v18952_v43 }
 0x568   : > { %v15351_v31 = vpop.f32.mrb[29].mxu1  ;;  %21749 = vst [vmem:[#allocation101_spill] sm:$0xff] %v21748_v44 }
 0x569   : > { %v19010_v39 = vpop.f32.mrb[36].mxu0  ;;  %v1781_v31 = vld [vmem:[%s18116_s2 + $0xf] sm:$0x1]  ;;  %vm19045_vm6 = vcmp.eq.s32.totalorder %v1869_v2, 1 }
 0x56a   : > { %v15381_v13 = vpop.f32.mrb[37].mxu0  ;;  %vm1797_vm2 = vcmp.ne.f32.partialorder %v1781_v31, 0.0 }
 0x56b   : > { %v2499_v34 = vpop.f32.mrb[30].mxu1  ;;  %v1861_v13 = vrot.slane %v1809_v40, %v18952_v43  ;;  %v1813_v40 = vsel %vm1797_vm2, 1, %v21743_v62 }
 0x56c   : > { %v19020_v37 = vsel %vm19012_vm14, %v2499_v34, -1e+09  ;;  %v15356_v49 = vpop.f32.mrb[31].mxu1 }
 0x56d   : > { %v19023_v10 = vpop.f32.mrb[38].mxu0  ;;  %v3148_v54 = vsel %vm1894_vm4, %v19020_v37, -inf  ;;  %vm19036_vm5 = vcmp.eq.s32.totalorder %v1861_v13, 1  ;;  %v1877_v13 = vrot.slane %v1813_v40, %v18952_v43 }
 0x56e   : > { %v15391_v59 = vpop.f32.mrb[39].mxu0  ;;  %3149 = vmax.xlane.f32.xlu1 %v3148_v54  ;;  %v21751_v29 = vsel %vm19036_vm5, 4294967295, %v21750_v29 }
 0x56f   : > { %v2651_v9 = vpop.f32.mrb[32].mxu1  ;;  %21752 = vst [vmem:[#allocation102_spill] sm:$0xff] %v21751_v29  ;;  %vm19056_vm8 = vcmp.eq.s32.totalorder %v1877_v13, 1  ;;  %v19070_v13 = vpop.permute.xlu0 %4552 }
 0x570   : > { %v3120_v34 = vsel %vm19027_vm1, %v2651_v9, -1e+09  ;;  %v15366_v49 = vpop.f32.mrb[33].mxu1  ;;  %v21753_v9 = vmov 0 }
 0x571   : > { %v3154_v63 = vsel %vm1894_vm4, %v3120_v34, -inf  ;;  %v21754_v9 = vsel %vm19045_vm6, 4294967295, %v21753_v9 }
 0x572   : > { %3155 = vmax.xlane.f32.xlu0 %v3154_v63  ;;  %21755 = vst [vmem:[#allocation103_spill] sm:$0xff] %v21754_v9 }
 0x573   : > { %v2803_v54 = vpop.f32.mrb[34].mxu1 }
 0x574   : > { %v3122_v59 = vsel %vm19036_vm5, %v2803_v54, -1e+09  ;;  %v15376_v31 = vpop.f32.mrb[35].mxu1  ;;  %v21756_v54 = vmov 0 }
 0x575   : > { %v3160_v44 = vsel %vm1894_vm4, %v3122_v59, -inf  ;;  %v21757_v54 = vsel %vm19056_vm8, 4294967295, %v21756_v54 }
 0x576   : > { %3161 = vmax.xlane.f32.xlu1 %v3160_v44  ;;  %21758 = vst [vmem:[#allocation104_spill] sm:$0xff] %v21757_v54 }
 0x577   : > { %v2955_v49 = vpop.f32.mrb[36].mxu1 }
 0x578   : > { %v19052_v63 = vsel %vm19045_vm6, %v2955_v49, -1e+09  ;;  %v15386_v58 = vpop.f32.mrb[37].mxu1  ;;  %v19072_v49 = vpop.permute.xlu1 %4550 }
 0x579   : > { %v3166_v29 = vsel %vm1894_vm4, %v19052_v63, -inf }
 0x57a   : > { %3167 = vmax.xlane.f32.xlu0 %v3166_v29  ;;  %v19074_v29 = vpop.permute.xlu0 %4864 }
 0x57b   : > { %v3107_v2 = vpop.f32.mrb[38].mxu1 }
 0x57c   : > { %v19062_v31 = vsel %vm19056_vm8, %v3107_v2, -1e+09  ;;  %v15396_v44 = vpop.f32.mrb[39].mxu1  ;;  %v19076_v58 = vpop.permute.xlu1 %4708 }
 0x57d   : > { %v3172_v40 = vsel %vm1894_vm4, %v19062_v31, -inf }
 0x57e   : > { %3173 = vmax.xlane.f32.xlu1 %v3172_v40  ;;  %v19078_v2 = vpop.permute.xlu0 %5020 }
 0x580   : > { %v19080_v44 = vpop.permute.xlu1 %4706 }
 0x58f   : > { %5018 = vrot.lane.b32.xlu1 %v18823_v50, %s17495_s27  ;;  %v19083_v50 = vpop.permute.xlu1 %4862 }
 0x590   : > { %5176 = vrot.lane.b32.xlu0 %v18832_v24, %s17495_s27 }
 0x5e0   : > { %v3132_v9 = vpop.xlane.xlu0 %3131 }
 0x5e1   : > { %v3176_v40 = vsub.f32 %v18965_v4, %v3132_v9 }
 0x5e3   : > { %v3193_v54 = vmul.f32 1.442695, %v3176_v40 }
 0x5e5   : > { %16519 = vpow2.f32 %v3193_v54 }
 0x5ea   : > { %v3138_v24 = vpop.xlane.xlu1 %3137 }
 0x5eb   : > { %v3178_v51 = vsub.f32 %v18980_v0, %v3138_v24 }
 0x5ed   : > { %v3197_v7 = vmul.f32 1.442695, %v3178_v51 }
 0x5ef   : > { %16521 = vpow2.f32 %v3197_v7  ;;  %v19086_v15 = vpop.eup %16519 }
 0x5f0   : > { %v3226_v12 = vsel %vm1894_vm4, %v19086_v15, 0.0 }
 0x5f1   : > { %3227 = vadd.xlane.f32.xlu0 %v3226_v12 }
 0x5f3   : > { %v3144_v52 = vpop.xlane.xlu0 %3143 }
 0x5f4   : > { %v3180_v21 = vsub.f32 %v18998_v14, %v3144_v52 }
 0x5f6   : > { %v3201_v45 = vmul.f32 1.442695, %v3180_v21 }
 0x5f8   : > { %16523 = vpow2.f32 %v3201_v45 }
 0x5f9   : > { %v19091_v4 = vpop.eup %16521 }
 0x5fa   : > { %v3232_v9 = vsel %vm1894_vm4, %v19091_v4, 0.0 }
 0x5fb   : > { %v3150_v54 = vpop.xlane.xlu1 %3149  ;;  %3233 = vadd.xlane.f32.xlu1 %v3232_v9 }
 0x5fc   : > { %v3182_v51 = vsub.f32 %v19020_v37, %v3150_v54 }
 0x5fe   : > { %v3205_v7 = vmul.f32 1.442695, %v3182_v51 }
 0x5ff   : > { %v3156_v24 = vpop.xlane.xlu0 %3155 }
 0x600   : > { %16525 = vpow2.f32 %v3205_v7  ;;  %v3184_v0 = vsub.f32 %v3120_v34, %v3156_v24 }
 0x602   : > { %v19096_v40 = vpop.eup %16523  ;;  %v3209_v12 = vmul.f32 1.442695, %v3184_v0 }
 0x603   : > { %v3162_v61 = vpop.xlane.xlu1 %3161  ;;  %v3238_v45 = vsel %vm1894_vm4, %v19096_v40, 0.0 }
 0x604   : > { %16527 = vpow2.f32 %v3209_v12  ;;  %v3186_v21 = vsub.f32 %v3122_v59, %v3162_v61  ;;  %3239 = vadd.xlane.f32.xlu0 %v3238_v45 }
 0x606   : > { %v3213_v52 = vmul.f32 1.442695, %v3186_v21 }
 0x607   : > { %v3168_v59 = vpop.xlane.xlu0 %3167 }
 0x608   : > { %16529 = vpow2.f32 %v3213_v52  ;;  %v3188_v51 = vsub.f32 %v19052_v63, %v3168_v59  ;;  %v21759_v59 = vmov 0 }
 0x60a   : > { %v19100_v14 = vpop.eup %16525  ;;  %v3217_v24 = vmul.f32 1.442695, %v3188_v51 }
 0x60b   : > { %v3244_v37 = vsel %vm1894_vm4, %v19100_v14, 0.0  ;;  %v3174_v7 = vpop.xlane.xlu1 %3173 }
 0x60c   : > { %3245 = vadd.xlane.f32.xlu1 %v3244_v37  ;;  %v3190_v0 = vsub.f32 %v19062_v31, %v3174_v7  ;;  %16531 = vpow2.f32 %v3217_v24  ;;  %v1766_v31 = vld [vmem:[%s18116_s2] sm:$0x1]  ;;  %v1770_v7 = vld [vmem:[%s18116_s2 + $0x4] sm:$0x1] }
 0x60d   : > { %vm1782_vm10 = vcmp.ne.f32.partialorder %v1766_v31, 0.0  ;;  %vm1786_vm15 = vcmp.ne.f32.partialorder %v1770_v7, 0.0 }
 0x60e   : > { %v19104_v9 = vpop.eup %16527  ;;  %v3221_v12 = vmul.f32 1.442695, %v3190_v0  ;;  %v1798_v37 = vsel %vm1782_vm10, 1, %v21743_v62  ;;  %v1802_v31 = vsel %vm1786_vm15, 1, %v21743_v62 }
 0x60f   : > { %v3250_v34 = vsel %vm1894_vm4, %v19104_v9, 0.0 }
 0x610   : > { %3251 = vadd.xlane.f32.xlu0 %v3250_v34  ;;  %16533 = vpow2.f32 %v3221_v12  ;;  %v1817_v34 = vrot.slane %v1798_v37, %v18952_v43  ;;  %v1772_v12 = vld [vmem:[%s18116_s2 + $0x6] sm:$0x1]  ;;  %v1774_v37 = vld [vmem:[%s18116_s2 + $0x8] sm:$0x1] }
 0x611   : > { %vm1788_vm2 = vcmp.ne.f32.partialorder %v1772_v12, 0.0  ;;  %v21765_v12 = vmov 0 }
 0x612   : > { %v19108_v54 = vpop.eup %16529  ;;  %vm19138_vm12 = vcmp.eq.s32.totalorder %v1817_v34, 1  ;;  %v1833_v34 = vrot.slane %v1802_v31, %v18952_v43  ;;  %v1804_v7 = vsel %vm1788_vm2, 1, %v21743_v62  ;;  %v19175_v31 = vpop.permute.xlu1 %5018 }
 0x613   : > { %v3256_v61 = vsel %vm1894_vm4, %v19108_v54, 0.0  ;;  %v21760_v59 = vsel %vm19138_vm12, 4294967295, %v21759_v59  ;;  %v19145_v51 = vsel %vm19138_vm12, %v18956_v47, -1e+09  ;;  %v21762_v47 = vmov 0 }
 0x614   : > { %3257 = vadd.xlane.f32.xlu1 %v3256_v61  ;;  %v1768_v61 = vld [vmem:[%s18116_s2 + $0x2] sm:$0x1]  ;;  %21761 = vst [vmem:[#allocation105_spill] sm:$0xff] %v21760_v59  ;;  %v3127_v0 = vsel %vm1894_vm4, %v19145_v51, -inf  ;;  %vm19169_vm15 = vcmp.eq.s32.totalorder %v1833_v34, 1 }
 0x615   : > { %vm1784_vm13 = vcmp.ne.f32.partialorder %v1768_v61, 0.0  ;;  %v21766_v12 = vsel %vm19169_vm15, 4294967295, %v21765_v12 }
 0x616   : > { %v19118_v45 = vpop.eup %16531  ;;  %v1800_v24 = vsel %vm1784_vm13, 1, %v21743_v62  ;;  %vm1790_vm13 = vcmp.ne.f32.partialorder %v1774_v37, 0.0  ;;  %21767 = vst [vmem:[#allocation107_spill] sm:$0xff] %v21766_v12 }
 0x617   : > { %v3262_v21 = vsel %vm1894_vm4, %v19118_v45, 0.0 }
 0x61a   : > { %v19122_v52 = vpop.eup %16533 }
 0x61b   : > { %v3268_v63 = vsel %vm1894_vm4, %v19122_v52, 0.0 }
 0x625   : > { %5174 = vrot.lane.b32.xlu1 %v18850_v60, %s17495_s27 }
 0x626   : > { %5332 = vrot.lane.b32.xlu0 %v18858_v55, %s17495_s27 }
 0x645   : > { %3263 = vadd.xlane.f32.xlu0 %v3262_v21  ;;  %v1825_v21 = vrot.slane %v1800_v24, %v18952_v43 }
 0x647   : > { %vm19157_vm10 = vcmp.eq.s32.totalorder %v1825_v21, 1  ;;  %v1841_v21 = vrot.slane %v1804_v7, %v18952_v43 }
 0x648   : > { %v21763_v47 = vsel %vm19157_vm10, 4294967295, %v21762_v47  ;;  %v19166_v24 = vsel %vm19157_vm10, %v18971_v42, -1e+09  ;;  %v19182_v42 = vsel %vm19169_vm15, %v18986_v11, -1e+09 }
 0x649   : > { %3269 = vadd.xlane.f32.xlu1 %v3268_v63  ;;  %v19153_v63 = vpop.permute.xlu0 %5176  ;;  %21764 = vst [vmem:[#allocation106_spill] sm:$0xff] %v21763_v47  ;;  %v3133_v37 = vsel %vm1894_vm4, %v19166_v24, -inf  ;;  %vm19186_vm2 = vcmp.eq.s32.totalorder %v1841_v21, 1 }
 0x64a   : > { %v19196_v11 = vsel %vm19186_vm2, %v19007_v18, -1e+09 }
 0x65a   : > { %5330 = vrot.lane.b32.xlu1 %v18876_v53, %s17495_s27 }
 0x65b   : > { %5488 = vrot.lane.b32.xlu0 %v18881_v26, %s17495_s27 }
 0x65e   : > { %5486 = vrot.lane.b32.xlu1 %v18895_v8, %s17495_s27  ;;  %v1806_v8 = vsel %vm1790_vm13, 1, %v21743_v62 }
 0x65f   : > { %v1849_v34 = vrot.slane %v1806_v8, %v18952_v43  ;;  %v21771_v8 = vmov 0 }
 0x661   : > { %vm19198_vm3 = vcmp.eq.s32.totalorder %v1849_v34, 1  ;;  %v21774_v34 = vmov 0 }
 0x662   : > { %5644 = vrot.lane.b32.xlu1 %v18900_v41, %s17495_s27  ;;  %v21768_v41 = vmov 0  ;;  %v21772_v8 = vsel %vm19198_vm3, 4294967295, %v21771_v8  ;;  %v19211_v18 = vsel %vm19198_vm3, %v18989_v1, -1e+09 }
 0x663   : > { %v21769_v41 = vsel %vm19186_vm2, 4294967295, %v21768_v41  ;;  %21773 = vst [vmem:[#allocation109_spill] sm:$0xff] %v21772_v8  ;;  %v3151_v1 = vsel %vm1894_vm4, %v19211_v18, -inf }
 0x664   : > { %21770 = vst [vmem:[#allocation108_spill] sm:$0xff] %v21769_v41 }
 0x67a   : > { %3128 = vmax.xlane.f32.xlu0 %v3127_v0  ;;  %v1778_v0 = vld [vmem:[%s18116_s2 + $0xc] sm:$0x1] }
 0x67b   : > { %vm1794_vm0 = vcmp.ne.f32.partialorder %v1778_v0, 0.0  ;;  %v3139_v0 = vsel %vm1894_vm4, %v19182_v42, -inf }
 0x67c   : > { %v1810_v7 = vsel %vm1794_vm0, 1, %v21743_v62 }
 0x67d   : > { %v1865_v21 = vrot.slane %v1810_v7, %v18952_v43 }
 0x67e   : > { %v3228_v61 = vpop.xlane.xlu0 %3227 }
 0x67f   : > { %16535 = vrcp.f32 %v3228_v61  ;;  %v1780_v61 = vld [vmem:[%s18116_s2 + $0xe] sm:$0x1]  ;;  %vm19214_vm0 = vcmp.eq.s32.totalorder %v1865_v21, 1 }
 0x680   : > { %vm1796_vm13 = vcmp.ne.f32.partialorder %v1780_v61, 0.0  ;;  %v3145_v61 = vsel %vm1894_vm4, %v19196_v11, -inf  ;;  %v21775_v34 = vsel %vm19214_vm0, 4294967295, %v21774_v34 }
 0x681   : > { %21776 = vst [vmem:[#allocation110_spill] sm:$0xff] %v21775_v34 }
 0x686   : > { %3134 = vmax.xlane.f32.xlu1 %v3133_v37 }
 0x688   : > { %v3234_v53 = vpop.xlane.xlu1 %3233 }
 0x689   : > { %16537 = vrcp.f32 %v3234_v53  ;;  %v16536_v26 = vpop.eup %16535  ;;  %v1812_v53 = vsel %vm1796_vm13, 1, %v21743_v62  ;;  %vm21778_vm13 = vmmov 0  }
 0x68a   : > { %3140 = vmax.xlane.f32.xlu1 %v3139_v0  ;;  %v3288_v37 = vmul.f32 %v16536_v26, %v19086_v15  ;;  %v1873_v26 = vrot.slane %v1812_v53, %v18952_v43  ;;  %v21777_v15 = vmov 0.0   ;;  %v19229_v0 = vsel %vm19214_vm0, %v19010_v39, -1e+09 }
 0x68c   : > { %15405 = vmatmul.mubr.msk.f32.vlgmr.msra.gmra.mrb[40].mxu1 %vm1894_vm4, %v3288_v37  ;;  %vm19231_vm3 = vcmp.eq.s32.totalorder %v1873_v26, 1  ;;  %v21779_v37 = vmov 0  ;;  %v1776_v26 = vld [vmem:[%s18116_s2 + $0xa] sm:$0x1] }
 0x68d   : > { %15413 = vmatpush3.msra.mxu1 %v18864_v32  ;;  %15414 = vmatprep.mubr.msk.f32.mxu1 %vm21778_vm13, %v21777_v15  ;;  %v21780_v37 = vsel %vm19231_vm3, 4294967295, %v21779_v37 }
 0x68e   : > { %3146 = vmax.xlane.f32.xlu1 %v3145_v61  ;;  %15422 = vmatprep.subr.mxu1 %v21777_v15  ;;  %21781 = vst [vmem:[#allocation111_spill] sm:$0xff] %v21780_v37  ;;  %v3163_v61 = vsel %vm1894_vm4, %v19229_v0, -inf }
 0x690   : > { %5642 = vrot.lane.b32.xlu0 %v18914_v16, %s17495_s27  ;;  %v19241_v16 = vsel %vm19231_vm3, %v19023_v10, -1e+09  ;;  %vm1792_vm3 = vcmp.ne.f32.partialorder %v1776_v26, 0.0  ;;  %v21782_v26 = vmov 0 }
 0x691   : > { %v3240_v7 = vpop.xlane.xlu0 %3239 }
 0x692   : > { %16539 = vrcp.f32 %v3240_v7  ;;  %3152 = vmax.xlane.f32.xlu1 %v3151_v1 }
 0x693   : > { %v16538_v21 = vpop.eup %16537 }
 0x694   : > { %v3290_v53 = vmul.f32 %v16538_v21, %v19091_v4  ;;  %v3169_v4 = vsel %vm1894_vm4, %v19241_v16, -inf  ;;  %v1808_v21 = vsel %vm1792_vm3, 1, %v21743_v62  ;;  %vm21830_vm3 = vnez %v21772_v8 }
 0x696   : > { %3164 = vmax.xlane.f32.xlu1 %v3163_v61  ;;  %15415 = vmatmul.mubr.msk.f32.vlgmr.msra.gmra.mrb[42].mxu1 %vm1894_vm4, %v3290_v53 }
 0x697   : > { %15423 = vmatpush3.msra.mxu1 %v18884_v33  ;;  %15424 = vmatprep.mubr.msk.f32.mxu1 %vm21778_vm13, %v21777_v15 }
 0x698   : > { %15432 = vmatprep.subr.mxu1 %v21777_v15 }
 0x699   : > { %v3246_v39 = vpop.xlane.xlu1 %3245 }
 0x69a   : > { %16541 = vrcp.f32 %v3246_v39  ;;  %3170 = vmax.xlane.f32.xlu1 %v3169_v4  ;;  %v1857_v39 = vrot.slane %v1808_v21, %v18952_v43 }
 0x69c   : > { %v16540_v7 = vpop.eup %16539  ;;  %vm19261_vm0 = vcmp.eq.s32.totalorder %v1857_v39, 1 }
 0x69d   : > { %v3252_v10 = vpop.xlane.xlu0 %3251  ;;  %v3292_v1 = vmul.f32 %v16540_v7, %v19096_v40  ;;  %v21783_v26 = vsel %vm19261_vm0, 4294967295, %v21782_v26  ;;  %v19273_v43 = vsel %vm19261_vm0, %v19001_v25, -1e+09 }
 0x69e   : > { %16543 = vrcp.f32 %v3252_v10  ;;  %21784 = vst [vmem:[#allocation112_spill] sm:$0xff] %v21783_v26 }
 0x69f   : > { %15425 = vmatmul.mubr.msk.f32.vlgmr.msra.gmra.mrb[44].mxu1 %vm1894_vm4, %v3292_v1 }
 0x6a0   : > { %15433 = vmatpush3.msra.mxu1 %v18903_v36  ;;  %15434 = vmatprep.mubr.msk.f32.mxu1 %vm21778_vm13, %v21777_v15 }
 0x6a1   : > { %v3258_v53 = vpop.xlane.xlu1 %3257  ;;  %15442 = vmatprep.subr.mxu1 %v21777_v15  ;;  %v5333_v25 = vpop.permute.xlu0 %5332 }
 0x6a2   : > { %16545 = vrcp.f32 %v3258_v53 }
 0x6a4   : > { %v16542_v61 = vpop.eup %16541 }
 0x6a5   : > { %v3294_v40 = vmul.f32 %v16542_v61, %v19100_v14  ;;  %v5175_v10 = vpop.permute.xlu1 %5174 }
 0x6a7   : > { %15435 = vmatmul.mubr.msk.f32.vlgmr.msra.gmra.mrb[46].mxu1 %vm1894_vm4, %v3294_v40 }
 0x6a8   : > { %v16544_v4 = vpop.eup %16543  ;;  %15443 = vmatpush3.msra.mxu1 %v18921_v20  ;;  %15444 = vmatprep.mubr.msk.f32.mxu1 %vm21778_vm13, %v21777_v15 }
 0x6a9   : > { %15452 = vmatprep.subr.mxu1 %v21777_v15  ;;  %v3296_v62 = vmul.f32 %v16544_v4, %v19104_v9  ;;  %v3157_v9 = vsel %vm1894_vm4, %v19273_v43, -inf }
 0x6ab   : > { %15445 = vmatmul.mubr.msk.f32.vlgmr.msra.gmra.mrb[48].mxu1 %vm1894_vm4, %v3296_v62 }
 0x6ac   : > { %v16546_v14 = vpop.eup %16545  ;;  %15453 = vmatpush3.msra.mxu1 %v18933_v3  ;;  %15454 = vmatprep.mubr.msk.f32.mxu1 %vm21778_vm13, %v21777_v15 }
 0x6ad   : > { %15462 = vmatprep.subr.mxu1 %v21777_v15  ;;  %v3298_v7 = vmul.f32 %v16546_v14, %v19108_v54 }
 0x6af   : > { %3158 = vmax.xlane.f32.xlu0 %v3157_v9  ;;  %15455 = vmatmul.mubr.msk.f32.vlgmr.msra.gmra.mrb[50].mxu1 %vm1894_vm4, %v3298_v7 }
 0x6b0   : > { %15463 = vmatpush3.msra.mxu1 %v18939_v38  ;;  %15464 = vmatprep.mubr.msk.f32.mxu1 %vm21778_vm13, %v21777_v15 }
 0x6b1   : > { %15472 = vmatprep.subr.mxu1 %v21777_v15 }
 0x6d2   : > { %v3264_v1 = vpop.xlane.xlu0 %3263 }
 0x6d3   : > { %16547 = vrcp.f32 %v3264_v1 }
 0x6d6   : > { %v3270_v21 = vpop.xlane.xlu1 %3269 }
 0x6d7   : > { %16549 = vrcp.f32 %v3270_v21 }
 0x6dd   : > { %v16548_v54 = vpop.eup %16547 }
 0x6de   : > { %v3300_v53 = vmul.f32 %v16548_v54, %v19118_v45 }
 0x6e0   : > { %15465 = vmatmul.mubr.msk.f32.vlgmr.msra.gmra.mrb[52].mxu1 %vm1894_vm4, %v3300_v53 }
 0x6e1   : > { %v16550_v61 = vpop.eup %16549  ;;  %15473 = vmatpush3.msra.mxu1 %v18945_v19  ;;  %15474 = vmatprep.mubr.msk.f32.mxu1 %vm21778_vm13, %v21777_v15 }
 0x6e2   : > { %v3302_v39 = vmul.f32 %v16550_v61, %v19122_v52  ;;  %15482 = vmatprep.subr.mxu1 %v21777_v15 }
 0x6e4   : > { %15475 = vmatmul.mubr.msk.f32.vlgmr.msra.gmra.mrb[54].mxu1 %vm1894_vm4, %v3302_v39 }
 0x6e5   : > { %15484 = vmatprep.mubr.msk.f32.mxu1 %vm21778_vm13, %v21777_v15 }
 0x6e8   : > { %15483 = vmatpush3.xpose.msk.msra.mxu1 %vm1894_vm4, %v19070_v13  ;;  %v5331_v13 = vpop.permute.xlu1 %5330 }
 0x6e9   : > { %15492 = vmatprep.subr.mxu1 %v21777_v15 }
 0x6eb   : > { %15485 = vmatmul.mubr.msk.f32.vlgmr.msra.gmra.mrb[56].mxu1 %vm1894_vm4, %v19072_v49  ;;  %v5489_v49 = vpop.permute.xlu0 %5488 }
 0x6ec   : > { %15493 = vmatpush3.xpose.msk.msra.mxu1 %vm1894_vm4, %v19076_v58  ;;  %15494 = vmatprep.mubr.msk.f32.mxu1 %vm21778_vm13, %v21777_v15 }
 0x6ed   : > { %15502 = vmatprep.subr.mxu1 %v21777_v15 }
 0x6ef   : > { %15495 = vmatmul.mubr.msk.f32.vlgmr.msra.gmra.mrb[58].mxu1 %vm1894_vm4, %v19080_v44 }
 0x6f0   : > { %15503 = vmatpush3.xpose.msk.msra.mxu1 %vm1894_vm4, %v19074_v29  ;;  %15504 = vmatprep.mubr.msk.f32.mxu1 %vm21778_vm13, %v21777_v15 }
 0x6f1   : > { %15512 = vmatprep.subr.mxu1 %v21777_v15 }
 0x6f3   : > { %15505 = vmatmul.mubr.msk.f32.vlgmr.msra.gmra.mrb[60].mxu1 %vm1894_vm4, %v19083_v50  ;;  %v5487_v50 = vpop.permute.xlu1 %5486 }
 0x6f4   : > { %15513 = vmatpush3.xpose.msk.msra.mxu1 %vm1894_vm4, %v19078_v2  ;;  %15514 = vmatprep.mubr.msk.f32.mxu1 %vm21778_vm13, %v21777_v15 }
 0x6f5   : > { %15522 = vmatprep.subr.mxu1 %v21777_v15 }
 0x6f7   : > { %15515 = vmatmul.mubr.msk.f32.vlgmr.msra.gmra.mrb[62].mxu1 %vm1894_vm4, %v19175_v31  ;;  %v5645_v29 = vpop.permute.xlu1 %5644 }
 0x6f8   : > { %15523 = vmatpush3.xpose.msk.msra.mxu1 %vm1894_vm4, %v19153_v63  ;;  %15524 = vmatprep.mubr.msk.f32.mxu1 %vm21778_vm13, %v21777_v15 }
 0x6f9   : > { %15532 = vmatprep.subr.mxu1 %v21777_v15 }
 0x6fb   : > { %15525 = vmatmul.mubr.msk.f32.vlgmr.msra.gmra.mrb[64].mxu1 %vm1894_vm4, %v5175_v10 }
 0x6fc   : > { %15533 = vmatpush3.xpose.msk.msra.mxu1 %vm1894_vm4, %v5333_v25  ;;  %15534 = vmatprep.mubr.msk.f32.mxu1 %vm21778_vm13, %v21777_v15 }
 0x6fd   : > { %15542 = vmatprep.subr.mxu1 %v21777_v15 }
 0x6ff   : > { %15535 = vmatmul.mubr.msk.f32.vlgmr.msra.gmra.mrb[66].mxu1 %vm1894_vm4, %v5331_v13 }
 0x700   : > { %15543 = vmatpush3.xpose.msk.msra.mxu1 %vm1894_vm4, %v5489_v49  ;;  %15544 = vmatprep.mubr.msk.f32.mxu1 %vm21778_vm13, %v21777_v15 }
 0x701   : > { %15552 = vmatprep.subr.mxu1 %v21777_v15 }
 0x703   : > { %15545 = vmatmul.mubr.msk.f32.vlgmr.msra.gmra.mrb[68].mxu1 %vm1894_vm4, %v5487_v50 }
 0x704   : > { %15553 = vmatpush3.xpose.msk.msra.mxu1 %vm1894_vm4, %v5645_v29  ;;  %15554 = vmatprep.mubr.msk.f32.mxu1 %vm21778_vm13, %v21777_v15 }
 0x705   : > { %15562 = vmatprep.subr.mxu1 %v21777_v15 }
 0x707   : > { %v3129_v58 = vpop.xlane.xlu0 %3128 }
 0x708   : > { %v3175_v2 = vsub.f32 %v19145_v51, %v3129_v58 }
 0x70a   : > { %v3191_v44 = vmul.f32 1.442695, %v3175_v2 }
 0x70b   : > { %v5643_v45 = vpop.permute.xlu0 %5642 }
 0x70c   : > { %16551 = vpow2.f32 %v3191_v44  ;;  %15555 = vmatmul.mubr.msk.f32.vlgmr.msra.gmra.mrb[70].mxu1 %vm1894_vm4, %v5643_v45 }
 0x70d   : > { %15564 = vmatprep.mubr.msk.f32.mxu1 %vm21778_vm13, %v21777_v15 }
 0x713   : > { %v3135_v52 = vpop.xlane.xlu1 %3134 }
 0x714   : > { %v3177_v63 = vsub.f32 %v19166_v24, %v3135_v52 }
 0x716   : > { %v19349_v31 = vpop.eup %16551  ;;  %v3195_v40 = vmul.f32 1.442695, %v3177_v63 }
 0x717   : > { %v3141_v4 = vpop.xlane.xlu1 %3140  ;;  %v3223_v62 = vsel %vm1894_vm4, %v19349_v31, 0.0 }
 0x718   : > { %16553 = vpow2.f32 %v3195_v40  ;;  %v3179_v51 = vsub.f32 %v19182_v42, %v3141_v4  ;;  %3224 = vadd.xlane.f32.xlu1 %v3223_v62 }
 0x71a   : > { %v3199_v14 = vmul.f32 1.442695, %v3179_v51 }
 0x71b   : > { %v3147_v7 = vpop.xlane.xlu1 %3146 }
 0x71c   : > { %16555 = vpow2.f32 %v3199_v14  ;;  %v3181_v9 = vsub.f32 %v19196_v11, %v3147_v7 }
 0x71e   : > { %v3203_v25 = vmul.f32 1.442695, %v3181_v9 }
 0x71f   : > { %v3153_v10 = vpop.xlane.xlu1 %3152 }
 0x720   : > { %16557 = vpow2.f32 %v3203_v25  ;;  %v3183_v24 = vsub.f32 %v19211_v18, %v3153_v10  ;;  %v21788_v10 = vld [vmem:[#allocation65_spill] sm:$0xff] }
 0x722   : > { %v19356_v1 = vpop.eup %16553  ;;  %v3207_v21 = vmul.f32 1.442695, %v3183_v24  ;;  %v21789_v24 = vld [vmem:[#allocation52_spill] sm:$0xff] }
 0x723   : > { %v3165_v54 = vpop.xlane.xlu1 %3164  ;;  %v3229_v53 = vsel %vm1894_vm4, %v19356_v1, 0.0 }
 0x724   : > { %16559 = vpow2.f32 %v3207_v21  ;;  %v3187_v42 = vsub.f32 %v19229_v0, %v3165_v54  ;;  %3230 = vadd.xlane.f32.xlu1 %v3229_v53  ;;  %v21791_v54 = vld [vmem:[#allocation68_spill] sm:$0xff] }
 0x726   : > { %v19361_v61 = vpop.eup %16555  ;;  %v3215_v39 = vmul.f32 1.442695, %v3187_v42 }
 0x727   : > { %v3235_v11 = vsel %vm1894_vm4, %v19361_v61, 0.0  ;;  %v3171_v58 = vpop.xlane.xlu1 %3170 }
 0x728   : > { %16561 = vpow2.f32 %v3215_v39  ;;  %3236 = vadd.xlane.f32.xlu1 %v3235_v11  ;;  %v3189_v2 = vsub.f32 %v19241_v16, %v3171_v58  ;;  %v21793_v39 = vld [vmem:[#allocation70_spill] sm:$0xff] }
 0x72a   : > { %v19365_v18 = vpop.eup %16557  ;;  %v3219_v52 = vmul.f32 1.442695, %v3189_v2  ;;  %v21797_v2 = vld [vmem:[#allocation59_spill] sm:$0xff] }
 0x72b   : > { %v3241_v13 = vsel %vm1894_vm4, %v19365_v18, 0.0 }
 0x72c   : > { %3242 = vadd.xlane.f32.xlu1 %v3241_v13  ;;  %v21794_v13 = vld [vmem:[#allocation56_spill] sm:$0xff] }
 0x72e   : > { %v19369_v50 = vpop.eup %16559 }
 0x72f   : > { %v3247_v0 = vsel %vm1894_vm4, %v19369_v50, 0.0 }
 0x730   : > { %3248 = vadd.xlane.f32.xlu1 %v3247_v0 }
 0x732   : > { %v19373_v49 = vpop.eup %16561 }
 0x733   : > { %v3259_v29 = vsel %vm1894_vm4, %v19373_v49, 0.0 }
 0x734   : > { %3260 = vadd.xlane.f32.xlu0 %v3259_v29  ;;  %v21796_v29 = vld [vmem:[#allocation88_spill] sm:$0xff] }
 0x73c   : > { %v3159_v44 = vpop.xlane.xlu0 %3158 }
 0x73d   : > { %v3185_v45 = vsub.f32 %v19273_v43, %v3159_v44  ;;  %v21798_v44 = vld [vmem:[#allocation50_spill] sm:$0xff] }
 0x73f   : > { %v3211_v63 = vmul.f32 1.442695, %v3185_v45  ;;  %v21799_v45 = vld [vmem:[#allocation54_spill] sm:$0xff] }
 0x741   : > { %16563 = vpow2.f32 %v3211_v63  ;;  %v21800_v63 = vld [vmem:[#allocation57_spill] sm:$0xff] }
 0x742   : > { %16565 = vpow2.f32 %v3219_v52 }
 0x74a   : > { %4474 = vrot.lane.b32.xlu0 %v18677_v6, %s17495_s27 }
 0x74b   : > { %v19381_v40 = vpop.eup %16563 }
 0x74c   : > { %v3253_v4 = vsel %vm1894_vm4, %v19381_v40, 0.0  ;;  %v19385_v62 = vpop.eup %16565 }
 0x74d   : > { %3254 = vadd.xlane.f32.xlu1 %v3253_v4  ;;  %v3265_v16 = vsel %vm1894_vm4, %v19385_v62, 0.0 }
 0x74e   : > { %4628 = vrot.lane.b32.xlu0 %v18720_v46, %s17495_s27 }
 0x751   : > { %3266 = vadd.xlane.f32.xlu1 %v3265_v16 }
 0x752   : > { %4784 = vrot.lane.b32.xlu0 %v18752_v48, %s17495_s27 }
 0x756   : > { %4940 = vrot.lane.b32.xlu0 %v18801_v57, %s17495_s27 }
 0x75a   : > { %5096 = vrot.lane.b32.xlu0 %v18759_v23, %s17495_s27 }
 0x75e   : > { %5252 = vrot.lane.b32.xlu0 %v18783_v35, %s17495_s27 }
 0x75f   : > { %v19399_v43 = vpop.f32.mrb[40].mxu1 }
 0x760   : > { %21785 = vst [vmem:[#allocation113_spill] sm:$0xff] %v19399_v43  ;;  %v15406_v51 = vpop.f32.mrb[41].mxu1 }
 0x762   : > { %5408 = vrot.lane.b32.xlu0 %v18806_v30, %s17495_s27  ;;  %4472 = vrot.lane.b32.xlu1 %v18683_v28, %s17495_s27 }
 0x766   : > { %5564 = vrot.lane.b32.xlu0 %v18834_v56, %s17495_s27  ;;  %4630 = vrot.lane.b32.xlu1 %v18703_v22, %s17495_s27 }
 0x769   : > { %v19409_v14 = vpop.f32.mrb[42].mxu1 }
 0x76a   : > { %21786 = vst [vmem:[#allocation114_spill] sm:$0xff] %v19409_v14  ;;  %6144 = vrot.lane.b32.xlu0 %v18864_v32, %s17495_s27  ;;  %4786 = vrot.lane.b32.xlu1 %v18740_v5, %s17495_s27  ;;  %v15416_v7 = vpop.f32.mrb[43].mxu1 }
 0x76b   : > { %v21801_v7 = vld [vmem:[#allocation60_spill] sm:$0xff] }
 0x76e   : > { %6760 = vrot.lane.b32.xlu0 %v18933_v3, %s17495_s27  ;;  %4942 = vrot.lane.b32.xlu1 %v18781_v17, %s17495_s27 }
 0x772   : > { %7068 = vrot.lane.b32.xlu0 %v18945_v19, %s17495_s27  ;;  %v19421_v9 = vpop.f32.mrb[44].mxu1  ;;  %5098 = vrot.lane.b32.xlu1 %v18756_v27, %s17495_s27 }
 0x773   : > { %21787 = vst [vmem:[#allocation115_spill] sm:$0xff] %v19421_v9  ;;  %v15426_v25 = vpop.f32.mrb[45].mxu1  ;;  %v21806_v9 = vld [vmem:[#allocation82_spill] sm:$0xff] }
 0x776   : > { %7532 = vrot.lane.b32.xlu0 %v18683_v28, %s17497_s30  ;;  %5254 = vrot.lane.b32.xlu1 %v21788_v10, %s17495_s27 }
 0x77a   : > { %7610 = vrot.lane.b32.xlu0 %v21789_v24, %s17497_s30  ;;  %v19431_v21 = vpop.f32.mrb[46].mxu1  ;;  %5410 = vrot.lane.b32.xlu1 %v21791_v54, %s17495_s27 }
 0x77b   : > { %21790 = vst [vmem:[#allocation116_spill] sm:$0xff] %v19431_v21  ;;  %v15436_v53 = vpop.f32.mrb[47].mxu1 }
 0x77c   : > { %v21803_v53 = vld [vmem:[#allocation78_spill] sm:$0xff] }
 0x77e   : > { %7688 = vrot.lane.b32.xlu0 %v18720_v46, %s17497_s30  ;;  %v19437_v42 = vpop.f32.mrb[48].mxu1  ;;  %5566 = vrot.lane.b32.xlu1 %v21793_v39, %s17495_s27 }
 0x77f   : > { %21792 = vst [vmem:[#allocation68_spill] sm:$0xff] %v19437_v42  ;;  %v15446_v11 = vpop.f32.mrb[49].mxu1 }
 0x782   : > { %7766 = vrot.lane.b32.xlu0 %v21794_v13, %s17497_s30  ;;  %v19443_v0 = vpop.f32.mrb[50].mxu1  ;;  %5990 = vrot.lane.b32.xlu1 %v21796_v29, %s17495_s27 }
 0x783   : > { %21795 = vst [vmem:[#allocation70_spill] sm:$0xff] %v19443_v0  ;;  %v15456_v58 = vpop.f32.mrb[51].mxu1 }
 0x786   : > { %7844 = vrot.lane.b32.xlu0 %v18752_v48, %s17497_s30  ;;  %6298 = vrot.lane.b32.xlu1 %v18884_v33, %s17495_s27 }
 0x78a   : > { %7922 = vrot.lane.b32.xlu0 %v21797_v2, %s17497_s30  ;;  %6452 = vrot.lane.b32.xlu1 %v18903_v36, %s17495_s27 }
 0x78e   : > { %8000 = vrot.lane.b32.xlu0 %v18801_v57, %s17497_s30  ;;  %6606 = vrot.lane.b32.xlu1 %v18921_v20, %s17495_s27 }
 0x792   : > { %6914 = vrot.lane.b32.xlu1 %v18939_v38, %s17495_s27 }
 0x796   : > { %7534 = vrot.lane.b32.xlu1 %v18677_v6, %s17497_s30 }
 0x79a   : > { %7612 = vrot.lane.b32.xlu1 %v21798_v44, %s17497_s30 }
 0x79e   : > { %7690 = vrot.lane.b32.xlu1 %v18703_v22, %s17497_s30 }
 0x7a2   : > { %7768 = vrot.lane.b32.xlu1 %v21799_v45, %s17497_s30 }
 0x7a5   : > { %v3225_v52 = vpop.xlane.xlu1 %3224 }
 0x7a6   : > { %16567 = vrcp.f32 %v3225_v52  ;;  %7846 = vrot.lane.b32.xlu1 %v18740_v5, %s17497_s30 }
 0x7aa   : > { %7924 = vrot.lane.b32.xlu1 %v21800_v63, %s17497_s30 }
 0x7ae   : > { %8002 = vrot.lane.b32.xlu1 %v18781_v17, %s17497_s30 }
 0x7b0   : > { %v16568_v4 = vpop.eup %16567 }
 0x7b1   : > { %v3231_v16 = vpop.xlane.xlu1 %3230  ;;  %v3287_v51 = vmul.f32 %v16568_v4, %v19349_v31  ;;  %v21804_v31 = vld [vmem:[#allocation71_spill] sm:$0xff] }
 0x7b2   : > { %16569 = vrcp.f32 %v3231_v16  ;;  %8080 = vrot.lane.b32.xlu1 %v21801_v7, %s17497_s30 }
 0x7b3   : > { %15400 = vmatmul.mubr.msk.f32.vlgmr.msra.gmra.mrb[40].mxu0 %vm1894_vm4, %v3287_v51  ;;  %v19479_v25 = vpop.f32.mrb[52].mxu1 }
 0x7b4   : > { %21802 = vst [vmem:[#allocation117_spill] sm:$0xff] %v19479_v25  ;;  %15408 = vmatpush3.msra.mxu0 %v21803_v53  ;;  %v15466_v11 = vpop.f32.mrb[53].mxu1  ;;  %15409 = vmatprep.mubr.msk.f32.mxu0 %vm21778_vm13, %v21777_v15 }
 0x7b5   : > { %v3237_v58 = vpop.xlane.xlu1 %3236  ;;  %15417 = vmatprep.subr.mxu0 %v21777_v15 }
 0x7b6   : > { %16571 = vrcp.f32 %v3237_v58  ;;  %8078 = vrot.lane.b32.xlu1 %v21804_v31, %s17497_s30 }
 0x7b7   : > { %v19487_v52 = vpop.f32.mrb[54].mxu1 }
 0x7b8   : > { %21805 = vst [vmem:[#allocation118_spill] sm:$0xff] %v19487_v52  ;;  %v15476_v4 = vpop.f32.mrb[55].mxu1 }
 0x7b9   : > { %v3243_v16 = vpop.xlane.xlu1 %3242 }
 0x7ba   : > { %16573 = vrcp.f32 %v3243_v16 }
 0x7bc   : > { %v16570_v51 = vpop.eup %16569 }
 0x7bd   : > { %v3249_v25 = vpop.xlane.xlu1 %3248  ;;  %v3289_v0 = vmul.f32 %v16570_v51, %v19356_v1 }
 0x7be   : > { %v4624_v11 = vpop.f32.mrb[56].mxu1  ;;  %16575 = vrcp.f32 %v3249_v25  ;;  %v21807_v25 = vld [vmem:[#allocation86_spill] sm:$0xff] }
 0x7bf   : > { %v15486_v42 = vpop.f32.mrb[57].mxu1  ;;  %15410 = vmatmul.mubr.msk.f32.vlgmr.msra.gmra.mrb[42].mxu0 %vm1894_vm4, %v3289_v0 }
 0x7c0   : > { %v16572_v21 = vpop.eup %16571  ;;  %15418 = vmatpush3.msra.mxu0 %v21806_v9  ;;  %15419 = vmatprep.mubr.msk.f32.mxu0 %vm21778_vm13, %v21777_v15 }
 0x7c1   : > { %15427 = vmatprep.subr.mxu0 %v21777_v15  ;;  %v3291_v58 = vmul.f32 %v16572_v21, %v19361_v61  ;;  %v21808_v21 = vld [vmem:[#allocation90_spill] sm:$0xff]  ;;  %v3261_v31 = vpop.xlane.xlu0 %3260 }
 0x7c2   : > { %v19496_v4 = vpop.f32.mrb[58].mxu1 }
 0x7c3   : > { %v15496_v16 = vpop.f32.mrb[59].mxu1  ;;  %15420 = vmatmul.mubr.msk.f32.vlgmr.msra.gmra.mrb[44].mxu0 %vm1894_vm4, %v3291_v58 }
 0x7c4   : > { %v16574_v1 = vpop.eup %16573  ;;  %15428 = vmatpush3.msra.mxu0 %v21807_v25  ;;  %15429 = vmatprep.mubr.msk.f32.mxu0 %vm21778_vm13, %v21777_v15 }
 0x7c5   : > { %15437 = vmatprep.subr.mxu0 %v21777_v15  ;;  %v3293_v42 = vmul.f32 %v16574_v1, %v19365_v18  ;;  %v21809_v18 = vld [vmem:[#allocation92_spill] sm:$0xff]  ;;  %v4475_v46 = vpop.permute.xlu0 %4474 }
 0x7c6   : > { %v19504_v0 = vpop.f32.mrb[60].mxu1 }
 0x7c7   : > { %v15506_v51 = vpop.f32.mrb[61].mxu1  ;;  %15430 = vmatmul.mubr.msk.f32.vlgmr.msra.gmra.mrb[46].mxu0 %vm1894_vm4, %v3293_v42 }
 0x7c8   : > { %v16576_v61 = vpop.eup %16575  ;;  %15438 = vmatpush3.msra.mxu0 %v21808_v21  ;;  %15439 = vmatprep.mubr.msk.f32.mxu0 %vm21778_vm13, %v21777_v15 }
 0x7c9   : > { %15447 = vmatprep.subr.mxu0 %v21777_v15  ;;  %v3295_v58 = vmul.f32 %v16576_v61, %v19369_v50  ;;  %v19523_v50 = vsel %vm18958_vm7, %v4624_v11, -1e+09 }
 0x7ca   : > { %v5092_v16 = vpop.f32.mrb[62].mxu1 }
 0x7cb   : > { %v15516_v52 = vpop.f32.mrb[63].mxu1  ;;  %15440 = vmatmul.mubr.msk.f32.vlgmr.msra.gmra.mrb[48].mxu0 %vm1894_vm4, %v3295_v58  ;;  %v5739_v58 = vsel %vm1894_vm4, %v19523_v50, -inf  ;;  %v19531_v2 = vsel %vm19012_vm14, %v5092_v16, -1e+09 }
 0x7cc   : > { %15448 = vmatpush3.msra.mxu0 %v21809_v18  ;;  %15449 = vmatprep.mubr.msk.f32.mxu0 %vm21778_vm13, %v21777_v15 }
 0x7cd   : > { %15457 = vmatprep.subr.mxu0 %v21777_v15 }
 0x7ce   : > { %v19517_v1 = vpop.f32.mrb[64].mxu1 }
 0x7cf   : > { %v15526_v42 = vpop.f32.mrb[65].mxu1 }
 0x7d2   : > { %v19519_v51 = vpop.f32.mrb[66].mxu1 }
 0x7d3   : > { %v15536_v14 = vpop.f32.mrb[67].mxu1 }
 0x7d4   : > { %v5757_v14 = vsel %vm1894_vm4, %v19531_v2, -inf }
 0x7d6   : > { %v19525_v52 = vpop.f32.mrb[68].mxu1 }
 0x7d7   : > { %v15546_v61 = vpop.f32.mrb[69].mxu1 }
 0x7da   : > { %5740 = vmax.xlane.f32.xlu1 %v5739_v58  ;;  %v3255_v42 = vpop.xlane.xlu1 %3254  ;;  %v21812_v58 = vld [vmem:[#allocation94_spill] sm:$0xff] }
 0x7db   : > { %16577 = vrcp.f32 %v3255_v42 }
 0x7dc   : > { %16579 = vrcp.f32 %v3261_v31 }
 0x7de   : > { %5758 = vmax.xlane.f32.xlu1 %v5757_v14  ;;  %v3267_v11 = vpop.xlane.xlu1 %3266 }
 0x7df   : > { %v19535_v7 = vpop.f32.mrb[70].mxu1  ;;  %16581 = vrcp.f32 %v3267_v11  ;;  %v21813_v11 = vld [vmem:[#allocation96_spill] sm:$0xff] }
 0x7e0   : > { %v15556_v61 = vpop.f32.mrb[71].mxu1 }
 0x7e2   : > { %v4473_v48 = vpop.permute.xlu1 %4472 }
 0x7e5   : > { %v16578_v17 = vpop.eup %16577 }
 0x7e6   : > { %v4631_v13 = vpop.permute.xlu1 %4630  ;;  %v3297_v63 = vmul.f32 %v16578_v17, %v19381_v40  ;;  %v16580_v16 = vpop.eup %16579 }
 0x7e7   : > { %v3299_v42 = vmul.f32 %v16580_v16, %v19373_v49  ;;  %v4629_v17 = vpop.permute.xlu0 %4628 }
 0x7e8   : > { %15450 = vmatmul.mubr.msk.f32.vlgmr.msra.gmra.mrb[50].mxu0 %vm1894_vm4, %v3297_v63 }
 0x7e9   : > { %15458 = vmatpush3.msra.mxu0 %v21812_v58  ;;  %15459 = vmatprep.mubr.msk.f32.mxu0 %vm21778_vm13, %v21777_v15  ;;  %v16582_v14 = vpop.eup %16581 }
 0x7ea   : > { %v4787_v31 = vpop.permute.xlu1 %4786  ;;  %15467 = vmatprep.subr.mxu0 %v21777_v15  ;;  %v3301_v63 = vmul.f32 %v16582_v14, %v19385_v62 }
 0x7eb   : > { %v4785_v61 = vpop.permute.xlu0 %4784 }
 0x7ec   : > { %15460 = vmatmul.mubr.msk.f32.vlgmr.msra.gmra.mrb[52].mxu0 %vm1894_vm4, %v3299_v42 }
 0x7ed   : > { %15468 = vmatpush3.msra.mxu0 %v21813_v11  ;;  %15469 = vmatprep.mubr.msk.f32.mxu0 %vm21778_vm13, %v21777_v15 }
 0x7ee   : > { %v4943_v40 = vpop.permute.xlu1 %4942  ;;  %15477 = vmatprep.subr.mxu0 %v21777_v15 }
 0x7ef   : > { %8158 = vrot.lane.b32.xlu1 %v18756_v27, %s17497_s30  ;;  %v4941_v62 = vpop.permute.xlu0 %4940 }
 0x7f0   : > { %15470 = vmatmul.mubr.msk.f32.vlgmr.msra.gmra.mrb[54].mxu0 %vm1894_vm4, %v3301_v63 }
 0x7f1   : > { %15479 = vmatprep.mubr.msk.f32.mxu0 %vm21778_vm13, %v21777_v15 }
 0x7f2   : > { %v5099_v49 = vpop.permute.xlu1 %5098 }
 0x7f4   : > { %15478 = vmatpush3.xpose.msk.msra.mxu0 %vm1894_vm4, %v4475_v46 }
 0x7f5   : > { %15487 = vmatprep.subr.mxu0 %v21777_v15 }
 0x7f6   : > { %v5255_v16 = vpop.permute.xlu1 %5254 }
 0x7f7   : > { %15480 = vmatmul.mubr.msk.f32.vlgmr.msra.gmra.mrb[56].mxu0 %vm1894_vm4, %v4473_v48  ;;  %v5097_v48 = vpop.permute.xlu0 %5096 }
 0x7f8   : > { %15488 = vmatpush3.xpose.msk.msra.mxu0 %vm1894_vm4, %v4631_v13  ;;  %15489 = vmatprep.mubr.msk.f32.mxu0 %vm21778_vm13, %v21777_v15 }
 0x7f9   : > { %15497 = vmatprep.subr.mxu0 %v21777_v15 }
 0x7fa   : > { %v5411_v42 = vpop.permute.xlu1 %5410 }
 0x7fb   : > { %15490 = vmatmul.mubr.msk.f32.vlgmr.msra.gmra.mrb[58].mxu0 %vm1894_vm4, %v4629_v17 }
 0x7fc   : > { %15498 = vmatpush3.xpose.msk.msra.mxu0 %vm1894_vm4, %v4787_v31  ;;  %15499 = vmatprep.mubr.msk.f32.mxu0 %vm21778_vm13, %v21777_v15  ;;  %v5253_v31 = vpop.permute.xlu0 %5252 }
 0x7fd   : > { %15507 = vmatprep.subr.mxu0 %v21777_v15 }
 0x7fe   : > { %v5567_v46 = vpop.permute.xlu1 %5566 }
 0x7ff   : > { %15500 = vmatmul.mubr.msk.f32.vlgmr.msra.gmra.mrb[60].mxu0 %vm1894_vm4, %v4785_v61 }
 0x800   : > { %15508 = vmatpush3.xpose.msk.msra.mxu0 %vm1894_vm4, %v4943_v40  ;;  %15509 = vmatprep.mubr.msk.f32.mxu0 %vm21778_vm13, %v21777_v15  ;;  %v5409_v14 = vpop.permute.xlu0 %5408  ;;  %v19591_v40 = vsel %vm19036_vm5, %v19519_v51, -1e+09 }
 0x801   : > { %15517 = vmatprep.subr.mxu0 %v21777_v15  ;;  %v5769_v63 = vsel %vm1894_vm4, %v19591_v40, -inf }
 0x802   : > { %v5991_v13 = vpop.permute.xlu1 %5990 }
 0x803   : > { %15510 = vmatmul.mubr.msk.f32.vlgmr.msra.gmra.mrb[62].mxu0 %vm1894_vm4, %v4941_v62  ;;  %15563 = vmatpush3.msra.mxu1 %v5991_v13 }
 0x804   : > { %15518 = vmatpush3.xpose.msk.msra.mxu0 %vm1894_vm4, %v5099_v49  ;;  %15519 = vmatprep.mubr.msk.f32.mxu0 %vm21778_vm13, %v21777_v15  ;;  %v5565_v49 = vpop.permute.xlu0 %5564 }
 0x805   : > { %15527 = vmatprep.subr.mxu0 %v21777_v15  ;;  %15572 = vmatprep.subr.mxu1 %v21777_v15 }
 0x806   : > { %v19665_v44 = vpop.permute.xlu1 %6298 }
 0x807   : > { %15520 = vmatmul.mubr.msk.f32.vlgmr.msra.gmra.mrb[64].mxu0 %vm1894_vm4, %v5097_v48 }
 0x808   : > { %15528 = vmatpush3.xpose.msk.msra.mxu0 %vm1894_vm4, %v5255_v16  ;;  %15529 = vmatprep.mubr.msk.f32.mxu0 %vm21778_vm13, %v21777_v15 }
 0x809   : > { %15537 = vmatprep.subr.mxu0 %v21777_v15 }
 0x80b   : > { %15530 = vmatmul.mubr.msk.f32.vlgmr.msra.gmra.mrb[66].mxu0 %vm1894_vm4, %v5253_v31 }
 0x80c   : > { %15538 = vmatpush3.xpose.msk.msra.mxu0 %vm1894_vm4, %v5411_v42  ;;  %15539 = vmatprep.mubr.msk.f32.mxu0 %vm21778_vm13, %v21777_v15 }
 0x80d   : > { %15547 = vmatprep.subr.mxu0 %v21777_v15 }
 0x80f   : > { %15540 = vmatmul.mubr.msk.f32.vlgmr.msra.gmra.mrb[68].mxu0 %vm1894_vm4, %v5409_v14 }
 0x810   : > { %15548 = vmatpush3.xpose.msk.msra.mxu0 %vm1894_vm4, %v5567_v46  ;;  %15549 = vmatprep.mubr.msk.f32.mxu0 %vm21778_vm13, %v21777_v15 }
 0x811   : > { %15557 = vmatprep.subr.mxu0 %v21777_v15 }
 0x813   : > { %15550 = vmatmul.mubr.msk.f32.vlgmr.msra.gmra.mrb[70].mxu0 %vm1894_vm4, %v5565_v49  ;;  %5770 = vmax.xlane.f32.xlu1 %v5769_v63 }
 0x814   : > { %15559 = vmatprep.mubr.msk.f32.mxu0 %vm21778_vm13, %v21777_v15 }
 0x886   : > { %v19603_v51 = vpop.f32.mrb[40].mxu0 }
 0x887   : > { %21815 = vst [vmem:[#allocation119_spill] sm:$0xff] %v19603_v51  ;;  %v15401_v61 = vpop.f32.mrb[41].mxu0 }
 0x892   : > { %v19605_v16 = vpop.f32.mrb[42].mxu0 }
 0x893   : > { %21816 = vst [vmem:[#allocation120_spill] sm:$0xff] %v19605_v16  ;;  %v15411_v62 = vpop.f32.mrb[43].mxu0 }
 0x896   : > { %v19607_v42 = vpop.f32.mrb[44].mxu0 }
 0x897   : > { %21817 = vst [vmem:[#allocation121_spill] sm:$0xff] %v19607_v42  ;;  %v15421_v46 = vpop.f32.mrb[45].mxu0 }
 0x89a   : > { %v19609_v48 = vpop.f32.mrb[46].mxu0 }
 0x89b   : > { %21818 = vst [vmem:[#allocation122_spill] sm:$0xff] %v19609_v48  ;;  %v15431_v13 = vpop.f32.mrb[47].mxu0 }
 0x89e   : > { %v19611_v31 = vpop.f32.mrb[48].mxu0 }
 0x89f   : > { %21819 = vst [vmem:[#allocation123_spill] sm:$0xff] %v19611_v31  ;;  %v15441_v14 = vpop.f32.mrb[49].mxu0 }
 0x8bb   : > { %v19613_v49 = vpop.f32.mrb[50].mxu0 }
 0x8bc   : > { %21820 = vst [vmem:[#allocation124_spill] sm:$0xff] %v19613_v49  ;;  %v15451_v63 = vpop.f32.mrb[51].mxu0  ;;  %v19628_v49 = vsel %vm18973_vm9, %v19496_v4, -1e+09 }
 0x8bf   : > { %v19615_v27 = vpop.f32.mrb[52].mxu0 }
 0x8c0   : > { %21821 = vst [vmem:[#allocation125_spill] sm:$0xff] %v19615_v27  ;;  %v15461_v5 = vpop.f32.mrb[53].mxu0  ;;  %v19641_v27 = vsel %vm18991_vm11, %v19504_v0, -1e+09  ;;  %v19655_v0 = vsel %vm19027_vm1, %v19517_v1, -1e+09 }
 0x8c1   : > { %v5751_v31 = vsel %vm1894_vm4, %v19641_v27, -inf  ;;  %v21827_v1 = vld [vmem:[#allocation72_spill] sm:$0xff] }
 0x8c3   : > { %v19617_v51 = vpop.f32.mrb[54].mxu0 }
 0x8c4   : > { %21822 = vst [vmem:[#allocation126_spill] sm:$0xff] %v19617_v51  ;;  %v15471_v61 = vpop.f32.mrb[55].mxu0 }
 0x8ca   : > { %v4546_v16 = vpop.f32.mrb[56].mxu0 }
 0x8cb   : > { %v19621_v62 = vsel %vm19138_vm12, %v4546_v16, -1e+09  ;;  %v15481_v46 = vpop.f32.mrb[57].mxu0  ;;  %v5745_v16 = vsel %vm1894_vm4, %v19628_v49, -inf }
 0x8cc   : > { %v5736_v13 = vsel %vm1894_vm4, %v19621_v62, -inf }
 0x8cd   : > { %5737 = vmax.xlane.f32.xlu0 %v5736_v13  ;;  %v19646_v13 = vsel %vm19056_vm8, %v19535_v7, -1e+09  ;;  %vm21832_vm8 = vnez %v21775_v34 }
 0x8ce   : > { %v4702_v63 = vpop.f32.mrb[58].mxu0  ;;  %v5781_v48 = vsel %vm1894_vm4, %v19646_v13, -inf }
 0x8cf   : > { %v19632_v5 = vsel %vm19157_vm10, %v4702_v63, -1e+09  ;;  %v15491_v61 = vpop.f32.mrb[59].mxu0 }
 0x8d0   : > { %v5742_v46 = vsel %vm1894_vm4, %v19632_v5, -inf }
 0x8d1   : > { %5746 = vmax.xlane.f32.xlu0 %v5745_v16  ;;  %5743 = vmax.xlane.f32.xlu1 %v5742_v46  ;;  %v5763_v16 = vsel %vm1894_vm4, %v19655_v0, -inf }
 0x8d2   : > { %v4858_v63 = vpop.f32.mrb[60].mxu0 }
 0x8d3   : > { %v15501_v61 = vpop.f32.mrb[61].mxu0 }
 0x8d5   : > { %5752 = vmax.xlane.f32.xlu0 %v5751_v31  ;;  %5782 = vmax.xlane.f32.xlu1 %v5781_v48 }
 0x8d6   : > { %v5014_v24 = vpop.f32.mrb[62].mxu0 }
 0x8d7   : > { %v15511_v7 = vpop.f32.mrb[63].mxu0  ;;  %v19702_v6 = vsel %vm19186_vm2, %v5014_v24, -1e+09 }
 0x8d8   : > { %v19673_v7 = vpop.permute.xlu1 %6452  ;;  %v5754_v3 = vsel %vm1894_vm4, %v19702_v6, -inf }
 0x8d9   : > { %5764 = vmax.xlane.f32.xlu0 %v5763_v16 }
 0x8da   : > { %v19659_v46 = vpop.f32.mrb[64].mxu0 }
 0x8db   : > { %v15521_v61 = vpop.f32.mrb[65].mxu0 }
 0x8de   : > { %v19661_v45 = vpop.f32.mrb[66].mxu0 }
 0x8df   : > { %v15531_v28 = vpop.f32.mrb[67].mxu0 }
 0x8e0   : > { %v19679_v28 = vpop.permute.xlu1 %6606 }
 0x8e2   : > { %v19663_v22 = vpop.f32.mrb[68].mxu0 }
 0x8e3   : > { %v15541_v19 = vpop.f32.mrb[69].mxu0 }
 0x8e4   : > { %v19681_v19 = vpop.permute.xlu1 %6914 }
 0x8e6   : > { %8236 = vrot.lane.b32.xlu1 %v21827_v1, %s17497_s30  ;;  %v19669_v48 = vpop.f32.mrb[70].mxu0 }
 0x8e7   : > { %v15551_v31 = vpop.f32.mrb[71].mxu0 }
 0x8e8   : > { %v19683_v16 = vpop.permute.xlu1 %7534 }
 0x8ea   : > { %8234 = vrot.lane.b32.xlu1 %v18850_v60, %s17497_s30  ;;  %v19690_v60 = vsel %vm19045_vm6, %v19525_v52, -1e+09  ;;  %vm21837_vm6 = vnez %v21780_v37 }
 0x8ec   : > { %v19685_v61 = vpop.permute.xlu1 %7612 }
 0x8ee   : > { %8314 = vrot.lane.b32.xlu1 %v21788_v10, %s17497_s30  ;;  %v5775_v10 = vsel %vm1894_vm4, %v19690_v60, -inf }
 0x8ef   : > { %8156 = vrot.lane.b32.xlu0 %v18759_v23, %s17497_s30  ;;  %v19698_v23 = vsel %vm19169_vm15, %v4858_v63, -1e+09  ;;  %v19714_v63 = vpop.permute.xlu0 %6144 }
 0x8f0   : > { %v19692_v1 = vpop.permute.xlu1 %7690  ;;  %v5748_v52 = vsel %vm1894_vm4, %v19698_v23, -inf }
 0x8f3   : > { %v19718_v24 = vpop.permute.xlu0 %6760 }
 0x8f4   : > { %v19704_v38 = vpop.permute.xlu1 %7768 }
 0x8f7   : > { %v19724_v42 = vpop.permute.xlu0 %7068 }
 0x8f8   : > { %v19710_v4 = vpop.permute.xlu1 %7846 }
 0x8fc   : > { %v19712_v31 = vpop.permute.xlu1 %7924 }
 0x900   : > { %v19716_v17 = vpop.permute.xlu1 %8002 }
 0x90e   : > { %5776 = vmax.xlane.f32.xlu0 %v5775_v10  ;;  %v19720_v10 = vpop.permute.xlu1 %8080 }
 0x912   : > { %5749 = vmax.xlane.f32.xlu0 %v5748_v52  ;;  %5755 = vmax.xlane.f32.xlu1 %v5754_v3  ;;  %v19728_v3 = vpop.permute.xlu1 %8078  ;;  %v19730_v52 = vpop.permute.xlu0 %7532 }
 0x916   : > { %v5741_v57 = vpop.xlane.xlu1 %5740  ;;  %v19733_v51 = vpop.permute.xlu0 %7610 }
 0x917   : > { %v5785_v41 = vsub.f32 %v19523_v50, %v5741_v57 }
 0x919   : > { %v5802_v12 = vmul.f32 1.442695, %v5785_v41 }
 0x91a   : > { %v19735_v14 = vpop.permute.xlu0 %7688  ;;  %v5759_v57 = vpop.xlane.xlu1 %5758 }
 0x91b   : > { %16583 = vpow2.f32 %v5802_v12  ;;  %v5791_v21 = vsub.f32 %v19531_v2, %v5759_v57 }
 0x91d   : > { %v5814_v53 = vmul.f32 1.442695, %v5791_v21 }
 0x91e   : > { %v19737_v47 = vpop.permute.xlu0 %7766  ;;  %v19751_v12 = vpop.permute.xlu1 %8158 }
 0x91f   : > { %21829 = vst [vmem:[#allocation127_spill] sm:$0xff] %v19751_v12 }
 0x922   : > { %v19741_v43 = vpop.permute.xlu0 %7844  ;;  %v5771_v36 = vpop.xlane.xlu1 %5770 }
 0x923   : > { %v5795_v11 = vsub.f32 %v19591_v40, %v5771_v36  ;;  %v21831_v40 = vld [vmem:[#allocation80_spill] sm:$0xff] }
 0x925   : > { %v5822_v12 = vmul.f32 1.442695, %v5795_v11 }
 0x926   : > { %v19745_v59 = vpop.permute.xlu0 %7922 }
 0x928   : > { %8312 = vrot.lane.b32.xlu0 %v18783_v35, %s17497_s30  ;;  %v19739_v35 = vpop.eup %16583 }
 0x92a   : > { %v19747_v32 = vpop.permute.xlu0 %8000 }
 0x92c   : > { %8392 = vrot.lane.b32.xlu0 %v18858_v55, %s17497_s30  ;;  %v5835_v55 = vsel %vm1894_vm4, %v19739_v35, 0.0 }
 0x94b   : > { %5836 = vadd.xlane.f32.xlu0 %v5835_v55 }
 0x95a   : > { %v19749_v50 = vpop.xlane.xlu0 %5737 }
 0x95e   : > { %v5747_v41 = vpop.xlane.xlu0 %5746  ;;  %v19787_v11 = vpop.xlane.xlu1 %5743 }
 0x95f   : > { %v5787_v29 = vsub.f32 %v19628_v49, %v5747_v41 }
 0x961   : > { %v5806_v58 = vmul.f32 1.442695, %v5787_v29 }
 0x962   : > { %v5753_v20 = vpop.xlane.xlu0 %5752  ;;  %v5783_v49 = vpop.xlane.xlu1 %5782 }
 0x963   : > { %v5789_v33 = vsub.f32 %v19641_v27, %v5753_v20  ;;  %16585 = vpow2.f32 %v5806_v58  ;;  %v19765_v27 = vsel %vm21830_vm3, %v19659_v46, -1e+09  ;;  %v5799_v46 = vsub.f32 %v19646_v13, %v5783_v49 }
 0x964   : > { %v5760_v36 = vsel %vm1894_vm4, %v19765_v27, -inf }
 0x965   : > { %v5810_v55 = vmul.f32 1.442695, %v5789_v33 }
 0x966   : > { %v5765_v18 = vpop.xlane.xlu0 %5764 }
 0x967   : > { %v5793_v25 = vsub.f32 %v19655_v0, %v5765_v18  ;;  %16587 = vpow2.f32 %v5810_v55 }
 0x968   : > { %16589 = vpow2.f32 %v5814_v53 }
 0x969   : > { %v5818_v9 = vmul.f32 1.442695, %v5793_v25 }
 0x96a   : > { %v19793_v0 = vpop.permute.xlu0 %8156 }
 0x96b   : > { %16591 = vpow2.f32 %v5818_v9 }
 0x96c   : > { %16593 = vpow2.f32 %v5822_v12  ;;  %v5830_v12 = vmul.f32 1.442695, %v5799_v46  ;;  %v21834_v46 = vld [vmem:[#allocation84_spill] sm:$0xff] }
 0x96d   : > { %v19758_v29 = vpop.eup %16585 }
 0x96e   : > { %v5841_v2 = vsel %vm1894_vm4, %v19758_v29, 0.0 }
 0x96f   : > { %5842 = vadd.xlane.f32.xlu1 %v5841_v2 }
 0x971   : > { %v19767_v33 = vpop.eup %16587 }
 0x972   : > { %v5847_v20 = vsel %vm1894_vm4, %v19767_v33, 0.0  ;;  %v19773_v9 = vpop.eup %16589 }
 0x973   : > { %5761 = vmax.xlane.f32.xlu1 %v5760_v36  ;;  %5848 = vadd.xlane.f32.xlu0 %v5847_v20  ;;  %v5853_v21 = vsel %vm1894_vm4, %v19773_v9, 0.0 }
 0x975   : > { %v19775_v53 = vpop.eup %16591 }
 0x976   : > { %v5859_v25 = vsel %vm1894_vm4, %v19775_v53, 0.0  ;;  %v19781_v18 = vpop.eup %16593 }
 0x977   : > { %5854 = vadd.xlane.f32.xlu1 %v5853_v21  ;;  %5860 = vadd.xlane.f32.xlu0 %v5859_v25  ;;  %v5865_v58 = vsel %vm1894_vm4, %v19781_v18, 0.0  ;;  %v21833_v21 = vld [vmem:[#allocation79_spill] sm:$0xff] }
 0x97b   : > { %5866 = vadd.xlane.f32.xlu1 %v5865_v58 }
 0x98c   : > { %8470 = vrot.lane.b32.xlu1 %v21791_v54, %s17497_s30 }
 0x990   : > { %8468 = vrot.lane.b32.xlu1 %v18806_v30, %s17497_s30 }
 0x994   : > { %8548 = vrot.lane.b32.xlu1 %v21831_v40, %s17497_s30 }
 0x99b   : > { %v5777_v57 = vpop.xlane.xlu0 %5776 }
 0x99c   : > { %v5797_v41 = vsub.f32 %v19690_v60, %v5777_v57  ;;  %v19808_v60 = vsel %vm21832_vm8, %v19663_v22, -1e+09  ;;  %v21835_v57 = vld [vmem:[#allocation87_spill] sm:$0xff] }
 0x99d   : > { %v5772_v13 = vsel %vm1894_vm4, %v19808_v60, -inf }
 0x99e   : > { %v5826_v55 = vmul.f32 1.442695, %v5797_v41 }
 0x99f   : > { %v5750_v58 = vpop.xlane.xlu0 %5749 }
 0x9a0   : > { %16595 = vpow2.f32 %v5826_v55  ;;  %v19829_v55 = vsel %vm19261_vm0, %v19661_v45, -1e+09  ;;  %v19839_v45 = vpop.permute.xlu1 %8236 }
 0x9a1   : > { %16597 = vpow2.f32 %v5830_v12  ;;  %v5784_v12 = vsub.f32 %v19621_v62, %v19749_v50 }
 0x9a3   : > { %v19816_v49 = vpop.permute.xlu0 %8312 }
 0x9a4   : > { %v19841_v62 = vpop.permute.xlu1 %8234 }
 0x9a7   : > { %v19822_v22 = vpop.permute.xlu0 %8392 }
 0x9aa   : > { %v19797_v2 = vpop.eup %16595 }
 0x9ab   : > { %v5871_v36 = vsel %vm1894_vm4, %v19797_v2, 0.0  ;;  %v19801_v20 = vpop.eup %16597 }
 0x9ac   : > { %5872 = vadd.xlane.f32.xlu0 %v5871_v36  ;;  %v5877_v25 = vsel %vm1894_vm4, %v19801_v20, 0.0 }
 0x9b0   : > { %5878 = vadd.xlane.f32.xlu0 %v5877_v25  ;;  %v5766_v25 = vsel %vm1894_vm4, %v19829_v55, -inf }
 0x9b8   : > { %5773 = vmax.xlane.f32.xlu1 %v5772_v13  ;;  %v5800_v13 = vmul.f32 1.442695, %v5784_v12 }
 0x9c6   : > { %8390 = vrot.lane.b32.xlu0 %v21833_v21, %s17497_s30 }
 0x9c9   : > { %8624 = vrot.lane.b32.xlu1 %v18834_v56, %s17497_s30 }
 0x9cd   : > { %8704 = vrot.lane.b32.xlu1 %v21834_v46, %s17497_s30 }
 0x9d1   : > { %8702 = vrot.lane.b32.xlu1 %v21835_v57, %s17497_s30 }
 0x9d8   : > { %v5837_v41 = vpop.xlane.xlu0 %5836 }
 0x9d9   : > { %16599 = vrcp.f32 %v5837_v41  ;;  %v19845_v41 = vpop.permute.xlu1 %8314 }
 0x9da   : > { %16601 = vpow2.f32 %v5800_v13 }
 0x9e3   : > { %v16600_v36 = vpop.eup %16599 }
 0x9e4   : > { %v5897_v46 = vmul.f32 %v16600_v36, %v19739_v35  ;;  %v19843_v50 = vpop.eup %16601 }
 0x9e5   : > { %5767 = vmax.xlane.f32.xlu0 %v5766_v25  ;;  %v5832_v35 = vsel %vm1894_vm4, %v19843_v50, 0.0 }
 0x9e6   : > { %15565 = vmatmul.mubr.msk.f32.vlgmr.msra.gmra.mrb[72].mxu1 %vm1894_vm4, %v5897_v46  ;;  %v5756_v46 = vpop.xlane.xlu1 %5755 }
 0x9e7   : > { %15573 = vmatpush3.msra.mxu1 %v19714_v63  ;;  %15574 = vmatprep.mubr.msk.f32.mxu1 %vm21778_vm13, %v21777_v15  ;;  %v21836_v63 = vld [vmem:[#allocation83_spill] sm:$0xff] }
 0x9e8   : > { %15582 = vmatprep.subr.mxu1 %v21777_v15 }
 0x9f5   : > { %5833 = vadd.xlane.f32.xlu1 %v5832_v35 }
 0x9fb   : > { %8546 = vrot.lane.b32.xlu0 %v21836_v63, %s17497_s30 }
 0x9fc   : > { %v5843_v12 = vpop.xlane.xlu1 %5842 }
 0x9fd   : > { %16603 = vrcp.f32 %v5843_v12  ;;  %v5786_v12 = vsub.f32 %v19632_v5, %v19787_v11 }
 0x9ff   : > { %8626 = vrot.lane.b32.xlu0 %v21793_v39, %s17497_s30 }
 0xa00   : > { %v5762_v36 = vpop.xlane.xlu1 %5761  ;;  %v5849_v25 = vpop.xlane.xlu0 %5848 }
 0xa01   : > { %16605 = vrcp.f32 %v5849_v25 }
 0xa04   : > { %v5855_v13 = vpop.xlane.xlu1 %5854  ;;  %v5861_v57 = vpop.xlane.xlu0 %5860 }
 0xa05   : > { %16607 = vrcp.f32 %v5855_v13 }
 0xa06   : > { %16609 = vrcp.f32 %v5861_v57 }
 0xa07   : > { %v16604_v56 = vpop.eup %16603 }
 0xa08   : > { %v5899_v40 = vmul.f32 %v16604_v56, %v19758_v29  ;;  %v5867_v35 = vpop.xlane.xlu1 %5866  ;;  %v5804_v56 = vmul.f32 1.442695, %v5786_v12  ;;  %v5788_v29 = vsub.f32 %v19698_v23, %v5750_v58 }
 0xa09   : > { %16611 = vrcp.f32 %v5867_v35 }
 0xa0a   : > { %15575 = vmatmul.mubr.msk.f32.vlgmr.msra.gmra.mrb[74].mxu1 %vm1894_vm4, %v5899_v40  ;;  %16613 = vpow2.f32 %v5804_v56  ;;  %v5790_v40 = vsub.f32 %v19702_v6, %v5756_v46  ;;  %v19884_v6 = vsel %vm21837_vm6, %v19669_v48, -1e+09 }
 0xa0b   : > { %v16606_v21 = vpop.eup %16605  ;;  %15583 = vmatpush3.msra.mxu1 %v19665_v44  ;;  %15584 = vmatprep.mubr.msk.f32.mxu1 %vm21778_vm13, %v21777_v15 }
 0xa0c   : > { %15592 = vmatprep.subr.mxu1 %v21777_v15  ;;  %v5901_v25 = vmul.f32 %v16606_v21, %v19767_v33  ;;  %v5808_v33 = vmul.f32 1.442695, %v5788_v29  ;;  %v5812_v21 = vmul.f32 1.442695, %v5790_v40  ;;  %v21845_v40 = vld [vmem:[#allocation81_spill] sm:$0xff] }
 0xa0e   : > { %15585 = vmatmul.mubr.msk.f32.vlgmr.msra.gmra.mrb[76].mxu1 %vm1894_vm4, %v5901_v25  ;;  %16615 = vpow2.f32 %v5808_v33 }
 0xa0f   : > { %15593 = vmatpush3.msra.mxu1 %v19673_v7  ;;  %15594 = vmatprep.mubr.msk.f32.mxu1 %vm21778_vm13, %v21777_v15  ;;  %v16608_v5 = vpop.eup %16607  ;;  %16617 = vpow2.f32 %v5812_v21  ;;  %v21846_v21 = vld [vmem:[#allocation85_spill] sm:$0xff] }
 0xa10   : > { %15602 = vmatprep.subr.mxu1 %v21777_v15  ;;  %v5903_v44 = vmul.f32 %v16608_v5, %v19773_v9  ;;  %v16610_v11 = vpop.eup %16609  ;;  %v5792_v9 = vsub.f32 %v19765_v27, %v5762_v36  ;;  %v5778_v27 = vsel %vm1894_vm4, %v19884_v6, -inf }
 0xa11   : > { %v5905_v23 = vmul.f32 %v16610_v11, %v19775_v53 }
 0xa12   : > { %15595 = vmatmul.mubr.msk.f32.vlgmr.msra.gmra.mrb[78].mxu1 %vm1894_vm4, %v5903_v44  ;;  %v5816_v53 = vmul.f32 1.442695, %v5792_v9  ;;  %v21844_v44 = vld [vmem:[#allocation78_spill] sm:$0xff]  ;;  %v21847_v9 = vld [vmem:[#allocation89_spill] sm:$0xff] }
 0xa13   : > { %15603 = vmatpush3.msra.mxu1 %v19679_v28  ;;  %15604 = vmatprep.mubr.msk.f32.mxu1 %vm21778_vm13, %v21777_v15  ;;  %v16612_v7 = vpop.eup %16611 }
 0xa14   : > { %15612 = vmatprep.subr.mxu1 %v21777_v15  ;;  %v5907_v28 = vmul.f32 %v16612_v7, %v19781_v18  ;;  %16619 = vpow2.f32 %v5816_v53  ;;  %v21850_v53 = vld [vmem:[#allocation88_spill] sm:$0xff] }
 0xa16   : > { %15605 = vmatmul.mubr.msk.f32.vlgmr.msra.gmra.mrb[80].mxu1 %vm1894_vm4, %v5905_v23 }
 0xa17   : > { %15613 = vmatpush3.msra.mxu1 %v19718_v24  ;;  %15614 = vmatprep.mubr.msk.f32.mxu1 %vm21778_vm13, %v21777_v15  ;;  %v19894_v24 = vpop.eup %16613 }
 0xa18   : > { %15622 = vmatprep.subr.mxu1 %v21777_v15  ;;  %v5838_v48 = vsel %vm1894_vm4, %v19894_v24, 0.0  ;;  %v19899_v18 = vpop.eup %16615 }
 0xa19   : > { %v5844_v58 = vsel %vm1894_vm4, %v19899_v18, 0.0  ;;  %v19903_v57 = vpop.eup %16617 }
 0xa1a   : > { %15615 = vmatmul.mubr.msk.f32.vlgmr.msra.gmra.mrb[82].mxu1 %vm1894_vm4, %v5907_v28  ;;  %v21849_v28 = vld [vmem:[#allocation94_spill] sm:$0xff] }
 0xa1b   : > { %15623 = vmatpush3.msra.mxu1 %v19681_v19  ;;  %15624 = vmatprep.mubr.msk.f32.mxu1 %vm21778_vm13, %v21777_v15  ;;  %v5850_v19 = vsel %vm1894_vm4, %v19903_v57, 0.0 }
 0xa1c   : > { %15632 = vmatprep.subr.mxu1 %v21777_v15 }
 0xa1e   : > { %5779 = vmax.xlane.f32.xlu0 %v5778_v27  ;;  %v19907_v46 = vpop.eup %16619  ;;  %v21851_v27 = vld [vmem:[#allocation77_spill] sm:$0xff] }
 0xa1f   : > { %v5856_v36 = vsel %vm1894_vm4, %v19907_v46, 0.0 }
 0xa22   : > { %5839 = vadd.xlane.f32.xlu0 %v5838_v48 }
 0xa26   : > { %5845 = vadd.xlane.f32.xlu0 %v5844_v58 }
 0xa2a   : > { %5851 = vadd.xlane.f32.xlu0 %v5850_v19 }
 0xa2e   : > { %5857 = vadd.xlane.f32.xlu0 %v5856_v36 }
 0xa39   : > { %v5873_v13 = vpop.xlane.xlu0 %5872 }
 0xa3a   : > { %16621 = vrcp.f32 %v5873_v13 }
 0xa3d   : > { %v5879_v35 = vpop.xlane.xlu0 %5878 }
 0xa3e   : > { %16623 = vrcp.f32 %v5879_v35 }
 0xa44   : > { %v16622_v12 = vpop.eup %16621 }
 0xa45   : > { %v5909_v25 = vmul.f32 %v16622_v12, %v19797_v2 }
 0xa47   : > { %15625 = vmatmul.mubr.msk.f32.vlgmr.msra.gmra.mrb[84].mxu1 %vm1894_vm4, %v5909_v25 }
 0xa48   : > { %v16624_v56 = vpop.eup %16623  ;;  %15633 = vmatpush3.msra.mxu1 %v19724_v42  ;;  %15634 = vmatprep.mubr.msk.f32.mxu1 %vm21778_vm13, %v21777_v15 }
 0xa49   : > { %v5911_v29 = vmul.f32 %v16624_v56, %v19801_v20  ;;  %15689 = vmatprep.subr.mxu1 %v21777_v15 }
 0xa4b   : > { %15635 = vmatmul.mubr.msk.f32.vlgmr.msra.gmra.mrb[86].mxu1 %vm1894_vm4, %v5911_v29 }
 0xa4c   : > { %15691 = vmatprep.mubr.msk.f32.mxu1 %vm21778_vm13, %v21777_v15 }
 0xa4f   : > { %15690 = vmatpush3.xpose.msk.msra.mxu1 %vm1894_vm4, %v19683_v16 }
 0xa50   : > { %15694 = vmatprep.subr.mxu1 %v21777_v15 }
 0xa52   : > { %15692 = vmatmul.mubr.msk.f32.vlgmr.msra.gmra.mrb[88].mxu1 %vm1894_vm4, %v19730_v52 }
 0xa53   : > { %15695 = vmatpush3.xpose.msk.msra.mxu1 %vm1894_vm4, %v19685_v61  ;;  %15696 = vmatprep.mubr.msk.f32.mxu1 %vm21778_vm13, %v21777_v15 }
 0xa54   : > { %15699 = vmatprep.subr.mxu1 %v21777_v15 }
 0xa56   : > { %15697 = vmatmul.mubr.msk.f32.vlgmr.msra.gmra.mrb[90].mxu1 %vm1894_vm4, %v19733_v51  ;;  %v8471_v51 = vpop.permute.xlu1 %8470 }
 0xa57   : > { %15700 = vmatpush3.xpose.msk.msra.mxu1 %vm1894_vm4, %v19692_v1  ;;  %15701 = vmatprep.mubr.msk.f32.mxu1 %vm21778_vm13, %v21777_v15 }
 0xa58   : > { %15704 = vmatprep.subr.mxu1 %v21777_v15 }
 0xa5a   : > { %15702 = vmatmul.mubr.msk.f32.vlgmr.msra.gmra.mrb[92].mxu1 %vm1894_vm4, %v19735_v14 }
 0xa5b   : > { %15705 = vmatpush3.xpose.msk.msra.mxu1 %vm1894_vm4, %v19704_v38  ;;  %15706 = vmatprep.mubr.msk.f32.mxu1 %vm21778_vm13, %v21777_v15  ;;  %v8469_v38 = vpop.permute.xlu1 %8468 }
 0xa5c   : > { %15709 = vmatprep.subr.mxu1 %v21777_v15 }
 0xa5e   : > { %15707 = vmatmul.mubr.msk.f32.vlgmr.msra.gmra.mrb[94].mxu1 %vm1894_vm4, %v19737_v47 }
 0xa5f   : > { %15710 = vmatpush3.xpose.msk.msra.mxu1 %vm1894_vm4, %v19710_v4  ;;  %15711 = vmatprep.mubr.msk.f32.mxu1 %vm21778_vm13, %v21777_v15  ;;  %v8549_v47 = vpop.permute.xlu1 %8548 }
 0xa60   : > { %15714 = vmatprep.subr.mxu1 %v21777_v15 }
 0xa62   : > { %15712 = vmatmul.mubr.msk.f32.vlgmr.msra.gmra.mrb[96].mxu1 %vm1894_vm4, %v19741_v43 }
 0xa63   : > { %15715 = vmatpush3.xpose.msk.msra.mxu1 %vm1894_vm4, %v19712_v31  ;;  %15716 = vmatprep.mubr.msk.f32.mxu1 %vm21778_vm13, %v21777_v15  ;;  %v5774_v43 = vpop.xlane.xlu1 %5773 }
 0xa64   : > { %15719 = vmatprep.subr.mxu1 %v21777_v15 }
 0xa66   : > { %15717 = vmatmul.mubr.msk.f32.vlgmr.msra.gmra.mrb[98].mxu1 %vm1894_vm4, %v19745_v59  ;;  %v8391_v59 = vpop.permute.xlu0 %8390 }
 0xa67   : > { %15720 = vmatpush3.xpose.msk.msra.mxu1 %vm1894_vm4, %v19716_v17  ;;  %15721 = vmatprep.mubr.msk.f32.mxu1 %vm21778_vm13, %v21777_v15  ;;  %v21838_v17 = vld [vmem:[#allocation127_spill] sm:$0xff]  ;;  %v8625_v31 = vpop.permute.xlu1 %8624 }
 0xa68   : > { %15724 = vmatprep.subr.mxu1 %v21777_v15 }
 0xa6a   : > { %15722 = vmatmul.mubr.msk.f32.vlgmr.msra.gmra.mrb[100].mxu1 %vm1894_vm4, %v19747_v32  ;;  %v5796_v32 = vsub.f32 %v19808_v60, %v5774_v43  ;;  %v21839_v60 = vld [vmem:[#allocation74_spill] sm:$0xff] }
 0xa6b   : > { %15725 = vmatpush3.xpose.msk.msra.mxu1 %vm1894_vm4, %v19720_v10  ;;  %15726 = vmatprep.mubr.msk.f32.mxu1 %vm21778_vm13, %v21777_v15  ;;  %v8705_v2 = vpop.permute.xlu1 %8704 }
 0xa6c   : > { %15729 = vmatprep.subr.mxu1 %v21777_v15  ;;  %v5824_v4 = vmul.f32 1.442695, %v5796_v32 }
 0xa6e   : > { %15727 = vmatmul.mubr.msk.f32.vlgmr.msra.gmra.mrb[102].mxu1 %vm1894_vm4, %v19728_v3 }
 0xa6f   : > { %15730 = vmatpush3.xpose.msk.msra.mxu1 %vm1894_vm4, %v21838_v17  ;;  %15731 = vmatprep.mubr.msk.f32.mxu1 %vm21778_vm13, %v21777_v15  ;;  %v8703_v20 = vpop.permute.xlu1 %8702 }
 0xa70   : > { %15734 = vmatprep.subr.mxu1 %v21777_v15 }
 0xa72   : > { %15732 = vmatmul.mubr.msk.f32.vlgmr.msra.gmra.mrb[104].mxu1 %vm1894_vm4, %v19793_v0  ;;  %v5768_v42 = vpop.xlane.xlu0 %5767 }
 0xa73   : > { %15735 = vmatpush3.xpose.msk.msra.mxu1 %vm1894_vm4, %v19839_v45  ;;  %v5794_v14 = vsub.f32 %v19829_v55, %v5768_v42  ;;  %15736 = vmatprep.mubr.msk.f32.mxu1 %vm21778_vm13, %v21777_v15  ;;  %v21842_v55 = vld [vmem:[#allocation92_spill] sm:$0xff] }
 0xa74   : > { %15739 = vmatprep.subr.mxu1 %v21777_v15 }
 0xa75   : > { %v5820_v1 = vmul.f32 1.442695, %v5794_v14 }
 0xa76   : > { %15737 = vmatmul.mubr.msk.f32.vlgmr.msra.gmra.mrb[106].mxu1 %vm1894_vm4, %v19841_v62  ;;  %v8547_v16 = vpop.permute.xlu0 %8546 }
 0xa77   : > { %16625 = vpow2.f32 %v5820_v1  ;;  %15740 = vmatpush3.xpose.msk.msra.mxu1 %vm1894_vm4, %v19845_v41  ;;  %15741 = vmatprep.mubr.msk.f32.mxu1 %vm21778_vm13, %v21777_v15  ;;  %v21843_v41 = vld [vmem:[#allocation96_spill] sm:$0xff] }
 0xa78   : > { %15744 = vmatprep.subr.mxu1 %v21777_v15  ;;  %16627 = vpow2.f32 %v5824_v4 }
 0xa7a   : > { %15742 = vmatmul.mubr.msk.f32.vlgmr.msra.gmra.mrb[108].mxu1 %vm1894_vm4, %v19816_v49  ;;  %v8627_v52 = vpop.permute.xlu0 %8626  ;;  %v21840_v49 = vld [vmem:[#allocation82_spill] sm:$0xff] }
 0xa7b   : > { %15745 = vmatpush3.xpose.msk.msra.mxu1 %vm1894_vm4, %v19822_v22  ;;  %15746 = vmatprep.mubr.msk.f32.mxu1 %vm21778_vm13, %v21777_v15  ;;  %v21841_v22 = vld [vmem:[#allocation86_spill] sm:$0xff] }
 0xa7c   : > { %15749 = vmatprep.subr.mxu1 %v21777_v15 }
 0xa7e   : > { %15747 = vmatmul.mubr.msk.f32.vlgmr.msra.gmra.mrb[110].mxu1 %vm1894_vm4, %v8391_v59 }
 0xa7f   : > { %15750 = vmatpush3.xpose.msk.msra.mxu1 %vm1894_vm4, %v8471_v51  ;;  %15751 = vmatprep.mubr.msk.f32.mxu1 %vm21778_vm13, %v21777_v15 }
 0xa80   : > { %15754 = vmatprep.subr.mxu1 %v21777_v15 }
 0xa81   : > { %v20008_v61 = vpop.eup %16625 }
 0xa82   : > { %15752 = vmatmul.mubr.msk.f32.vlgmr.msra.gmra.mrb[112].mxu1 %vm1894_vm4, %v8469_v38  ;;  %v5862_v10 = vsel %vm1894_vm4, %v20008_v61, 0.0  ;;  %v20013_v3 = vpop.eup %16627  ;;  %v5834_v59 = vpop.xlane.xlu1 %5833 }
 0xa83   : > { %15755 = vmatpush3.xpose.msk.msra.mxu1 %vm1894_vm4, %v8549_v47  ;;  %5863 = vadd.xlane.f32.xlu0 %v5862_v10  ;;  %v5868_v0 = vsel %vm1894_vm4, %v20013_v3, 0.0 }
 0xa84   : > { %15756 = vmatprep.mubr.msk.f32.mxu1 %vm21778_vm13, %v21777_v15  ;;  %15759 = vmatprep.subr.mxu1 %v21777_v15 }
 0xa86   : > { %15757 = vmatmul.mubr.msk.f32.vlgmr.msra.gmra.mrb[114].mxu1 %vm1894_vm4, %v8547_v16 }
 0xa87   : > { %15760 = vmatpush3.xpose.msk.msra.mxu1 %vm1894_vm4, %v8627_v52  ;;  %5869 = vadd.xlane.f32.xlu0 %v5868_v0 }
 0xa88   : > { %15761 = vmatprep.mubr.msk.f32.mxu1 %vm21778_vm13, %v21777_v15  ;;  %15764 = vmatprep.subr.mxu1 %v21777_v15 }
 0xa8a   : > { %15762 = vmatmul.mubr.msk.f32.vlgmr.msra.gmra.mrb[116].mxu1 %vm1894_vm4, %v8625_v31 }
 0xa8b   : > { %15765 = vmatpush3.xpose.msk.msra.mxu1 %vm1894_vm4, %v8705_v2  ;;  %15766 = vmatprep.mubr.msk.f32.mxu1 %vm21778_vm13, %v21777_v15 }
 0xa8c   : > { %15774 = vmatprep.subr.mxu1 %v21777_v15 }
 0xa8e   : > { %15767 = vmatmul.mubr.msk.f32.vlgmr.msra.gmra.mrb[118].mxu1 %vm1894_vm4, %v8703_v20 }
 0xa8f   : > { %15776 = vmatprep.mubr.msk.f32.mxu1 %vm21778_vm13, %v21777_v15 }
 0xa9d   : > { %5913 = vrot.lane.b32.xlu0 %v21839_v60, %s17495_s27 }
 0xaa1   : > { %6221 = vrot.lane.b32.xlu0 %v21840_v49, %s17495_s27 }
 0xaa5   : > { %6375 = vrot.lane.b32.xlu0 %v21841_v22, %s17495_s27 }
 0xaa9   : > { %6683 = vrot.lane.b32.xlu0 %v21842_v55, %s17495_s27 }
 0xaab   : > { %v5780_v45 = vpop.xlane.xlu0 %5779 }
 0xaac   : > { %v5798_v62 = vsub.f32 %v19884_v6, %v5780_v45  ;;  %v21848_v6 = vld [vmem:[#allocation90_spill] sm:$0xff] }
 0xaad   : > { %6991 = vrot.lane.b32.xlu0 %v21843_v41, %s17495_s27 }
 0xaae   : > { %v5828_v5 = vmul.f32 1.442695, %v5798_v62 }
 0xaaf   : > { %v5840_v51 = vpop.xlane.xlu0 %5839 }
 0xab0   : > { %16629 = vpow2.f32 %v5828_v5 }
 0xab1   : > { %8972 = vrot.lane.b32.xlu0 %v21839_v60, %s17497_s30  ;;  %16631 = vrcp.f32 %v5834_v59 }
 0xab2   : > { %16633 = vrcp.f32 %v5840_v51 }
 0xab3   : > { %v5846_v38 = vpop.xlane.xlu0 %5845 }
 0xab4   : > { %16635 = vrcp.f32 %v5846_v38 }
 0xab5   : > { %9124 = vrot.lane.b32.xlu0 %v21844_v44, %s17497_s30 }
 0xab7   : > { %v20089_v47 = vpop.xlane.xlu0 %5851 }
 0xab8   : > { %16637 = vrcp.f32 %v20089_v47 }
 0xab9   : > { %v20049_v11 = vpop.f32.mrb[72].mxu1  ;;  %9352 = vrot.lane.b32.xlu0 %v21845_v40, %s17497_s30 }
 0xaba   : > { %v20053_v33 = vpop.eup %16629  ;;  %v15566_v23 = vpop.f32.mrb[73].mxu1 }
 0xabb   : > { %v5874_v7 = vsel %vm1894_vm4, %v20053_v33, 0.0  ;;  %v20091_v43 = vpop.xlane.xlu0 %5857  ;;  %v16632_v42 = vpop.eup %16631 }
 0xabc   : > { %5875 = vadd.xlane.f32.xlu1 %v5874_v7  ;;  %v5896_v4 = vmul.f32 %v16632_v42, %v19843_v50  ;;  %16639 = vrcp.f32 %v20091_v43 }
 0xabd   : > { %9504 = vrot.lane.b32.xlu0 %v21846_v21, %s17497_s30 }
 0xac1   : > { %9656 = vrot.lane.b32.xlu0 %v21847_v9, %s17497_s30 }
 0xacd   : > { %6067 = vrot.lane.b32.xlu1 %v21844_v44, %s17495_s27 }
 0xad1   : > { %6529 = vrot.lane.b32.xlu1 %v21848_v6, %s17495_s27 }
 0xad5   : > { %6837 = vrot.lane.b32.xlu1 %v21849_v28, %s17495_s27 }
 0xad9   : > { %9048 = vrot.lane.b32.xlu1 %v21850_v53, %s17497_s30 }
 0xadd   : > { %9200 = vrot.lane.b32.xlu1 %v21851_v27, %s17497_s30  ;;  %v20071_v48 = vpop.f32.mrb[74].mxu1  ;;  %v20267_v27 = vld [vmem:[#allocation19] sm:$0xff] }
 0xade   : > { %v15576_v58 = vpop.f32.mrb[75].mxu1 }
 0xae1   : > { %9276 = vrot.lane.b32.xlu1 %v21840_v49, %s17497_s30  ;;  %v20075_v19 = vpop.f32.mrb[76].mxu1 }
 0xae2   : > { %v15586_v36 = vpop.f32.mrb[77].mxu1 }
 0xae5   : > { %9428 = vrot.lane.b32.xlu1 %v21841_v22, %s17497_s30  ;;  %v20079_v13 = vpop.f32.mrb[78].mxu1 }
 0xae6   : > { %v15596_v35 = vpop.f32.mrb[79].mxu1 }
 0xae9   : > { %9580 = vrot.lane.b32.xlu1 %v21848_v6, %s17497_s30  ;;  %v20083_v12 = vpop.f32.mrb[80].mxu1 }
 0xaea   : > { %v15606_v25 = vpop.f32.mrb[81].mxu1 }
 0xaed   : > { %9732 = vrot.lane.b32.xlu1 %v21842_v55, %s17497_s30  ;;  %v20087_v56 = vpop.f32.mrb[82].mxu1 }
 0xaee   : > { %v15616_v29 = vpop.f32.mrb[83].mxu1 }
 0xb10   : > { %v20093_v17 = vpop.xlane.xlu0 %5863 }
 0xb11   : > { %16641 = vrcp.f32 %v20093_v17 }
 0xb14   : > { %v20095_v32 = vpop.xlane.xlu0 %5869 }
 0xb15   : > { %16643 = vrcp.f32 %v20095_v32 }
 0xb18   : > { %v5914_v14 = vpop.permute.xlu0 %5913 }
 0xb19   : > { %15558 = vmatpush3.msra.mxu0 %v5914_v14 }
 0xb1a   : > { %15560 = vmatmul.mubr.msk.f32.vlgmr.msra.gmra.mrb[72].mxu0 %vm1894_vm4, %v5896_v4  ;;  %v20099_v1 = vpop.f32.mrb[84].mxu1  ;;  %15567 = vmatprep.subr.mxu0 %v21777_v15 }
 0xb1b   : > { %v15626_v16 = vpop.f32.mrb[85].mxu1  ;;  %15569 = vmatprep.mubr.msk.f32.mxu0 %vm21778_vm13, %v21777_v15 }
 0xb1e   : > { %v20104_v31 = vpop.f32.mrb[86].mxu1 }
 0xb1f   : > { %v15636_v10 = vpop.f32.mrb[87].mxu1 }
 0xb25   : > { %v7606_v52 = vpop.f32.mrb[88].mxu1 }
 0xb26   : > { %v20108_v2 = vsel %vm19138_vm12, %v7606_v52, -1e+09  ;;  %v15693_v50 = vpop.f32.mrb[89].mxu1 }
 0xb27   : > { %v8796_v20 = vsel %vm1894_vm4, %v20108_v2, -inf }
 0xb28   : > { %8797 = vmax.xlane.f32.xlu1 %v8796_v20 }
 0xb29   : > { %v7684_v45 = vpop.f32.mrb[90].mxu1 }
 0xb2a   : > { %v20114_v5 = vsel %vm18958_vm7, %v7684_v45, -1e+09  ;;  %v15698_v23 = vpop.f32.mrb[91].mxu1 }
 0xb2b   : > { %v8799_v7 = vsel %vm1894_vm4, %v20114_v5, -inf }
 0xb2c   : > { %8800 = vmax.xlane.f32.xlu0 %v8799_v7 }
 0xb2d   : > { %v7762_v58 = vpop.f32.mrb[92].mxu1 }
 0xb2e   : > { %v20120_v35 = vsel %vm19157_vm10, %v7762_v58, -1e+09  ;;  %v15703_v25 = vpop.f32.mrb[93].mxu1 }
 0xb2f   : > { %v8802_v29 = vsel %vm1894_vm4, %v20120_v35, -inf }
 0xb30   : > { %8803 = vmax.xlane.f32.xlu0 %v8802_v29 }
 0xb31   : > { %v7840_v59 = vpop.f32.mrb[94].mxu1 }
 0xb32   : > { %v20126_v14 = vsel %vm18973_vm9, %v7840_v59, -1e+09  ;;  %v15708_v4 = vpop.f32.mrb[95].mxu1 }
 0xb33   : > { %v8805_v16 = vsel %vm1894_vm4, %v20126_v14, -inf }
 0xb34   : > { %8806 = vmax.xlane.f32.xlu1 %v8805_v16 }
 0xb35   : > { %v7918_v10 = vpop.f32.mrb[96].mxu1 }
 0xb36   : > { %v20132_v50 = vsel %vm19169_vm15, %v7918_v10, -1e+09  ;;  %v15713_v20 = vpop.f32.mrb[97].mxu1 }
 0xb37   : > { %v8808_v45 = vsel %vm1894_vm4, %v20132_v50, -inf }
 0xb38   : > { %8809 = vmax.xlane.f32.xlu0 %v8808_v45 }
 0xb39   : > { %v7996_v23 = vpop.f32.mrb[98].mxu1 }
 0xb3a   : > { %v20138_v58 = vsel %vm18991_vm11, %v7996_v23, -1e+09  ;;  %v15718_v25 = vpop.f32.mrb[99].mxu1 }
 0xb3b   : > { %v8811_v29 = vsel %vm1894_vm4, %v20138_v58, -inf }
 0xb3c   : > { %8812 = vmax.xlane.f32.xlu1 %v8811_v29 }
 0xb3d   : > { %v8074_v59 = vpop.f32.mrb[100].mxu1 }
 0xb3e   : > { %v20144_v16 = vsel %vm19186_vm2, %v8074_v59, -1e+09  ;;  %v15723_v10 = vpop.f32.mrb[101].mxu1 }
 0xb3f   : > { %v8814_v20 = vsel %vm1894_vm4, %v20144_v16, -inf }
 0xb40   : > { %8815 = vmax.xlane.f32.xlu0 %v8814_v20 }
 0xb41   : > { %v8152_v45 = vpop.f32.mrb[102].mxu1 }
 0xb42   : > { %v20150_v23 = vsel %vm19012_vm14, %v8152_v45, -1e+09  ;;  %v15728_v25 = vpop.f32.mrb[103].mxu1 }
 0xb43   : > { %v8817_v29 = vsel %vm1894_vm4, %v20150_v23, -inf  ;;  %v16634_v25 = vpop.eup %16633 }
 0xb44   : > { %8818 = vmax.xlane.f32.xlu1 %v8817_v29  ;;  %v5898_v47 = vmul.f32 %v16634_v25, %v19894_v24 }
 0xb45   : > { %v8230_v21 = vpop.f32.mrb[104].mxu1 }
 0xb46   : > { %v20156_v59 = vsel %vm21830_vm3, %v8230_v21, -1e+09  ;;  %v15733_v10 = vpop.f32.mrb[105].mxu1  ;;  %v6222_v21 = vpop.permute.xlu0 %6221 }
 0xb47   : > { %v8820_v51 = vsel %vm1894_vm4, %v20156_v59, -inf }
 0xb48   : > { %8821 = vmax.xlane.f32.xlu0 %v8820_v51  ;;  %v16636_v51 = vpop.eup %16635 }
 0xb49   : > { %v8308_v20 = vpop.f32.mrb[106].mxu1  ;;  %v5876_v45 = vpop.xlane.xlu1 %5875 }
 0xb4a   : > { %v20163_v44 = vsel %vm19027_vm1, %v8308_v20, -1e+09  ;;  %v15738_v38 = vpop.f32.mrb[107].mxu1  ;;  %16645 = vrcp.f32 %v5876_v45 }
 0xb4b   : > { %v8823_v29 = vsel %vm1894_vm4, %v20163_v44, -inf }
 0xb4c   : > { %8824 = vmax.xlane.f32.xlu1 %v8823_v29 }
 0xb4d   : > { %v8386_v10 = vpop.f32.mrb[108].mxu1  ;;  %v6068_v55 = vpop.permute.xlu1 %6067 }
 0xb4e   : > { %v20171_v6 = vsel %vm19261_vm0, %v8386_v10, -1e+09  ;;  %v15743_v22 = vpop.f32.mrb[109].mxu1  ;;  %15568 = vmatpush3.msra.mxu0 %v6068_v55  ;;  %v16638_v55 = vpop.eup %16637 }
 0xb4f   : > { %v8826_v20 = vsel %vm1894_vm4, %v20171_v6, -inf  ;;  %15570 = vmatmul.mubr.msk.f32.vlgmr.msra.gmra.mrb[74].mxu0 %vm1894_vm4, %v5898_v47  ;;  %15577 = vmatprep.subr.mxu0 %v21777_v15  ;;  %v5900_v22 = vmul.f32 %v16636_v51, %v19899_v18  ;;  %v6376_v10 = vpop.permute.xlu0 %6375  ;;  %v5902_v18 = vmul.f32 %v16638_v55, %v19903_v57  ;;  %v16640_v51 = vpop.eup %16639 }
 0xb50   : > { %8827 = vmax.xlane.f32.xlu0 %v8826_v20  ;;  %15578 = vmatpush3.msra.mxu0 %v6222_v21  ;;  %v5904_v57 = vmul.f32 %v16640_v51, %v19907_v46  ;;  %v16642_v55 = vpop.eup %16641 }
 0xb51   : > { %v8464_v43 = vpop.f32.mrb[110].mxu1  ;;  %v6530_v24 = vpop.permute.xlu1 %6529  ;;  %15579 = vmatprep.mubr.msk.f32.mxu0 %vm21778_vm13, %v21777_v15  ;;  %15587 = vmatprep.subr.mxu0 %v21777_v15  ;;  %v5906_v46 = vmul.f32 %v16642_v55, %v20008_v61  ;;  %v21864_v55 = vld [vmem:[#allocation104_spill] sm:$0xff] }
 0xb52   : > { %v20184_v38 = vsel %vm19036_vm5, %v8464_v43, -1e+09  ;;  %v15748_v29 = vpop.f32.mrb[111].mxu1  ;;  %v16644_v51 = vpop.eup %16643 }
 0xb53   : > { %v8829_v17 = vsel %vm1894_vm4, %v20184_v38, -inf  ;;  %15580 = vmatmul.mubr.msk.f32.vlgmr.msra.gmra.mrb[76].mxu0 %vm1894_vm4, %v5900_v22  ;;  %v5908_v61 = vmul.f32 %v16644_v51, %v20013_v3  ;;  %v7145_v3 = vld [vmem:[#allocation19 + $0x8] sm:$0xff] }
 0xb54   : > { %8830 = vmax.xlane.f32.xlu1 %v8829_v17  ;;  %15588 = vmatpush3.msra.mxu0 %v6376_v10  ;;  %v21862_v10 = vld [vmem:[#allocation103_spill] sm:$0xff]  ;;  %v21867_v51 = vld [vmem:[#allocation93_spill] sm:$0xff] }
 0xb55   : > { %v8542_v21 = vpop.f32.mrb[112].mxu1  ;;  %v6838_v47 = vpop.permute.xlu1 %6837  ;;  %15589 = vmatprep.mubr.msk.f32.mxu0 %vm21778_vm13, %v21777_v15  ;;  %15597 = vmatprep.subr.mxu0 %v21777_v15 }
 0xb56   : > { %v20196_v20 = vsel %vm21832_vm8, %v8542_v21, -1e+09  ;;  %v15753_v43 = vpop.f32.mrb[113].mxu1  ;;  %vm21863_vm8 = vnez %v21862_v10 }
 0xb57   : > { %v8832_v32 = vsel %vm1894_vm4, %v20196_v20, -inf  ;;  %15590 = vmatmul.mubr.msk.f32.vlgmr.msra.gmra.mrb[78].mxu0 %vm1894_vm4, %v5902_v18  ;;  %v6684_v18 = vpop.permute.xlu0 %6683 }
 0xb58   : > { %8833 = vmax.xlane.f32.xlu0 %v8832_v32  ;;  %15598 = vmatpush3.msra.mxu0 %v6530_v24 }
 0xb59   : > { %v8620_v22 = vpop.f32.mrb[114].mxu1  ;;  %v9049_v29 = vpop.permute.xlu1 %9048  ;;  %15599 = vmatprep.mubr.msk.f32.mxu0 %vm21778_vm13, %v21777_v15  ;;  %15607 = vmatprep.subr.mxu0 %v21777_v15 }
 0xb5a   : > { %v20207_v17 = vsel %vm21863_vm8, %v8620_v22, -1e+09  ;;  %v15758_v21 = vpop.f32.mrb[115].mxu1  ;;  %15775 = vmatpush3.msra.mxu1 %v9049_v29 }
 0xb5b   : > { %v8835_v45 = vsel %vm1894_vm4, %v20207_v17, -inf  ;;  %15600 = vmatmul.mubr.msk.f32.vlgmr.msra.gmra.mrb[80].mxu0 %vm1894_vm4, %v5904_v57  ;;  %15784 = vmatprep.subr.mxu1 %v21777_v15  ;;  %v16646_v57 = vpop.eup %16645 }
 0xb5c   : > { %8836 = vmax.xlane.f32.xlu1 %v8835_v45  ;;  %15608 = vmatpush3.msra.mxu0 %v6684_v18  ;;  %v6992_v45 = vpop.permute.xlu0 %6991 }
 0xb5d   : > { %v8698_v24 = vpop.f32.mrb[116].mxu1  ;;  %15609 = vmatprep.mubr.msk.f32.mxu0 %vm21778_vm13, %v21777_v15  ;;  %15617 = vmatprep.subr.mxu0 %v21777_v15 }
 0xb5e   : > { %v20219_v43 = vsel %vm21837_vm6, %v8698_v24, -1e+09  ;;  %v15763_v32 = vpop.f32.mrb[117].mxu1  ;;  %vm21865_vm6 = vnez %v21864_v55 }
 0xb5f   : > { %v8838_v22 = vsel %vm1894_vm4, %v20219_v43, -inf  ;;  %15610 = vmatmul.mubr.msk.f32.vlgmr.msra.gmra.mrb[82].mxu0 %vm1894_vm4, %v5906_v46  ;;  %v21866_v46 = vld [vmem:[#allocation91_spill] sm:$0xff]  ;;  %v20245_v32 = vpop.permute.xlu1 %9200 }
 0xb60   : > { %8839 = vmax.xlane.f32.xlu0 %v8838_v22  ;;  %15618 = vmatpush3.msra.mxu0 %v6838_v47  ;;  %v5910_v47 = vmul.f32 %v16646_v57, %v20053_v33  ;;  %v20247_v22 = vpop.permute.xlu0 %8972 }
 0xb61   : > { %v8776_v29 = vpop.f32.mrb[118].mxu1  ;;  %15619 = vmatprep.mubr.msk.f32.mxu0 %vm21778_vm13, %v21777_v15  ;;  %15627 = vmatprep.subr.mxu0 %v21777_v15 }
 0xb62   : > { %v20230_v21 = vsel %vm21865_vm6, %v8776_v29, -1e+09  ;;  %v15768_v18 = vpop.f32.mrb[119].mxu1 }
 0xb63   : > { %v8841_v24 = vsel %vm1894_vm4, %v20230_v21, -inf  ;;  %15620 = vmatmul.mubr.msk.f32.vlgmr.msra.gmra.mrb[84].mxu0 %vm1894_vm4, %v5908_v61  ;;  %v20249_v29 = vpop.permute.xlu1 %9276 }
 0xb64   : > { %8842 = vmax.xlane.f32.xlu1 %v8841_v24  ;;  %15628 = vmatpush3.msra.mxu0 %v6992_v45  ;;  %v20251_v33 = vpop.permute.xlu0 %9124 }
 0xb65   : > { %15629 = vmatprep.mubr.msk.f32.mxu0 %vm21778_vm13, %v21777_v15  ;;  %15637 = vmatprep.subr.mxu0 %v7145_v3 }
 0xb67   : > { %15630 = vmatmul.mubr.msk.f32.vlgmr.msra.gmra.mrb[86].mxu0 %vm1894_vm4, %v5910_v47  ;;  %v20253_v61 = vpop.permute.xlu1 %9428 }
 0xb68   : > { %15638 = vmatpush3.msra.mxu0 %v7145_v3  ;;  %v20255_v57 = vpop.permute.xlu0 %9352 }
 0xb69   : > { %15663 = vmatprep.subr.mxu0 %v20267_v27 }
 0xb6b   : > { %v20257_v18 = vpop.permute.xlu1 %9580 }
 0xb6c   : > { %v20259_v45 = vpop.permute.xlu0 %9504 }
 0xb6f   : > { %v20261_v24 = vpop.permute.xlu1 %9732 }
 0xb70   : > { %v20263_v47 = vpop.permute.xlu0 %9656 }
 0xb75   : > { %9884 = vrot.lane.b32.xlu1 %v21849_v28, %s17497_s30 }
 0xb76   : > { %9808 = vrot.lane.b32.xlu0 %v21866_v46, %s17497_s30 }
 0xb7a   : > { %9960 = vrot.lane.b32.xlu0 %v21867_v51, %s17497_s30 }
 0xbb5   : > { %v8798_v3 = vpop.xlane.xlu1 %8797 }
 0xbb6   : > { %v8844_v51 = vsub.f32 %v20108_v2, %v8798_v3 }
 0xbb8   : > { %v8860_v46 = vmul.f32 1.442695, %v8844_v51 }
 0xbb9   : > { %v8801_v28 = vpop.xlane.xlu0 %8800 }
 0xbba   : > { %16647 = vpow2.f32 %v8860_v46  ;;  %v8845_v49 = vsub.f32 %v20114_v5, %v8801_v28 }
 0xbbc   : > { %v8862_v37 = vmul.f32 1.442695, %v8845_v49 }
 0xbbd   : > { %v8804_v34 = vpop.xlane.xlu0 %8803 }
 0xbbe   : > { %16649 = vpow2.f32 %v8862_v37  ;;  %v8846_v26 = vsub.f32 %v20120_v35, %v8804_v34 }
 0xbc0   : > { %v8864_v8 = vmul.f32 1.442695, %v8846_v26 }
 0xbc1   : > { %v8807_v55 = vpop.xlane.xlu1 %8806 }
 0xbc2   : > { %16651 = vpow2.f32 %v8864_v8  ;;  %v8847_v10 = vsub.f32 %v20126_v14, %v8807_v55 }
 0xbc4   : > { %v20272_v2 = vpop.eup %16647  ;;  %v8866_v51 = vmul.f32 1.442695, %v8847_v10 }
 0xbc5   : > { %v8810_v46 = vpop.xlane.xlu0 %8809  ;;  %v8892_v49 = vsel %vm1894_vm4, %v20272_v2, 0.0 }
 0xbc6   : > { %16653 = vpow2.f32 %v8866_v51  ;;  %v8848_v28 = vsub.f32 %v20132_v50, %v8810_v46  ;;  %8893 = vadd.xlane.f32.xlu0 %v8892_v49 }
 0xbc8   : > { %v20277_v5 = vpop.eup %16649  ;;  %v8868_v37 = vmul.f32 1.442695, %v8848_v28 }
 0xbc9   : > { %v8813_v34 = vpop.xlane.xlu1 %8812  ;;  %v8895_v8 = vsel %vm1894_vm4, %v20277_v5, 0.0 }
 0xbca   : > { %16655 = vpow2.f32 %v8868_v37  ;;  %v8849_v26 = vsub.f32 %v20138_v58, %v8813_v34  ;;  %8896 = vadd.xlane.f32.xlu1 %v8895_v8 }
 0xbcc   : > { %v20282_v35 = vpop.eup %16651  ;;  %v8870_v14 = vmul.f32 1.442695, %v8849_v26 }
 0xbcd   : > { %v8816_v10 = vpop.xlane.xlu0 %8815  ;;  %v8898_v55 = vsel %vm1894_vm4, %v20282_v35, 0.0 }
 0xbce   : > { %16657 = vpow2.f32 %v8870_v14  ;;  %v8850_v50 = vsub.f32 %v20144_v16, %v8816_v10  ;;  %8899 = vadd.xlane.f32.xlu0 %v8898_v55 }
 0xbd0   : > { %v20287_v3 = vpop.eup %16653  ;;  %v8872_v51 = vmul.f32 1.442695, %v8850_v50 }
 0xbd1   : > { %v8819_v46 = vpop.xlane.xlu1 %8818  ;;  %v8901_v49 = vsel %vm1894_vm4, %v20287_v3, 0.0 }
 0xbd2   : > { %16659 = vpow2.f32 %v8872_v51  ;;  %v8851_v58 = vsub.f32 %v20150_v23, %v8819_v46  ;;  %8902 = vadd.xlane.f32.xlu1 %v8901_v49 }
 0xbd4   : > { %v20292_v28 = vpop.eup %16655  ;;  %v8874_v37 = vmul.f32 1.442695, %v8851_v58 }
 0xbd5   : > { %v8822_v34 = vpop.xlane.xlu0 %8821  ;;  %v8904_v8 = vsel %vm1894_vm4, %v20292_v28, 0.0 }
 0xbd6   : > { %16661 = vpow2.f32 %v8874_v37  ;;  %v8852_v16 = vsub.f32 %v20156_v59, %v8822_v34  ;;  %8905 = vadd.xlane.f32.xlu0 %v8904_v8 }
 0xbd8   : > { %v20297_v26 = vpop.eup %16657  ;;  %v8876_v14 = vmul.f32 1.442695, %v8852_v16 }
 0xbd9   : > { %v8825_v10 = vpop.xlane.xlu1 %8824  ;;  %v8907_v55 = vsel %vm1894_vm4, %v20297_v26, 0.0 }
 0xbda   : > { %16663 = vpow2.f32 %v8876_v14  ;;  %v8853_v23 = vsub.f32 %v20163_v44, %v8825_v10  ;;  %8908 = vadd.xlane.f32.xlu1 %v8907_v55 }
 0xbdc   : > { %v20302_v50 = vpop.eup %16659  ;;  %v8878_v51 = vmul.f32 1.442695, %v8853_v23 }
 0xbdd   : > { %v8828_v46 = vpop.xlane.xlu0 %8827  ;;  %v8910_v49 = vsel %vm1894_vm4, %v20302_v50, 0.0 }
 0xbde   : > { %16665 = vpow2.f32 %v8878_v51  ;;  %v8854_v59 = vsub.f32 %v20171_v6, %v8828_v46  ;;  %8911 = vadd.xlane.f32.xlu0 %v8910_v49 }
 0xbe0   : > { %v20307_v58 = vpop.eup %16661  ;;  %v8880_v37 = vmul.f32 1.442695, %v8854_v59 }
 0xbe1   : > { %v8831_v34 = vpop.xlane.xlu1 %8830  ;;  %v8913_v8 = vsel %vm1894_vm4, %v20307_v58, 0.0 }
 0xbe2   : > { %16667 = vpow2.f32 %v8880_v37  ;;  %v8855_v44 = vsub.f32 %v20184_v38, %v8831_v34  ;;  %8914 = vadd.xlane.f32.xlu1 %v8913_v8 }
 0xbe4   : > { %v20312_v16 = vpop.eup %16663  ;;  %v8882_v14 = vmul.f32 1.442695, %v8855_v44 }
 0xbe5   : > { %v8834_v10 = vpop.xlane.xlu0 %8833  ;;  %v8916_v55 = vsel %vm1894_vm4, %v20312_v16, 0.0 }
 0xbe6   : > { %16669 = vpow2.f32 %v8882_v14  ;;  %v8856_v6 = vsub.f32 %v20196_v20, %v8834_v10  ;;  %8917 = vadd.xlane.f32.xlu0 %v8916_v55 }
 0xbe8   : > { %v20317_v23 = vpop.eup %16665  ;;  %v8884_v51 = vmul.f32 1.442695, %v8856_v6 }
 0xbe9   : > { %v8837_v46 = vpop.xlane.xlu1 %8836  ;;  %v8919_v49 = vsel %vm1894_vm4, %v20317_v23, 0.0 }
 0xbea   : > { %16671 = vpow2.f32 %v8884_v51  ;;  %v8857_v38 = vsub.f32 %v20207_v17, %v8837_v46  ;;  %8920 = vadd.xlane.f32.xlu1 %v8919_v49 }
 0xbec   : > { %v20322_v59 = vpop.eup %16667  ;;  %v8886_v37 = vmul.f32 1.442695, %v8857_v38 }
 0xbed   : > { %v8840_v34 = vpop.xlane.xlu0 %8839  ;;  %v5985_v8 = vpop.f32.mrb[72].mxu0  ;;  %v8922_v20 = vsel %vm1894_vm4, %v20322_v59, 0.0 }
 0xbee   : > { %16673 = vpow2.f32 %v8886_v37  ;;  %v8858_v44 = vsub.f32 %v20219_v43, %v8840_v34  ;;  %8923 = vadd.xlane.f32.xlu0 %v8922_v20  ;;  %v15561_v14 = vpop.f32.mrb[73].mxu0  ;;  %15639 = vmatprep.mubr.msk.f32.mxu0 %vm1894_vm4, %v5985_v8  ;;  %v21868_v8 = vld [vmem:[#allocation51_spill] sm:$0xff]  ;;  %v21869_v20 = vld [vmem:[#allocation50_spill] sm:$0xff] }
 0xbef   : > { %15640 = vmatmul.mubr.msk.f32.vlgmr.msra.gmra.mrb[88].mxu0 %vm1894_vm4, %v20049_v11  ;;  %v21871_v14 = vld [vmem:[#allocation55_spill] sm:$0xff] }
 0xbf0   : > { %v20330_v17 = vpop.eup %16669  ;;  %v8888_v10 = vmul.f32 1.442695, %v8858_v44  ;;  %15664 = vmatpush3.msra.mxu0 %v20267_v27  ;;  %v21870_v44 = vld [vmem:[#allocation95_spill] sm:$0xff] }
 0xbf1   : > { %v8843_v55 = vpop.xlane.xlu1 %8842  ;;  %v8925_v6 = vsel %vm1894_vm4, %v20330_v17, 0.0  ;;  %15769 = vmatprep.subr.mxu0 %v21777_v15 }
 0xbf2   : > { %16675 = vpow2.f32 %v8888_v10  ;;  %v8859_v43 = vsub.f32 %v20230_v21, %v8843_v55  ;;  %8926 = vadd.xlane.f32.xlu1 %v8925_v6  ;;  %v21872_v10 = vld [vmem:[#allocation53_spill] sm:$0xff]  ;;  %v21873_v55 = vld [vmem:[#allocation54_spill] sm:$0xff]  ;;  %v21874_v6 = vld [vmem:[#allocation52_spill] sm:$0xff] }
 0xbf4   : > { %v20337_v51 = vpop.eup %16671  ;;  %v8890_v46 = vmul.f32 1.442695, %v8859_v43 }
 0xbf5   : > { %v8928_v11 = vsel %vm1894_vm4, %v20337_v51, 0.0 }
 0xbf6   : > { %16677 = vpow2.f32 %v8890_v46  ;;  %8929 = vadd.xlane.f32.xlu0 %v8928_v11  ;;  %v21875_v46 = vld [vmem:[#allocation61_spill] sm:$0xff] }
 0xbf8   : > { %v20341_v49 = vpop.eup %16673 }
 0xbf9   : > { %v8931_v27 = vsel %vm1894_vm4, %v20341_v49, 0.0 }
 0xbfa   : > { %8932 = vadd.xlane.f32.xlu1 %v8931_v27  ;;  %v21876_v27 = vld [vmem:[#allocation58_spill] sm:$0xff] }
 0xbfc   : > { %v20345_v38 = vpop.eup %16675 }
 0xbfd   : > { %v8934_v21 = vsel %vm1894_vm4, %v20345_v38, 0.0 }
 0xbfe   : > { %8935 = vadd.xlane.f32.xlu1 %v8934_v21 }
 0xc00   : > { %v20349_v37 = vpop.eup %16677 }
 0xc01   : > { %v8937_v34 = vsel %vm1894_vm4, %v20349_v37, 0.0 }
 0xc02   : > { %8938 = vadd.xlane.f32.xlu0 %v8937_v34  ;;  %v21877_v34 = vld [vmem:[#allocation57_spill] sm:$0xff] }
 0xc0f   : > { %10036 = vrot.lane.b32.xlu1 %v21843_v41, %s17497_s30 }
 0xc13   : > { %10401 = vrot.lane.b32.xlu1 %v21868_v8, %s17498_s4 }
 0xc17   : > { %10479 = vrot.lane.b32.xlu1 %v21869_v20, %s17498_s4  ;;  %v21878_v20 = vld [vmem:[#allocation56_spill] sm:$0xff] }
 0xc18   : > { %10112 = vrot.lane.b32.xlu0 %v21870_v44, %s17497_s30 }
 0xc1b   : > { %10557 = vrot.lane.b32.xlu1 %v21871_v14, %s17498_s4 }
 0xc1c   : > { %10399 = vrot.lane.b32.xlu0 %v21872_v10, %s17498_s4  ;;  %v21879_v10 = vld [vmem:[#allocation66_spill] sm:$0xff] }
 0xc1f   : > { %10635 = vrot.lane.b32.xlu1 %v21873_v55, %s17498_s4 }
 0xc20   : > { %10477 = vrot.lane.b32.xlu0 %v21874_v6, %s17498_s4 }
 0xc22   : > { %v6139_v43 = vpop.f32.mrb[74].mxu0 }
 0xc23   : > { %10713 = vrot.lane.b32.xlu1 %v21875_v46, %s17498_s4  ;;  %v15571_v11 = vpop.f32.mrb[75].mxu0  ;;  %15642 = vmatprep.mubr.msk.f32.mxu0 %vm1894_vm4, %v6139_v43  ;;  %v21881_v43 = vld [vmem:[#allocation60_spill] sm:$0xff] }
 0xc24   : > { %10555 = vrot.lane.b32.xlu0 %v21876_v27, %s17498_s4  ;;  %15643 = vmatmul.mubr.msk.f32.gmra.mrb[90].mxu0 %vm1894_vm4, %v20071_v48  ;;  %v21880_v48 = vld [vmem:[#allocation62_spill] sm:$0xff]  ;;  %v21883_v27 = vld [vmem:[#allocation63_spill] sm:$0xff] }
 0xc26   : > { %v6293_v21 = vpop.f32.mrb[76].mxu0 }
 0xc27   : > { %10791 = vrot.lane.b32.xlu1 %v21877_v34, %s17498_s4  ;;  %v15581_v8 = vpop.f32.mrb[77].mxu0  ;;  %15645 = vmatprep.mubr.msk.f32.mxu0 %vm1894_vm4, %v6293_v21 }
 0xc28   : > { %10633 = vrot.lane.b32.xlu0 %v21878_v20, %s17498_s4  ;;  %15646 = vmatmul.mubr.msk.f32.gmra.mrb[92].mxu0 %vm1894_vm4, %v20075_v19  ;;  %v21882_v19 = vld [vmem:[#allocation59_spill] sm:$0xff]  ;;  %v21885_v8 = vld [vmem:[#allocation64_spill] sm:$0xff] }
 0xc2a   : > { %v6447_v14 = vpop.f32.mrb[78].mxu0 }
 0xc2b   : > { %10869 = vrot.lane.b32.xlu1 %v21879_v10, %s17498_s4  ;;  %v15591_v55 = vpop.f32.mrb[79].mxu0  ;;  %15648 = vmatprep.mubr.msk.f32.mxu0 %vm1894_vm4, %v6447_v14  ;;  %v21887_v10 = vld [vmem:[#allocation65_spill] sm:$0xff] }
 0xc2c   : > { %10711 = vrot.lane.b32.xlu0 %v21880_v48, %s17498_s4  ;;  %15649 = vmatmul.mubr.msk.f32.gmra.mrb[94].mxu0 %vm1894_vm4, %v20079_v13  ;;  %v21884_v13 = vld [vmem:[#allocation69_spill] sm:$0xff]  ;;  %v21889_v48 = vld [vmem:[#allocation119_spill] sm:$0xff] }
 0xc2e   : > { %v6601_v6 = vpop.f32.mrb[80].mxu0 }
 0xc2f   : > { %10947 = vrot.lane.b32.xlu1 %v21881_v43, %s17498_s4  ;;  %v15601_v46 = vpop.f32.mrb[81].mxu0  ;;  %15651 = vmatprep.mubr.msk.f32.mxu0 %vm1894_vm4, %v6601_v6  ;;  %v21890_v6 = vld [vmem:[#allocation67_spill] sm:$0xff]  ;;  %v21892_v43 = vld [vmem:[#allocation113_spill] sm:$0xff] }
 0xc30   : > { %10789 = vrot.lane.b32.xlu0 %v21882_v19, %s17498_s4  ;;  %15652 = vmatmul.mubr.msk.f32.gmra.mrb[96].mxu0 %vm1894_vm4, %v20083_v12  ;;  %v21886_v12 = vld [vmem:[#allocation71_spill] sm:$0xff]  ;;  %v21893_v46 = vld [vmem:[#allocation120_spill] sm:$0xff]  ;;  %v21895_v19 = vld [vmem:[#allocation114_spill] sm:$0xff] }
 0xc32   : > { %v6755_v11 = vpop.f32.mrb[82].mxu0 }
 0xc33   : > { %11025 = vrot.lane.b32.xlu1 %v21883_v27, %s17498_s4  ;;  %v15611_v21 = vpop.f32.mrb[83].mxu0  ;;  %15654 = vmatprep.mubr.msk.f32.mxu0 %vm1894_vm4, %v6755_v11  ;;  %v21896_v11 = vld [vmem:[#allocation121_spill] sm:$0xff]  ;;  %v21898_v27 = vld [vmem:[#allocation115_spill] sm:$0xff] }
 0xc34   : > { %10867 = vrot.lane.b32.xlu0 %v21884_v13, %s17498_s4  ;;  %15655 = vmatmul.mubr.msk.f32.gmra.mrb[98].mxu0 %vm1894_vm4, %v20087_v56  ;;  %v21888_v56 = vld [vmem:[#allocation72_spill] sm:$0xff]  ;;  %v20444_v21 = vpop.permute.xlu0 %9808 }
 0xc35   : > { %v21900_v13 = vld [vmem:[#allocation80_spill] sm:$0xff] }
 0xc36   : > { %v6909_v34 = vpop.f32.mrb[84].mxu0 }
 0xc37   : > { %11023 = vrot.lane.b32.xlu1 %v21885_v8, %s17498_s4  ;;  %v15621_v20 = vpop.f32.mrb[85].mxu0  ;;  %15657 = vmatprep.mubr.msk.f32.mxu0 %vm1894_vm4, %v6909_v34  ;;  %v21901_v34 = vld [vmem:[#allocation116_spill] sm:$0xff] }
 0xc38   : > { %10945 = vrot.lane.b32.xlu0 %v21886_v12, %s17498_s4  ;;  %15658 = vmatmul.mubr.msk.f32.gmra.mrb[100].mxu0 %vm1894_vm4, %v20099_v1  ;;  %v21891_v1 = vld [vmem:[#allocation75_spill] sm:$0xff]  ;;  %v20456_v8 = vpop.permute.xlu0 %9960  ;;  %v21903_v20 = vld [vmem:[#allocation73_spill] sm:$0xff]  ;;  %v21904_v12 = vld [vmem:[#allocation68_spill] sm:$0xff] }
 0xc3a   : > { %v7063_v14 = vpop.f32.mrb[86].mxu0 }
 0xc3b   : > { %11181 = vrot.lane.b32.xlu1 %v21887_v10, %s17498_s4  ;;  %v15631_v55 = vpop.f32.mrb[87].mxu0  ;;  %15660 = vmatprep.mubr.msk.f32.mxu0 %vm1894_vm4, %v7063_v14  ;;  %v20466_v14 = vpop.permute.xlu1 %9884 }
 0xc3c   : > { %11103 = vrot.lane.b32.xlu0 %v21888_v56, %s17498_s4  ;;  %15661 = vmatmul.mubr.msk.f32.gmra.mrb[102].mxu0 %vm1894_vm4, %v20104_v31  ;;  %v21894_v31 = vld [vmem:[#allocation76_spill] sm:$0xff]  ;;  %v21907_v56 = vld [vmem:[#allocation70_spill] sm:$0xff] }
 0xc3d   : > { %15665 = vmatprep.mubr.msk.f32.mxu0 %vm1894_vm4, %v21889_v48  ;;  %v21906_v55 = vld [vmem:[#allocation84_spill] sm:$0xff] }
 0xc3f   : > { %11179 = vrot.lane.b32.xlu1 %v21890_v6, %s17498_s4  ;;  %v21909_v6 = vld [vmem:[#allocation87_spill] sm:$0xff] }
 0xc40   : > { %11101 = vrot.lane.b32.xlu0 %v21891_v1, %s17498_s4  ;;  %15666 = vmatmul.mubr.msk.f32.vlgmr.msra.gmra.mrb[88].mxu0 %vm1894_vm4, %v21892_v43  ;;  %v21910_v1 = vld [vmem:[#allocation117_spill] sm:$0xff] }
 0xc41   : > { %15770 = vmatpush3.msra.mxu0 %v20247_v22  ;;  %15668 = vmatprep.mubr.msk.f32.mxu0 %vm1894_vm4, %v21893_v46  ;;  %v21897_v22 = vld [vmem:[#allocation79_spill] sm:$0xff]  ;;  %v21912_v46 = vld [vmem:[#allocation118_spill] sm:$0xff] }
 0xc42   : > { %15779 = vmatprep.subr.mxu0 %v21777_v15 }
 0xc43   : > { %11337 = vrot.lane.b32.xlu1 %v21791_v54, %s17498_s4  ;;  %v21899_v54 = vld [vmem:[#allocation122_spill] sm:$0xff] }
 0xc44   : > { %11259 = vrot.lane.b32.xlu0 %v21894_v31, %s17498_s4  ;;  %15669 = vmatmul.mubr.msk.f32.gmra.mrb[90].mxu0 %vm1894_vm4, %v21895_v19 }
 0xc45   : > { %15671 = vmatprep.mubr.msk.f32.mxu0 %vm1894_vm4, %v21896_v11 }
 0xc47   : > { %11335 = vrot.lane.b32.xlu1 %v18806_v30, %s17498_s4  ;;  %v21902_v30 = vld [vmem:[#allocation123_spill] sm:$0xff] }
 0xc48   : > { %11257 = vrot.lane.b32.xlu0 %v21897_v22, %s17498_s4  ;;  %15672 = vmatmul.mubr.msk.f32.gmra.mrb[92].mxu0 %vm1894_vm4, %v21898_v27 }
 0xc49   : > { %15674 = vmatprep.mubr.msk.f32.mxu0 %vm1894_vm4, %v21899_v54 }
 0xc4b   : > { %11493 = vrot.lane.b32.xlu1 %v21793_v39, %s17498_s4  ;;  %v21905_v39 = vld [vmem:[#allocation124_spill] sm:$0xff] }
 0xc4c   : > { %11415 = vrot.lane.b32.xlu0 %v21900_v13, %s17498_s4  ;;  %15675 = vmatmul.mubr.msk.f32.gmra.mrb[94].mxu0 %vm1894_vm4, %v21901_v34 }
 0xc4d   : > { %15677 = vmatprep.mubr.msk.f32.mxu0 %vm1894_vm4, %v21902_v30 }
 0xc4f   : > { %11491 = vrot.lane.b32.xlu1 %v21903_v20, %s17498_s4 }
 0xc50   : > { %11413 = vrot.lane.b32.xlu0 %v21836_v63, %s17498_s4  ;;  %15678 = vmatmul.mubr.msk.f32.gmra.mrb[96].mxu0 %vm1894_vm4, %v21904_v12  ;;  %v21908_v63 = vld [vmem:[#allocation125_spill] sm:$0xff] }
 0xc51   : > { %15680 = vmatprep.mubr.msk.f32.mxu0 %vm1894_vm4, %v21905_v39 }
 0xc53   : > { %11915 = vrot.lane.b32.xlu1 %v21850_v53, %s17498_s4  ;;  %v8894_v10 = vpop.xlane.xlu0 %8893  ;;  %v21911_v53 = vld [vmem:[#allocation126_spill] sm:$0xff] }
 0xc54   : > { %16679 = vrcp.f32 %v8894_v10  ;;  %11571 = vrot.lane.b32.xlu0 %v21906_v55, %s17498_s4  ;;  %15681 = vmatmul.mubr.msk.f32.gmra.mrb[98].mxu0 %vm1894_vm4, %v21907_v56 }
 0xc55   : > { %15683 = vmatprep.mubr.msk.f32.mxu0 %vm1894_vm4, %v21908_v63 }
 0xc57   : > { %v8897_v48 = vpop.xlane.xlu1 %8896 }
 0xc58   : > { %16681 = vrcp.f32 %v8897_v48  ;;  %11569 = vrot.lane.b32.xlu0 %v21909_v6, %s17498_s4  ;;  %15684 = vmatmul.mubr.msk.f32.gmra.mrb[100].mxu0 %vm1894_vm4, %v21910_v1  ;;  %v10189_v6 = vld [vmem:[#allocation19 + $0x10] sm:$0xff] }
 0xc59   : > { %15686 = vmatprep.mubr.msk.f32.mxu0 %vm1894_vm4, %v21911_v53 }
 0xc5b   : > { %v8900_v43 = vpop.xlane.xlu0 %8899 }
 0xc5c   : > { %16683 = vrcp.f32 %v8900_v43  ;;  %11839 = vrot.lane.b32.xlu0 %v21839_v60, %s17498_s4  ;;  %15687 = vmatmul.mubr.msk.f32.gmra.mrb[102].mxu0 %vm1894_vm4, %v21912_v46 }
 0xc5d   : > { %15771 = vmatprep.mubr.msk.f32.mxu0 %vm21778_vm13, %v21777_v15 }
 0xc5e   : > { %v16680_v31 = vpop.eup %16679 }
 0xc5f   : > { %v8956_v19 = vmul.f32 %v16680_v31, %v20272_v2  ;;  %v8903_v11 = vpop.xlane.xlu1 %8902 }
 0xc60   : > { %16685 = vrcp.f32 %v8903_v11 }
 0xc61   : > { %15772 = vmatmul.mubr.msk.f32.vlgmr.msra.gmra.mrb[104].mxu0 %vm1894_vm4, %v8956_v19 }
 0xc62   : > { %v16682_v22 = vpop.eup %16681  ;;  %15780 = vmatpush3.msra.mxu0 %v20251_v33  ;;  %15781 = vmatprep.mubr.msk.f32.mxu0 %vm21778_vm13, %v21777_v15 }
 0xc63   : > { %v8906_v60 = vpop.xlane.xlu0 %8905  ;;  %v8957_v27 = vmul.f32 %v16682_v22, %v20277_v5  ;;  %15789 = vmatprep.subr.mxu0 %v21777_v15 }
 0xc64   : > { %16687 = vrcp.f32 %v8906_v60 }
 0xc65   : > { %15777 = vmatmul.mubr.msk.f32.vlgmr.msra.gmra.mrb[120].mxu1 %vm1894_vm4, %v8957_v27 }
 0xc66   : > { %v16684_v54 = vpop.eup %16683  ;;  %15785 = vmatpush3.msra.mxu1 %v20245_v32  ;;  %15786 = vmatprep.mubr.msk.f32.mxu1 %vm21778_vm13, %v21777_v15 }
 0xc67   : > { %v8909_v2 = vpop.xlane.xlu1 %8908  ;;  %v8958_v33 = vmul.f32 %v16684_v54, %v20282_v35  ;;  %15794 = vmatprep.subr.mxu1 %v21777_v15 }
 0xc68   : > { %16689 = vrcp.f32 %v8909_v2 }
 0xc69   : > { %15782 = vmatmul.mubr.msk.f32.vlgmr.msra.gmra.mrb[106].mxu0 %vm1894_vm4, %v8958_v33 }
 0xc6a   : > { %v16686_v5 = vpop.eup %16685  ;;  %15790 = vmatpush3.msra.mxu0 %v20249_v29  ;;  %15791 = vmatprep.mubr.msk.f32.mxu0 %vm21778_vm13, %v21777_v15 }
 0xc6b   : > { %v8912_v13 = vpop.xlane.xlu0 %8911  ;;  %v8959_v32 = vmul.f32 %v16686_v5, %v20287_v3  ;;  %15799 = vmatprep.subr.mxu0 %v21777_v15 }
 0xc6c   : > { %16691 = vrcp.f32 %v8912_v13 }
 0xc6d   : > { %15787 = vmatmul.mubr.msk.f32.vlgmr.msra.gmra.mrb[122].mxu1 %vm1894_vm4, %v8959_v32 }
 0xc6e   : > { %v16688_v35 = vpop.eup %16687  ;;  %15795 = vmatpush3.msra.mxu1 %v20255_v57  ;;  %15796 = vmatprep.mubr.msk.f32.mxu1 %vm21778_vm13, %v21777_v15 }
 0xc6f   : > { %v8915_v34 = vpop.xlane.xlu1 %8914  ;;  %v8960_v29 = vmul.f32 %v16688_v35, %v20292_v28  ;;  %15804 = vmatprep.subr.mxu1 %v21777_v15 }
 0xc70   : > { %16693 = vrcp.f32 %v8915_v34 }
 0xc71   : > { %15792 = vmatmul.mubr.msk.f32.vlgmr.msra.gmra.mrb[108].mxu0 %vm1894_vm4, %v8960_v29 }
 0xc72   : > { %v16690_v3 = vpop.eup %16689  ;;  %15800 = vmatpush3.msra.mxu0 %v20253_v61  ;;  %15801 = vmatprep.mubr.msk.f32.mxu0 %vm21778_vm13, %v21777_v15 }
 0xc73   : > { %v8918_v30 = vpop.xlane.xlu0 %8917  ;;  %v8961_v57 = vmul.f32 %v16690_v3, %v20297_v26  ;;  %15809 = vmatprep.subr.mxu0 %v21777_v15 }
 0xc74   : > { %16695 = vrcp.f32 %v8918_v30 }
 0xc75   : > { %15797 = vmatmul.mubr.msk.f32.vlgmr.msra.gmra.mrb[124].mxu1 %vm1894_vm4, %v8961_v57 }
 0xc76   : > { %v16692_v28 = vpop.eup %16691  ;;  %15805 = vmatpush3.msra.mxu1 %v20259_v45  ;;  %15806 = vmatprep.mubr.msk.f32.mxu1 %vm21778_vm13, %v21777_v15 }
 0xc77   : > { %v8921_v20 = vpop.xlane.xlu1 %8920  ;;  %v8962_v61 = vmul.f32 %v16692_v28, %v20302_v50  ;;  %15814 = vmatprep.subr.mxu1 %v21777_v15 }
 0xc78   : > { %16697 = vrcp.f32 %v8921_v20 }
 0xc79   : > { %15802 = vmatmul.mubr.msk.f32.vlgmr.msra.gmra.mrb[110].mxu0 %vm1894_vm4, %v8962_v61 }
 0xc7a   : > { %v16694_v26 = vpop.eup %16693  ;;  %15810 = vmatpush3.msra.mxu0 %v20257_v18  ;;  %15811 = vmatprep.mubr.msk.f32.mxu0 %vm21778_vm13, %v21777_v15 }
 0xc7b   : > { %v8924_v12 = vpop.xlane.xlu0 %8923  ;;  %v8963_v45 = vmul.f32 %v16694_v26, %v20307_v58  ;;  %15819 = vmatprep.subr.mxu0 %v21777_v15 }
 0xc7c   : > { %16699 = vrcp.f32 %v8924_v12 }
 0xc7d   : > { %15807 = vmatmul.mubr.msk.f32.vlgmr.msra.gmra.mrb[126].mxu1 %vm1894_vm4, %v8963_v45 }
 0xc7e   : > { %v16696_v50 = vpop.eup %16695  ;;  %15815 = vmatpush3.msra.mxu1 %v20263_v47  ;;  %15816 = vmatprep.mubr.msk.f32.mxu1 %vm21778_vm13, %v21777_v15 }
 0xc7f   : > { %v8927_v39 = vpop.xlane.xlu1 %8926  ;;  %v8964_v18 = vmul.f32 %v16696_v50, %v20312_v16  ;;  %15824 = vmatprep.subr.mxu1 %v21777_v15 }
 0xc80   : > { %16701 = vrcp.f32 %v8927_v39 }
 0xc81   : > { %15812 = vmatmul.mubr.msk.f32.vlgmr.msra.gmra.mrb[112].mxu0 %vm1894_vm4, %v8964_v18 }
 0xc82   : > { %v16698_v58 = vpop.eup %16697  ;;  %15820 = vmatpush3.msra.mxu0 %v20261_v24  ;;  %15821 = vmatprep.mubr.msk.f32.mxu0 %vm21778_vm13, %v21777_v15 }
 0xc83   : > { %v8930_v10 = vpop.xlane.xlu0 %8929  ;;  %v8965_v47 = vmul.f32 %v16698_v58, %v20317_v23  ;;  %15829 = vmatprep.subr.mxu0 %v21777_v15 }
 0xc84   : > { %16703 = vrcp.f32 %v8930_v10 }
 0xc85   : > { %15817 = vmatmul.mubr.msk.f32.vlgmr.msra.gmra.mrb[128].mxu1 %vm1894_vm4, %v8965_v47 }
 0xc86   : > { %v16700_v16 = vpop.eup %16699  ;;  %15825 = vmatpush3.msra.mxu1 %v20444_v21  ;;  %15826 = vmatprep.mubr.msk.f32.mxu1 %vm21778_vm13, %v21777_v15 }
 0xc87   : > { %v8933_v55 = vpop.xlane.xlu1 %8932  ;;  %v8966_v24 = vmul.f32 %v16700_v16, %v20322_v59  ;;  %15834 = vmatprep.subr.mxu1 %v21777_v15 }
 0xc88   : > { %16705 = vrcp.f32 %v8933_v55 }
 0xc89   : > { %15822 = vmatmul.mubr.msk.f32.vlgmr.msra.gmra.mrb[114].mxu0 %vm1894_vm4, %v8966_v24 }
 0xc8a   : > { %v16702_v23 = vpop.eup %16701  ;;  %15830 = vmatpush3.msra.mxu0 %v20466_v14  ;;  %15831 = vmatprep.mubr.msk.f32.mxu0 %vm21778_vm13, %v21777_v15 }
 0xc8b   : > { %v8936_v56 = vpop.xlane.xlu1 %8935  ;;  %v8967_v21 = vmul.f32 %v16702_v23, %v20330_v17  ;;  %15839 = vmatprep.subr.mxu0 %v21777_v15 }
 0xc8c   : > { %16707 = vrcp.f32 %v8936_v56 }
 0xc8d   : > { %15827 = vmatmul.mubr.msk.f32.vlgmr.msra.gmra.mrb[130].mxu1 %vm1894_vm4, %v8967_v21 }
 0xc8e   : > { %v16704_v59 = vpop.eup %16703  ;;  %15835 = vmatpush3.msra.mxu1 %v20456_v8  ;;  %15836 = vmatprep.mubr.msk.f32.mxu1 %vm21778_vm13, %v21777_v15 }
 0xc8f   : > { %v10037_v63 = vpop.permute.xlu1 %10036  ;;  %v8939_v48 = vpop.xlane.xlu0 %8938  ;;  %v8968_v14 = vmul.f32 %v16704_v59, %v20337_v51  ;;  %15844 = vmatprep.subr.mxu1 %v21777_v15 }
 0xc90   : > { %16709 = vrcp.f32 %v8939_v48 }
 0xc91   : > { %15832 = vmatmul.mubr.msk.f32.vlgmr.msra.gmra.mrb[116].mxu0 %vm1894_vm4, %v8968_v14 }
 0xc92   : > { %v16706_v17 = vpop.eup %16705  ;;  %15840 = vmatpush3.msra.mxu0 %v10037_v63  ;;  %15841 = vmatprep.mubr.msk.f32.mxu0 %vm21778_vm13, %v21777_v15 }
 0xc93   : > { %v10402_v1 = vpop.permute.xlu1 %10401  ;;  %v10113_v8 = vpop.permute.xlu0 %10112  ;;  %v8969_v53 = vmul.f32 %v16706_v17, %v20341_v49  ;;  %15849 = vmatprep.subr.mxu0 %v10189_v6 }
 0xc95   : > { %15837 = vmatmul.mubr.msk.f32.vlgmr.msra.gmra.mrb[132].mxu1 %vm1894_vm4, %v8969_v53 }
 0xc96   : > { %v16708_v43 = vpop.eup %16707  ;;  %15845 = vmatpush3.msra.mxu1 %v10113_v8  ;;  %15846 = vmatprep.mubr.msk.f32.mxu1 %vm21778_vm13, %v21777_v15 }
 0xc97   : > { %v10480_v51 = vpop.permute.xlu1 %10479  ;;  %v10400_v46 = vpop.permute.xlu0 %10399  ;;  %v8970_v31 = vmul.f32 %v16708_v43, %v20345_v38  ;;  %15875 = vmatprep.subr.mxu1 %v21777_v15 }
 0xc99   : > { %15842 = vmatmul.mubr.msk.f32.vlgmr.msra.gmra.mrb[118].mxu0 %vm1894_vm4, %v8970_v31 }
 0xc9a   : > { %v16710_v19 = vpop.eup %16709  ;;  %15850 = vmatpush3.msra.mxu0 %v10189_v6 }
 0xc9b   : > { %v10558_v11 = vpop.permute.xlu1 %10557  ;;  %v10478_v49 = vpop.permute.xlu0 %10477  ;;  %v8971_v22 = vmul.f32 %v16710_v19, %v20349_v37  ;;  %15915 = vmatprep.subr.mxu0 %v21777_v15 }
 0xc9d   : > { %15847 = vmatmul.mubr.msk.f32.vlgmr.msra.gmra.mrb[134].mxu1 %vm1894_vm4, %v8971_v22 }
 0xc9e   : > { %15876 = vmatpush3.xpose.msk.msra.mxu1 %vm1894_vm4, %v10402_v1  ;;  %15877 = vmatprep.mubr.msk.f32.mxu1 %vm21778_vm13, %v21777_v15 }
 0xc9f   : > { %v10636_v38 = vpop.permute.xlu1 %10635  ;;  %v10556_v60 = vpop.permute.xlu0 %10555  ;;  %15880 = vmatprep.subr.mxu1 %v21777_v15 }
 0xca1   : > { %15878 = vmatmul.mubr.msk.f32.vlgmr.msra.gmra.mrb[136].mxu1 %vm1894_vm4, %v10400_v46 }
 0xca2   : > { %15881 = vmatpush3.xpose.msk.msra.mxu1 %vm1894_vm4, %v10480_v51  ;;  %15882 = vmatprep.mubr.msk.f32.mxu1 %vm21778_vm13, %v21777_v15 }
 0xca3   : > { %v10714_v37 = vpop.permute.xlu1 %10713  ;;  %v10634_v27 = vpop.permute.xlu0 %10633  ;;  %15885 = vmatprep.subr.mxu1 %v21777_v15 }
 0xca5   : > { %15883 = vmatmul.mubr.msk.f32.vlgmr.msra.gmra.mrb[138].mxu1 %vm1894_vm4, %v10478_v49 }
 0xca6   : > { %15886 = vmatpush3.xpose.msk.msra.mxu1 %vm1894_vm4, %v10558_v11  ;;  %15887 = vmatprep.mubr.msk.f32.mxu1 %vm21778_vm13, %v21777_v15 }
 0xca7   : > { %v10792_v54 = vpop.permute.xlu1 %10791  ;;  %v10712_v2 = vpop.permute.xlu0 %10711  ;;  %15890 = vmatprep.subr.mxu1 %v21777_v15 }
 0xca9   : > { %15888 = vmatmul.mubr.msk.f32.vlgmr.msra.gmra.mrb[140].mxu1 %vm1894_vm4, %v10556_v60 }
 0xcaa   : > { %15891 = vmatpush3.xpose.msk.msra.mxu1 %vm1894_vm4, %v10636_v38  ;;  %15892 = vmatprep.mubr.msk.f32.mxu1 %vm21778_vm13, %v21777_v15 }
 0xcab   : > { %v10870_v33 = vpop.permute.xlu1 %10869  ;;  %v10790_v5 = vpop.permute.xlu0 %10789  ;;  %15895 = vmatprep.subr.mxu1 %v21777_v15 }
 0xcad   : > { %15893 = vmatmul.mubr.msk.f32.vlgmr.msra.gmra.mrb[142].mxu1 %vm1894_vm4, %v10634_v27 }
 0xcae   : > { %15896 = vmatpush3.xpose.msk.msra.mxu1 %vm1894_vm4, %v10714_v37  ;;  %15897 = vmatprep.mubr.msk.f32.mxu1 %vm21778_vm13, %v21777_v15 }
 0xcaf   : > { %v10948_v13 = vpop.permute.xlu1 %10947  ;;  %v10868_v32 = vpop.permute.xlu0 %10867  ;;  %15900 = vmatprep.subr.mxu1 %v21777_v15 }
 0xcb1   : > { %15898 = vmatmul.mubr.msk.f32.vlgmr.msra.gmra.mrb[144].mxu1 %vm1894_vm4, %v10712_v2 }
 0xcb2   : > { %15901 = vmatpush3.xpose.msk.msra.mxu1 %vm1894_vm4, %v10792_v54  ;;  %15902 = vmatprep.mubr.msk.f32.mxu1 %vm21778_vm13, %v21777_v15 }
 0xcb3   : > { %v11026_v35 = vpop.permute.xlu1 %11025  ;;  %v10946_v34 = vpop.permute.xlu0 %10945  ;;  %15905 = vmatprep.subr.mxu1 %v21777_v15 }
 0xcb5   : > { %15903 = vmatmul.mubr.msk.f32.vlgmr.msra.gmra.mrb[146].mxu1 %vm1894_vm4, %v10790_v5 }
 0xcb6   : > { %15906 = vmatpush3.xpose.msk.msra.mxu1 %vm1894_vm4, %v10870_v33  ;;  %15907 = vmatprep.mubr.msk.f32.mxu1 %vm21778_vm13, %v21777_v15 }
 0xcb7   : > { %v20607_v29 = vpop.permute.xlu1 %11023  ;;  %v11104_v3 = vpop.permute.xlu0 %11103  ;;  %15910 = vmatprep.subr.mxu1 %v21777_v15 }
 0xcb9   : > { %15908 = vmatmul.mubr.msk.f32.vlgmr.msra.gmra.mrb[148].mxu1 %vm1894_vm4, %v10868_v32 }
 0xcba   : > { %15911 = vmatpush3.xpose.msk.msra.mxu1 %vm1894_vm4, %v10948_v13  ;;  %15912 = vmatprep.mubr.msk.f32.mxu1 %vm21778_vm13, %v21777_v15 }
 0xcbb   : > { %v20614_v30 = vpop.permute.xlu1 %11181  ;;  %v11102_v57 = vpop.permute.xlu0 %11101  ;;  %15920 = vmatprep.subr.mxu1 %v21777_v15 }
 0xcbd   : > { %15913 = vmatmul.mubr.msk.f32.vlgmr.msra.gmra.mrb[150].mxu1 %vm1894_vm4, %v10946_v34 }
 0xcbe   : > { %15921 = vmatpush3.xpose.msk.msra.mxu1 %vm1894_vm4, %v11104_v3  ;;  %15922 = vmatprep.mubr.msk.f32.mxu1 %vm21778_vm13, %v21777_v15 }
 0xcbf   : > { %v20621_v28 = vpop.permute.xlu1 %11179  ;;  %v11260_v20 = vpop.permute.xlu0 %11259  ;;  %15930 = vmatprep.subr.mxu1 %v21777_v15 }
 0xcc1   : > { %15923 = vmatmul.mubr.msk.f32.vlgmr.msra.gmra.mrb[152].mxu1 %vm1894_vm4, %v11102_v57 }
 0xcc2   : > { %15931 = vmatpush3.xpose.msk.msra.mxu1 %vm1894_vm4, %v11260_v20  ;;  %15932 = vmatprep.mubr.msk.f32.mxu1 %vm21778_vm13, %v21777_v15 }
 0xcc3   : > { %v20628_v61 = vpop.permute.xlu1 %11337  ;;  %v11258_v26 = vpop.permute.xlu0 %11257  ;;  %15940 = vmatprep.subr.mxu1 %v21777_v15 }
 0xcc5   : > { %15933 = vmatmul.mubr.msk.f32.vlgmr.msra.gmra.mrb[154].mxu1 %vm1894_vm4, %v11258_v26 }
 0xcc6   : > { %15942 = vmatprep.mubr.msk.f32.mxu1 %vm21778_vm13, %v21777_v15 }
 0xcc7   : > { %v20634_v12 = vpop.permute.xlu1 %11335  ;;  %v11416_v45 = vpop.permute.xlu0 %11415 }
 0xcc8   : > { %15941 = vmatpush3.xpose.msk.msra.mxu1 %vm1894_vm4, %v11416_v45 }
 0xcc9   : > { %15950 = vmatprep.subr.mxu1 %v21777_v15 }
 0xccb   : > { %v20638_v50 = vpop.permute.xlu1 %11493  ;;  %v11414_v39 = vpop.permute.xlu0 %11413 }
 0xccc   : > { %15943 = vmatmul.mubr.msk.f32.vlgmr.msra.gmra.mrb[156].mxu1 %vm1894_vm4, %v11414_v39 }
 0xccd   : > { %15952 = vmatprep.mubr.msk.f32.mxu1 %vm21778_vm13, %v21777_v15 }
 0xccf   : > { %v20643_v18 = vpop.permute.xlu1 %11491  ;;  %v11572_v58 = vpop.permute.xlu0 %11571 }
 0xcd0   : > { %15951 = vmatpush3.xpose.msk.msra.mxu1 %vm1894_vm4, %v11572_v58 }
 0xcd1   : > { %15960 = vmatprep.subr.mxu1 %v21777_v15 }
 0xcd3   : > { %v11916_v10 = vpop.permute.xlu1 %11915  ;;  %v11570_v47 = vpop.permute.xlu0 %11569 }
 0xcd4   : > { %15953 = vmatmul.mubr.msk.f32.vlgmr.msra.gmra.mrb[158].mxu1 %vm1894_vm4, %v11570_v47 }
 0xcd5   : > { %15961 = vmatpush3.msra.mxu1 %v11916_v10  ;;  %15962 = vmatprep.mubr.msk.f32.mxu1 %vm21778_vm13, %v21777_v15 }
 0xcd6   : > { %15970 = vmatprep.subr.mxu1 %v21777_v15 }
 0xcd7   : > { %v11840_v36 = vpop.permute.xlu0 %11839 }
 0xd34   : > { %v9044_v16 = vpop.f32.mrb[104].mxu0 }
 0xd35   : > { %v15773_v55 = vpop.f32.mrb[105].mxu0  ;;  %15851 = vmatprep.mubr.msk.f32.mxu0 %vm1894_vm4, %v9044_v16 }
 0xd38   : > { %v9120_v24 = vpop.f32.mrb[120].mxu1 }
 0xd39   : > { %v15778_v23 = vpop.f32.mrb[121].mxu1  ;;  %15852 = vmatmul.mubr.msk.f32.vlgmr.msra.gmra.mrb[88].mxu0 %vm1894_vm4, %v9120_v24 }
 0xd3a   : > { %15916 = vmatpush3.xpose.msk.msra.mxu0 %vm1894_vm4, %v11026_v35 }
 0xd3b   : > { %15925 = vmatprep.subr.mxu0 %v21777_v15 }
 0xd3c   : > { %v9196_v56 = vpop.f32.mrb[106].mxu0 }
 0xd3d   : > { %v15783_v21 = vpop.f32.mrb[107].mxu0  ;;  %15854 = vmatprep.mubr.msk.f32.mxu0 %vm1894_vm4, %v9196_v56 }
 0xd40   : > { %v9272_v59 = vpop.f32.mrb[122].mxu1 }
 0xd41   : > { %v15788_v63 = vpop.f32.mrb[123].mxu1  ;;  %15855 = vmatmul.mubr.msk.f32.gmra.mrb[90].mxu0 %vm1894_vm4, %v9272_v59 }
 0xd44   : > { %v9348_v48 = vpop.f32.mrb[108].mxu0 }
 0xd45   : > { %v15793_v14 = vpop.f32.mrb[109].mxu0  ;;  %15857 = vmatprep.mubr.msk.f32.mxu0 %vm1894_vm4, %v9348_v48 }
 0xd48   : > { %v9424_v6 = vpop.f32.mrb[124].mxu1 }
 0xd49   : > { %v15798_v17 = vpop.f32.mrb[125].mxu1  ;;  %15858 = vmatmul.mubr.msk.f32.gmra.mrb[92].mxu0 %vm1894_vm4, %v9424_v6 }
 0xd4c   : > { %v9500_v1 = vpop.f32.mrb[110].mxu0 }
 0xd4d   : > { %v15803_v8 = vpop.f32.mrb[111].mxu0  ;;  %15860 = vmatprep.mubr.msk.f32.mxu0 %vm1894_vm4, %v9500_v1 }
 0xd50   : > { %v9576_v53 = vpop.f32.mrb[126].mxu1 }
 0xd51   : > { %v15808_v43 = vpop.f32.mrb[127].mxu1  ;;  %15861 = vmatmul.mubr.msk.f32.gmra.mrb[94].mxu0 %vm1894_vm4, %v9576_v53 }
 0xd54   : > { %v9652_v51 = vpop.f32.mrb[112].mxu0 }
 0xd55   : > { %v15813_v46 = vpop.f32.mrb[113].mxu0  ;;  %15863 = vmatprep.mubr.msk.f32.mxu0 %vm1894_vm4, %v9652_v51 }
 0xd58   : > { %v9728_v31 = vpop.f32.mrb[128].mxu1 }
 0xd59   : > { %v15818_v19 = vpop.f32.mrb[129].mxu1  ;;  %15864 = vmatmul.mubr.msk.f32.gmra.mrb[96].mxu0 %vm1894_vm4, %v9728_v31 }
 0xd5c   : > { %v9804_v11 = vpop.f32.mrb[114].mxu0 }
 0xd5d   : > { %v15823_v49 = vpop.f32.mrb[115].mxu0  ;;  %15866 = vmatprep.mubr.msk.f32.mxu0 %vm1894_vm4, %v9804_v11 }
 0xd60   : > { %v9880_v22 = vpop.f32.mrb[130].mxu1 }
 0xd61   : > { %v15828_v38 = vpop.f32.mrb[131].mxu1  ;;  %15867 = vmatmul.mubr.msk.f32.gmra.mrb[98].mxu0 %vm1894_vm4, %v9880_v22 }
 0xd64   : > { %v9956_v60 = vpop.f32.mrb[116].mxu0 }
 0xd65   : > { %v15833_v37 = vpop.f32.mrb[117].mxu0  ;;  %15869 = vmatprep.mubr.msk.f32.mxu0 %vm1894_vm4, %v9956_v60 }
 0xd68   : > { %v10032_v27 = vpop.f32.mrb[132].mxu1 }
 0xd69   : > { %v15838_v54 = vpop.f32.mrb[133].mxu1  ;;  %15870 = vmatmul.mubr.msk.f32.gmra.mrb[100].mxu0 %vm1894_vm4, %v10032_v27 }
 0xd6c   : > { %v10108_v2 = vpop.f32.mrb[118].mxu0 }
 0xd6d   : > { %v15843_v33 = vpop.f32.mrb[119].mxu0  ;;  %15872 = vmatprep.mubr.msk.f32.mxu0 %vm1894_vm4, %v10108_v2 }
 0xd70   : > { %v10184_v5 = vpop.f32.mrb[134].mxu1 }
 0xd71   : > { %v15848_v13 = vpop.f32.mrb[135].mxu1  ;;  %15873 = vmatmul.mubr.msk.f32.gmra.mrb[102].mxu0 %vm1894_vm4, %v10184_v5 }
 0xd72   : > { %15917 = vmatprep.mubr.msk.f32.mxu0 %vm21778_vm13, %v21777_v15 }
 0xd74   : > { %v10473_v32 = vpop.f32.mrb[136].mxu1 }
 0xd75   : > { %v20673_v35 = vsel %vm19138_vm12, %v10473_v32, -1e+09  ;;  %v15879_v34 = vpop.f32.mrb[137].mxu1  ;;  %15918 = vmatmul.mubr.msk.f32.vlgmr.msra.gmra.mrb[120].mxu0 %vm1894_vm4, %v20607_v29 }
 0xd76   : > { %v11663_v3 = vsel %vm1894_vm4, %v20673_v35, -inf  ;;  %15926 = vmatpush3.xpose.msk.msra.mxu0 %vm1894_vm4, %v20614_v30  ;;  %15927 = vmatprep.mubr.msk.f32.mxu0 %vm21778_vm13, %v21777_v15 }
 0xd77   : > { %11664 = vmax.xlane.f32.xlu1 %v11663_v3  ;;  %15935 = vmatprep.subr.mxu0 %v21777_v15 }
 0xd78   : > { %v10551_v57 = vpop.f32.mrb[138].mxu1 }
 0xd79   : > { %v20686_v0 = vsel %vm18958_vm7, %v10551_v57, -1e+09  ;;  %v15884_v20 = vpop.f32.mrb[139].mxu1  ;;  %15928 = vmatmul.mubr.msk.f32.vlgmr.msra.gmra.mrb[122].mxu0 %vm1894_vm4, %v20621_v28 }
 0xd7a   : > { %v11666_v29 = vsel %vm1894_vm4, %v20686_v0, -inf  ;;  %15936 = vmatpush3.xpose.msk.msra.mxu0 %vm1894_vm4, %v20628_v61  ;;  %15937 = vmatprep.mubr.msk.f32.mxu0 %vm21778_vm13, %v21777_v15 }
 0xd7b   : > { %11667 = vmax.xlane.f32.xlu0 %v11666_v29  ;;  %15945 = vmatprep.subr.mxu0 %v21777_v15 }
 0xd7c   : > { %v10629_v30 = vpop.f32.mrb[140].mxu1 }
 0xd7d   : > { %v20699_v62 = vsel %vm19157_vm10, %v10629_v30, -1e+09  ;;  %v15889_v26 = vpop.f32.mrb[141].mxu1  ;;  %15938 = vmatmul.mubr.msk.f32.vlgmr.msra.gmra.mrb[124].mxu0 %vm1894_vm4, %v20634_v12 }
 0xd7e   : > { %v11669_v28 = vsel %vm1894_vm4, %v20699_v62, -inf  ;;  %15946 = vmatpush3.xpose.msk.msra.mxu0 %vm1894_vm4, %v20638_v50  ;;  %15947 = vmatprep.mubr.msk.f32.mxu0 %vm21778_vm13, %v21777_v15 }
 0xd7f   : > { %11670 = vmax.xlane.f32.xlu0 %v11669_v28  ;;  %15955 = vmatprep.subr.mxu0 %v21777_v15 }
 0xd80   : > { %v10707_v61 = vpop.f32.mrb[142].mxu1 }
 0xd81   : > { %v20712_v45 = vsel %vm18973_vm9, %v10707_v61, -1e+09  ;;  %v15894_v39 = vpop.f32.mrb[143].mxu1  ;;  %15948 = vmatmul.mubr.msk.f32.vlgmr.msra.gmra.mrb[126].mxu0 %vm1894_vm4, %v20643_v18 }
 0xd82   : > { %v11672_v12 = vsel %vm1894_vm4, %v20712_v45, -inf  ;;  %15956 = vmatpush3.msra.mxu0 %v11840_v36  ;;  %15957 = vmatprep.mubr.msk.f32.mxu0 %vm21778_vm13, %v21777_v15 }
 0xd83   : > { %11673 = vmax.xlane.f32.xlu1 %v11672_v12  ;;  %15965 = vmatprep.subr.mxu0 %v21777_v15 }
 0xd84   : > { %v10785_v50 = vpop.f32.mrb[144].mxu1 }
 0xd85   : > { %v11651_v42 = vsel %vm19169_vm15, %v10785_v50, -1e+09  ;;  %v15899_v58 = vpop.f32.mrb[145].mxu1 }
 0xd86   : > { %v11675_v10 = vsel %vm1894_vm4, %v11651_v42, -inf }
 0xd87   : > { %11676 = vmax.xlane.f32.xlu0 %v11675_v10 }
 0xd88   : > { %v10863_v47 = vpop.f32.mrb[146].mxu1 }
 0xd89   : > { %v20726_v18 = vsel %vm18991_vm11, %v10863_v47, -1e+09  ;;  %v15904_v16 = vpop.f32.mrb[147].mxu1  ;;  %vm21933_vm11 = vcmask 261120  }
 0xd8a   : > { %v11678_v55 = vsel %vm1894_vm4, %v20726_v18, -inf }
 0xd8b   : > { %11679 = vmax.xlane.f32.xlu1 %v11678_v55 }
 0xd8c   : > { %v10941_v24 = vpop.f32.mrb[148].mxu1 }
 0xd8d   : > { %v20732_v23 = vsel %vm19186_vm2, %v10941_v24, -1e+09  ;;  %v15909_v52 = vpop.f32.mrb[149].mxu1 }
 0xd8e   : > { %v11681_v56 = vsel %vm1894_vm4, %v20732_v23, -inf }
 0xd8f   : > { %11682 = vmax.xlane.f32.xlu0 %v11681_v56 }
 0xd90   : > { %v11019_v21 = vpop.f32.mrb[150].mxu1 }
 0xd91   : > { %v20738_v7 = vsel %vm19012_vm14, %v11019_v21, -1e+09  ;;  %v15914_v59 = vpop.f32.mrb[151].mxu1 }
 0xd92   : > { %v11684_v63 = vsel %vm1894_vm4, %v20738_v7, -inf }
 0xd93   : > { %11685 = vmax.xlane.f32.xlu1 %v11684_v63 }
 0xd94   : > { %v11175_v48 = vpop.f32.mrb[152].mxu1 }
 0xd95   : > { %v20744_v4 = vsel %vm19027_vm1, %v11175_v48, -1e+09  ;;  %v15924_v14 = vpop.f32.mrb[153].mxu1 }
 0xd96   : > { %v11690_v6 = vsel %vm1894_vm4, %v20744_v4, -inf }
 0xd97   : > { %11691 = vmax.xlane.f32.xlu1 %v11690_v6 }
 0xd98   : > { %v11331_v17 = vpop.f32.mrb[154].mxu1 }
 0xd99   : > { %v20750_v9 = vsel %vm19036_vm5, %v11331_v17, -1e+09  ;;  %v15934_v1 = vpop.f32.mrb[155].mxu1 }
 0xd9a   : > { %v11696_v8 = vsel %vm1894_vm4, %v20750_v9, -inf }
 0xd9b   : > { %11697 = vmax.xlane.f32.xlu1 %v11696_v8 }
 0xd9f   : > { %v11487_v53 = vpop.f32.mrb[156].mxu1 }
 0xda0   : > { %v20756_v40 = vsel %vm21863_vm8, %v11487_v53, -1e+09  ;;  %v15944_v51 = vpop.f32.mrb[157].mxu1 }
 0xda1   : > { %v11702_v46 = vsel %vm1894_vm4, %v20756_v40, -inf }
 0xda2   : > { %11703 = vmax.xlane.f32.xlu1 %v11702_v46 }
 0xda7   : > { %v11643_v31 = vpop.f32.mrb[158].mxu1 }
 0xda8   : > { %v20762_v25 = vsel %vm21865_vm6, %v11643_v31, -1e+09  ;;  %v15954_v11 = vpop.f32.mrb[159].mxu1 }
 0xda9   : > { %v11708_v49 = vsel %vm1894_vm4, %v20762_v25, -inf }
 0xdaa   : > { %11709 = vmax.xlane.f32.xlu1 %v11708_v49 }
 0xe04   : > { %v11665_v22 = vpop.xlane.xlu1 %11664 }
 0xe05   : > { %v11711_v38 = vsub.f32 %v20673_v35, %v11665_v22 }
 0xe07   : > { %v11727_v60 = vmul.f32 1.442695, %v11711_v38 }
 0xe08   : > { %v11668_v37 = vpop.xlane.xlu0 %11667 }
 0xe09   : > { %16711 = vpow2.f32 %v11727_v60  ;;  %v11712_v27 = vsub.f32 %v20686_v0, %v11668_v37 }
 0xe0b   : > { %v11729_v54 = vmul.f32 1.442695, %v11712_v27 }
 0xe0c   : > { %v11671_v2 = vpop.xlane.xlu0 %11670 }
 0xe0d   : > { %16713 = vpow2.f32 %v11729_v54  ;;  %v11713_v33 = vsub.f32 %v20699_v62, %v11671_v2 }
 0xe0f   : > { %v11731_v5 = vmul.f32 1.442695, %v11713_v33 }
 0xe10   : > { %v11674_v13 = vpop.xlane.xlu1 %11673 }
 0xe11   : > { %16715 = vpow2.f32 %v11731_v5  ;;  %v11714_v32 = vsub.f32 %v20712_v45, %v11674_v13 }
 0xe13   : > { %v20770_v34 = vpop.eup %16711  ;;  %v11733_v3 = vmul.f32 1.442695, %v11714_v32 }
 0xe14   : > { %v11677_v57 = vpop.xlane.xlu0 %11676  ;;  %v11759_v35 = vsel %vm1894_vm4, %v20770_v34, 0.0 }
 0xe15   : > { %16717 = vpow2.f32 %v11733_v3  ;;  %v11715_v20 = vsub.f32 %v11651_v42, %v11677_v57  ;;  %11760 = vadd.xlane.f32.xlu0 %v11759_v35 }
 0xe17   : > { %v20774_v0 = vpop.eup %16713  ;;  %v11735_v29 = vmul.f32 1.442695, %v11715_v20 }
 0xe18   : > { %v11680_v30 = vpop.xlane.xlu1 %11679  ;;  %v11762_v62 = vsel %vm1894_vm4, %v20774_v0, 0.0 }
 0xe19   : > { %16719 = vpow2.f32 %v11735_v29  ;;  %v11716_v26 = vsub.f32 %v20726_v18, %v11680_v30  ;;  %11763 = vadd.xlane.f32.xlu1 %v11762_v62  ;;  %v21917_v30 = vld [vmem:[#allocation110_spill] sm:$0xff] }
 0xe1a   : > { %vm21918_vm7 = vnez %v21917_v30 }
 0xe1b   : > { %v20779_v28 = vpop.eup %16715  ;;  %v11737_v61 = vmul.f32 1.442695, %v11716_v26 }
 0xe1c   : > { %v11683_v36 = vpop.xlane.xlu0 %11682  ;;  %v11765_v45 = vsel %vm1894_vm4, %v20779_v28, 0.0 }
 0xe1d   : > { %16721 = vpow2.f32 %v11737_v61  ;;  %v11717_v39 = vsub.f32 %v20732_v23, %v11683_v36  ;;  %11766 = vadd.xlane.f32.xlu0 %v11765_v45  ;;  %v21919_v61 = vld [vmem:[#allocation77_spill] sm:$0xff] }
 0xe1f   : > { %v20784_v12 = vpop.eup %16717  ;;  %v11739_v50 = vmul.f32 1.442695, %v11717_v39  ;;  %v21920_v39 = vld [vmem:[#allocation111_spill] sm:$0xff] }
 0xe20   : > { %v11686_v42 = vpop.xlane.xlu1 %11685  ;;  %v11768_v58 = vsel %vm1894_vm4, %v20784_v12, 0.0  ;;  %vm21921_vm9 = vnez %v21920_v39 }
 0xe21   : > { %16723 = vpow2.f32 %v11739_v50  ;;  %v11718_v10 = vsub.f32 %v20738_v7, %v11686_v42  ;;  %11769 = vadd.xlane.f32.xlu1 %v11768_v58  ;;  %v21922_v58 = vld [vmem:[#allocation82_spill] sm:$0xff] }
 0xe23   : > { %v20789_v47 = vpop.eup %16719  ;;  %v11741_v18 = vmul.f32 1.442695, %v11718_v10 }
 0xe24   : > { %v11692_v16 = vpop.xlane.xlu1 %11691  ;;  %v11771_v55 = vsel %vm1894_vm4, %v20789_v47, 0.0 }
 0xe25   : > { %16725 = vpow2.f32 %v11741_v18  ;;  %v11720_v24 = vsub.f32 %v20744_v4, %v11692_v16  ;;  %11772 = vadd.xlane.f32.xlu0 %v11771_v55  ;;  %v21923_v16 = vld [vmem:[#allocation86_spill] sm:$0xff] }
 0xe27   : > { %v20794_v23 = vpop.eup %16721  ;;  %v11745_v52 = vmul.f32 1.442695, %v11720_v24  ;;  %v21924_v24 = vld [vmem:[#allocation90_spill] sm:$0xff] }
 0xe28   : > { %v11698_v56 = vpop.xlane.xlu1 %11697  ;;  %v11774_v21 = vsel %vm1894_vm4, %v20794_v23, 0.0 }
 0xe29   : > { %16727 = vpow2.f32 %v11745_v52  ;;  %v11722_v7 = vsub.f32 %v20750_v9, %v11698_v56  ;;  %11775 = vadd.xlane.f32.xlu1 %v11774_v21  ;;  %v21925_v52 = vld [vmem:[#allocation92_spill] sm:$0xff]  ;;  %v21926_v56 = vld [vmem:[#allocation94_spill] sm:$0xff] }
 0xe2a   : > { %v21927_v21 = vld [vmem:[#allocation78_spill] sm:$0xff] }
 0xe2b   : > { %v20799_v59 = vpop.eup %16723  ;;  %v11749_v63 = vmul.f32 1.442695, %v11722_v7  ;;  %v21928_v7 = vld [vmem:[#allocation81_spill] sm:$0xff] }
 0xe2c   : > { %v20801_v48 = vpop.f32.mrb[96].mxu0  ;;  %v11777_v4 = vsel %vm1894_vm4, %v20799_v59, 0.0 }
 0xe2d   : > { %16729 = vpow2.f32 %v11749_v63  ;;  %v20805_v14 = vpop.f32.mrb[97].mxu0  ;;  %11778 = vadd.xlane.f32.xlu0 %v11777_v4  ;;  %v21929_v63 = vld [vmem:[#allocation85_spill] sm:$0xff] }
 0xe2e   : > { %v21930_v4 = vld [vmem:[#allocation89_spill] sm:$0xff] }
 0xe2f   : > { %v20807_v6 = vpop.eup %16725  ;;  %v11704_v17 = vpop.xlane.xlu1 %11703 }
 0xe30   : > { %v11724_v1 = vsub.f32 %v20756_v40, %v11704_v17  ;;  %v11780_v9 = vsel %vm1894_vm4, %v20807_v6, 0.0  ;;  %v21931_v17 = vld [vmem:[#allocation91_spill] sm:$0xff] }
 0xe31   : > { %11781 = vadd.xlane.f32.xlu1 %v11780_v9 }
 0xe32   : > { %v11753_v8 = vmul.f32 1.442695, %v11724_v1  ;;  %v21932_v1 = vld [vmem:[#allocation93_spill] sm:$0xff] }
 0xe33   : > { %v20812_v53 = vpop.eup %16727 }
 0xe34   : > { %16731 = vpow2.f32 %v11753_v8  ;;  %v20814_v43 = vpop.f32.mrb[98].mxu0  ;;  %v11786_v51 = vsel %vm1894_vm4, %v20812_v53, 0.0 }
 0xe35   : > { %v20818_v46 = vpop.f32.mrb[99].mxu0  ;;  %11787 = vadd.xlane.f32.xlu1 %v11786_v51 }
 0xe37   : > { %v20820_v31 = vpop.eup %16729  ;;  %v11710_v38 = vpop.xlane.xlu1 %11709 }
 0xe38   : > { %v11792_v40 = vsel %vm1894_vm4, %v20820_v31, 0.0  ;;  %v11726_v37 = vsub.f32 %v20762_v25, %v11710_v38 }
 0xe39   : > { %11793 = vadd.xlane.f32.xlu1 %v11792_v40 }
 0xe3a   : > { %v11757_v2 = vmul.f32 1.442695, %v11726_v37 }
 0xe3c   : > { %v20824_v19 = vpop.f32.mrb[100].mxu0  ;;  %16733 = vpow2.f32 %v11757_v2 }
 0xe3d   : > { %v20826_v11 = vpop.f32.mrb[101].mxu0 }
 0xe3e   : > { %v20828_v49 = vpop.eup %16731 }
 0xe3f   : > { %v11798_v22 = vsel %vm1894_vm4, %v20828_v49, 0.0 }
 0xe40   : > { %11799 = vadd.xlane.f32.xlu1 %v11798_v22 }
 0xe44   : > { %v20832_v60 = vpop.f32.mrb[102].mxu0 }
 0xe45   : > { %v20835_v27 = vpop.f32.mrb[103].mxu0 }
 0xe46   : > { %v20865_v18 = vpop.eup %16733 }
 0xe47   : > { %v11804_v55 = vsel %vm1894_vm4, %v20865_v18, 0.0 }
 0xe48   : > { %v11097_v54 = vpop.f32.mrb[120].mxu0 }
 0xe49   : > { %v20839_v5 = vsel %vm21830_vm3, %v11097_v54, -1e+09  ;;  %v15919_v13 = vpop.f32.mrb[121].mxu0 }
 0xe4a   : > { %v11687_v32 = vsel %vm1894_vm4, %v20839_v5, -inf }
 0xe4b   : > { %11688 = vmax.xlane.f32.xlu0 %v11687_v32 }
 0xe4c   : > { %v11253_v3 = vpop.f32.mrb[122].mxu0 }
 0xe4d   : > { %v20845_v35 = vsel %vm19261_vm0, %v11253_v3, -1e+09  ;;  %v15929_v25 = vpop.f32.mrb[123].mxu0 }
 0xe4e   : > { %v11693_v20 = vsel %vm1894_vm4, %v20845_v35, -inf }
 0xe4f   : > { %11694 = vmax.xlane.f32.xlu0 %v11693_v20 }
 0xe50   : > { %v11409_v29 = vpop.f32.mrb[124].mxu0 }
 0xe51   : > { %v20851_v62 = vsel %vm21918_vm7, %v11409_v29, -1e+09  ;;  %v15939_v26 = vpop.f32.mrb[125].mxu0  ;;  %12067 = vrot.lane.b32.xlu1 %v21919_v61, %s17498_s4 }
 0xe52   : > { %v11699_v36 = vsel %vm1894_vm4, %v20851_v62, -inf }
 0xe53   : > { %11700 = vmax.xlane.f32.xlu0 %v11699_v36 }
 0xe54   : > { %v11565_v45 = vpop.f32.mrb[126].mxu0 }
 0xe55   : > { %v20859_v50 = vsel %vm21921_vm9, %v11565_v45, -1e+09  ;;  %v15949_v42 = vpop.f32.mrb[127].mxu0  ;;  %12143 = vrot.lane.b32.xlu1 %v21922_v58, %s17498_s4 }
 0xe56   : > { %v11705_v10 = vsel %vm1894_vm4, %v20859_v50, -inf }
 0xe57   : > { %11706 = vmax.xlane.f32.xlu0 %v11705_v10 }
 0xe59   : > { %12295 = vrot.lane.b32.xlu1 %v21923_v16, %s17498_s4 }
 0xe5b   : > { %11805 = vadd.xlane.f32.xlu0 %v11804_v55 }
 0xe5d   : > { %12447 = vrot.lane.b32.xlu1 %v21924_v24, %s17498_s4 }
 0xe61   : > { %12599 = vrot.lane.b32.xlu1 %v21925_v52, %s17498_s4 }
 0xe65   : > { %12751 = vrot.lane.b32.xlu1 %v21926_v56, %s17498_s4 }
 0xe71   : > { %11991 = vrot.lane.b32.xlu0 %v21927_v21, %s17498_s4 }
 0xe75   : > { %12219 = vrot.lane.b32.xlu0 %v21928_v7, %s17498_s4 }
 0xe79   : > { %12371 = vrot.lane.b32.xlu0 %v21929_v63, %s17498_s4 }
 0xe7d   : > { %12523 = vrot.lane.b32.xlu0 %v21930_v4, %s17498_s4 }
 0xe81   : > { %12675 = vrot.lane.b32.xlu0 %v21931_v17, %s17498_s4 }
 0xe85   : > { %12827 = vrot.lane.b32.xlu0 %v21932_v1, %s17498_s4 }
 0xea2   : > { %v11761_v9 = vpop.xlane.xlu0 %11760 }
 0xea3   : > { %16735 = vrcp.f32 %v11761_v9 }
 0xea6   : > { %v11764_v8 = vpop.xlane.xlu1 %11763 }
 0xea7   : > { %16737 = vrcp.f32 %v11764_v8 }
 0xead   : > { %v16736_v51 = vpop.eup %16735 }
 0xeae   : > { %v11823_v40 = vmul.f32 %v16736_v51, %v20770_v34  ;;  %v11770_v37 = vpop.xlane.xlu1 %11769  ;;  %v11767_v34 = vpop.xlane.xlu0 %11766 }
 0xeaf   : > { %16739 = vrcp.f32 %v11770_v37 }
 0xeb0   : > { %15958 = vmatmul.mubr.msk.f32.vlgmr.msra.gmra.mrb[128].mxu0 %vm1894_vm4, %v11823_v40 }
 0xeb1   : > { %v16738_v22 = vpop.eup %16737  ;;  %15967 = vmatprep.mubr.msk.f32.mxu0 %vm21778_vm13, %v21777_v15 }
 0xeb2   : > { %v11824_v38 = vmul.f32 %v16738_v22, %v20774_v0  ;;  %v11773_v57 = vpop.xlane.xlu0 %11772 }
 0xeb4   : > { %15963 = vmatmul.mubr.msk.f32.vlgmr.msra.gmra.mrb[160].mxu1 %vm1894_vm4, %v11824_v38 }
 0xeb5   : > { %15972 = vmatprep.mubr.msk.f32.mxu1 %vm21778_vm13, %v21777_v15 }
 0xeb6   : > { %v11776_v54 = vpop.xlane.xlu1 %11775 }
 0xeb9   : > { %v16740_v3 = vpop.eup %16739 }
 0xeba   : > { %v11826_v25 = vmul.f32 %v16740_v3, %v20784_v12  ;;  %v11779_v0 = vpop.xlane.xlu0 %11778 }
 0xebe   : > { %v11782_v2 = vpop.xlane.xlu1 %11781 }
 0xec2   : > { %v11788_v33 = vpop.xlane.xlu1 %11787 }
 0xec6   : > { %v11794_v13 = vpop.xlane.xlu1 %11793 }
 0xecd   : > { %v20897_v32 = vpop.xlane.xlu1 %11799 }
 0xed1   : > { %v12068_v20 = vpop.permute.xlu1 %12067 }
 0xed2   : > { %15971 = vmatpush3.msra.mxu1 %v12068_v20 }
 0xed3   : > { %15973 = vmatmul.mubr.msk.f32.vlgmr.msra.gmra.mrb[162].mxu1 %vm1894_vm4, %v11826_v25  ;;  %15980 = vmatprep.subr.mxu1 %v21777_v15 }
 0xed4   : > { %15982 = vmatprep.mubr.msk.f32.mxu1 %vm21778_vm13, %v21777_v15 }
 0xed8   : > { %v11689_v29 = vpop.xlane.xlu0 %11688 }
 0xed9   : > { %v11719_v30 = vsub.f32 %v20839_v5, %v11689_v29 }
 0xedb   : > { %v11743_v26 = vmul.f32 1.442695, %v11719_v30 }
 0xedc   : > { %v11695_v61 = vpop.xlane.xlu0 %11694 }
 0xedd   : > { %16741 = vpow2.f32 %v11743_v26  ;;  %v11721_v36 = vsub.f32 %v20845_v35, %v11695_v61 }
 0xede   : > { %16743 = vrcp.f32 %v11767_v34 }
 0xedf   : > { %v11747_v12 = vmul.f32 1.442695, %v11721_v36 }
 0xee0   : > { %v11701_v45 = vpop.xlane.xlu0 %11700 }
 0xee1   : > { %16745 = vpow2.f32 %v11747_v12  ;;  %v11723_v39 = vsub.f32 %v20851_v62, %v11701_v45  ;;  %v12144_v62 = vpop.permute.xlu1 %12143  ;;  %v13056_v45 = vld [vmem:[#allocation19 + $0x18] sm:$0xff] }
 0xee2   : > { %16747 = vrcp.f32 %v11773_v57 }
 0xee3   : > { %16749 = vrcp.f32 %v11776_v54  ;;  %v11751_v42 = vmul.f32 1.442695, %v11723_v39 }
 0xee4   : > { %v11707_v58 = vpop.xlane.xlu0 %11706 }
 0xee5   : > { %16751 = vpow2.f32 %v11751_v42  ;;  %v11725_v10 = vsub.f32 %v20859_v50, %v11707_v58  ;;  %v12296_v1 = vpop.permute.xlu1 %12295 }
 0xee6   : > { %16753 = vrcp.f32 %v11779_v0 }
 0xee7   : > { %v20908_v16 = vpop.eup %16741  ;;  %v11755_v5 = vmul.f32 1.442695, %v11725_v10  ;;  %16755 = vrcp.f32 %v11782_v2 }
 0xee8   : > { %v20910_v55 = vpop.xlane.xlu0 %11805  ;;  %v11783_v35 = vsel %vm1894_vm4, %v20908_v16, 0.0  ;;  %v16744_v24 = vpop.eup %16743 }
 0xee9   : > { %16757 = vpow2.f32 %v11755_v5  ;;  %11784 = vadd.xlane.f32.xlu0 %v11783_v35  ;;  %v11825_v21 = vmul.f32 %v16744_v24, %v20779_v28  ;;  %v12448_v2 = vpop.permute.xlu1 %12447 }
 0xeea   : > { %16759 = vrcp.f32 %v11788_v33 }
 0xeeb   : > { %v20914_v52 = vpop.eup %16745  ;;  %16761 = vrcp.f32 %v11794_v13 }
 0xeec   : > { %v16748_v56 = vpop.eup %16747  ;;  %v11992_v50 = vpop.permute.xlu0 %11991  ;;  %v11789_v7 = vsel %vm1894_vm4, %v20914_v52, 0.0  ;;  %16763 = vrcp.f32 %v20897_v32 }
 0xeed   : > { %v16750_v63 = vpop.eup %16749  ;;  %11790 = vadd.xlane.f32.xlu0 %v11789_v7  ;;  %15966 = vmatpush3.msra.mxu0 %v11992_v50  ;;  %v11827_v28 = vmul.f32 %v16748_v56, %v20789_v47  ;;  %16765 = vrcp.f32 %v20910_v55  ;;  %v12600_v57 = vpop.permute.xlu1 %12599 }
 0xeee   : > { %15968 = vmatmul.mubr.msk.f32.vlgmr.msra.gmra.mrb[130].mxu0 %vm1894_vm4, %v11825_v21  ;;  %15975 = vmatprep.subr.mxu0 %v21777_v15  ;;  %v11828_v17 = vmul.f32 %v16750_v63, %v20794_v23 }
 0xeef   : > { %v20921_v4 = vpop.eup %16751  ;;  %15976 = vmatpush3.msra.mxu0 %v12144_v62  ;;  %15977 = vmatprep.mubr.msk.f32.mxu0 %vm21778_vm13, %v21777_v15 }
 0xef0   : > { %v12220_v9 = vpop.permute.xlu0 %12219  ;;  %v11795_v8 = vsel %vm1894_vm4, %v20921_v4, 0.0  ;;  %15985 = vmatprep.subr.mxu0 %v21777_v15  ;;  %v16754_v51 = vpop.eup %16753 }
 0xef1   : > { %11796 = vadd.xlane.f32.xlu0 %v11795_v8  ;;  %15981 = vmatpush3.msra.mxu1 %v12220_v9  ;;  %v16756_v40 = vpop.eup %16755  ;;  %v11829_v47 = vmul.f32 %v16754_v51, %v20799_v59  ;;  %v12752_v25 = vpop.permute.xlu1 %12751 }
 0xef2   : > { %15978 = vmatmul.mubr.msk.f32.vlgmr.msra.gmra.mrb[132].mxu0 %vm1894_vm4, %v11827_v28  ;;  %15983 = vmatmul.mubr.msk.f32.vlgmr.msra.gmra.mrb[164].mxu1 %vm1894_vm4, %v11828_v17  ;;  %v11830_v37 = vmul.f32 %v16756_v40, %v20807_v6 }
 0xef3   : > { %v20932_v22 = vpop.eup %16757  ;;  %15986 = vmatpush3.msra.mxu0 %v12296_v1  ;;  %15990 = vmatprep.subr.mxu1 %v21777_v15 }
 0xef4   : > { %v12372_v23 = vpop.permute.xlu0 %12371  ;;  %v11801_v38 = vsel %vm1894_vm4, %v20932_v22, 0.0  ;;  %15987 = vmatprep.mubr.msk.f32.mxu0 %vm21778_vm13, %v21777_v15  ;;  %15992 = vmatprep.mubr.msk.f32.mxu1 %vm21778_vm13, %v21777_v15  ;;  %v16760_v54 = vpop.eup %16759 }
 0xef5   : > { %11802 = vadd.xlane.f32.xlu1 %v11801_v38  ;;  %15991 = vmatpush3.msra.mxu1 %v12372_v23  ;;  %v11832_v33 = vmul.f32 %v16760_v54, %v20812_v53  ;;  %v16762_v6 = vpop.eup %16761 }
 0xef6   : > { %15995 = vmatprep.subr.mxu0 %v21777_v15  ;;  %15988 = vmatmul.mubr.msk.f32.vlgmr.msra.gmra.mrb[134].mxu0 %vm1894_vm4, %v11829_v47  ;;  %v11834_v34 = vmul.f32 %v16762_v6, %v20820_v31  ;;  %v16764_v32 = vpop.eup %16763 }
 0xef7   : > { %15993 = vmatmul.mubr.msk.f32.vlgmr.msra.gmra.mrb[166].mxu1 %vm1894_vm4, %v11830_v37  ;;  %15996 = vmatpush3.msra.mxu0 %v12448_v2  ;;  %v11836_v3 = vmul.f32 %v16764_v32, %v20828_v49  ;;  %v16766_v0 = vpop.eup %16765 }
 0xef8   : > { %16000 = vmatprep.subr.mxu1 %v21777_v15  ;;  %v12524_v59 = vpop.permute.xlu0 %12523  ;;  %16002 = vmatprep.mubr.msk.f32.mxu1 %vm21778_vm13, %v21777_v15  ;;  %v11838_v30 = vmul.f32 %v16766_v0, %v20865_v18 }
 0xef9   : > { %16001 = vmatpush3.msra.mxu1 %v12524_v59  ;;  %15997 = vmatprep.mubr.msk.f32.mxu0 %vm21778_vm13, %v21777_v15 }
 0xefa   : > { %16010 = vmatprep.subr.mxu1 %v21777_v15  ;;  %16005 = vmatprep.subr.mxu0 %v21777_v15 }
 0xefb   : > { %16003 = vmatmul.mubr.msk.f32.vlgmr.msra.gmra.mrb[168].mxu1 %vm1894_vm4, %v11832_v33 }
 0xefc   : > { %v12676_v13 = vpop.permute.xlu0 %12675  ;;  %16012 = vmatprep.mubr.msk.f32.mxu1 %vm21778_vm13, %v21777_v15 }
 0xefd   : > { %16011 = vmatpush3.msra.mxu1 %v12676_v13  ;;  %v21007_v13 = vld [vmem:[#allocation20] ss:$0 sm:$0xff] }
 0xefe   : > { %16020 = vmatprep.subr.mxu1 %v21777_v15 }
 0xeff   : > { %16013 = vmatmul.mubr.msk.f32.vlgmr.msra.gmra.mrb[170].mxu1 %vm1894_vm4, %v11834_v34 }
 0xf00   : > { %v12828_v53 = vpop.permute.xlu0 %12827  ;;  %16022 = vmatprep.mubr.msk.f32.mxu1 %vm21778_vm13, %v21777_v15 }
 0xf01   : > { %16021 = vmatpush3.msra.mxu1 %v12828_v53 }
 0xf02   : > { %16030 = vmatprep.subr.mxu1 %v21777_v15 }
 0xf03   : > { %16023 = vmatmul.mubr.msk.f32.vlgmr.msra.gmra.mrb[172].mxu1 %vm1894_vm4, %v11836_v3 }
 0xf04   : > { %16032 = vmatprep.mubr.msk.f32.mxu1 %vm21778_vm13, %v21777_v15 }
 0xf06   : > { %12903 = vrot.lane.b32.xlu1 %v21843_v41, %s17498_s4 }
 0xf07   : > { %12979 = vrot.lane.b32.xlu0 %v21870_v44, %s17498_s4 }
 0xf76   : > { %v11785_v31 = vpop.xlane.xlu0 %11784 }
 0xf77   : > { %16767 = vrcp.f32 %v11785_v31  ;;  %v16839_v31 = vld [vmem:[%s18108_s5 + $0x8] sm:$0xff] }
 0xf7a   : > { %v11791_v49 = vpop.xlane.xlu0 %11790 }
 0xf7b   : > { %16769 = vrcp.f32 %v11791_v49  ;;  %v16840_v49 = vld [vmem:[%s18108_s5] sm:$0xff] }
 0xf7e   : > { %v11797_v20 = vpop.xlane.xlu0 %11796 }
 0xf7f   : > { %16771 = vrcp.f32 %v11797_v20 }
 0xf81   : > { %v16768_v29 = vpop.eup %16767 }
 0xf82   : > { %v11831_v26 = vmul.f32 %v16768_v29, %v20908_v16  ;;  %v11803_v41 = vpop.xlane.xlu1 %11802  ;;  %v12980_v61 = vpop.permute.xlu0 %12979 }
 0xf83   : > { %16773 = vrcp.f32 %v11803_v41  ;;  %v11911_v44 = vpop.f32.mrb[128].mxu0  ;;  %16031 = vmatpush3.msra.mxu1 %v12980_v61  ;;  %v16841_v61 = vld [vmem:[%s18108_s5 + $0x18] sm:$0xff] }
 0xf84   : > { %v15959_v36 = vpop.f32.mrb[129].mxu0  ;;  %15998 = vmatmul.mubr.msk.f32.vlgmr.msra.gmra.mrb[136].mxu0 %vm1894_vm4, %v11831_v26  ;;  %16033 = vmatmul.mubr.msk.f32.vlgmr.msra.gmra.mrb[174].mxu1 %vm1894_vm4, %v11838_v30 }
 0xf85   : > { %v16770_v12 = vpop.eup %16769  ;;  %16006 = vmatpush3.msra.mxu0 %v12600_v57  ;;  %16007 = vmatprep.mubr.msk.f32.mxu0 %vm21778_vm13, %v21777_v15  ;;  %v16842_v36 = vld [vmem:[%s18108_s5 + $0x10] sm:$0xff] }
 0xf86   : > { %v11833_v18 = vmul.f32 %v16770_v12, %v20914_v52  ;;  %16015 = vmatprep.subr.mxu0 %v21777_v15  ;;  %16181 = vmatprep.subr.mxu1 %v13056_v45  ;;  %v12904_v16 = vpop.permute.xlu1 %12903 }
 0xf87   : > { %v11987_v39 = vpop.f32.mrb[160].mxu1  ;;  %16182 = vmatpush3.msra.mxu1 %v13056_v45 }
 0xf88   : > { %v15964_v42 = vpop.f32.mrb[161].mxu1  ;;  %16008 = vmatmul.mubr.msk.f32.vlgmr.msra.gmra.mrb[138].mxu0 %vm1894_vm4, %v11833_v18 }
 0xf89   : > { %v16772_v58 = vpop.eup %16771  ;;  %16016 = vmatpush3.msra.mxu0 %v12752_v25  ;;  %16017 = vmatprep.mubr.msk.f32.mxu0 %vm21778_vm13, %v21777_v15 }
 0xf8a   : > { %v11835_v10 = vmul.f32 %v16772_v58, %v20921_v4  ;;  %16025 = vmatprep.subr.mxu0 %v21777_v15 }
 0xf8c   : > { %16018 = vmatmul.mubr.msk.f32.vlgmr.msra.gmra.mrb[140].mxu0 %vm1894_vm4, %v11835_v10 }
 0xf8d   : > { %v16774_v5 = vpop.eup %16773  ;;  %16026 = vmatpush3.msra.mxu0 %v12904_v16  ;;  %16027 = vmatprep.mubr.msk.f32.mxu0 %vm21778_vm13, %v21777_v15  ;;  %v16843_v16 = vld [vmem:[%s18108_s5 + $0x28] sm:$0xff] }
 0xf8e   : > { %v11837_v55 = vmul.f32 %v16774_v5, %v20932_v22  ;;  %16035 = vmatprep.subr.mxu0 %v13056_v45 }
 0xf90   : > { %16028 = vmatmul.mubr.msk.f32.vlgmr.msra.gmra.mrb[142].mxu0 %vm1894_vm4, %v11837_v55  ;;  %v16844_v55 = vld [vmem:[%s18108_s5 + $0x20] sm:$0xff] }
 0xf91   : > { %16037 = vmatprep.mubr.msk.f32.mxu0 %vm1894_vm4, %v11911_v44  ;;  %16036 = vmatpush3.msra.mxu0 %v13056_v45 }
 0xf94   : > { %16038 = vmatmul.mubr.msk.f32.vlgmr.msra.gmra.mrb[88].mxu0 %vm1894_vm4, %v11987_v39 }
 0xfa6   : > { %v12139_v35 = vpop.f32.mrb[162].mxu1 }
 0xfa7   : > { %v15974_v24 = vpop.f32.mrb[163].mxu1 }
 0xfc1   : > { %v12063_v62 = vpop.f32.mrb[130].mxu0 }
 0xfc2   : > { %v15969_v52 = vpop.f32.mrb[131].mxu0  ;;  %16040 = vmatprep.mubr.msk.f32.mxu0 %vm1894_vm4, %v12063_v62 }
 0xfc3   : > { %16041 = vmatmul.mubr.msk.f32.gmra.mrb[90].mxu0 %vm1894_vm4, %v12139_v35 }
 0xfc5   : > { %v12215_v56 = vpop.f32.mrb[132].mxu0  ;;  %v12291_v15 = vpop.f32.mrb[164].mxu1 }
 0xfc6   : > { %v15979_v21 = vpop.f32.mrb[133].mxu0  ;;  %v15984_v50 = vpop.f32.mrb[165].mxu1  ;;  %16043 = vmatprep.mubr.msk.f32.mxu0 %vm1894_vm4, %v12215_v56 }
 0xfc7   : > { %16044 = vmatmul.mubr.msk.f32.gmra.mrb[92].mxu0 %vm1894_vm4, %v12291_v15  ;;  %v16845_v50 = vld [vmem:[%s18108_s5 + $0x38] sm:$0xff] }
 0xfc9   : > { %v12367_v7 = vpop.f32.mrb[134].mxu0 }
 0xfca   : > { %v12443_v63 = vpop.f32.mrb[166].mxu1  ;;  %v15989_v4 = vpop.f32.mrb[135].mxu0  ;;  %16046 = vmatprep.mubr.msk.f32.mxu0 %vm1894_vm4, %v12367_v7 }
 0xfcb   : > { %v15994_v28 = vpop.f32.mrb[167].mxu1  ;;  %16047 = vmatmul.mubr.msk.f32.gmra.mrb[94].mxu0 %vm1894_vm4, %v12443_v63  ;;  %v16846_v63 = vld [vmem:[%s18108_s5 + $0x30] sm:$0xff] }
 0xfce   : > { %v12595_v17 = vpop.f32.mrb[168].mxu1 }
 0xfcf   : > { %v16004_v1 = vpop.f32.mrb[169].mxu1 }
 0xfd2   : > { %v12747_v9 = vpop.f32.mrb[170].mxu1 }
 0xfd3   : > { %v16014_v8 = vpop.f32.mrb[171].mxu1 }
 0xfd6   : > { %v12899_v51 = vpop.f32.mrb[172].mxu1 }
 0xfd7   : > { %v16024_v40 = vpop.f32.mrb[173].mxu1 }
0x1057   : > { %v12519_v22 = vpop.f32.mrb[136].mxu0  ;;  %v13051_v47 = vpop.f32.mrb[174].mxu1 }
0x1058   : > { %v15999_v23 = vpop.f32.mrb[137].mxu0  ;;  %v16034_v38 = vpop.f32.mrb[175].mxu1  ;;  %16049 = vmatprep.mubr.msk.f32.mxu1 %vm1894_vm4, %v12519_v22 }
0x1059   : > { %16050 = vmatmul.mubr.msk.f32.vlgmr.msra.gmra.mrb[176].mxu1 %vm1894_vm4, %v12595_v17 }
0x105b   : > { %v12671_v37 = vpop.f32.mrb[138].mxu0 }
0x105c   : > { %v16009_v54 = vpop.f32.mrb[139].mxu0  ;;  %16052 = vmatprep.mubr.msk.f32.mxu1 %vm1894_vm4, %v12671_v37  ;;  %v16847_v37 = vld [vmem:[%s18108_s5 + $0x48] sm:$0xff] }
0x105d   : > { %16053 = vmatmul.mubr.msk.f32.gmra.mrb[178].mxu1 %vm1894_vm4, %v12747_v9 }
0x105f   : > { %v12823_v2 = vpop.f32.mrb[140].mxu0 }
0x1060   : > { %v16019_v59 = vpop.f32.mrb[141].mxu0  ;;  %16055 = vmatprep.mubr.msk.f32.mxu1 %vm1894_vm4, %v12823_v2 }
0x1061   : > { %16056 = vmatmul.mubr.msk.f32.gmra.mrb[180].mxu1 %vm1894_vm4, %v12899_v51 }
0x1063   : > { %v12975_v33 = vpop.f32.mrb[142].mxu0 }
0x1064   : > { %v16029_v6 = vpop.f32.mrb[143].mxu0  ;;  %16058 = vmatprep.mubr.msk.f32.mxu1 %vm1894_vm4, %v12975_v33  ;;  %v16848_v33 = vld [vmem:[%s18108_s5 + $0x40] sm:$0xff] }
0x1065   : > { %16059 = vmatmul.mubr.msk.f32.gmra.mrb[182].mxu1 %vm1894_vm4, %v13051_v47  ;;  %vm21934_vm4 = vmmov %vm21933_vm11 }
0x1066   : > { %vm21935_vm14 = vmmov %vm21934_vm4 }
0x1067   : > { %v16039_v34 = vpop.f32.mrb[88].mxu0  ;;  %vm21936_vm1 = vmmov %vm21934_vm4 }
0x1068   : > { %v13274_v32 = vadd.f32 %v16039_v34, %v21007_v13  ;;  %v13171_v53 = vpop.f32.mrb[89].mxu0  ;;  %vm21937_vm5 = vmmov %vm21936_vm1 }
0x1069   : > { %v13273_v3 = vadd.f32 %v21007_v13, %v13171_v53  ;;  %vm21938_vm6 = vmmov %vm21936_vm1 }
0x106a   : > { %v21012_v57 = vadd.f32 %v16839_v31, %v13274_v32  ;;  %vm21939_vm8 = vmmov %vm21936_vm1 }
0x106b   : > { %v21015_v25 = vadd.f32 %v16840_v49, %v13273_v3  ;;  %vm21940_vm12 = vmmov %vm21936_vm1  ;;  %v16849_v49 = vld [vmem:[%s18108_s5 + $0x58] sm:$0xff] }
0x106c   : > { %v13310_v20 = vsel %vm21933_vm11, %v21012_v57, 0.0  ;;  %vm21941_vm10 = vmmov %vm21936_vm1 }
0x106d   : > { %13311 = vadd.xlane.f32.xlu0 %v13310_v20  ;;  %v13307_v0 = vsel %vm21934_vm4, %v21015_v25, 0.0  ;;  %vm21942_vm15 = vmmov %vm21936_vm1 }
0x106e   : > { %13308 = vadd.xlane.f32.xlu1 %v13307_v0  ;;  %vm21943_vm2 = vmmov %vm21936_vm1 }
0x106f   : > { %vm21944_vm0 = vmmov %vm21936_vm1 }
0x1070   : > { %vm21945_vm13 = vmmov %vm21944_vm0 }
0x1071   : > { %vm21946_vm3 = vmmov %vm21944_vm0 }
0x1072   : > { %vm21947_vm7 = vmmov %vm21944_vm0 }
0x1073   : > { %vm21948_vm9 = vmmov %vm21944_vm0 }
0x1074   : > { %vm21949_vm11 = vmmov %vm21944_vm0 }
0x1075   : > { %vm21950_vm4 = vmmov %vm21944_vm0 }
0x1096   : > { %v16042_v29 = vpop.f32.mrb[90].mxu0 }
0x1097   : > { %v13276_v30 = vadd.f32 %v16042_v29, %v21007_v13  ;;  %v13181_v26 = vpop.f32.mrb[91].mxu0  ;;  %v16850_v29 = vld [vmem:[%s18108_s5 + $0x50] sm:$0xff] }
0x1098   : > { %v13275_v41 = vadd.f32 %v21007_v13, %v13181_v26 }
0x1099   : > { %v21024_v44 = vadd.f32 %v16841_v61, %v13276_v30 }
0x109a   : > { %v21027_v12 = vadd.f32 %v16842_v36, %v13275_v41  ;;  %v16045_v45 = vpop.f32.mrb[92].mxu0 }
0x109b   : > { %v13278_v18 = vadd.f32 %v16045_v45, %v21007_v13  ;;  %v13191_v39 = vpop.f32.mrb[93].mxu0  ;;  %v13316_v42 = vsel %vm21935_vm14, %v21024_v44, 0.0  ;;  %vm21951_vm14 = vmmov %vm21944_vm0 }
0x109c   : > { %v13277_v58 = vadd.f32 %v21007_v13, %v13191_v39  ;;  %13317 = vadd.xlane.f32.xlu1 %v13316_v42  ;;  %v13313_v10 = vsel %vm21936_vm1, %v21027_v12, 0.0  ;;  %v16851_v42 = vld [vmem:[%s18108_s5 + $0x68] sm:$0xff]  ;;  %vm21952_vm1 = vmmov %vm21944_vm0 }
0x109d   : > { %v21036_v5 = vadd.f32 %v16843_v16, %v13278_v18  ;;  %13314 = vadd.xlane.f32.xlu0 %v13313_v10 }
0x109e   : > { %v21039_v35 = vadd.f32 %v16844_v55, %v13277_v58  ;;  %v16048_v24 = vpop.f32.mrb[94].mxu0  ;;  %v16852_v55 = vld [vmem:[%s18108_s5 + $0x60] sm:$0xff] }
0x109f   : > { %v13280_v62 = vadd.f32 %v16048_v24, %v21007_v13  ;;  %v13201_v52 = vpop.f32.mrb[95].mxu0  ;;  %v13322_v56 = vsel %vm21937_vm5, %v21036_v5, 0.0  ;;  %vm21953_vm5 = vmmov %vm21944_vm0 }
0x10a0   : > { %v13279_v15 = vadd.f32 %v21007_v13, %v13201_v52  ;;  %13323 = vadd.xlane.f32.xlu1 %v13322_v56  ;;  %v13319_v21 = vsel %vm21938_vm6, %v21039_v35, 0.0  ;;  %vm21954_vm6 = vmmov %vm21944_vm0 }
0x10a1   : > { %v21048_v7 = vadd.f32 %v16845_v50, %v13280_v62  ;;  %13320 = vadd.xlane.f32.xlu0 %v13319_v21 }
0x10a2   : > { %v21051_v4 = vadd.f32 %v16846_v63, %v13279_v15 }
0x10a3   : > { %v13328_v28 = vsel %vm21939_vm8, %v21048_v7, 0.0  ;;  %vm21955_vm8 = vmmov %vm21944_vm0 }
0x10a4   : > { %13329 = vadd.xlane.f32.xlu1 %v13328_v28  ;;  %v13325_v17 = vsel %vm21940_vm12, %v21051_v4, 0.0  ;;  %vm21956_vm12 = vmmov %vm21944_vm0 }
0x10a5   : > { %13326 = vadd.xlane.f32.xlu0 %v13325_v17  ;;  %v16853_v17 = vld [vmem:[%s18108_s5 + $0x78] sm:$0xff] }
0x10fa   : > { %v13312_v38 = vpop.xlane.xlu0 %13311 }
0x10fb   : > { %v13309_v22 = vpop.xlane.xlu1 %13308  ;;  %v13356_v41 = vmul.f32 0.03125, %v13312_v38 }
0x10fc   : > { %v13355_v45 = vmul.f32 0.03125, %v13309_v22 }
0x10fd   : > { %v21098_v52 = vsub.f32 %v21012_v57, %v13356_v41 }
0x10fe   : > { %v21104_v50 = vsub.f32 %v21015_v25, %v13355_v45 }
0x1129   : > { %v13318_v32 = vpop.xlane.xlu1 %13317 }
0x112a   : > { %v13315_v31 = vpop.xlane.xlu0 %13314  ;;  %v13358_v56 = vmul.f32 0.03125, %v13318_v32 }
0x112b   : > { %v13357_v63 = vmul.f32 0.03125, %v13315_v31 }
0x112c   : > { %v16051_v1 = vpop.f32.mrb[176].mxu1 }
0x112d   : > { %v16183_v9 = vadd.f32 %v16051_v1, %v20801_v48  ;;  %v13211_v8 = vpop.f32.mrb[177].mxu1  ;;  %v13324_v16 = vpop.xlane.xlu1 %13323 }
0x112e   : > { %v16184_v51 = vadd.f32 %v13211_v8, %v20805_v14  ;;  %v13321_v15 = vpop.xlane.xlu0 %13320 }
0x112f   : > { %v13282_v40 = vadd.f32 %v16183_v9, %v21007_v13  ;;  %v16854_v9 = vld [vmem:[%s18108_s5 + $0x70] sm:$0xff]  ;;  %s17499_s5 = smov [#allocation31]  }
0x1130   : > { %v13281_v47 = vadd.f32 %v16184_v51, %v21007_v13  ;;  %v16054_v23 = vpop.f32.mrb[178].mxu1  ;;  %v21116_v51 = vsub.f32 %v21024_v44, %v13358_v56  ;;  %s17367_s9 = sshll.u32 %s17499_s5, 4  ;;  %s17368_s9 = int_to_ptr.vmem [resolvable:$false] %s17367_s9 }
0x1131   : > { %v21062_v54 = vadd.f32 %v16847_v37, %v13282_v40  ;;  %v16185_v2 = vadd.f32 %v16054_v23, %v20814_v43  ;;  %v13221_v59 = vpop.f32.mrb[179].mxu1  ;;  %v13360_v40 = vmul.f32 0.03125, %v13324_v16  ;;  %v13359_v23 = vmul.f32 0.03125, %v13321_v15  ;;  %v13330_v38 = vpop.xlane.xlu1 %13329  ;;  %v13674_v16 = vld [vmem:[#allocation25 + $0x18] sm:$0xff]  ;;  %s17369_s11 = scalar_lea.vmem %s17368_s9, 4096  ;;  %p17370_p10 = scmp.lt.s32.totalorder %s21400_s3, %s17368_s9 }
0x1132   : > { %v21066_v48 = vadd.f32 %v16848_v33, %v13281_v47  ;;  %v16186_v14 = vadd.f32 %v13221_v59, %v20818_v46  ;;  %v21123_v47 = vsub.f32 %v21027_v12, %v13357_v63  ;;  %v13327_v59 = vpop.xlane.xlu0 %13326  ;;  %p17371_p11 = scmp.lt.s32.totalorder %s17369_s11, %s17363_s19 }
0x1133   : > { %v13284_v6 = vadd.f32 %v16185_v2, %v21007_v13  ;;  %v13334_v34 = vsel %vm21941_vm10, %v21062_v54, 0.0  ;;  %v13387_v2 = vmul.f32 %v21104_v50, %v21104_v50  ;;  %v21130_v33 = vsub.f32 %v21036_v5, %v13360_v40  ;;  %vm21957_vm10 = vmmov %vm21944_vm0 }
0x1134   : > { %v13283_v53 = vadd.f32 %v16186_v14, %v21007_v13  ;;  %13335 = vadd.xlane.f32.xlu1 %v13334_v34  ;;  %v16057_v3 = vpop.f32.mrb[180].mxu1  ;;  %v13331_v43 = vsel %vm21942_vm15, %v21066_v48, 0.0  ;;  %v13362_v14 = vmul.f32 0.03125, %v13330_v38  ;;  %v13390_v34 = vmul.f32 %v21116_v51, %v21116_v51  ;;  %vm21958_vm15 = vmmov %vm21944_vm0  ;;  %p17372_p5 = por %p17371_p11, %p17370_p10 }
0x1135   : > { %v21076_v20 = vadd.f32 %v16849_v49, %v13284_v6  ;;  %v16187_v46 = vadd.f32 %v16057_v3, %v20824_v19  ;;  %13332 = vadd.xlane.f32.xlu0 %v13331_v43  ;;  %v13231_v0 = vpop.f32.mrb[181].mxu1  ;;  %v21136_v32 = vsub.f32 %v21039_v35, %v13359_v23  ;;  %v13403_v3 = vsel %vm21950_vm4, %v13387_v2, 0.0 }
0x1136   : > { %v21080_v30 = vadd.f32 %v16850_v29, %v13283_v53  ;;  %v16188_v26 = vadd.f32 %v13231_v0, %v20826_v11  ;;  %v13361_v53 = vmul.f32 0.03125, %v13327_v59  ;;  %v13389_v43 = vmul.f32 %v21123_v47, %v21123_v47  ;;  %p17373_p7 = pnand %p17372_p5, %p17366_p2 }
0x1137   : > { %v13286_v61 = vadd.f32 %v16187_v46, %v21007_v13  ;;  %v13340_v36 = vsel %vm21943_vm2, %v21076_v20, 0.0  ;;  %v21142_v31 = vsub.f32 %v21048_v7, %v13362_v14  ;;  %v13412_v49 = vsel %vm21951_vm14, %v13390_v34, 0.0  ;;  %vm21959_vm2 = vmmov %vm21944_vm0 }
0x1138   : > { %v13285_v18 = vadd.f32 %v16188_v26, %v21007_v13  ;;  %13341 = vadd.xlane.f32.xlu1 %v13340_v36  ;;  %v16060_v39 = vpop.f32.mrb[182].mxu1  ;;  %v13337_v19 = vsel %vm21944_vm0, %v21080_v30, 0.0  ;;  %v13392_v46 = vmul.f32 %v21130_v33, %v21130_v33  ;;  %v21148_v0 = vsub.f32 %v21051_v4, %v13361_v53 }
0x1139   : > { %v21090_v58 = vadd.f32 %v16851_v42, %v13286_v61  ;;  %v16189_v10 = vadd.f32 %v16060_v39, %v20832_v60  ;;  %13338 = vadd.xlane.f32.xlu0 %v13337_v19  ;;  %v13241_v11 = vpop.f32.mrb[183].mxu1  ;;  %v13409_v29 = vsel %vm21952_vm1, %v13389_v43, 0.0  ;;  %v13391_v26 = vmul.f32 %v21136_v32, %v21136_v32  ;;  %v13671_v19 = vld [vmem:[#allocation25] sm:$0xff]  ;;  %v13672_v42 = vld [vmem:[#allocation25 + $0x8] sm:$0xff] }
0x113a   : > { %v21094_v24 = vadd.f32 %v16852_v55, %v13285_v18  ;;  %v16190_v62 = vadd.f32 %v13241_v11, %v20835_v27  ;;  %v13418_v41 = vsel %vm21953_vm5, %v13392_v46, 0.0  ;;  %v13394_v61 = vmul.f32 %v21142_v31, %v21142_v31  ;;  %v13673_v11 = vld [vmem:[#allocation25 + $0x10] sm:$0xff] }
0x113b   : > { %v13288_v21 = vadd.f32 %v16189_v10, %v21007_v13  ;;  %v13346_v60 = vsel %vm21945_vm13, %v21090_v58, 0.0  ;;  %v13415_v36 = vsel %vm21954_vm6, %v13391_v26, 0.0  ;;  %v13393_v45 = vmul.f32 %v21148_v0, %v21148_v0  ;;  %vm21960_vm13 = vmmov %vm21944_vm0 }
0x113c   : > { %v13287_v28 = vadd.f32 %v16190_v62, %v21007_v13  ;;  %13347 = vadd.xlane.f32.xlu1 %v13346_v60  ;;  %v13343_v27 = vsel %vm21946_vm3, %v21094_v24, 0.0  ;;  %v13388_v13 = vmul.f32 %v21098_v52, %v21098_v52  ;;  %v13424_v18 = vsel %vm21955_vm8, %v13394_v61, 0.0  ;;  %vm21961_vm3 = vmmov %vm21944_vm0 }
0x113d   : > { %v21110_v1 = vadd.f32 %v16853_v17, %v13288_v21  ;;  %13344 = vadd.xlane.f32.xlu0 %v13343_v27  ;;  %v13421_v39 = vsel %vm21956_vm12, %v13393_v45, 0.0  ;;  %v16157_v10 = vpack.c.bf16 %v13672_v42, %v13671_v19  ;;  %v16161_v55 = vpack.c.bf16 %v13674_v16, %v13673_v11 }
0x113e   : > { %v21113_v8 = vadd.f32 %v16854_v9, %v13287_v28  ;;  %v13406_v6 = vsel %vm21949_vm11, %v13388_v13, 0.0 }
0x113f   : > { %v13352_v22 = vsel %vm21947_vm7, %v21110_v1, 0.0  ;;  %16158 = vmatprep.subr.bf16.mxu1 %v16157_v10  ;;  %vm21962_vm7 = vmmov %vm21944_vm0 }
0x1140   : > { %13353 = vadd.xlane.f32.xlu1 %v13352_v22  ;;  %v13349_v37 = vsel %vm21948_vm9, %v21113_v8, 0.0  ;;  %16160 = vmatpush3.bf16.msra.mxu1 %v16157_v10  ;;  %vm21963_vm9 = vmmov %vm21944_vm0 }
0x1141   : > { %13350 = vadd.xlane.f32.xlu0 %v13349_v37  ;;  %16162 = vmatprep.subr.bf16.mxu1 %v16161_v55 }
0x1144   : > { %13407 = vadd.xlane.f32.xlu1 %v13406_v6  ;;  %16164 = vmatpush3.bf16.msra.mxu1 %v16161_v55 }
0x1145   : > { %13404 = vadd.xlane.f32.xlu0 %v13403_v3 }
0x1148   : > { %13413 = vadd.xlane.f32.xlu1 %v13412_v49 }
0x1149   : > { %13410 = vadd.xlane.f32.xlu0 %v13409_v29 }
0x114c   : > { %13419 = vadd.xlane.f32.xlu1 %v13418_v41 }
0x114d   : > { %13416 = vadd.xlane.f32.xlu0 %v13415_v36 }
0x1150   : > { %13425 = vadd.xlane.f32.xlu1 %v13424_v18 }
0x1151   : > { %13422 = vadd.xlane.f32.xlu0 %v13421_v39 }
0x11c1   : > { %v13336_v62 = vpop.xlane.xlu1 %13335 }
0x11c2   : > { %v13364_v56 = vmul.f32 0.03125, %v13336_v62  ;;  %v13333_v15 = vpop.xlane.xlu0 %13332 }
0x11c3   : > { %v13363_v21 = vmul.f32 0.03125, %v13333_v15 }
0x11c4   : > { %v21162_v60 = vsub.f32 %v21062_v54, %v13364_v56 }
0x11c5   : > { %v21165_v63 = vsub.f32 %v21066_v48, %v13363_v21  ;;  %v13342_v28 = vpop.xlane.xlu1 %13341 }
0x11c6   : > { %v13366_v27 = vmul.f32 0.03125, %v13342_v28  ;;  %v13339_v17 = vpop.xlane.xlu0 %13338  ;;  %v13396_v9 = vmul.f32 %v21162_v60, %v21162_v60 }
0x11c7   : > { %v13365_v40 = vmul.f32 0.03125, %v13339_v17  ;;  %v13395_v22 = vmul.f32 %v21165_v63, %v21165_v63 }
0x11c8   : > { %v21172_v13 = vsub.f32 %v21076_v20, %v13366_v27  ;;  %v13430_v23 = vsel %vm21957_vm10, %v13396_v9, 0.0 }
0x11c9   : > { %v21176_v38 = vsub.f32 %v21080_v30, %v13365_v40  ;;  %v13348_v37 = vpop.xlane.xlu1 %13347  ;;  %13431 = vadd.xlane.f32.xlu1 %v13430_v23  ;;  %v13427_v2 = vsel %vm21958_vm15, %v13395_v22, 0.0 }
0x11ca   : > { %v13368_v59 = vmul.f32 0.03125, %v13348_v37  ;;  %13428 = vadd.xlane.f32.xlu0 %v13427_v2  ;;  %v13345_v14 = vpop.xlane.xlu0 %13344  ;;  %v13398_v6 = vmul.f32 %v21172_v13, %v21172_v13 }
0x11cb   : > { %v13367_v34 = vmul.f32 0.03125, %v13345_v14  ;;  %v13397_v53 = vmul.f32 %v21176_v38, %v21176_v38 }
0x11cc   : > { %v21184_v3 = vsub.f32 %v21090_v58, %v13368_v59  ;;  %v13436_v43 = vsel %vm21959_vm2, %v13398_v6, 0.0 }
0x11cd   : > { %v21188_v49 = vsub.f32 %v21094_v24, %v13367_v34  ;;  %v13354_v46 = vpop.xlane.xlu1 %13353  ;;  %13437 = vadd.xlane.f32.xlu1 %v13436_v43  ;;  %v13433_v29 = vsel %vm21944_vm0, %v13397_v53, 0.0  ;;  %v21214_v53 = vld [vmem:[#allocation22] ss:$0 sm:$0xff] }
0x11ce   : > { %v13370_v26 = vmul.f32 0.03125, %v13354_v46  ;;  %13434 = vadd.xlane.f32.xlu0 %v13433_v29  ;;  %v13351_v41 = vpop.xlane.xlu0 %13350  ;;  %v13400_v61 = vmul.f32 %v21184_v3, %v21184_v3 }
0x11cf   : > { %v13369_v36 = vmul.f32 0.03125, %v13351_v41  ;;  %v13399_v45 = vmul.f32 %v21188_v49, %v21188_v49 }
0x11d0   : > { %v21196_v18 = vsub.f32 %v21110_v1, %v13370_v26  ;;  %v13442_v39 = vsel %vm21960_vm13, %v13400_v61, 0.0 }
0x11d1   : > { %v21200_v19 = vsub.f32 %v21113_v8, %v13369_v36  ;;  %13443 = vadd.xlane.f32.xlu1 %v13442_v39  ;;  %v13408_v42 = vpop.xlane.xlu1 %13407  ;;  %v13439_v10 = vsel %vm21961_vm3, %v13399_v45, 0.0  ;;  %v21222_v45 = vmul.f32 %v21214_v53, %v21098_v52 }
0x11d2   : > { %v13452_v11 = vmul.f32 0.032258064, %v13408_v42  ;;  %13440 = vadd.xlane.f32.xlu0 %v13439_v10  ;;  %v13405_v16 = vpop.xlane.xlu0 %13404  ;;  %v13402_v55 = vmul.f32 %v21196_v18, %v21196_v18 }
0x11d3   : > { %v13451_v62 = vmul.f32 0.032258064, %v13405_v16  ;;  %v13401_v56 = vmul.f32 %v21200_v19, %v21200_v19 }
0x11d4   : > { %16775 = vrsqrt.f32 %v13452_v11  ;;  %v13448_v21 = vsel %vm21962_vm7, %v13402_v55, 0.0  ;;  %vm13476_vm11 = vcmp.eq.f32.partialorder %v13452_v11, inf  ;;  %vm13478_vm4 = vcmp.eq.f32.partialorder %v13452_v11, 0.0 }
0x11d5   : > { %16777 = vrsqrt.f32 %v13451_v62  ;;  %v13414_v15 = vpop.xlane.xlu1 %13413  ;;  %v13445_v27 = vsel %vm21963_vm9, %v13401_v56, 0.0  ;;  %13449 = vadd.xlane.f32.xlu1 %v13448_v21  ;;  %v13479_v29 = vand.u32 2147483648, %v13452_v11  ;;  %vm13469_vm14 = vcmp.eq.f32.partialorder %v13451_v62, inf }
0x11d6   : > { %v13454_v28 = vmul.f32 0.032258064, %v13414_v15  ;;  %v13411_v17 = vpop.xlane.xlu0 %13410  ;;  %13446 = vadd.xlane.f32.xlu0 %v13445_v27  ;;  %v13472_v61 = vand.u32 2147483648, %v13451_v62  ;;  %vm13471_vm1 = vcmp.eq.f32.partialorder %v13451_v62, 0.0 }
0x11d7   : > { %v13453_v9 = vmul.f32 0.032258064, %v13411_v17 }
0x11d8   : > { %16779 = vrsqrt.f32 %v13454_v28  ;;  %vm13490_vm5 = vcmp.eq.f32.partialorder %v13454_v28, inf  ;;  %vm13492_vm6 = vcmp.eq.f32.partialorder %v13454_v28, 0.0  ;;  %v13493_v15 = vand.u32 2147483648, %v13454_v28 }
0x11d9   : > { %16781 = vrsqrt.f32 %v13453_v9  ;;  %v13420_v40 = vpop.xlane.xlu1 %13419  ;;  %vm13483_vm8 = vcmp.eq.f32.partialorder %v13453_v9, inf  ;;  %v13486_v17 = vand.u32 2147483648, %v13453_v9  ;;  %vm13485_vm12 = vcmp.eq.f32.partialorder %v13453_v9, 0.0 }
0x11da   : > { %v13456_v22 = vmul.f32 0.032258064, %v13420_v40  ;;  %v13417_v23 = vpop.xlane.xlu0 %13416 }
0x11db   : > { %v21209_v37 = vmul.f32 0.032258064, %v13417_v23 }
0x11dc   : > { %16783 = vrsqrt.f32 %v13456_v22  ;;  %vm13504_vm10 = vcmp.eq.f32.partialorder %v13456_v22, inf  ;;  %vm13506_vm15 = vcmp.eq.f32.partialorder %v13456_v22, 0.0 }
0x11dd   : > { %16785 = vrsqrt.f32 %v21209_v37  ;;  %v13426_v2 = vpop.xlane.xlu1 %13425  ;;  %vm13497_vm2 = vcmp.eq.f32.partialorder %v21209_v37, inf  ;;  %vm13499_vm0 = vcmp.eq.f32.partialorder %v21209_v37, 0.0 }
0x11de   : > { %v16776_v59 = vpop.eup %16775  ;;  %v21212_v14 = vmul.f32 0.032258064, %v13426_v2  ;;  %v13423_v6 = vpop.xlane.xlu0 %13422 }
0x11df   : > { %v16778_v34 = vpop.eup %16777  ;;  %v13475_v43 = vmul.f32 %v16776_v59, %v13452_v11  ;;  %v21216_v46 = vmul.f32 0.032258064, %v13423_v6 }
0x11e0   : > { %v13468_v26 = vmul.f32 %v16778_v34, %v13451_v62  ;;  %16787 = vrsqrt.f32 %v21212_v14  ;;  %v13507_v34 = vand.u32 2147483648, %v13456_v22  ;;  %vm13518_vm13 = vcmp.eq.f32.partialorder %v21212_v14, inf }
0x11e1   : > { %v13477_v41 = vsel %vm13476_vm11, %v13452_v11, %v13475_v43  ;;  %16789 = vrsqrt.f32 %v21216_v46  ;;  %vm13520_vm3 = vcmp.eq.f32.partialorder %v21212_v14, 0.0  ;;  %vm13511_vm7 = vcmp.eq.f32.partialorder %v21216_v46, inf }
0x11e2   : > { %v16780_v36 = vpop.eup %16779  ;;  %v13480_v39 = vsel %vm13478_vm4, %v13479_v29, %v13477_v41  ;;  %v13470_v42 = vsel %vm13469_vm14, %v13451_v62, %v13468_v26  ;;  %vm13513_vm9 = vcmp.eq.f32.partialorder %v21216_v46, 0.0  ;;  %vm21964_vm11 = vcmask 261120  }
0x11e3   : > { %v16782_v10 = vpop.eup %16781  ;;  %v13602_v16 = vadd.f32 1e-06, %v13480_v39  ;;  %v13473_v55 = vsel %vm13471_vm1, %v13472_v61, %v13470_v42  ;;  %v13489_v56 = vmul.f32 %v16780_v36, %v13454_v28  ;;  %vm21965_vm4 = vmmov %vm21964_vm11 }
0x11e4   : > { %v13482_v11 = vmul.f32 %v16782_v10, %v13453_v9  ;;  %v13601_v21 = vadd.f32 1e-06, %v13473_v55  ;;  %vm21966_vm14 = vmmov %vm21965_vm4 }
0x11e5   : > { %16791 = vrcp.f32 %v13602_v16  ;;  %v13491_v27 = vsel %vm13490_vm5, %v13454_v28, %v13489_v56  ;;  %v13500_v28 = vand.u32 2147483648, %v21209_v37  ;;  %vm21967_vm1 = vmmov %vm21965_vm4 }
0x11e6   : > { %v16784_v40 = vpop.eup %16783  ;;  %v13494_v23 = vsel %vm13492_vm6, %v13493_v15, %v13491_v27  ;;  %v13484_v52 = vsel %vm13483_vm8, %v13453_v9, %v13482_v11  ;;  %16793 = vrcp.f32 %v13601_v21  ;;  %v13585_v27 = vmul.f32 %v21214_v53, %v21104_v50  ;;  %vm21968_vm5 = vmmov %vm21967_vm1 }
0x11e7   : > { %v16786_v2 = vpop.eup %16785  ;;  %v13487_v62 = vsel %vm13485_vm12, %v13486_v17, %v13484_v52  ;;  %v13503_v59 = vmul.f32 %v16784_v40, %v13456_v22  ;;  %v13604_v6 = vadd.f32 1e-06, %v13494_v23  ;;  %v21241_v52 = vld [vmem:[#allocation23] ss:$0 sm:$0xff]  ;;  %vm21969_vm6 = vmmov %vm21967_vm1 }
0x11e8   : > { %v13496_v43 = vmul.f32 %v16786_v2, %v21209_v37  ;;  %v13603_v29 = vadd.f32 1e-06, %v13487_v62  ;;  %vm21970_vm8 = vmmov %vm21967_vm1 }
0x11e9   : > { %v13505_v26 = vsel %vm13504_vm10, %v13456_v22, %v13503_v59  ;;  %16795 = vrcp.f32 %v13604_v6  ;;  %v13521_v22 = vand.u32 2147483648, %v21212_v14  ;;  %v13588_v59 = vmul.f32 %v21214_v53, %v21116_v51  ;;  %vm21971_vm12 = vmmov %vm21967_vm1 }
0x11ea   : > { %v16788_v41 = vpop.eup %16787  ;;  %v13508_v61 = vsel %vm13506_vm15, %v13507_v34, %v13505_v26  ;;  %v13498_v9 = vsel %vm13497_vm2, %v21209_v37, %v13496_v43  ;;  %16797 = vrcp.f32 %v13603_v29  ;;  %v13514_v37 = vand.u32 2147483648, %v21216_v46 }
0x11eb   : > { %v16790_v36 = vpop.eup %16789  ;;  %v13501_v39 = vsel %vm13499_vm0, %v13500_v28, %v13498_v9  ;;  %v13517_v42 = vmul.f32 %v16788_v41, %v21212_v14  ;;  %v13606_v10 = vadd.f32 1e-06, %v13508_v61  ;;  %v13587_v6 = vmul.f32 %v21214_v53, %v21123_v47 }
0x11ec   : > { %v13510_v16 = vmul.f32 %v16790_v36, %v21216_v46  ;;  %v13605_v55 = vadd.f32 1e-06, %v13501_v39  ;;  %v13590_v26 = vmul.f32 %v21214_v53, %v21130_v33  ;;  %v13589_v28 = vmul.f32 %v21214_v53, %v21136_v32 }
0x11ed   : > { %v13519_v56 = vsel %vm13518_vm13, %v21212_v14, %v13517_v42  ;;  %16799 = vrcp.f32 %v13606_v10  ;;  %v13592_v39 = vmul.f32 %v21214_v53, %v21142_v31  ;;  %v13591_v42 = vmul.f32 %v21214_v53, %v21148_v0  ;;  %v13891_v0 = vld [vmem:[#allocation28] sm:$0xff] }
0x11ee   : > { %v13522_v15 = vsel %vm13520_vm3, %v13521_v22, %v13519_v56  ;;  %v13512_v11 = vsel %vm13511_vm7, %v21216_v46, %v13510_v16  ;;  %16801 = vrcp.f32 %v13605_v55 }
0x11ef   : > { %v16792_v21 = vpop.eup %16791  ;;  %v13515_v17 = vsel %vm13513_vm9, %v13514_v37, %v13512_v11  ;;  %v13608_v40 = vadd.f32 1e-06, %v13522_v15  ;;  %v13892_v37 = vld [vmem:[#allocation28 + $0x8] sm:$0xff]  ;;  %v13893_v15 = vld [vmem:[#allocation28 + $0x10] sm:$0xff] }
0x11f0   : > { %v16794_v23 = vpop.eup %16793  ;;  %v13620_v14 = vmul.f32 %v16792_v21, %v21222_v45  ;;  %v13607_v2 = vadd.f32 1e-06, %v13515_v17  ;;  %v16165_v11 = vpack.c.bf16 %v13892_v37, %v13891_v0  ;;  %v13894_v21 = vld [vmem:[#allocation28 + $0x18] sm:$0xff]  ;;  %v13895_v17 = vld [vmem:[#allocation28 + $0x20] sm:$0xff] }
0x11f1   : > { %v13618_v62 = vmul.f32 %v16794_v23, %v13585_v27  ;;  %16803 = vrcp.f32 %v13608_v40  ;;  %v16169_v27 = vpack.c.bf16 %v13894_v21, %v13893_v15  ;;  %v13896_v40 = vld [vmem:[#allocation28 + $0x28] sm:$0xff] }
0x11f2   : > { %16805 = vrcp.f32 %v13607_v2  ;;  %v13656_v43 = vadd.f32 %v21241_v52, %v13620_v14  ;;  %16166 = vmatprep.subr.bf16.mxu0 %v16165_v11  ;;  %v16173_v23 = vpack.c.bf16 %v13896_v40, %v13895_v17  ;;  %v13897_v14 = vld [vmem:[#allocation28 + $0x30] sm:$0xff]  ;;  %v13898_v2 = vld [vmem:[#allocation28 + $0x38] sm:$0xff] }
0x11f3   : > { %v16796_v46 = vpop.eup %16795  ;;  %v13655_v50 = vadd.f32 %v21241_v52, %v13618_v62  ;;  %16168 = vmatpush3.bf16.msra.mxu0 %v16165_v11  ;;  %v16177_v62 = vpack.c.bf16 %v13898_v2, %v13897_v14 }
0x11f4   : > { %v16798_v34 = vpop.eup %16797  ;;  %v13624_v29 = vmul.f32 %v16796_v46, %v13588_v59  ;;  %16170 = vmatprep.subr.bf16.mxu0 %v16169_v27 }
0x11f5   : > { %16069 = vmatprep.mubr.msk.f32.mxu1 %vm21964_vm11, %v13655_v50  ;;  %v13622_v45 = vmul.f32 %v16798_v34, %v13587_v6 }
0x11f6   : > { %16070 = vmatmul.mubr.msk.f32.vlgmr.msra.gmra.mrb[184].mxu1 %vm21965_vm4, %v13656_v43  ;;  %v13658_v61 = vadd.f32 %v21241_v52, %v13624_v29 }
0x11f7   : > { %v16800_v51 = vpop.eup %16799  ;;  %v13657_v47 = vadd.f32 %v21241_v52, %v13622_v45  ;;  %16172 = vmatpush3.bf16.msra.mxu0 %v16169_v27 }
0x11f8   : > { %v16802_v41 = vpop.eup %16801  ;;  %v13628_v9 = vmul.f32 %v16800_v51, %v13590_v26  ;;  %16174 = vmatprep.subr.bf16.mxu0 %v16173_v23 }
0x11f9   : > { %16072 = vmatprep.mubr.msk.f32.mxu1 %vm21966_vm14, %v13657_v47  ;;  %v13626_v36 = vmul.f32 %v16802_v41, %v13589_v28 }
0x11fa   : > { %16073 = vmatmul.mubr.msk.f32.gmra.mrb[186].mxu1 %vm21967_vm1, %v13658_v61  ;;  %v13660_v22 = vadd.f32 %v21241_v52, %v13628_v9 }
0x11fb   : > { %v16804_v33 = vpop.eup %16803  ;;  %v13659_v32 = vadd.f32 %v21241_v52, %v13626_v36  ;;  %16176 = vmatpush3.bf16.msra.mxu0 %v16173_v23 }
0x11fc   : > { %v16806_v10 = vpop.eup %16805  ;;  %v13632_v16 = vmul.f32 %v16804_v33, %v13592_v39  ;;  %16178 = vmatprep.subr.bf16.mxu0 %v16177_v62 }
0x11fd   : > { %16075 = vmatprep.mubr.msk.f32.mxu1 %vm21968_vm5, %v13659_v32  ;;  %v13630_v55 = vmul.f32 %v16806_v10, %v13591_v42 }
0x11fe   : > { %16076 = vmatmul.mubr.msk.f32.gmra.mrb[188].mxu1 %vm21969_vm6, %v13660_v22  ;;  %v13662_v31 = vadd.f32 %v21241_v52, %v13632_v16 }
0x11ff   : > { %v13661_v56 = vadd.f32 %v21241_v52, %v13630_v55  ;;  %16180 = vmatpush3.bf16.msra.mxu0 %v16177_v62 }
0x1201   : > { %16078 = vmatprep.mubr.msk.f32.mxu1 %vm21970_vm8, %v13661_v56 }
0x1202   : > { %16079 = vmatmul.mubr.msk.f32.gmra.mrb[190].mxu1 %vm21971_vm12, %v13662_v31 }
0x1256   : > { %v13432_v59 = vpop.xlane.xlu1 %13431 }
0x1257   : > { %v13460_v46 = vmul.f32 0.032258064, %v13432_v59  ;;  %v13429_v6 = vpop.xlane.xlu0 %13428 }
0x1258   : > { %v13459_v50 = vmul.f32 0.032258064, %v13429_v6 }
0x1259   : > { %16807 = vrsqrt.f32 %v13460_v46  ;;  %vm13532_vm10 = vcmp.eq.f32.partialorder %v13460_v46, inf  ;;  %vm13534_vm15 = vcmp.eq.f32.partialorder %v13460_v46, 0.0  ;;  %v13535_v33 = vand.u32 2147483648, %v13460_v46 }
0x125a   : > { %16809 = vrsqrt.f32 %v13459_v50  ;;  %v13438_v34 = vpop.xlane.xlu1 %13437  ;;  %vm13525_vm2 = vcmp.eq.f32.partialorder %v13459_v50, inf  ;;  %vm13527_vm0 = vcmp.eq.f32.partialorder %v13459_v50, 0.0  ;;  %v13528_v16 = vand.u32 2147483648, %v13459_v50 }
0x125b   : > { %v13462_v43 = vmul.f32 0.032258064, %v13438_v34  ;;  %v13435_v29 = vpop.xlane.xlu0 %13434 }
0x125c   : > { %v13461_v45 = vmul.f32 0.032258064, %v13435_v29 }
0x125d   : > { %16811 = vrsqrt.f32 %v13462_v43  ;;  %vm13546_vm13 = vcmp.eq.f32.partialorder %v13462_v43, inf  ;;  %vm13548_vm3 = vcmp.eq.f32.partialorder %v13462_v43, 0.0  ;;  %v13549_v11 = vand.u32 2147483648, %v13462_v43 }
0x125e   : > { %16813 = vrsqrt.f32 %v13461_v45  ;;  %v13444_v26 = vpop.xlane.xlu1 %13443  ;;  %vm13539_vm7 = vcmp.eq.f32.partialorder %v13461_v45, inf  ;;  %vm13541_vm9 = vcmp.eq.f32.partialorder %v13461_v45, 0.0  ;;  %v13542_v17 = vand.u32 2147483648, %v13461_v45 }
0x125f   : > { %v13464_v51 = vmul.f32 0.032258064, %v13444_v26  ;;  %v13441_v28 = vpop.xlane.xlu0 %13440 }
0x1260   : > { %v13463_v47 = vmul.f32 0.032258064, %v13441_v28 }
0x1261   : > { %16815 = vrsqrt.f32 %v13464_v51  ;;  %vm13560_vm11 = vcmp.eq.f32.partialorder %v13464_v51, inf  ;;  %vm13562_vm4 = vcmp.eq.f32.partialorder %v13464_v51, 0.0  ;;  %v13563_v34 = vand.u32 2147483648, %v13464_v51 }
0x1262   : > { %16817 = vrsqrt.f32 %v13463_v47  ;;  %v13450_v36 = vpop.xlane.xlu1 %13449  ;;  %vm13553_vm14 = vcmp.eq.f32.partialorder %v13463_v47, inf  ;;  %vm13555_vm1 = vcmp.eq.f32.partialorder %v13463_v47, 0.0 }
0x1263   : > { %v16808_v41 = vpop.eup %16807  ;;  %v13447_v39 = vpop.xlane.xlu0 %13446  ;;  %v13466_v32 = vmul.f32 0.032258064, %v13450_v36 }
0x1264   : > { %v16810_v61 = vpop.eup %16809  ;;  %v13531_v9 = vmul.f32 %v16808_v41, %v13460_v46  ;;  %v21272_v10 = vmul.f32 0.032258064, %v13447_v39 }
0x1265   : > { %v13524_v42 = vmul.f32 %v16810_v61, %v13459_v50  ;;  %16819 = vrsqrt.f32 %v13466_v32  ;;  %vm13574_vm5 = vcmp.eq.f32.partialorder %v13466_v32, inf  ;;  %vm13576_vm6 = vcmp.eq.f32.partialorder %v13466_v32, 0.0 }
0x1266   : > { %v13533_v22 = vsel %vm13532_vm10, %v13460_v46, %v13531_v9  ;;  %16821 = vrsqrt.f32 %v21272_v10  ;;  %vm13567_vm8 = vcmp.eq.f32.partialorder %v21272_v10, inf  ;;  %vm13569_vm12 = vcmp.eq.f32.partialorder %v21272_v10, 0.0 }
0x1267   : > { %v16812_v55 = vpop.eup %16811  ;;  %v13536_v56 = vsel %vm13534_vm15, %v13535_v33, %v13533_v22  ;;  %v13526_v31 = vsel %vm13525_vm2, %v13459_v50, %v13524_v42  ;;  %v13577_v22 = vand.u32 2147483648, %v13466_v32  ;;  %vm21972_vm10 = vcmask 261120  }
0x1268   : > { %v16814_v0 = vpop.eup %16813  ;;  %v13529_v37 = vsel %vm13527_vm0, %v13528_v16, %v13526_v31  ;;  %v13545_v15 = vmul.f32 %v16812_v55, %v13462_v43  ;;  %v13610_v23 = vadd.f32 1e-06, %v13536_v56  ;;  %v13593_v55 = vmul.f32 %v21214_v53, %v21165_v63  ;;  %vm21973_vm15 = vmmov %vm21972_vm10 }
0x1269   : > { %v13538_v21 = vmul.f32 %v16814_v0, %v13461_v45  ;;  %v13609_v40 = vadd.f32 1e-06, %v13529_v37  ;;  %v13594_v0 = vmul.f32 %v21214_v53, %v21162_v60  ;;  %vm21974_vm2 = vmmov %vm21972_vm10 }
0x126a   : > { %v13547_v27 = vsel %vm13546_vm13, %v13462_v43, %v13545_v15  ;;  %v13556_v43 = vand.u32 2147483648, %v13463_v47  ;;  %vm21975_vm0 = vmmov %vm21974_vm2 }
0x126b   : > { %v16816_v14 = vpop.eup %16815  ;;  %v13550_v2 = vsel %vm13548_vm3, %v13549_v11, %v13547_v27  ;;  %v13540_v62 = vsel %vm13539_vm7, %v13461_v45, %v13538_v21  ;;  %16823 = vrcp.f32 %v13609_v40  ;;  %v13596_v11 = vmul.f32 %v21214_v53, %v21172_v13  ;;  %vm21976_vm13 = vmmov %vm21975_vm0 }
0x126c   : > { %v16818_v59 = vpop.eup %16817  ;;  %v13543_v46 = vsel %vm13541_vm9, %v13542_v17, %v13540_v62  ;;  %v13559_v6 = vmul.f32 %v16816_v14, %v13464_v51  ;;  %v13612_v50 = vadd.f32 1e-06, %v13550_v2  ;;  %16825 = vrcp.f32 %v13610_v23  ;;  %vm21977_vm3 = vmmov %vm21975_vm0 }
0x126d   : > { %v13552_v29 = vmul.f32 %v16818_v59, %v13463_v47  ;;  %v13611_v26 = vadd.f32 1e-06, %v13543_v46  ;;  %v13595_v17 = vmul.f32 %v21214_v53, %v21176_v38  ;;  %v13598_v59 = vmul.f32 %v21214_v53, %v21184_v3  ;;  %vm21978_vm7 = vmmov %vm21975_vm0 }
0x126e   : > { %v13561_v28 = vsel %vm13560_vm11, %v13464_v51, %v13559_v6  ;;  %16827 = vrcp.f32 %v13612_v50  ;;  %v13597_v38 = vmul.f32 %v21214_v53, %v21188_v49  ;;  %v13600_v3 = vmul.f32 %v21214_v53, %v21196_v18  ;;  %vm21979_vm9 = vmmov %vm21975_vm0  ;;  %v14751_v18 = vld [vmem:[#allocation26] ss:$0 sm:$0xff] }
0x126f   : > { %v13564_v41 = vsel %vm13562_vm4, %v13563_v34, %v13561_v28  ;;  %v13554_v61 = vsel %vm13553_vm14, %v13463_v47, %v13552_v29  ;;  %16829 = vrcp.f32 %v13611_v26  ;;  %v16820_v36 = vpop.eup %16819  ;;  %v13570_v47 = vand.u32 2147483648, %v21272_v10  ;;  %vm21980_vm4 = vmmov %vm21975_vm0 }
0x1270   : > { %v13557_v45 = vsel %vm13555_vm1, %v13556_v43, %v13554_v61  ;;  %v13614_v9 = vadd.f32 1e-06, %v13564_v41  ;;  %v13573_v33 = vmul.f32 %v16820_v36, %v13466_v32  ;;  %v16822_v42 = vpop.eup %16821  ;;  %v13599_v43 = vmul.f32 %v21214_v53, %v21200_v19  ;;  %vm21981_vm14 = vmmov %vm21975_vm0 }
0x1271   : > { %v13613_v39 = vadd.f32 1e-06, %v13557_v45  ;;  %v13566_v51 = vmul.f32 %v16822_v42, %v21272_v10  ;;  %vm13906_vm11 = vcmask 523264   ;;  %vm21982_vm1 = vmmov %vm21975_vm0 }
0x1272   : > { %16831 = vrcp.f32 %v13614_v9  ;;  %v13575_v16 = vsel %vm13574_vm5, %v13466_v32, %v13573_v33  ;;  %vm21983_vm5 = vmmov %vm21975_vm0 }
0x1273   : > { %16833 = vrcp.f32 %v13613_v39  ;;  %v13578_v56 = vsel %vm13576_vm6, %v13577_v22, %v13575_v16  ;;  %v13568_v15 = vsel %vm13567_vm8, %v21272_v10, %v13566_v51  ;;  %vm21984_vm6 = vmmov %vm21975_vm0 }
0x1274   : > { %v13616_v37 = vadd.f32 1e-06, %v13578_v56  ;;  %v13571_v21 = vsel %vm13569_vm12, %v13570_v47, %v13568_v15  ;;  %vm21985_vm8 = vmmov %vm21975_vm0 }
0x1275   : > { %v16824_v31 = vpop.eup %16823  ;;  %v13615_v40 = vadd.f32 1e-06, %v13571_v21  ;;  %vm21986_vm12 = vmmov %vm21975_vm0 }
0x1276   : > { %v16826_v32 = vpop.eup %16825  ;;  %v13634_v63 = vmul.f32 %v16824_v31, %v13593_v55  ;;  %16835 = vrcp.f32 %v13616_v37 }
0x1277   : > { %v13636_v23 = vmul.f32 %v16826_v32, %v13594_v0  ;;  %16837 = vrcp.f32 %v13615_v40 }
0x1278   : > { %v16828_v27 = vpop.eup %16827  ;;  %v13663_v60 = vadd.f32 %v21241_v52, %v13634_v63 }
0x1279   : > { %v16830_v14 = vpop.eup %16829  ;;  %v13664_v2 = vadd.f32 %v21241_v52, %v13636_v23  ;;  %v13640_v10 = vmul.f32 %v16828_v27, %v13596_v11 }
0x127a   : > { %v13638_v62 = vmul.f32 %v16830_v14, %v13595_v17  ;;  %16081 = vmatprep.mubr.msk.f32.mxu1 %vm21972_vm10, %v13663_v60  ;;  %vm21987_vm10 = vmmov %vm21975_vm0 }
0x127b   : > { %16082 = vmatmul.mubr.msk.f32.gmra.mrb[192].mxu1 %vm21973_vm15, %v13664_v2  ;;  %v13666_v50 = vadd.f32 %v21241_v52, %v13640_v10  ;;  %vm21988_vm15 = vmmov %vm21975_vm0 }
0x127c   : > { %v16832_v13 = vpop.eup %16831  ;;  %v13665_v46 = vadd.f32 %v21241_v52, %v13638_v62 }
0x127d   : > { %v16834_v6 = vpop.eup %16833  ;;  %v13644_v29 = vmul.f32 %v16832_v13, %v13598_v59 }
0x127e   : > { %16084 = vmatprep.mubr.msk.f32.mxu1 %vm21974_vm2, %v13665_v46  ;;  %v13642_v34 = vmul.f32 %v16834_v6, %v13597_v38  ;;  %vm21989_vm2 = vmmov %vm21975_vm0 }
0x127f   : > { %16085 = vmatmul.mubr.msk.f32.gmra.mrb[194].mxu1 %vm21975_vm0, %v13666_v50  ;;  %v13668_v49 = vadd.f32 %v21241_v52, %v13644_v29 }
0x1280   : > { %v13667_v26 = vadd.f32 %v21241_v52, %v13642_v34  ;;  %v16836_v28 = vpop.eup %16835 }
0x1281   : > { %v16838_v41 = vpop.eup %16837  ;;  %v13648_v61 = vmul.f32 %v16836_v28, %v13600_v3 }
0x1282   : > { %16087 = vmatprep.mubr.msk.f32.mxu1 %vm21976_vm13, %v13667_v26  ;;  %v13646_v45 = vmul.f32 %v16838_v41, %v13599_v43  ;;  %vm21990_vm13 = vmmov %vm21975_vm0 }
0x1283   : > { %16088 = vmatmul.mubr.msk.f32.gmra.mrb[196].mxu1 %vm21977_vm3, %v13668_v49  ;;  %v13670_v36 = vadd.f32 %v21241_v52, %v13648_v61  ;;  %vm21991_vm3 = vmmov %vm21975_vm0 }
0x1284   : > { %v13669_v9 = vadd.f32 %v21241_v52, %v13646_v45 }
0x1286   : > { %16090 = vmatprep.mubr.msk.f32.mxu1 %vm21978_vm7, %v13669_v9  ;;  %vm21992_vm7 = vmmov %vm21975_vm0 }
0x1287   : > { %16091 = vmatmul.mubr.msk.f32.gmra.mrb[198].mxu1 %vm21979_vm9, %v13670_v36  ;;  %vm21994_vm9 = vmmov %vm21975_vm0 }
0x12c9   : > { %v16071_v39 = vpop.f32.mrb[184].mxu1 }
0x12ca   : > { %v13802_v33 = vadd.f32 %v16071_v39, %v14751_v18  ;;  %v13796_v42 = vpop.f32.mrb[185].mxu1 }
0x12cb   : > { %v13797_v22 = vadd.f32 %v14751_v18, %v13796_v42 }
0x12cc   : > { %v13876_v16 = vmax.f32 %v13802_v33, 0.0  ;;  %v21328_v33 = vld [vmem:[#allocation29] ss:$0 sm:$0xff] }
0x12cd   : > { %v13875_v19 = vmax.f32 %v13797_v22, 0.0  ;;  %v16074_v53 = vpop.f32.mrb[186].mxu1 }
0x12ce   : > { %v13812_v51 = vadd.f32 %v16074_v53, %v14751_v18  ;;  %v13806_v55 = vpop.f32.mrb[187].mxu1 }
0x12cf   : > { %v13807_v56 = vadd.f32 %v14751_v18, %v13806_v55  ;;  %16109 = vmatprep.mubr.msk.f32.mxu0 %vm13906_vm11, %v13875_v19 }
0x12d0   : > { %16110 = vmatmul.mubr.msk.f32.vlgmr.msra.gmra.mrb[144].mxu0 %vm13906_vm11, %v13876_v16  ;;  %v13878_v31 = vmax.f32 %v13812_v51, 0.0 }
0x12d1   : > { %v13877_v52 = vmax.f32 %v13807_v56, 0.0  ;;  %v16077_v47 = vpop.f32.mrb[188].mxu1 }
0x12d2   : > { %v13822_v0 = vadd.f32 %v16077_v47, %v14751_v18  ;;  %v13816_v37 = vpop.f32.mrb[189].mxu1 }
0x12d3   : > { %v13817_v15 = vadd.f32 %v14751_v18, %v13816_v37  ;;  %16112 = vmatprep.mubr.msk.f32.mxu0 %vm13906_vm11, %v13877_v52 }
0x12d4   : > { %16113 = vmatmul.mubr.msk.f32.gmra.mrb[146].mxu0 %vm13906_vm11, %v13878_v31  ;;  %v13880_v21 = vmax.f32 %v13822_v0, 0.0 }
0x12d5   : > { %v13879_v32 = vmax.f32 %v13817_v15, 0.0  ;;  %v16080_v11 = vpop.f32.mrb[190].mxu1 }
0x12d6   : > { %v13832_v63 = vadd.f32 %v16080_v11, %v14751_v18  ;;  %v13826_v27 = vpop.f32.mrb[191].mxu1 }
0x12d7   : > { %v13827_v17 = vadd.f32 %v14751_v18, %v13826_v27  ;;  %16115 = vmatprep.mubr.msk.f32.mxu0 %vm13906_vm11, %v13879_v32 }
0x12d8   : > { %16116 = vmatmul.mubr.msk.f32.gmra.mrb[148].mxu0 %vm13906_vm11, %v13880_v21  ;;  %v13882_v23 = vmax.f32 %v13832_v63, 0.0 }
0x12d9   : > { %v13881_v40 = vmax.f32 %v13827_v17, 0.0 }
0x12db   : > { %16118 = vmatprep.mubr.msk.f32.mxu0 %vm13906_vm11, %v13881_v40 }
0x12dc   : > { %16119 = vmatmul.mubr.msk.f32.gmra.mrb[150].mxu0 %vm13906_vm11, %v13882_v23 }
0x134e   : > { %v16083_v14 = vpop.f32.mrb[192].mxu1 }
0x134f   : > { %v13842_v60 = vadd.f32 %v16083_v14, %v14751_v18  ;;  %v13836_v2 = vpop.f32.mrb[193].mxu1 }
0x1350   : > { %v13837_v62 = vadd.f32 %v14751_v18, %v13836_v2 }
0x1351   : > { %v13884_v59 = vmax.f32 %v13842_v60, 0.0 }
0x1352   : > { %v13883_v10 = vmax.f32 %v13837_v62, 0.0  ;;  %v16086_v13 = vpop.f32.mrb[194].mxu1 }
0x1353   : > { %v13852_v38 = vadd.f32 %v16086_v13, %v14751_v18  ;;  %v13846_v46 = vpop.f32.mrb[195].mxu1 }
0x1354   : > { %v13847_v6 = vadd.f32 %v14751_v18, %v13846_v46  ;;  %16121 = vmatprep.mubr.msk.f32.mxu0 %vm13906_vm11, %v13883_v10 }
0x1355   : > { %16122 = vmatmul.mubr.msk.f32.gmra.mrb[152].mxu0 %vm13906_vm11, %v13884_v59  ;;  %v13886_v29 = vmax.f32 %v13852_v38, 0.0 }
0x1356   : > { %v13885_v50 = vmax.f32 %v13847_v6, 0.0  ;;  %v16089_v34 = vpop.f32.mrb[196].mxu1 }
0x1357   : > { %v13862_v26 = vadd.f32 %v16089_v34, %v14751_v18  ;;  %v13856_v28 = vpop.f32.mrb[197].mxu1 }
0x1358   : > { %v13857_v3 = vadd.f32 %v14751_v18, %v13856_v28  ;;  %16124 = vmatprep.mubr.msk.f32.mxu0 %vm13906_vm11, %v13885_v50 }
0x1359   : > { %16125 = vmatmul.mubr.msk.f32.gmra.mrb[154].mxu0 %vm13906_vm11, %v13886_v29  ;;  %v13888_v43 = vmax.f32 %v13862_v26, 0.0 }
0x135a   : > { %v13887_v49 = vmax.f32 %v13857_v3, 0.0  ;;  %v16092_v41 = vpop.f32.mrb[198].mxu1 }
0x135b   : > { %v13872_v61 = vadd.f32 %v16092_v41, %v14751_v18  ;;  %v13866_v45 = vpop.f32.mrb[199].mxu1 }
0x135c   : > { %16127 = vmatprep.mubr.msk.f32.mxu0 %vm13906_vm11, %v13887_v49  ;;  %v13867_v9 = vadd.f32 %v14751_v18, %v13866_v45 }
0x135d   : > { %16128 = vmatmul.mubr.msk.f32.gmra.mrb[156].mxu0 %vm13906_vm11, %v13888_v43  ;;  %v13890_v39 = vmax.f32 %v13872_v61, 0.0 }
0x135e   : > { %v13889_v36 = vmax.f32 %v13867_v9, 0.0 }
0x1360   : > { %16130 = vmatprep.mubr.msk.f32.mxu0 %vm13906_vm11, %v13889_v36 }
0x1361   : > { %16131 = vmatmul.mubr.msk.f32.gmra.mrb[158].mxu0 %vm13906_vm11, %v13890_v39  ;;  %vm21995_vm11 = vmmov %vm21975_vm0 }
0x13a3   : > { %v16111_v42 = vpop.f32.mrb[144].mxu0 }
0x13a4   : > { %v14027_v22 = vadd.f32 %v16111_v42, %v21328_v33  ;;  %v14021_v19 = vpop.f32.mrb[145].mxu0 }
0x13a5   : > { %v14022_v53 = vadd.f32 %v21328_v33, %v14021_v19 }
0x13a6   : > { %v14101_v16 = vadd.f32 %v14027_v22, %v21012_v57 }
0x13a7   : > { %v14100_v51 = vadd.f32 %v14022_v53, %v21015_v25  ;;  %v16114_v55 = vpop.f32.mrb[146].mxu0 }
0x13a8   : > { %14117 = vst.msk [vmem:[%s21336_s8 + $0x8] sm:$0xff] %vm21980_vm4, %v14101_v16  ;;  %v14037_v18 = vadd.f32 %v16114_v55, %v21328_v33  ;;  %v14031_v56 = vpop.f32.mrb[147].mxu0 }
0x13a9   : > { %14116 = vst.msk [vmem:[%s21336_s8] sm:$0xff] %vm21981_vm14, %v14100_v51  ;;  %v14032_v57 = vadd.f32 %v21328_v33, %v14031_v56 }
0x13aa   : > { %v14103_v25 = vadd.f32 %v14037_v18, %v21024_v44 }
0x13ab   : > { %v14102_v52 = vadd.f32 %v14032_v57, %v21027_v12  ;;  %v16117_v47 = vpop.f32.mrb[148].mxu0 }
0x13ac   : > { %14119 = vst.msk [vmem:[%s21336_s8 + $0x18] sm:$0xff] %vm21982_vm1, %v14103_v25  ;;  %v14047_v31 = vadd.f32 %v16117_v47, %v21328_v33  ;;  %v14041_v0 = vpop.f32.mrb[149].mxu0 }
0x13ad   : > { %14118 = vst.msk [vmem:[%s21336_s8 + $0x10] sm:$0xff] %vm21983_vm5, %v14102_v52  ;;  %v14042_v37 = vadd.f32 %v21328_v33, %v14041_v0 }
0x13ae   : > { %v14105_v15 = vadd.f32 %v14047_v31, %v21036_v5 }
0x13af   : > { %v14104_v32 = vadd.f32 %v14042_v37, %v21039_v35  ;;  %v16120_v11 = vpop.f32.mrb[150].mxu0 }
0x13b0   : > { %14121 = vst.msk [vmem:[%s21336_s8 + $0x28] sm:$0xff] %vm21984_vm6, %v14105_v15  ;;  %v14057_v44 = vadd.f32 %v16120_v11, %v21328_v33  ;;  %v14051_v12 = vpop.f32.mrb[151].mxu0 }
0x13b1   : > { %14120 = vst.msk [vmem:[%s21336_s8 + $0x20] sm:$0xff] %vm21985_vm8, %v14104_v32  ;;  %v14052_v21 = vadd.f32 %v21328_v33, %v14051_v12 }
0x13b2   : > { %v14107_v63 = vadd.f32 %v14057_v44, %v21048_v7 }
0x13b3   : > { %v14106_v27 = vadd.f32 %v14052_v21, %v21051_v4 }
0x13b4   : > { %14123 = vst.msk [vmem:[%s21336_s8 + $0x38] sm:$0xff] %vm21986_vm12, %v14107_v63 }
0x13b5   : > { %14122 = vst.msk [vmem:[%s21336_s8 + $0x30] sm:$0xff] %vm21987_vm10, %v14106_v27 }
0x1428   : > { %v16123_v5 = vpop.f32.mrb[152].mxu0 }
0x1429   : > { %v14067_v35 = vadd.f32 %v16123_v5, %v21328_v33  ;;  %v14061_v17 = vpop.f32.mrb[153].mxu0 }
0x142a   : > { %v14062_v40 = vadd.f32 %v21328_v33, %v14061_v17 }
0x142b   : > { %v14109_v23 = vadd.f32 %v14067_v35, %v21062_v54 }
0x142c   : > { %v14108_v14 = vadd.f32 %v14062_v40, %v21066_v48  ;;  %v16126_v60 = vpop.f32.mrb[154].mxu0 }
0x142d   : > { %14125 = vst.msk [vmem:[%s21336_s8 + $0x48] sm:$0xff] %vm21988_vm15, %v14109_v23  ;;  %v14077_v7 = vadd.f32 %v16126_v60, %v21328_v33  ;;  %v14071_v4 = vpop.f32.mrb[155].mxu0 }
0x142e   : > { %14124 = vst.msk [vmem:[%s21336_s8 + $0x40] sm:$0xff] %vm21989_vm2, %v14108_v14  ;;  %v14072_v2 = vadd.f32 %v21328_v33, %v14071_v4 }
0x142f   : > { %v14111_v62 = vadd.f32 %v14077_v7, %v21076_v20 }
0x1430   : > { %v14110_v54 = vadd.f32 %v14072_v2, %v21080_v30  ;;  %v16129_v10 = vpop.f32.mrb[156].mxu0 }
0x1431   : > { %14127 = vst.msk [vmem:[%s21336_s8 + $0x58] sm:$0xff] %vm21975_vm0, %v14111_v62  ;;  %v14087_v48 = vadd.f32 %v16129_v10, %v21328_v33  ;;  %v14081_v13 = vpop.f32.mrb[157].mxu0 }
0x1432   : > { %14126 = vst.msk [vmem:[%s21336_s8 + $0x50] sm:$0xff] %vm21990_vm13, %v14110_v54  ;;  %v14082_v59 = vadd.f32 %v21328_v33, %v14081_v13 }
0x1433   : > { %v14113_v38 = vadd.f32 %v14087_v48, %v21090_v58 }
0x1434   : > { %v14112_v46 = vadd.f32 %v14082_v59, %v21094_v24  ;;  %v16132_v20 = vpop.f32.mrb[158].mxu0 }
0x1435   : > { %14129 = vst.msk [vmem:[%s21336_s8 + $0x68] sm:$0xff] %vm21991_vm3, %v14113_v38  ;;  %v14097_v30 = vadd.f32 %v16132_v20, %v21328_v33  ;;  %v14091_v6 = vpop.f32.mrb[159].mxu0 }
0x1436   : > { %14128 = vst.msk [vmem:[%s21336_s8 + $0x60] sm:$0xff] %vm21992_vm7, %v14112_v46  ;;  %v14092_v50 = vadd.f32 %v21328_v33, %v14091_v6 }
0x1437   : > { %v14115_v34 = vadd.f32 %v14097_v30, %v21110_v1 }
0x1438   : > { %v14114_v58 = vadd.f32 %v14092_v50, %v21113_v8 }
0x1439   : > { %14131 = vst.msk [vmem:[%s21336_s8 + $0x78] sm:$0xff] %vm21994_vm9, %v14115_v34 }
0x143a   : > { %14130 = vst.msk [vmem:[%s21336_s8 + $0x70] sm:$0xff] %vm21995_vm11, %v14114_v58 }
0x143b   : > { %17376 = shalt.err (!%p17373_p7)
}
0x143c   : > { %s17377_s28 = scalar_lea.hbm %s21398_s18, 2048  ;;  %s17381_s27 = scalar_lea.hbm %s21993_s7, 4096 }
0x143d   : > { %p17378_p9 = scmp.ne.s32.totalorder %s21398_s18, %s17377_s28  ;;  %p17382_p0 = scmp.lt.u32.totalorder %s21398_s18, %s21993_s7 }
0x143e   : > { %p17383_p4 = scmp.lt.u32.totalorder %s17381_s27, %s17377_s28  ;;  %p17385_p1 = scmp.lt.u32.totalorder %s17377_s28, %s21398_s18 }
0x143f   : > { %p17379_p8 = pnand %p17378_p9, %p21996_p3 }
0x1440   : > { %p17384_p13 = por %p17383_p4, %p17382_p0 }
0x1441   : > { %p17380_p12 = pneg %p17379_p8 }
0x1442   : > { %p17386_p6 = por %p17385_p1, %p17384_p13 }
0x1444   : > { %p17387_p2 = pnand %p17386_p6, %p17380_p12 }
0x1446   : > { %17390 = shalt.err (!%p17387_p2)
}
0x1447   : > { %s17500_s8 = smov 128   ;;  %s17501_s10 = smov 8  }
0x1448   : > { %16299 = dma.vmem_to_hbm [thread:$0]  (%p21996_p3), %s21400_s3, 2048, %s21398_s18, %s14133_s22, %s17500_s8, %s17500_s8, %s17501_s10  }
0x1449 PF: > { %s21997_s12 = sld [smem:[#allocation44_spill]]  ;;  %s21998_s26 = sld [smem:[#allocation47_spill]] }
0x144a   : > { %p21999_p10 = scmp.ne.s32.totalorder %s21655_s21, 0 }
0x144f   : > { %s14161_s19 = sand.u32 1, %s21997_s12   ;;  %p22000_p11 = scmp.ge.s32.totalorder %s21998_s26, 2 }
0x1450   : > { %s14162_s5 = scalar_lea.sflag [#allocation4], %s14161_s19 }
0x1451   : > { %p16358_p5 = pnand %p22000_p11, %p21999_p10 }
0x1453   : > { %17452 = dma.done.wait (!%p16358_p5), %s14162_s5, 2048  }
0x1454   : > { %17454 = vsyncadd (!%p16358_p5), %s14162_s5, 4294965248  ;;  %s22001_s27 = sld [smem:[#allocation45_spill]]  ;;  %s22002_s28 = sld [smem:[#allocation46_spill]] }
0x1455   : > { %p42_p7 = scmp.ge.s32.totalorder %s17977_s24, 4   ;;  %s22003_s30 = smov %s17977_s24 }
0x1457   :  { %44 = sbr.rel (!%p42_p7) target bundleno = 30 (0x1e), region = 217 }
0x145e   :  { %14167 = vsyncpa [#allocation3], 1 }
0x145f   :  { %14169 = vsyncpa [#allocation3 + $0x1], 1 }
0x1460   :  { %14170 = vsyncpa [#allocation6], 1 }
0x1461   :  { %14172 = vsyncpa [#allocation6 + $0x1], 1 }
0x1462   :  { %14173 = vsyncpa [#allocation9], 1 }
0x1463   :  { %14174 = vsyncpa [#allocation12], 1 }
0x1464   :  { %14175 = vsyncpa [#allocation15], 1 }
0x1465   :  { %14176 = vsyncpa [#allocation18], 1 }
0x1466   :  { %14177 = vsyncpa [#allocation21], 1 }
0x1467   :  { %14178 = vsyncpa [#allocation24], 1 }
0x1468   :  { %14179 = vsyncpa [#allocation27], 1 }
0x1469   :  { %14180 = vsyncpa [#allocation30], 1 }
0x146a   :  { %14181 = vsyncpa [#allocation4], 1 }
0x146b   :  { %14183 = vsyncpa [#allocation4 + $0x1], 1 }

</bundles_post_ra>
